<compile_context>
chip_gen: v5e
topology: v5e:2x2
jax: 0.10.0
libtpu: 0.0.40
codegen_flags: <defaults>
</compile_context>

<pallas_src>
import functools

import numpy as np
import jax
import jax.numpy as jnp
from jax.experimental import pallas as pl
from jax.experimental.pallas import tpu as pltpu


CFG = [8, 'M', 16, 'M']                 # width_scale = 1
NUM_INPUT_FEATURES = 4
NUM_CLASSES = 10
EXPECTED_FEATURE_SHAPE = (2, 2)
HEAD_HIDDEN = 1024                      # head_type = 'VGG'


def _round_up(v, m):
    return ((v + m - 1) // m) * m


# ---------------------------------------------------------------------------
# The fused kernel
# ---------------------------------------------------------------------------

def _vgg_kernel(x_ref, w1_ref, b1_ref, w2_ref, b2_ref, m1mask_ref, gsel_ref,
                fc1_ref, fc1b_ref, fc2_ref, fc2b_ref, fc3_ref, fc3b_ref,
                o_ref, imc_ref, *, Nb, Wp, n_uv):
    """Whole VGG forward: 2x[conv3x3+ReLU -> maxpool2x2] -> avgpool -> 3x Linear.

    Activations are channel-major and lane-dense: (C, Fpad) with flat lane order
    (Y, X, n) over the zero-halo padded (Hp, Wp) grid; the batch rides in the lanes.
    Spatial downsampling is deferred: pooled values live on strided cosets of the
    full grid, so no O(F^2) selection matrices are ever needed and the only mask
    in the whole kernel is a single broadcast multiply.
    """
    F = x_ref.shape[1]

    def conv3x3_relu(src, w_ref_, b_ref_, step):
        # In-VMEM im2col: 9 lane-rolled tap copies -> ONE deep (K = 9*Cin) MXU matmul.
        # Zero-halo / coset-masked inputs make per-tap boundary masks unnecessary.
        cin = src.shape[0]
        for t in range(9):
            dy, dx = t // 3 - 1, t % 3 - 1
            d = (dy * Wp + dx) * Nb * step           # flat shift of this tap
            tap = src if d == 0 else pltpu.roll(src, shift=(-d) % F, axis=1)
            imc_ref[pl.ds(t * cin, cin), :] = tap
        imc = imc_ref[pl.ds(0, 9 * cin), :].astype(jnp.bfloat16)
        out = jnp.dot(w_ref_[...], imc, preferred_element_type=jnp.float32)
        return jnp.maximum(out + b_ref_[...], 0.0)   # bias (Cout, 1) broadcasts on lanes

    def neighbor_max(a, step):
        # max over the 2x2 (stride `step` in grid units) window anchored at each position
        m = jnp.maximum(a, pltpu.roll(a, shift=(F - step * Nb) % F, axis=1))
        return jnp.maximum(m, pltpu.roll(m, shift=(F - step * Wp * Nb) % F, axis=1))

    # conv1 + ReLU on the zero-halo padded grid
    a1 = conv3x3_relu(x_ref[...], w1_ref, b1_ref, step=1)            # (C1, F) f32
    # maxpool1: the valid pooled value for (oy, ox) now sits at padded coords
    # (2oy+1, 2ox+1); one mask multiply zeroes everything off that coset
    # (halo garbage / out-of-range positions), which also provides conv2's pad=1 zeros.
    p1 = neighbor_max(a1, step=1) * m1mask_ref[...]                  # (C1, F) f32
    # conv2 + ReLU on the same full grid with doubled tap shifts (pool stride folded in)
    a2 = conv3x3_relu(p1, w2_ref, b2_ref, step=2)                    # (C2, F) f32
    # maxpool2: valid value for (qy, qx) sits at (4qy+1, 4qx+1)
    m2 = neighbor_max(a2, step=2).astype(jnp.bfloat16)               # (C2, F) bf16

    # AdaptiveAvgPool2d((hh, ww)) + flatten + fc1 fused:
    #   gsel[uv] holds the 1/(kh*kw) average weights (per batch lane) for output cell uv,
    #   fc1 rows are pre-permuted host-side to (uv-major, channel-minor) order,
    #   so no transpose / reshape of the feature map is needed in-kernel.
    c2 = fc1_ref.shape[0] // n_uv
    acc = jnp.zeros((Nb, fc1_ref.shape[1]), jnp.float32)
    for uv in range(n_uv):
        sel = gsel_ref[uv]                                           # (Nb, F) bf16
        pooled = jax.lax.dot_general(sel, m2, (((1,), (1,)), ((), ())),
                                     preferred_element_type=jnp.float32)   # (Nb, C2)
        acc = acc + jnp.dot(pooled.astype(jnp.bfloat16),
                            fc1_ref[pl.ds(uv * c2, c2), :],
                            preferred_element_type=jnp.float32)
    h = jnp.maximum(acc + fc1b_ref[...], 0.0)                        # Dropout = identity (eval)
    h = jnp.dot(h.astype(jnp.bfloat16), fc2_ref[...],
                preferred_element_type=jnp.float32) + fc2b_ref[...]
    h = jnp.maximum(h, 0.0)
    out = jnp.dot(h.astype(jnp.bfloat16), fc3_ref[...],
                  preferred_element_type=jnp.float32) + fc3b_ref[...]
    o_ref[...] = out.astype(o_ref.dtype)


# ---------------------------------------------------------------------------
# Parameters: "torch-layout" raw params + packing into kernel layout
# ---------------------------------------------------------------------------

def init_raw_params(key):
    """Random parameters in PyTorch layout (Conv2d OIHW, Linear as (in, out) = W.T)."""
    raw = {}
    in_ch = NUM_INPUT_FEATURES
    idx = 0
    for v in CFG:
        if v == 'M':
            continue
        idx += 1
        key, kw_, kb_ = jax.random.split(key, 3)
        s = 1.0 / np.sqrt(in_ch * 9)
        raw[f'conv{idx}_w'] = jax.random.normal(kw_, (v, in_ch, 3, 3), jnp.float32) * s
        raw[f'conv{idx}_b'] = jax.random.normal(kb_, (v,), jnp.float32) * s
        in_ch = v
    hh, ww = EXPECTED_FEATURE_SHAPE
    feat = in_ch * hh * ww
    dims = [(feat, HEAD_HIDDEN), (HEAD_HIDDEN, HEAD_HIDDEN), (HEAD_HIDDEN, NUM_CLASSES)]
    for li, (fi, fo) in enumerate(dims, start=1):
        key, kw_, kb_ = jax.random.split(key, 3)
        s = 1.0 / np.sqrt(fi)
        raw[f'fc{li}_w'] = jax.random.normal(kw_, (fi, fo), jnp.float32) * s
        raw[f'fc{li}_b'] = jax.random.normal(kb_, (fo,), jnp.float32) * s
    return raw


def pack_params(raw):
    """Pack raw params into kernel layout (bf16 weights, im2col conv layout,
    fc1 rows permuted to (uv-major, channel-minor) order)."""
    p = {}
    idx = 1
    while f'conv{idx}_w' in raw:
        w = raw[f'conv{idx}_w']                       # (Cout, Cin, 3, 3)
        cout, cin = w.shape[0], w.shape[1]
        cin_pad = _round_up(cin, 8)                   # keep im2col rows 8-aligned
        wt = jnp.transpose(w, (2, 3, 0, 1)).reshape(9, cout, cin)   # tap t = ky*3+kx
        wt = jnp.pad(wt, ((0, 0), (0, 0), (0, cin_pad - cin)))
        p[f'conv{idx}_w'] = (jnp.transpose(wt, (1, 0, 2))
                             .reshape(cout, 9 * cin_pad).astype(jnp.bfloat16))
        p[f'conv{idx}_b'] = raw[f'conv{idx}_b'].reshape(cout, 1)
        idx += 1
    hh, ww = EXPECTED_FEATURE_SHAPE
    c2 = raw[f'conv{idx - 1}_w'].shape[0]
    # fold the (c, u, v) -> (uv-major, c-minor) feature relayout into fc1's rows
    perm = np.arange(c2 * hh * ww).reshape(c2, hh * ww).T.reshape(-1)
    # TODO(synk): int8 (v5e/v6e) / fp8-e4m3 (v7x) fc weights to cut the dominant HBM bytes
    p['fc1_w'] = raw['fc1_w'][perm, :].astype(jnp.bfloat16)
    p['fc2_w'] = raw['fc2_w'].astype(jnp.bfloat16)
    p['fc3_w'] = raw['fc3_w'].astype(jnp.bfloat16)
    for li in (1, 2, 3):
        p[f'fc{li}_b'] = raw[f'fc{li}_b'].reshape(1, -1)
    return p


# ---------------------------------------------------------------------------
# Forward pass (one pallas_call)
# ---------------------------------------------------------------------------

def vgg_forward(params, x):
    """x: (N, C, H, W) NCHW (PyTorch convention) -> logits (N, NUM_CLASSES)."""
    Nb, Cin, H, W = x.shape
    hh, ww = EXPECTED_FEATURE_SHAPE
    assert H % 4 == 0 and W % 4 == 0, "two 2x2 maxpools need H, W divisible by 4"
    assert (H // 4) % hh == 0 and (W // 4) % ww == 0, "adaptive avgpool needs exact division"
    kh, kw = (H // 4) // hh, (W // 4) // ww
    Hp, Wp = H + 2, W + 2
    cin1p = params['conv1_w'].shape[1] // 9
    cin2 = params['conv2_w'].shape[1] // 9
    F = Hp * Wp * Nb
    Fpad = _round_up(F, 128)                          # lane-align the flat spatial axis

    # channel-major, lane-dense, zero-halo activation layout: (C, Fpad), flat (Y, X, n)
    xt = jnp.transpose(x, (1, 2, 3, 0))                              # (Cin, H, W, Nb)
    xt = jnp.pad(xt, ((0, cin1p - Cin), (1, 1), (1, 1), (0, 0)))     # pad channels + halo
    xflat = jnp.pad(xt.reshape(cin1p, F), ((0, 0), (0, Fpad - F)))

    # host-built, shape-only constants (~14 KiB total; constant-folded under jit)
    idx = np.arange(Fpad)
    Yi = idx // (Wp * Nb)
    Xi = (idx // Nb) % Wp
    m1mask = (((Yi % 2 == 1) & (Yi < H) & (Xi % 2 == 1) & (Xi < W))
              .astype(np.float32).reshape(1, Fpad))
    gsel = np.zeros((hh * ww, Nb, Fpad), np.float32)
    for u in range(hh):
        for v in range(ww):
            for i in range(kh):
                for j in range(kw):
                    Y = 4 * (kh * u + i) + 1
                    X = 4 * (kw * v + j) + 1
                    for n in range(Nb):
                        gsel[u * ww + v, n, (Y * Wp + X) * Nb + n] = 1.0 / (kh * kw)

    kernel = functools.partial(_vgg_kernel, Nb=Nb, Wp=Wp, n_uv=hh * ww)
    return pl.pallas_call(
        kernel,
        out_shape=jax.ShapeDtypeStruct((Nb, NUM_CLASSES), jnp.float32),
        scratch_shapes=[pltpu.VMEM((9 * max(cin1p, cin2), Fpad), jnp.float32)],
    )(xflat, params['conv1_w'], params['conv1_b'],
      params['conv2_w'], params['conv2_b'],
      jnp.asarray(m1mask), jnp.asarray(gsel, jnp.bfloat16),
      params['fc1_w'], params['fc1_b'], params['fc2_w'], params['fc2_b'],
      params['fc3_w'], params['fc3_b'])


# ---------------------------------------------------------------------------
# Pure-JAX reference (f32, torch semantics) for a sanity check
# ---------------------------------------------------------------------------

def vgg_reference(raw, x):
    def conv(y, w, b):
        y = jax.lax.conv_general_dilated(
            y, w, (1, 1), ((1, 1), (1, 1)),
            dimension_numbers=('NCHW', 'OIHW', 'NCHW'))
        return jax.nn.relu(y + b.reshape(1, -1, 1, 1))

    def maxpool2(y):
        return jax.lax.reduce_window(y, -jnp.inf, jax.lax.max,
                                     (1, 1, 2, 2), (1, 1, 2, 2), 'VALID')

    y = maxpool2(conv(x, raw['conv1_w'], raw['conv1_b']))
    y = maxpool2(conv(y, raw['conv2_w'], raw['conv2_b']))
    hh, ww = EXPECTED_FEATURE_SHAPE
    kh, kw = y.shape[2] // hh, y.shape[3] // ww       # divisible => uniform avg pooling
    y = jax.lax.reduce_window(y, 0.0, jax.lax.add,
                              (1, 1, kh, kw), (1, 1, kh, kw), 'VALID') / (kh * kw)
    v = y.reshape(y.shape[0], -1)
    h = jax.nn.relu(v @ raw['fc1_w'] + raw['fc1_b'])
    h = jax.nn.relu(h @ raw['fc2_w'] + raw['fc2_b'])
    return h @ raw['fc3_w'] + raw['fc3_b']


# ---------------------------------------------------------------------------
if __name__ == "__main__":
    x = jax.random.normal(jax.random.PRNGKey(0),
                          (2, NUM_INPUT_FEATURES, 16, 16), jnp.float32)
    raw = init_raw_params(jax.random.PRNGKey(1))
    params = pack_params(raw)

    fwd = jax.jit(vgg_forward)
    out = jax.block_until_ready(fwd(params, x))
    assert out.shape == (2, NUM_CLASSES), out.shape
    assert bool(jnp.all(jnp.isfinite(out)))

    # loose check vs f32 reference (kernel uses bf16 weights/activations on the MXU)
    ref = vgg_reference(raw, x)
    err = float(jnp.max(jnp.abs(out - ref)))
    assert err < 0.15, f"max abs diff vs reference too large: {err}"

    print("KERNEL_OK")
</pallas_src>

<mosaic_0001>
module attributes {stable_mosaic.version = 11 : i64} {
  func.func @_vgg_kernel(%arg0: memref<8x768xf32, #tpu.memory_space<vmem>>, %arg1: memref<8x72xbf16, #tpu.memory_space<vmem>>, %arg2: memref<8x1xf32, #tpu.memory_space<vmem>>, %arg3: memref<16x72xbf16, #tpu.memory_space<vmem>>, %arg4: memref<16x1xf32, #tpu.memory_space<vmem>>, %arg5: memref<1x768xf32, #tpu.memory_space<vmem>>, %arg6: memref<4x2x768xbf16, #tpu.memory_space<vmem>>, %arg7: memref<64x1024xbf16, #tpu.memory_space<vmem>>, %arg8: memref<1x1024xf32, #tpu.memory_space<vmem>>, %arg9: memref<1024x1024xbf16, #tpu.memory_space<vmem>>, %arg10: memref<1x1024xf32, #tpu.memory_space<vmem>>, %arg11: memref<1024x10xbf16, #tpu.memory_space<vmem>>, %arg12: memref<1x10xf32, #tpu.memory_space<vmem>>, %arg13: memref<2x10xf32, #tpu.memory_space<vmem>>, %arg14: memref<72x768xf32, #tpu.memory_space<vmem>>) attributes {dimension_semantics = [], scalar_prefetch = 0 : i64, scratch_operands = 1 : i64, tpu.core_type = #tpu.core_type<tc>} {
    %c0 = arith.constant 0 : index
    %c0_0 = arith.constant 0 : index
    %0 = vector.load %arg0[%c0, %c0_0] : memref<8x768xf32, #tpu.memory_space<vmem>>, vector<8x768xf32>
    %c38_i32 = arith.constant 38 : i32
    %1 = tpu.dynamic_rotate %0 by %c38_i32 dim 1 : vector<8x768xf32>, i32 -> vector<8x768xf32>
    %c0_1 = arith.constant 0 : index
    %c0_2 = arith.constant 0 : index
    %2 = vector.load %arg14[%c0_1, %c0_2] : memref<72x768xf32, #tpu.memory_space<vmem>>, vector<8x768xf32>
    tpu.vector_store %arg14[%c0_1, %c0_2], %1 {strides = array<i32>} : memref<72x768xf32, #tpu.memory_space<vmem>>, vector<8x768xf32>,
    %c36_i32 = arith.constant 36 : i32
    %3 = tpu.dynamic_rotate %0 by %c36_i32 dim 1 : vector<8x768xf32>, i32 -> vector<8x768xf32>
    %c8 = arith.constant 8 : index
    %c0_3 = arith.constant 0 : index
    %4 = vector.load %arg14[%c8, %c0_3] : memref<72x768xf32, #tpu.memory_space<vmem>>, vector<8x768xf32>
    tpu.vector_store %arg14[%c8, %c0_3], %3 {strides = array<i32>} : memref<72x768xf32, #tpu.memory_space<vmem>>, vector<8x768xf32>,
    %c34_i32 = arith.constant 34 : i32
    %5 = tpu.dynamic_rotate %0 by %c34_i32 dim 1 : vector<8x768xf32>, i32 -> vector<8x768xf32>
    %c16 = arith.constant 16 : index
    %c0_4 = arith.constant 0 : index
    %6 = vector.load %arg14[%c16, %c0_4] : memref<72x768xf32, #tpu.memory_space<vmem>>, vector<8x768xf32>
    tpu.vector_store %arg14[%c16, %c0_4], %5 {strides = array<i32>} : memref<72x768xf32, #tpu.memory_space<vmem>>, vector<8x768xf32>,
    %c2_i32 = arith.constant 2 : i32
    %7 = tpu.dynamic_rotate %0 by %c2_i32 dim 1 : vector<8x768xf32>, i32 -> vector<8x768xf32>
    %c24 = arith.constant 24 : index
    %c0_5 = arith.constant 0 : index
    %8 = vector.load %arg14[%c24, %c0_5] : memref<72x768xf32, #tpu.memory_space<vmem>>, vector<8x768xf32>
    tpu.vector_store %arg14[%c24, %c0_5], %7 {strides = array<i32>} : memref<72x768xf32, #tpu.memory_space<vmem>>, vector<8x768xf32>,
    %c32 = arith.constant 32 : index
    %c0_6 = arith.constant 0 : index
    %9 = vector.load %arg14[%c32, %c0_6] : memref<72x768xf32, #tpu.memory_space<vmem>>, vector<8x768xf32>
    tpu.vector_store %arg14[%c32, %c0_6], %0 {strides = array<i32>} : memref<72x768xf32, #tpu.memory_space<vmem>>, vector<8x768xf32>,
    %c766_i32 = arith.constant 766 : i32
    %10 = tpu.dynamic_rotate %0 by %c766_i32 dim 1 : vector<8x768xf32>, i32 -> vector<8x768xf32>
    %c40 = arith.constant 40 : index
    %c0_7 = arith.constant 0 : index
    %11 = vector.load %arg14[%c40, %c0_7] : memref<72x768xf32, #tpu.memory_space<vmem>>, vector<8x768xf32>
    tpu.vector_store %arg14[%c40, %c0_7], %10 {strides = array<i32>} : memref<72x768xf32, #tpu.memory_space<vmem>>, vector<8x768xf32>,
    %c734_i32 = arith.constant 734 : i32
    %12 = tpu.dynamic_rotate %0 by %c734_i32 dim 1 : vector<8x768xf32>, i32 -> vector<8x768xf32>
    %c48 = arith.constant 48 : index
    %c0_8 = arith.constant 0 : index
    %13 = vector.load %arg14[%c48, %c0_8] : memref<72x768xf32, #tpu.memory_space<vmem>>, vector<8x768xf32>
    tpu.vector_store %arg14[%c48, %c0_8], %12 {strides = array<i32>} : memref<72x768xf32, #tpu.memory_space<vmem>>, vector<8x768xf32>,
    %c732_i32 = arith.constant 732 : i32
    %14 = tpu.dynamic_rotate %0 by %c732_i32 dim 1 : vector<8x768xf32>, i32 -> vector<8x768xf32>
    %c56 = arith.constant 56 : index
    %c0_9 = arith.constant 0 : index
    %15 = vector.load %arg14[%c56, %c0_9] : memref<72x768xf32, #tpu.memory_space<vmem>>, vector<8x768xf32>
    tpu.vector_store %arg14[%c56, %c0_9], %14 {strides = array<i32>} : memref<72x768xf32, #tpu.memory_space<vmem>>, vector<8x768xf32>,
    %c730_i32 = arith.constant 730 : i32
    %16 = tpu.dynamic_rotate %0 by %c730_i32 dim 1 : vector<8x768xf32>, i32 -> vector<8x768xf32>
    %c64 = arith.constant 64 : index
    %c0_10 = arith.constant 0 : index
    %17 = vector.load %arg14[%c64, %c0_10] : memref<72x768xf32, #tpu.memory_space<vmem>>, vector<8x768xf32>
    tpu.vector_store %arg14[%c64, %c0_10], %16 {strides = array<i32>} : memref<72x768xf32, #tpu.memory_space<vmem>>, vector<8x768xf32>,
    %c0_11 = arith.constant 0 : index
    %c0_12 = arith.constant 0 : index
    %18 = vector.load %arg14[%c0_11, %c0_12] : memref<72x768xf32, #tpu.memory_space<vmem>>, vector<72x768xf32>
    %19 = arith.truncf %18 : vector<72x768xf32> to vector<72x768xbf16>
    %c0_13 = arith.constant 0 : index
    %c0_14 = arith.constant 0 : index
    %20 = vector.load %arg1[%c0_13, %c0_14] : memref<8x72xbf16, #tpu.memory_space<vmem>>, vector<8x72xbf16>
    %cst = arith.constant dense<0.000000e+00> : vector<8x768xf32>
    %21 = tpu.matmul %20, %19, %cst {dimension_numbers = #tpu.dot_dimension_numbers<[1], [0], [0], [1], [0, 0, 1, 1], [], []>} : vector<8x72xbf16>, vector<72x768xbf16>, vector<8x768xf32> -> vector<8x768xf32>
    %c0_15 = arith.constant 0 : index
    %c0_16 = arith.constant 0 : index
    %22 = vector.load %arg2[%c0_15, %c0_16] : memref<8x1xf32, #tpu.memory_space<vmem>>, vector<8x1xf32>
    %23 = vector.broadcast %22 : vector<8x1xf32> to vector<8x768xf32>
    %24 = arith.addf %21, %23 : vector<8x768xf32>
    %cst_17 = arith.constant 0.000000e+00 : f32
    %25 = vector.broadcast %cst_17 : f32 to vector<8x768xf32>
    %26 = arith.maximumf %24, %25 : vector<8x768xf32>
    %c766_i32_18 = arith.constant 766 : i32
    %27 = tpu.dynamic_rotate %26 by %c766_i32_18 dim 1 : vector<8x768xf32>, i32 -> vector<8x768xf32>
    %28 = arith.maximumf %26, %27 : vector<8x768xf32>
    %c732_i32_19 = arith.constant 732 : i32
    %29 = tpu.dynamic_rotate %28 by %c732_i32_19 dim 1 : vector<8x768xf32>, i32 -> vector<8x768xf32>
    %30 = arith.maximumf %28, %29 : vector<8x768xf32>
    %c0_20 = arith.constant 0 : index
    %c0_21 = arith.constant 0 : index
    %31 = vector.load %arg5[%c0_20, %c0_21] : memref<1x768xf32, #tpu.memory_space<vmem>>, vector<1x768xf32>
    %32 = vector.broadcast %31 : vector<1x768xf32> to vector<8x768xf32>
    %33 = arith.mulf %30, %32 : vector<8x768xf32>
    %c76_i32 = arith.constant 76 : i32
    %34 = tpu.dynamic_rotate %33 by %c76_i32 dim 1 : vector<8x768xf32>, i32 -> vector<8x768xf32>
    %c0_22 = arith.constant 0 : index
    %c0_23 = arith.constant 0 : index
    %35 = vector.load %arg14[%c0_22, %c0_23] : memref<72x768xf32, #tpu.memory_space<vmem>>, vector<8x768xf32>
    tpu.vector_store %arg14[%c0_22, %c0_23], %34 {strides = array<i32>} : memref<72x768xf32, #tpu.memory_space<vmem>>, vector<8x768xf32>,
    %c72_i32 = arith.constant 72 : i32
    %36 = tpu.dynamic_rotate %33 by %c72_i32 dim 1 : vector<8x768xf32>, i32 -> vector<8x768xf32>
    %c8_24 = arith.constant 8 : index
    %c0_25 = arith.constant 0 : index
    %37 = vector.load %arg14[%c8_24, %c0_25] : memref<72x768xf32, #tpu.memory_space<vmem>>, vector<8x768xf32>
    tpu.vector_store %arg14[%c8_24, %c0_25], %36 {strides = array<i32>} : memref<72x768xf32, #tpu.memory_space<vmem>>, vector<8x768xf32>,
    %c68_i32 = arith.constant 68 : i32
    %38 = tpu.dynamic_rotate %33 by %c68_i32 dim 1 : vector<8x768xf32>, i32 -> vector<8x768xf32>
    %c16_26 = arith.constant 16 : index
    %c0_27 = arith.constant 0 : index
    %39 = vector.load %arg14[%c16_26, %c0_27] : memref<72x768xf32, #tpu.memory_space<vmem>>, vector<8x768xf32>
    tpu.vector_store %arg14[%c16_26, %c0_27], %38 {strides = array<i32>} : memref<72x768xf32, #tpu.memory_space<vmem>>, vector<8x768xf32>,
    %c4_i32 = arith.constant 4 : i32
    %40 = tpu.dynamic_rotate %33 by %c4_i32 dim 1 : vector<8x768xf32>, i32 -> vector<8x768xf32>
    %c24_28 = arith.constant 24 : index
    %c0_29 = arith.constant 0 : index
    %41 = vector.load %arg14[%c24_28, %c0_29] : memref<72x768xf32, #tpu.memory_space<vmem>>, vector<8x768xf32>
    tpu.vector_store %arg14[%c24_28, %c0_29], %40 {strides = array<i32>} : memref<72x768xf32, #tpu.memory_space<vmem>>, vector<8x768xf32>,
    %c32_30 = arith.constant 32 : index
    %c0_31 = arith.constant 0 : index
    %42 = vector.load %arg14[%c32_30, %c0_31] : memref<72x768xf32, #tpu.memory_space<vmem>>, vector<8x768xf32>
    tpu.vector_store %arg14[%c32_30, %c0_31], %33 {strides = array<i32>} : memref<72x768xf32, #tpu.memory_space<vmem>>, vector<8x768xf32>,
    %c764_i32 = arith.constant 764 : i32
    %43 = tpu.dynamic_rotate %33 by %c764_i32 dim 1 : vector<8x768xf32>, i32 -> vector<8x768xf32>
    %c40_32 = arith.constant 40 : index
    %c0_33 = arith.constant 0 : index
    %44 = vector.load %arg14[%c40_32, %c0_33] : memref<72x768xf32, #tpu.memory_space<vmem>>, vector<8x768xf32>
    tpu.vector_store %arg14[%c40_32, %c0_33], %43 {strides = array<i32>} : memref<72x768xf32, #tpu.memory_space<vmem>>, vector<8x768xf32>,
    %c700_i32 = arith.constant 700 : i32
    %45 = tpu.dynamic_rotate %33 by %c700_i32 dim 1 : vector<8x768xf32>, i32 -> vector<8x768xf32>
    %c48_34 = arith.constant 48 : index
    %c0_35 = arith.constant 0 : index
    %46 = vector.load %arg14[%c48_34, %c0_35] : memref<72x768xf32, #tpu.memory_space<vmem>>, vector<8x768xf32>
    tpu.vector_store %arg14[%c48_34, %c0_35], %45 {strides = array<i32>} : memref<72x768xf32, #tpu.memory_space<vmem>>, vector<8x768xf32>,
    %c696_i32 = arith.constant 696 : i32
    %47 = tpu.dynamic_rotate %33 by %c696_i32 dim 1 : vector<8x768xf32>, i32 -> vector<8x768xf32>
    %c56_36 = arith.constant 56 : index
    %c0_37 = arith.constant 0 : index
    %48 = vector.load %arg14[%c56_36, %c0_37] : memref<72x768xf32, #tpu.memory_space<vmem>>, vector<8x768xf32>
    tpu.vector_store %arg14[%c56_36, %c0_37], %47 {strides = array<i32>} : memref<72x768xf32, #tpu.memory_space<vmem>>, vector<8x768xf32>,
    %c692_i32 = arith.constant 692 : i32
    %49 = tpu.dynamic_rotate %33 by %c692_i32 dim 1 : vector<8x768xf32>, i32 -> vector<8x768xf32>
    %c64_38 = arith.constant 64 : index
    %c0_39 = arith.constant 0 : index
    %50 = vector.load %arg14[%c64_38, %c0_39] : memref<72x768xf32, #tpu.memory_space<vmem>>, vector<8x768xf32>
    tpu.vector_store %arg14[%c64_38, %c0_39], %49 {strides = array<i32>} : memref<72x768xf32, #tpu.memory_space<vmem>>, vector<8x768xf32>,
    %c0_40 = arith.constant 0 : index
    %c0_41 = arith.constant 0 : index
    %51 = vector.load %arg14[%c0_40, %c0_41] : memref<72x768xf32, #tpu.memory_space<vmem>>, vector<72x768xf32>
    %52 = arith.truncf %51 : vector<72x768xf32> to vector<72x768xbf16>
    %c0_42 = arith.constant 0 : index
    %c0_43 = arith.constant 0 : index
    %53 = vector.load %arg3[%c0_42, %c0_43] : memref<16x72xbf16, #tpu.memory_space<vmem>>, vector<16x72xbf16>
    %cst_44 = arith.constant dense<0.000000e+00> : vector<16x768xf32>
    %54 = tpu.matmul %53, %52, %cst_44 {dimension_numbers = #tpu.dot_dimension_numbers<[1], [0], [0], [1], [0, 0, 1, 1], [], []>} : vector<16x72xbf16>, vector<72x768xbf16>, vector<16x768xf32> -> vector<16x768xf32>
    %c0_45 = arith.constant 0 : index
    %c0_46 = arith.constant 0 : index
    %55 = vector.load %arg4[%c0_45, %c0_46] : memref<16x1xf32, #tpu.memory_space<vmem>>, vector<16x1xf32>
    %56 = vector.broadcast %55 : vector<16x1xf32> to vector<16x768xf32>
    %57 = arith.addf %54, %56 : vector<16x768xf32>
    %cst_47 = arith.constant 0.000000e+00 : f32
    %58 = vector.broadcast %cst_47 : f32 to vector<16x768xf32>
    %59 = arith.maximumf %57, %58 : vector<16x768xf32>
    %c764_i32_48 = arith.constant 764 : i32
    %60 = tpu.dynamic_rotate %59 by %c764_i32_48 dim 1 : vector<16x768xf32>, i32 -> vector<16x768xf32>
    %61 = arith.maximumf %59, %60 : vector<16x768xf32>
    %c696_i32_49 = arith.constant 696 : i32
    %62 = tpu.dynamic_rotate %61 by %c696_i32_49 dim 1 : vector<16x768xf32>, i32 -> vector<16x768xf32>
    %63 = arith.maximumf %61, %62 : vector<16x768xf32>
    %64 = arith.truncf %63 : vector<16x768xf32> to vector<16x768xbf16>
    %cst_50 = arith.constant 0.000000e+00 : f32
    %65 = vector.broadcast %cst_50 : f32 to vector<2x1024xf32>
    %c0_51 = arith.constant 0 : index
    %c0_52 = arith.constant 0 : index
    %c0_53 = arith.constant 0 : index
    %66 = vector.load %arg6[%c0_51, %c0_52, %c0_53] : memref<4x2x768xbf16, #tpu.memory_space<vmem>>, vector<1x2x768xbf16>
    %67 = vector.shape_cast %66 : vector<1x2x768xbf16> to vector<2x768xbf16>
    %cst_54 = arith.constant dense<0.000000e+00> : vector<2x16xf32>
    %68 = tpu.matmul %67, %64, %cst_54 {dimension_numbers = #tpu.dot_dimension_numbers<[1], [1], [0], [0], [0, 0, 1, 0], [], []>} : vector<2x768xbf16>, vector<16x768xbf16>, vector<2x16xf32> -> vector<2x16xf32>
    %69 = arith.truncf %68 : vector<2x16xf32> to vector<2x16xbf16>
    %c0_55 = arith.constant 0 : index
    %c0_56 = arith.constant 0 : index
    %70 = vector.load %arg7[%c0_55, %c0_56] : memref<64x1024xbf16, #tpu.memory_space<vmem>>, vector<16x1024xbf16>
    %cst_57 = arith.constant dense<0.000000e+00> : vector<2x1024xf32>
    %71 = tpu.matmul %69, %70, %cst_57 {dimension_numbers = #tpu.dot_dimension_numbers<[1], [0], [0], [1], [0, 0, 1, 1], [], []>} : vector<2x16xbf16>, vector<16x1024xbf16>, vector<2x1024xf32> -> vector<2x1024xf32>
    %72 = arith.addf %65, %71 : vector<2x1024xf32>
    %c1 = arith.constant 1 : index
    %c0_58 = arith.constant 0 : index
    %c0_59 = arith.constant 0 : index
    %73 = vector.load %arg6[%c1, %c0_58, %c0_59] : memref<4x2x768xbf16, #tpu.memory_space<vmem>>, vector<1x2x768xbf16>
    %74 = vector.shape_cast %73 : vector<1x2x768xbf16> to vector<2x768xbf16>
    %cst_60 = arith.constant dense<0.000000e+00> : vector<2x16xf32>
    %75 = tpu.matmul %74, %64, %cst_60 {dimension_numbers = #tpu.dot_dimension_numbers<[1], [1], [0], [0], [0, 0, 1, 0], [], []>} : vector<2x768xbf16>, vector<16x768xbf16>, vector<2x16xf32> -> vector<2x16xf32>
    %76 = arith.truncf %75 : vector<2x16xf32> to vector<2x16xbf16>
    %c16_61 = arith.constant 16 : index
    %c0_62 = arith.constant 0 : index
    %77 = vector.load %arg7[%c16_61, %c0_62] : memref<64x1024xbf16, #tpu.memory_space<vmem>>, vector<16x1024xbf16>
    %cst_63 = arith.constant dense<0.000000e+00> : vector<2x1024xf32>
    %78 = tpu.matmul %76, %77, %cst_63 {dimension_numbers = #tpu.dot_dimension_numbers<[1], [0], [0], [1], [0, 0, 1, 1], [], []>} : vector<2x16xbf16>, vector<16x1024xbf16>, vector<2x1024xf32> -> vector<2x1024xf32>
    %79 = arith.addf %72, %78 : vector<2x1024xf32>
    %c2 = arith.constant 2 : index
    %c0_64 = arith.constant 0 : index
    %c0_65 = arith.constant 0 : index
    %80 = vector.load %arg6[%c2, %c0_64, %c0_65] : memref<4x2x768xbf16, #tpu.memory_space<vmem>>, vector<1x2x768xbf16>
    %81 = vector.shape_cast %80 : vector<1x2x768xbf16> to vector<2x768xbf16>
    %cst_66 = arith.constant dense<0.000000e+00> : vector<2x16xf32>
    %82 = tpu.matmul %81, %64, %cst_66 {dimension_numbers = #tpu.dot_dimension_numbers<[1], [1], [0], [0], [0, 0, 1, 0], [], []>} : vector<2x768xbf16>, vector<16x768xbf16>, vector<2x16xf32> -> vector<2x16xf32>
    %83 = arith.truncf %82 : vector<2x16xf32> to vector<2x16xbf16>
    %c32_67 = arith.constant 32 : index
    %c0_68 = arith.constant 0 : index
    %84 = vector.load %arg7[%c32_67, %c0_68] : memref<64x1024xbf16, #tpu.memory_space<vmem>>, vector<16x1024xbf16>
    %cst_69 = arith.constant dense<0.000000e+00> : vector<2x1024xf32>
    %85 = tpu.matmul %83, %84, %cst_69 {dimension_numbers = #tpu.dot_dimension_numbers<[1], [0], [0], [1], [0, 0, 1, 1], [], []>} : vector<2x16xbf16>, vector<16x1024xbf16>, vector<2x1024xf32> -> vector<2x1024xf32>
    %86 = arith.addf %79, %85 : vector<2x1024xf32>
    %c3 = arith.constant 3 : index
    %c0_70 = arith.constant 0 : index
    %c0_71 = arith.constant 0 : index
    %87 = vector.load %arg6[%c3, %c0_70, %c0_71] : memref<4x2x768xbf16, #tpu.memory_space<vmem>>, vector<1x2x768xbf16>
    %88 = vector.shape_cast %87 : vector<1x2x768xbf16> to vector<2x768xbf16>
    %cst_72 = arith.constant dense<0.000000e+00> : vector<2x16xf32>
    %89 = tpu.matmul %88, %64, %cst_72 {dimension_numbers = #tpu.dot_dimension_numbers<[1], [1], [0], [0], [0, 0, 1, 0], [], []>} : vector<2x768xbf16>, vector<16x768xbf16>, vector<2x16xf32> -> vector<2x16xf32>
    %90 = arith.truncf %89 : vector<2x16xf32> to vector<2x16xbf16>
    %c48_73 = arith.constant 48 : index
    %c0_74 = arith.constant 0 : index
    %91 = vector.load %arg7[%c48_73, %c0_74] : memref<64x1024xbf16, #tpu.memory_space<vmem>>, vector<16x1024xbf16>
    %cst_75 = arith.constant dense<0.000000e+00> : vector<2x1024xf32>
    %92 = tpu.matmul %90, %91, %cst_75 {dimension_numbers = #tpu.dot_dimension_numbers<[1], [0], [0], [1], [0, 0, 1, 1], [], []>} : vector<2x16xbf16>, vector<16x1024xbf16>, vector<2x1024xf32> -> vector<2x1024xf32>
    %93 = arith.addf %86, %92 : vector<2x1024xf32>
    %c0_76 = arith.constant 0 : index
    %c0_77 = arith.constant 0 : index
    %94 = vector.load %arg8[%c0_76, %c0_77] : memref<1x1024xf32, #tpu.memory_space<vmem>>, vector<1x1024xf32>
    %95 = vector.broadcast %94 : vector<1x1024xf32> to vector<2x1024xf32>
    %96 = arith.addf %93, %95 : vector<2x1024xf32>
    %cst_78 = arith.constant 0.000000e+00 : f32
    %97 = vector.broadcast %cst_78 : f32 to vector<2x1024xf32>
    %98 = arith.maximumf %96, %97 : vector<2x1024xf32>
    %99 = arith.truncf %98 : vector<2x1024xf32> to vector<2x1024xbf16>
    %c0_79 = arith.constant 0 : index
    %c0_80 = arith.constant 0 : index
    %100 = vector.load %arg9[%c0_79, %c0_80] : memref<1024x1024xbf16, #tpu.memory_space<vmem>>, vector<1024x1024xbf16>
    %cst_81 = arith.constant dense<0.000000e+00> : vector<2x1024xf32>
    %101 = tpu.matmul %99, %100, %cst_81 {dimension_numbers = #tpu.dot_dimension_numbers<[1], [0], [0], [1], [0, 0, 1, 1], [], []>} : vector<2x1024xbf16>, vector<1024x1024xbf16>, vector<2x1024xf32> -> vector<2x1024xf32>
    %c0_82 = arith.constant 0 : index
    %c0_83 = arith.constant 0 : index
    %102 = vector.load %arg10[%c0_82, %c0_83] : memref<1x1024xf32, #tpu.memory_space<vmem>>, vector<1x1024xf32>
    %103 = vector.broadcast %102 : vector<1x1024xf32> to vector<2x1024xf32>
    %104 = arith.addf %101, %103 : vector<2x1024xf32>
    %cst_84 = arith.constant 0.000000e+00 : f32
    %105 = vector.broadcast %cst_84 : f32 to vector<2x1024xf32>
    %106 = arith.maximumf %104, %105 : vector<2x1024xf32>
    %107 = arith.truncf %106 : vector<2x1024xf32> to vector<2x1024xbf16>
    %c0_85 = arith.constant 0 : index
    %c0_86 = arith.constant 0 : index
    %108 = vector.load %arg11[%c0_85, %c0_86] : memref<1024x10xbf16, #tpu.memory_space<vmem>>, vector<1024x10xbf16>
    %cst_87 = arith.constant dense<0.000000e+00> : vector<2x10xf32>
    %109 = tpu.matmul %107, %108, %cst_87 {dimension_numbers = #tpu.dot_dimension_numbers<[1], [0], [0], [1], [0, 0, 1, 1], [], []>} : vector<2x1024xbf16>, vector<1024x10xbf16>, vector<2x10xf32> -> vector<2x10xf32>
    %c0_88 = arith.constant 0 : index
    %c0_89 = arith.constant 0 : index
    %110 = vector.load %arg12[%c0_88, %c0_89] : memref<1x10xf32, #tpu.memory_space<vmem>>, vector<1x10xf32>
    %111 = vector.broadcast %110 : vector<1x10xf32> to vector<2x10xf32>
    %112 = arith.addf %109, %111 : vector<2x10xf32>
    %c0_90 = arith.constant 0 : index
    %c0_91 = arith.constant 0 : index
    %113 = vector.load %arg13[%c0_90, %c0_91] : memref<2x10xf32, #tpu.memory_space<vmem>>, vector<2x10xf32>
    tpu.vector_store %arg13[%c0_90, %c0_91], %112 {strides = array<i32>} : memref<2x10xf32, #tpu.memory_space<vmem>>, vector<2x10xf32>,
    return
  }
}

</mosaic_0001>

<bundles_post_ra>
// kernel: vgg_forward.1
= control target key start
LH: loop header
LB: loop body
LE: loop exit
PB: predicated region body
PF: predicated region fallthrough
CT: control target
= control target key end

     0   :  { %18 = vsyncpa [#allocation4], 0  ;;  %s11873_s0 = inlined_call_operand.vmem [shape: f32[8,768], index: 0, kind: input, shape index: {}]   ;;  %s11874_s1 = inlined_call_operand.hbm [shape: bf16[8,72], index: 1, kind: input, shape index: {}]   ;;  %s11875_s2 = inlined_call_operand.vmem [shape: f32[8,1], index: 2, kind: input, shape index: {}]   ;;  %s11876_s3 = inlined_call_operand.hbm [shape: bf16[16,72], index: 3, kind: input, shape index: {}]   ;;  %s11877_s4 = inlined_call_operand.vmem [shape: f32[16,1], index: 4, kind: input, shape index: {}]   ;;  %s11878_s5 = inlined_call_operand.hbm [shape: f32[1,768], index: 5, kind: input, shape index: {}]   ;;  %s11879_s6 = inlined_call_operand.hbm [shape: bf16[4,2,768], index: 6, kind: input, shape index: {}]   ;;  %s11880_s7 = inlined_call_operand.hbm [shape: bf16[64,1024], index: 7, kind: input, shape index: {}]   ;;  %s11881_s8 = inlined_call_operand.hbm [shape: f32[1,1024], index: 8, kind: input, shape index: {}]   ;;  %s11882_s9 = inlined_call_operand.hbm [shape: bf16[1024,1024], index: 9, kind: input, shape index: {}]   ;;  %s11883_s10 = inlined_call_operand.hbm [shape: f32[1,1024], index: 10, kind: input, shape index: {}]   ;;  %s11884_s11 = inlined_call_operand.vmem [shape: bf16[1024,10], index: 11, kind: input, shape index: {}]   ;;  %s11885_s12 = inlined_call_operand.hbm [shape: f32[1,10], index: 12, kind: input, shape index: {}]   ;;  %s11886_s13 = inlined_call_operand.hbm [shape: f32[2,10], index: 13, kind: output, shape index: {}]  }
   0x1   :  { %19 = vsyncpa [#allocation7], 0 }
   0x2   :  { %20 = vsyncpa [#allocation10], 0 }
   0x3   :  { %21 = vsyncpa [#allocation13], 0 }
   0x4   :  { %22 = vsyncpa [#allocation16], 0  ;;  %s43_s27 = sshll.u32 %s11876_s3, 4  ;;  %s44_s27 = int_to_ptr.hbm [resolvable:$true] %s43_s27 }
   0x5   :  { %23 = vsyncpa [#allocation5], 0  ;;  %s10462_s28 = smov [#allocation6]   ;;  %s69_s15 = sshll.u32 %s11879_s6, 4  ;;  %s70_s15 = int_to_ptr.hbm [resolvable:$true] %s69_s15 }
   0x6   :  { %s45_s29 = sshll.u32 %s10462_s28, 4  ;;  %s10463_s16 = smov 64   ;;  %s46_s29 = int_to_ptr.vmem [resolvable:$true] %s45_s29 }
   0x7   :  { %s10464_s17 = smov 4   ;;  %s10465_s18 = smov [#allocation9]  }
   0x8   :  { %51 = dma.hbm_to_vmem [thread:$0]  %s44_s27, 128, %s46_s29, [#allocation7], %s10463_s16, %s10463_s16, %s10464_s17  }
   0x9   :  { %s71_s19 = sshll.u32 %s10465_s18, 4  ;;  %s10466_s20 = smov 96   ;;  %s72_s19 = int_to_ptr.vmem [resolvable:$true] %s71_s19 }
   0xa   :  { %s10467_s21 = smov 6   ;;  %s96_s23 = sshll.u32 %s11881_s8, 4  ;;  %s97_s23 = int_to_ptr.hbm [resolvable:$true] %s96_s23 }
   0xb   :  { %77 = dma.hbm_to_vmem [thread:$0]  %s70_s15, 384, %s72_s19, [#allocation10], %s10466_s20, %s10466_s20, %s10467_s21  }
   0xc   :  { %s10468_s24 = smov [#allocation12]   ;;  %s120_s28 = sshll.u32 %s11883_s10, 4  ;;  %s121_s28 = int_to_ptr.hbm [resolvable:$true] %s120_s28 }
   0xd   :  { %s98_s25 = sshll.u32 %s10468_s24, 4  ;;  %s10469_s27 = smov [#allocation15]   ;;  %s99_s25 = int_to_ptr.vmem [resolvable:$true] %s98_s25 }
   0xe   :  { %101 = dma.hbm_to_vmem [thread:$0]  %s97_s23, 128, %s99_s25, [#allocation13]  }
   0xf   :  { %s122_s29 = sshll.u32 %s10469_s27, 4  ;;  %s31_s15 = sshll.u32 %s11874_s1, 4  ;;  %s123_s29 = int_to_ptr.vmem [resolvable:$true] %s122_s29  ;;  %s32_s15 = int_to_ptr.hbm [resolvable:$true] %s31_s15 }
  0x10   :  { %125 = dma.hbm_to_vmem [thread:$0]  %s121_s28, 128, %s123_s29, [#allocation16]  }
  0x11   :  { %s59_s18 = sshll.u32 %s11878_s5, 4  ;;  %s10470_s19 = smov [#allocation3]   ;;  %s60_s18 = int_to_ptr.hbm [resolvable:$true] %s59_s18 }
  0x12   :  { %s33_s20 = sshll.u32 %s10470_s19, 4  ;;  %s10471_s10 = smov [#allocation8]   ;;  %s34_s20 = int_to_ptr.vmem [resolvable:$true] %s33_s20 }
  0x13   :  { %36 = dma.hbm_to_vmem [thread:$0]  %s32_s15, 64, %s34_s20, [#allocation4]  }
  0x14   :  { %s61_s21 = sshll.u32 %s10471_s10, 4  ;;  %s82_s23 = sshll.u32 %s11880_s7, 4  ;;  %s62_s21 = int_to_ptr.vmem [resolvable:$true] %s61_s21  ;;  %s83_s23 = int_to_ptr.hbm [resolvable:$true] %s82_s23 }
  0x15   :  { %64 = dma.hbm_to_vmem [thread:$0]  %s60_s18, 96, %s62_s21, [#allocation7]  }
  0x16   :  { %s10472_s1 = smov [#allocation11]   ;;  %s106_s5 = sshll.u32 %s11882_s9, 4  ;;  %s107_s5 = int_to_ptr.hbm [resolvable:$true] %s106_s5 }
  0x17   :  { %s84_s24 = sshll.u32 %s10472_s1, 4  ;;  %s10473_s26 = smov 512   ;;  %s85_s24 = int_to_ptr.vmem [resolvable:$true] %s84_s24 }
  0x18   :  { %s10474_s28 = smov 32   ;;  %s10475_s27 = smov [#allocation14]  }
  0x19   :  { %90 = dma.hbm_to_vmem [thread:$0]  %s83_s23, 4096, %s85_s24, [#allocation10], %s10473_s26, %s10473_s26, %s10474_s28  }
  0x1a   :  { %s108_s29 = sshll.u32 %s10475_s27, 4  ;;  %s133_s7 = sshll.u32 %s11885_s12, 4  ;;  %s109_s29 = int_to_ptr.vmem [resolvable:$true] %s108_s29  ;;  %s134_s7 = int_to_ptr.hbm [resolvable:$true] %s133_s7 }
  0x1b   :  { %114 = dma.hbm_to_vmem [thread:$0]  %s107_s5, 65536, %s109_s29, [#allocation13], %s10473_s26, %s10473_s26, %s10474_s28  }
  0x1c   :  { %s10476_s15 = smov [#allocation17]  }
  0x1d   :  { %s135_s8 = sshll.u32 %s10476_s15, 4  ;;  %s136_s8 = int_to_ptr.vmem [resolvable:$true] %s135_s8 }
  0x1e   :  { %138 = dma.hbm_to_vmem [thread:$0]  %s134_s7, 16, %s136_s8, [#allocation16]  }
  0x1f   :  { %10450 = dma.done.wait [#allocation4], 64  }
  0x20   :  { %10451 = vsyncadd [#allocation4], 4294967232 }
  0x21   :  { %10452 = dma.done.wait [#allocation7], 224  }
  0x22   :  { %10453 = vsyncadd [#allocation7], 4294967072 }
  0x23   :  { %10454 = dma.done.wait [#allocation10], 4480  }
  0x24   :  { %10455 = vsyncadd [#allocation10], 4294962816 }
  0x25   :  { %10456 = dma.done.wait [#allocation13], 65664  }
  0x26   :  { %10457 = vsyncadd [#allocation13], 4294901632 }
  0x27   :  { %10458 = dma.done.wait [#allocation16], 144  }
  0x28   :  { %10459 = vsyncadd [#allocation16], 4294967152  ;;  %v10595_v0 = vld [vmem:[%s11873_s0 + $0x20] sm:$0xff]  ;;  %v10600_v1 = vld [vmem:[%s11873_s0 + $0x28] sm:$0xff]  ;;  %s10477_s3 = smov 90   ;;  %s10478_s22 = smov 92   ;;  %v194_v13 = vlaneseq }
  0x29   :  { %v10605_v2 = vld [vmem:[%s11873_s0] sm:$0xff]  ;;  %v9964_v3 = vpack.i.bf16 %v10600_v1, %v10595_v0  ;;  %v10612_v4 = vld [vmem:[%s11873_s0 + $0x8] sm:$0xff]  ;;  %v10620_v6 = vld [vmem:[%s11873_s0 + $0x10] sm:$0xff]  ;;  %s10479_s6 = smov 126   ;;  %s10480_s5 = smov 94   ;;  %vm485_vm1 = vcmask 1043456  }
  0x2a   :  { %v9954_v5 = vpack.i.bf16 %v10612_v4, %v10605_v2  ;;  %v10625_v7 = vld [vmem:[%s11873_s0 + $0x18] sm:$0xff]  ;;  %v9979_v9 = vpack.i.bf16 %v10600_v1, %v10605_v2  ;;  %s10481_s26 = smov 2   ;;  %s10482_s28 = smov 34   ;;  %v10019_v10 = vpack.i.bf16 %v10620_v6, %v10612_v4  ;;  %v10653_v14 = vand.u32 127, %v194_v13 }
  0x2b   :  { %9965 = vrot.lane.b32.xlu2 %v9964_v3, %s10477_s3  ;;  %v9959_v8 = vpack.i.bf16 %v10625_v7, %v10620_v6  ;;  %s10483_s0 = smov 36   ;;  %s10484_s27 = smov 38   ;;  %vm481_vm9 = vcmask 588800  }
  0x2c   :  { %9955 = vrot.lane.b32.xlu1 %v9954_v5, %s10478_s22  ;;  %9945 = vrot.lane.b32.xlu0 %v9954_v5, %s10477_s3  ;;  %vm377_vm0 = vcmp.lt.s32.totalorder %v10653_v14, 90  ;;  %vm352_vm2 = vcmp.lt.s32.totalorder %v10653_v14, 92  ;;  %vm302_vm3 = vcmp.lt.s32.totalorder %v10653_v14, 126  ;;  %vm327_vm4 = vcmp.lt.s32.totalorder %v10653_v14, 94  ;;  %s10487_s14 = smov 60   ;;  %s10488_s7 = smov 52  }
  0x2d   :  { %vm246_vm5 = vcmp.lt.s32.totalorder %v10653_v14, 34  ;;  %vm271_vm6 = vcmp.lt.s32.totalorder %v10653_v14, 2  ;;  %vm196_vm7 = vcmp.lt.s32.totalorder %v10653_v14, 38  ;;  %vm221_vm8 = vcmp.lt.s32.totalorder %v10653_v14, 36  ;;  %s10489_s15 = smov 56   ;;  %s10490_s8 = smov 124  }
  0x2e   :  { %s10491_s9 = smov 68   ;;  %s10492_s16 = smov 76   ;;  %vm849_vm10 = vcmp.lt.s32.totalorder %v10653_v14, 52  ;;  %vm799_vm11 = vcmp.lt.s32.totalorder %v10653_v14, 60  ;;  %vm824_vm12 = vcmp.lt.s32.totalorder %v10653_v14, 56  ;;  %vm774_vm13 = vcmp.lt.s32.totalorder %v10653_v14, 124 }
  0x2f   :  { %vm718_vm14 = vcmp.lt.s32.totalorder %v10653_v14, 68  ;;  %vm743_vm15 = vcmp.lt.s32.totalorder %v10653_v14, 4 }
  0x33   :  { %9970 = vrot.lane.b32.xlu2 %v9954_v5, %s10479_s6 }
  0x34   :  { %9960 = vrot.lane.b32.xlu1 %v9959_v8, %s10477_s3  ;;  %9950 = vrot.lane.b32.xlu0 %v9954_v5, %s10480_s5 }
  0x3b   :  { %9985 = vrot.lane.b32.xlu2 %v9959_v8, %s10480_s5 }
  0x3c   :  { %9980 = vrot.lane.b32.xlu1 %v9979_v9, %s10481_s26  ;;  %9975 = vrot.lane.b32.xlu0 %v9979_v9, %s10482_s28 }
  0x43   :  { %10000 = vrot.lane.b32.xlu2 %v9964_v3, %s10478_s22 }
  0x44   :  { %9995 = vrot.lane.b32.xlu1 %v9959_v8, %s10478_s22  ;;  %9990 = vrot.lane.b32.xlu0 %v9964_v3, %s10480_s5 }
  0x4b   :  { %10015 = vrot.lane.b32.xlu2 %v9959_v8, %s10479_s6 }
  0x4c   :  { %10010 = vrot.lane.b32.xlu1 %v9979_v9, %s10483_s0  ;;  %10005 = vrot.lane.b32.xlu0 %v9979_v9, %s10484_s27 }
  0x53   :  { %240 = vrot.lane.b32.xlu2 %v10625_v7, %s10482_s28 }
  0x54   :  { %10020 = vrot.lane.b32.xlu1 %v10019_v10, %s10482_s28  ;;  %298 = vrot.lane.b32.xlu0 %v10595_v0, %s10479_s6 }
  0x5b   :  { %10030 = vrot.lane.b32.xlu2 %v10019_v10, %s10484_s27 }
  0x5c   :  { %265 = vrot.lane.b32.xlu1 %v10625_v7, %s10481_s26  ;;  %10025 = vrot.lane.b32.xlu0 %v10019_v10, %s10481_s26 }
  0x63   :  { %215 = vrot.lane.b32.xlu2 %v10625_v7, %s10483_s0 }
  0x64   :  { %10035 = vrot.lane.b32.xlu1 %v10019_v10, %s10483_s0  ;;  %188 = vrot.lane.b32.xlu0 %v10625_v7, %s10484_s27 }
  0x6b   :  { %267 = vrot.lane.b32.xlu2 %v10595_v0, %s10481_s26 }
  0x6c   :  { %242 = vrot.lane.b32.xlu1 %v10595_v0, %s10482_s28  ;;  %300 = vrot.lane.b32.xlu0 %v10600_v1, %s10479_s6 }
  0x74   :  { %217 = vrot.lane.b32.xlu1 %v10595_v0, %s10483_s0  ;;  %190 = vrot.lane.b32.xlu0 %v10595_v0, %s10484_s27  ;;  %s6809_s27 = sshll.u32 %s11886_s13, 4  ;;  %s6810_s27 = int_to_ptr.hbm [resolvable:$true] %s6809_s27 }
  0x85   :  { %v10649_v11 = vpop.permute.xlu2 %9965 }
  0x86   :  { %v9967_v27 = vunpack.i.l.bf16 %v10649_v11 }
  0x8d   :  { %v10651_v12 = vpop.permute.xlu2 %9970 }
  0x8e   :  { %v9973_v22 = vunpack.i.h.bf16 %v10651_v12  ;;  %v9972_v23 = vunpack.i.l.bf16 %v10651_v12 }
  0x90   :  { %v307_v35 = vsel %vm302_vm3, %v9972_v23, %v9973_v22 }
  0x91   :  { %v456_v48 = vpack.c.bf16 %v307_v35, %v10605_v2 }
  0x95   :  { %v10660_v17 = vpop.permute.xlu2 %9985 }
  0x96   :  { %v9988_v59 = vunpack.i.h.bf16 %v10660_v17  ;;  %v9987_v60 = vunpack.i.l.bf16 %v10660_v17 }
  0x98   :  { %v330_v13 = vsel %vm327_vm4, %v9987_v60, %v9988_v59 }
  0x9d   :  { %v10691_v36 = vpop.permute.xlu2 %10000 }
  0x9e   :  { %v10655_v15 = vpop.permute.xlu1 %9955  ;;  %v10657_v16 = vpop.permute.xlu0 %9945  ;;  %v10002_v62 = vunpack.i.l.bf16 %v10691_v36 }
  0x9f   :  { %v9948_v18 = vunpack.i.h.bf16 %v10657_v16  ;;  %v9947_v19 = vunpack.i.l.bf16 %v10657_v16  ;;  %v9958_v24 = vunpack.i.h.bf16 %v10655_v15  ;;  %v9957_v25 = vunpack.i.l.bf16 %v10655_v15 }
  0xa1   :  { %v382_v20 = vsel %vm377_vm0, %v9947_v19, %v9948_v18  ;;  %v357_v34 = vsel %vm352_vm2, %v9957_v25, %v9958_v24 }
  0xa2   :  { %v468_v21 = vpack.c.bf16 %v382_v20, %v382_v20 }
  0xa4   :  { %v487_v26 = vsel %vm485_vm1, %v468_v21, 0 }
  0xa5   :  { %507 = vmatpush.bf16.msra.mxu0 %v487_v26  ;;  %v10016_v58 = vpop.permute.xlu2 %10015 }
  0xa6   :  { %v9961_v28 = vpop.permute.xlu1 %9960  ;;  %v10676_v29 = vpop.permute.xlu0 %9950  ;;  %v10018_v61 = vunpack.i.h.bf16 %v10016_v58  ;;  %v10017_v63 = vunpack.i.l.bf16 %v10016_v58 }
  0xa7   :  { %v9963_v30 = vunpack.i.h.bf16 %v9961_v28  ;;  %v9962_v31 = vunpack.i.l.bf16 %v9961_v28  ;;  %v9953_v32 = vunpack.i.h.bf16 %v10676_v29  ;;  %v9952_v33 = vunpack.i.l.bf16 %v10676_v29 }
  0xa8   :  { %v305_v17 = vsel %vm302_vm3, %v10017_v63, %v10018_v61 }
  0xa9   :  { %v332_v37 = vsel %vm327_vm4, %v9952_v33, %v9953_v32  ;;  %v381_v38 = vsel %vm377_vm0, %v9948_v18, %v9962_v31  ;;  %v380_v39 = vsel %vm377_vm0, %v9962_v31, %v9963_v30  ;;  %v379_v40 = vsel %vm377_vm0, %v9963_v30, %v9967_v27 }
  0xaa   :  { %v462_v41 = vpack.c.bf16 %v357_v34, %v332_v37  ;;  %v469_v42 = vpack.c.bf16 %v381_v38, %v381_v38  ;;  %v470_v43 = vpack.c.bf16 %v380_v39, %v380_v39  ;;  %v471_v44 = vpack.c.bf16 %v379_v40, %v379_v40 }
  0xab   :  { %v331_v10 = vsel %vm327_vm4, %v9953_v32, %v9987_v60  ;;  %v9968_v32 = vunpack.i.h.bf16 %v10649_v11  ;;  %v306_v34 = vsel %vm302_vm3, %v9973_v22, %v10017_v63 }
  0xac   :  { %508 = vmatpush.bf16.msra.mxu0 %v462_v41  ;;  %v490_v45 = vsel %vm485_vm1, %v469_v42, 0  ;;  %v493_v46 = vsel %vm485_vm1, %v470_v43, 0  ;;  %v496_v47 = vsel %vm485_vm1, %v471_v44, 0  ;;  %v457_v39 = vpack.c.bf16 %v306_v34, %v10612_v4 }
  0xad   :  { %520 = vmatpush.bf16.msra.mxu1 %v490_v45  ;;  %533 = vmatpush.bf16.msra.mxu2 %v493_v46  ;;  %v378_v35 = vsel %vm377_vm0, %v9967_v27, %v9968_v32  ;;  %v10003_v44 = vunpack.i.h.bf16 %v10691_v36  ;;  %v10786_v46 = vpop.permute.xlu2 %240 }
  0xae   :  { %546 = vmatpush.bf16.msra.mxu3 %v496_v47  ;;  %v10709_v49 = vpop.permute.xlu1 %9980  ;;  %v10711_v50 = vpop.permute.xlu0 %9975  ;;  %v472_v42 = vpack.c.bf16 %v378_v35, %v378_v35 }
  0xaf   :  { %v9983_v51 = vunpack.i.h.bf16 %v10709_v49  ;;  %v9982_v52 = vunpack.i.l.bf16 %v10709_v49  ;;  %v9978_v53 = vunpack.i.h.bf16 %v10711_v50  ;;  %v9977_v54 = vunpack.i.l.bf16 %v10711_v50 }
  0xb0   :  { %509 = vmatpush.bf16.msra.mxu0 %v456_v48  ;;  %v499_v47 = vsel %vm485_vm1, %v472_v42, 0 }
  0xb1   :  { %v252_v55 = vsel %vm246_vm5, %v9978_v53, %v9977_v54  ;;  %v277_v56 = vsel %vm271_vm6, %v9983_v51, %v9982_v52 }
  0xb2   :  { %v450_v57 = vpack.c.bf16 %v277_v56, %v252_v55  ;;  %v353_v55 = vsel %vm352_vm2, %v10002_v62, %v10003_v44  ;;  %v10797_v56 = vld [vmem:[#allocation3] sm:$0xf] }
  0xb4   :  { %510 = vmatpush.bf16.msra.mxu0 %v450_v57 }
  0xb6   :  { %v9996_v2 = vpop.permute.xlu1 %9995  ;;  %v10734_v3 = vpop.permute.xlu0 %9990 }
  0xb7   :  { %v9998_v5 = vunpack.i.h.bf16 %v9996_v2  ;;  %v9997_v8 = vunpack.i.l.bf16 %v9996_v2  ;;  %v9992_v9 = vunpack.i.l.bf16 %v10734_v3  ;;  %v9993_v27 = vunpack.i.h.bf16 %v10734_v3 }
  0xb9   :  { %v356_v18 = vsel %vm352_vm2, %v9958_v24, %v9997_v8  ;;  %v355_v20 = vsel %vm352_vm2, %v9997_v8, %v9998_v5  ;;  %v329_v21 = vsel %vm327_vm4, %v9988_v59, %v9992_v9  ;;  %v354_v26 = vsel %vm352_vm2, %v9998_v5, %v10002_v62  ;;  %v10031_v62 = vpop.permute.xlu2 %10030 }
  0xba   :  { %v463_v28 = vpack.c.bf16 %v356_v18, %v331_v10  ;;  %v464_v30 = vpack.c.bf16 %v355_v20, %v330_v13  ;;  %v465_v31 = vpack.c.bf16 %v354_v26, %v329_v21  ;;  %v458_v24 = vpack.c.bf16 %v305_v17, %v10620_v6  ;;  %v475_v18 = vld [vmem:[%s11875_s2] sm:$0xff]  ;;  %s10486_s2 = smov 72  }
  0xbb   :  { %v328_v48 = vsel %vm327_vm4, %v9992_v9, %v9993_v27  ;;  %v10485_v26 = vmov 0   ;;  %v10033_v34 = vunpack.i.h.bf16 %v10031_v62 }
  0xbc   :  { %521 = vmatpush.bf16.msra.mxu1 %v463_v28  ;;  %534 = vmatpush.bf16.msra.mxu2 %v464_v30  ;;  %v466_v60 = vpack.c.bf16 %v353_v55, %v328_v48 }
  0xbd   :  { %547 = vmatpush.bf16.msra.mxu3 %v465_v31  ;;  %10039 = vset.pattern.permute.xlu2 %v10485_v26 }
  0xbe   :  { %v10763_v37 = vpop.permute.xlu1 %10010  ;;  %v10765_v38 = vpop.permute.xlu0 %10005  ;;  %10146 = vset.pattern.permute.xlu1 %v10485_v26  ;;  %478 = vperm.xlu2 %10039, %v475_v18  }
  0xbf   :  { %v10013_v6 = vunpack.i.h.bf16 %v10763_v37  ;;  %v10012_v22 = vunpack.i.l.bf16 %v10763_v37  ;;  %v10008_v40 = vunpack.i.h.bf16 %v10765_v38  ;;  %v10007_v41 = vunpack.i.l.bf16 %v10765_v38  ;;  %10145 = vset.pattern.permute.xlu0 %v10485_v26 }
  0xc0   :  { %522 = vmatpush.bf16.msra.mxu1 %v457_v39  ;;  %535 = vmatpush.bf16.msra.mxu2 %v458_v24  ;;  %v10032_v24 = vunpack.i.l.bf16 %v10031_v62 }
  0xc1   :  { %v202_v4 = vsel %vm196_vm7, %v10008_v40, %v10007_v41  ;;  %v227_v43 = vsel %vm221_vm8, %v10013_v6, %v10012_v22 }
  0xc2   :  { %v444_v45 = vpack.c.bf16 %v227_v43, %v202_v4  ;;  %v216_v43 = vpop.permute.xlu2 %215 }
  0xc4   :  { %511 = vmatpush.bf16.msra.mxu0 %v444_v45  ;;  %v201_v45 = vsel %vm196_vm7, %v10007_v41, %v10032_v24 }
  0xc6   :  { %v10021_v57 = vpop.permute.xlu1 %10020  ;;  %v299_v58 = vpop.permute.xlu0 %298 }
  0xc7   :  { %v304_v59 = vsel %vm302_vm3, %v10018_v61, %v299_v58  ;;  %6823 = vmatmul.msk.bf16.vlgmr.msra.gmra.mxu0 %vm481_vm9, %v10797_v56  ;;  %v10023_v2 = vunpack.i.h.bf16 %v10021_v57  ;;  %v10022_v5 = vunpack.i.l.bf16 %v10021_v57 }
  0xc8   :  { %559 = vmatpush.bf16.msrb.mxu0 %v499_v47  ;;  %v459_v63 = vpack.c.bf16 %v304_v59, %v10625_v7  ;;  %v200_v47 = vsel %vm196_vm7, %v10032_v24, %v10033_v34 }
  0xc9   :  { %v251_v61 = vsel %vm246_vm5, %v9977_v54, %v10022_v5  ;;  %v250_v17 = vsel %vm246_vm5, %v10022_v5, %v10023_v2  ;;  %v249_v7 = vsel %vm246_vm5, %v10023_v2, %v10786_v46  ;;  %v358_v2 = vsel %vm352_vm2, %v10003_v44, %v9957_v25 }
  0xca   :  { %548 = vmatpush.bf16.msra.mxu3 %v459_v63  ;;  %v268_v36 = vpop.permute.xlu2 %267 }
  0xcc   :  { %560 = vmatpush.bf16.msrb.mxu0 %v466_v60 }
  0xce   :  { %v266_v8 = vpop.permute.xlu1 %265  ;;  %v10026_v9 = vpop.permute.xlu0 %10025 }
  0xcf   :  { %v10028_v10 = vunpack.i.h.bf16 %v10026_v9  ;;  %v10027_v13 = vunpack.i.l.bf16 %v10026_v9  ;;  %v273_v12 = vsel %vm271_vm6, %v266_v8, %v268_v36 }
  0xd1   :  { %v276_v20 = vsel %vm271_vm6, %v9982_v52, %v10027_v13  ;;  %v275_v21 = vsel %vm271_vm6, %v10027_v13, %v10028_v10  ;;  %v274_v54 = vsel %vm271_vm6, %v10028_v10, %v266_v8  ;;  %v383_v52 = vsel %vm377_vm0, %v9968_v32, %v9947_v19 }
  0xd2   :  { %v451_v28 = vpack.c.bf16 %v276_v20, %v251_v61  ;;  %v452_v30 = vpack.c.bf16 %v275_v21, %v250_v17  ;;  %v453_v31 = vpack.c.bf16 %v274_v54, %v249_v7  ;;  %v473_v48 = vpack.c.bf16 %v383_v52, %v383_v52 }
  0xd3   :  { %vm693_vm0 = vcmp.lt.s32.totalorder %v10653_v14, 72 }
  0xd4   :  { %523 = vmatpush.bf16.msra.mxu1 %v451_v28  ;;  %536 = vmatpush.bf16.msra.mxu2 %v452_v30  ;;  %v502_v59 = vsel %vm485_vm1, %v473_v48, 0 }
  0xd5   :  { %549 = vmatpush.bf16.msra.mxu3 %v453_v31 }
  0xd6   :  { %v10036_v35 = vpop.permute.xlu1 %10035  ;;  %v189_v39 = vpop.permute.xlu0 %188 }
  0xd7   :  { %v10038_v42 = vunpack.i.h.bf16 %v10036_v35  ;;  %v10037_v4 = vunpack.i.l.bf16 %v10036_v35  ;;  %v199_v16 = vsel %vm196_vm7, %v10033_v34, %v189_v39 }
  0xd9   :  { %v226_v11 = vsel %vm221_vm8, %v10012_v22, %v10037_v4  ;;  %v225_v19 = vsel %vm221_vm8, %v10037_v4, %v10038_v42  ;;  %v224_v32 = vsel %vm221_vm8, %v10038_v42, %v216_v43  ;;  %v333_v22 = vsel %vm327_vm4, %v9993_v27, %v9952_v33 }
  0xda   :  { %v445_v55 = vpack.c.bf16 %v226_v11, %v201_v45  ;;  %v446_v41 = vpack.c.bf16 %v225_v19, %v200_v47  ;;  %v447_v57 = vpack.c.bf16 %v224_v32, %v199_v16  ;;  %v467_v29 = vpack.c.bf16 %v358_v2, %v333_v22 }
  0xdc   :  { %524 = vmatpush.bf16.msra.mxu1 %v445_v55  ;;  %537 = vmatpush.bf16.msra.mxu2 %v446_v41 }
  0xdd   :  { %550 = vmatpush.bf16.msra.mxu3 %v447_v57 }
  0xde   :  { %v243_v60 = vpop.permute.xlu1 %242  ;;  %v301_v63 = vpop.permute.xlu0 %300 }
  0xdf   :  { %v303_v5 = vsel %vm302_vm3, %v299_v58, %v301_v63  ;;  %6824 = vmatmul.msk.bf16.vlgmr.msra.gmra.mxu1 %vm481_vm9, %v10797_v56  ;;  %v308_v33 = vsel %vm302_vm3, %v301_v63, %v9972_v23  ;;  %6825 = vmatmul.msk.bf16.vlgmr.msra.gmra.mxu2 %vm481_vm9, %v10797_v56  ;;  %v248_v25 = vsel %vm246_vm5, %v10786_v46, %v243_v60 }
  0xe0   :  { %572 = vmatpush.bf16.msrb.mxu1 %v502_v59  ;;  %6826 = vmatmul.msk.bf16.vlgmr.msra.gmra.mxu3 %vm481_vm9, %v10797_v56  ;;  %v460_v15 = vpack.c.bf16 %v303_v5, %v10595_v0  ;;  %v461_v23 = vpack.c.bf16 %v308_v33, %v10600_v1  ;;  %v247_v3 = vsel %vm246_vm5, %v243_v60, %v9978_v53  ;;  %v636_v5 = vld [vmem:[#allocation8] sm:$0x3f] }
  0xe1   :  { %v454_v27 = vpack.c.bf16 %v273_v12, %v248_v25  ;;  %v272_v0 = vsel %vm271_vm6, %v268_v36, %v9983_v51  ;;  %v639_v33 = vperm.slane %v636_v5, 1  ;;  %v638_v25 = vperm.slane %v636_v5, 0 }
  0xe2   :  { %561 = vmatpush.bf16.msrb.mxu0 %v460_v15  ;;  %v455_v50 = vpack.c.bf16 %v272_v0, %v247_v3 }
  0xe4   :  { %573 = vmatpush.bf16.msrb.mxu1 %v467_v29 }
  0xe6   :  { %v218_v44 = vpop.permute.xlu1 %217  ;;  %v191_v46 = vpop.permute.xlu0 %190  ;;  %562 = vmatpush.bf16.msrb.mxu0 %v454_v27 }
  0xe7   :  { %v223_v58 = vsel %vm221_vm8, %v216_v43, %v218_v44  ;;  %v198_v1 = vsel %vm196_vm7, %v189_v39, %v191_v46  ;;  %v222_v53 = vsel %vm221_vm8, %v218_v44, %v10013_v6  ;;  %v197_v49 = vsel %vm196_vm7, %v191_v46, %v10008_v40 }
  0xe8   :  { %574 = vmatpush.bf16.msrb.mxu1 %v461_v23  ;;  %v448_v51 = vpack.c.bf16 %v223_v58, %v198_v1  ;;  %v449_v62 = vpack.c.bf16 %v222_v53, %v197_v49  ;;  %v642_v53 = vperm.slane %v636_v5, 4 }
  0xea   :  { %563 = vmatpush.bf16.msrb.mxu0 %v448_v51  ;;  %v640_v51 = vperm.slane %v636_v5, 2 }
  0xec   :  { %575 = vmatpush.bf16.msrb.mxu1 %v455_v50 }
  0xed   :  { %6827 = vmatmul.msk.bf16.vlgmr.msrb.gmra.mxu0 %vm481_vm9, %v10797_v56 }
  0xf0   :  { %576 = vmatpush.bf16.msrb.mxu1 %v449_v62 }
  0xf3   :  { %6828 = vmatmul.msk.bf16.vlgmr.msrb.gmra.mxu1 %vm481_vm9, %v10797_v56 }
 0x118   :  { %v479_v37 = vpop.permute.xlu2 %478 }
 0x144   :  { %v513_v8 = vpop.f32.mrf.mxu0 }
 0x145   :  { %v514_v9 = vadd.f32 %v513_v8, %v479_v37 }
 0x147   :  { %v582_v6 = vmax.f32 %v514_v9, 0.0 }
 0x149   :  { %588 = vrot.lane.b32.xlu0 %v582_v6, %s10479_s6 }
 0x14c   :  { %v515_v38 = vpop.f32.mrf.mxu0 }
 0x15c   :  { %v526_v10 = vpop.f32.mrf.mxu1 }
 0x15d   :  { %v527_v40 = vadd.f32 %v526_v10, %v479_v37  ;;  %v643_v10 = vperm.slane %v636_v5, 5 }
 0x15f   :  { %v583_v13 = vmax.f32 %v527_v40, 0.0 }
 0x161   :  { %590 = vrot.lane.b32.xlu1 %v583_v13, %s10479_s6 }
 0x162   :  { %v539_v61 = vpop.f32.mrf.mxu2 }
 0x163   :  { %v552_v17 = vpop.f32.mrf.mxu3  ;;  %v540_v7 = vadd.f32 %v539_v61, %v479_v37 }
 0x164   :  { %v553_v18 = vadd.f32 %v552_v17, %v479_v37  ;;  %v528_v20 = vpop.f32.mrf.mxu1 }
 0x165   :  { %v584_v21 = vmax.f32 %v540_v7, 0.0  ;;  %v641_v7 = vperm.slane %v636_v5, 3 }
 0x166   :  { %v585_v54 = vmax.f32 %v553_v18, 0.0 }
 0x167   :  { %592 = vrot.lane.b32.xlu2 %v584_v21, %s10479_s6 }
 0x168   :  { %594 = vrot.lane.b32.xlu0 %v585_v54, %s10479_s6 }
 0x16a   :  { %v565_v56 = vpop.f32.mrf.mxu0  ;;  %v541_v30 = vpop.f32.mrf.mxu2 }
 0x16b   :  { %v554_v26 = vpop.f32.mrf.mxu3  ;;  %v566_v28 = vadd.f32 %v565_v56, %v479_v37 }
 0x16d   :  { %v586_v31 = vmax.f32 %v566_v28, 0.0 }
 0x16f   :  { %596 = vrot.lane.b32.xlu1 %v586_v31, %s10479_s6 }
 0x170   :  { %v578_v34 = vpop.f32.mrf.mxu1 }
 0x171   :  { %v579_v24 = vadd.f32 %v578_v34, %v479_v37 }
 0x172   :  { %v567_v35 = vpop.f32.mrf.mxu0 }
 0x173   :  { %v587_v52 = vmax.f32 %v579_v24, 0.0 }
 0x175   :  { %598 = vrot.lane.b32.xlu2 %v587_v52, %s10479_s6 }
 0x178   :  { %v580_v39 = vpop.f32.mrf.mxu1 }
 0x1bb   :  { %v589_v4 = vpop.permute.xlu0 %588 }
 0x1c1   :  { %v593_v42 = vpop.permute.xlu2 %592 }
 0x1cf   :  { %v599_v11 = vpop.permute.xlu2 %598 }
 0x1d0   :  { %v605_v19 = vsel %vm302_vm3, %v599_v11, %v589_v4 }
 0x1d1   :  { %v611_v57 = vmax.f32 %v587_v52, %v605_v19 }
 0x1d3   :  { %v591_v43 = vpop.permute.xlu1 %590 }
 0x1d4   :  { %v603_v45 = vsel %vm302_vm3, %v591_v43, %v593_v42  ;;  %v604_v47 = vsel %vm302_vm3, %v589_v4, %v591_v43 }
 0x1d5   :  { %v606_v48 = vmax.f32 %v582_v6, %v604_v47  ;;  %v607_v16 = vmax.f32 %v583_v13, %v603_v45 }
 0x1d7   :  { %614 = vrot.lane.b32.xlu1 %v607_v16, %s10478_s22  ;;  %612 = vrot.lane.b32.xlu0 %v606_v48, %s10478_s22 }
 0x1da   :  { %v595_v32 = vpop.permute.xlu0 %594 }
 0x1db   :  { %v602_v55 = vsel %vm302_vm3, %v593_v42, %v595_v32 }
 0x1dc   :  { %v608_v41 = vmax.f32 %v584_v21, %v602_v55 }
 0x1de   :  { %616 = vrot.lane.b32.xlu2 %v608_v41, %s10478_s22 }
 0x1df   :  { %622 = vrot.lane.b32.xlu1 %v611_v57, %s10478_s22 }
 0x1e1   :  { %v597_v59 = vpop.permute.xlu1 %596 }
 0x1e2   :  { %v600_v22 = vsel %vm302_vm3, %v597_v59, %v599_v11  ;;  %v601_v60 = vsel %vm302_vm3, %v595_v32, %v597_v59  ;;  %vm6800_vm3 = vcmask 74752  }
 0x1e3   :  { %v609_v63 = vmax.f32 %v585_v54, %v601_v60  ;;  %v610_v2 = vmax.f32 %v586_v31, %v600_v22 }
 0x1e5   :  { %618 = vrot.lane.b32.xlu0 %v609_v63, %s10478_s22 }
 0x1e6   :  { %620 = vrot.lane.b32.xlu2 %v610_v2, %s10478_s22 }
 0x238   :  { %v617_v29 = vpop.permute.xlu2 %616 }
 0x240   :  { %v621_v1 = vpop.permute.xlu2 %620 }
 0x249   :  { %v615_v15 = vpop.permute.xlu1 %614  ;;  %v613_v36 = vpop.permute.xlu0 %612 }
 0x24a   :  { %v627_v12 = vsel %vm352_vm2, %v615_v15, %v617_v29  ;;  %v628_v23 = vsel %vm352_vm2, %v613_v36, %v615_v15 }
 0x24b   :  { %v631_v3 = vmax.f32 %v607_v16, %v627_v12  ;;  %v630_v27 = vmax.f32 %v606_v48, %v628_v23 }
 0x24d   :  { %v10928_v0 = vmul.f32 %v639_v33, %v631_v3  ;;  %v10930_v44 = vmul.f32 %v638_v25, %v630_v27 }
 0x24f   :  { %683 = vrot.lane.b32.xlu1 %v10928_v0, %s10486_s2  ;;  %v10045_v46 = vpack.i.bf16 %v10928_v0, %v10930_v44 }
 0x251   :  { %v623_v58 = vpop.permute.xlu1 %622  ;;  %10046 = vrot.lane.b32.xlu2 %v10045_v46, %s10487_s14  ;;  %10041 = vrot.lane.b32.xlu0 %v10045_v46, %s10488_s7 }
 0x252   :  { %v624_v50 = vsel %vm352_vm2, %v621_v1, %v623_v58  ;;  %v629_v9 = vsel %vm352_vm2, %v623_v58, %v613_v36 }
 0x253   :  { %v634_v49 = vmax.f32 %v610_v2, %v624_v50  ;;  %v635_v40 = vmax.f32 %v611_v57, %v629_v9 }
 0x255   :  { %v10945_v6 = vmul.f32 %v642_v53, %v634_v49  ;;  %v10953_v61 = vmul.f32 %v643_v10, %v635_v40 }
 0x257   :  { %v619_v62 = vpop.permute.xlu0 %618  ;;  %v10080_v20 = vpack.i.bf16 %v10953_v61, %v10930_v44 }
 0x258   :  { %v626_v37 = vsel %vm352_vm2, %v617_v29, %v619_v62  ;;  %v625_v17 = vsel %vm352_vm2, %v619_v62, %v621_v1  ;;  %vm668_vm2 = vcmp.lt.s32.totalorder %v10653_v14, 76 }
 0x259   :  { %v632_v8 = vmax.f32 %v608_v41, %v626_v37  ;;  %10051 = vrot.lane.b32.xlu0 %v10045_v46, %s10489_s15  ;;  %v633_v18 = vmax.f32 %v609_v63, %v625_v17 }
 0x25b   :  { %v10947_v38 = vmul.f32 %v640_v51, %v632_v8  ;;  %v10961_v21 = vmul.f32 %v641_v7, %v633_v18 }
 0x25d   :  { %v10070_v13 = vpack.i.bf16 %v10945_v6, %v10947_v38  ;;  %v10095_v54 = vpack.i.bf16 %v10961_v21, %v10928_v0  ;;  %v10100_v56 = vpack.i.bf16 %v10961_v21, %v10953_v61  ;;  %v10135_v26 = vpack.i.bf16 %v10947_v38, %v10945_v6 }
 0x25e   :  { %v10140_v28 = vpack.i.bf16 %v10945_v6, %v10961_v21 }
 0x25f   :  { %10071 = vrot.lane.b32.xlu2 %v10070_v13, %s10489_s15  ;;  %10061 = vrot.lane.b32.xlu1 %v10070_v13, %s10488_s7 }
 0x261   :  { %10056 = vrot.lane.b32.xlu0 %v10045_v46, %s10490_s8 }
 0x267   :  { %10081 = vrot.lane.b32.xlu2 %v10080_v20, %s10491_s9  ;;  %10066 = vrot.lane.b32.xlu1 %v10070_v13, %s10487_s14 }
 0x269   :  { %10086 = vrot.lane.b32.xlu0 %v10080_v20, %s10464_s17 }
 0x26f   :  { %10076 = vrot.lane.b32.xlu1 %v10070_v13, %s10490_s8  ;;  %10096 = vrot.lane.b32.xlu2 %v10095_v54, %s10464_s17 }
 0x271   :  { %10101 = vrot.lane.b32.xlu0 %v10100_v56, %s10488_s7 }
 0x277   :  { %10111 = vrot.lane.b32.xlu2 %v10080_v20, %s10486_s2  ;;  %10091 = vrot.lane.b32.xlu1 %v10095_v54, %s10491_s9 }
 0x279   :  { %10116 = vrot.lane.b32.xlu0 %v10095_v54, %s10492_s16 }
 0x27f   :  { %10121 = vrot.lane.b32.xlu2 %v10100_v56, %s10487_s14  ;;  %10106 = vrot.lane.b32.xlu1 %v10080_v20, %s10492_s16 }
 0x281   :  { %10126 = vrot.lane.b32.xlu0 %v10100_v56, %s10489_s15 }
 0x287   :  { %10136 = vrot.lane.b32.xlu2 %v10135_v26, %s10491_s9  ;;  %10131 = vrot.lane.b32.xlu1 %v10100_v56, %s10490_s8 }
 0x289   :  { %739 = vrot.lane.b32.xlu0 %v10945_v6, %s10464_s17 }
 0x28f   :  { %10141 = vrot.lane.b32.xlu2 %v10140_v28, %s10486_s2  ;;  %664 = vrot.lane.b32.xlu1 %v10945_v6, %s10492_s16 }
 0x291   :  { %735 = vrot.lane.b32.xlu0 %v10947_v38, %s10464_s17 }
 0x297   :  { %685 = vrot.lane.b32.xlu2 %v10947_v38, %s10486_s2  ;;  %660 = vrot.lane.b32.xlu1 %v10947_v38, %s10492_s16 }
 0x2ab   :  { %v10988_v30 = vpop.permute.xlu2 %10046 }
 0x2ac   :  { %v10049_v43 = vunpack.i.h.bf16 %v10988_v30  ;;  %v10048_v45 = vunpack.i.l.bf16 %v10988_v30 }
 0x2ae   :  { %v804_v19 = vsel %vm799_vm11, %v10048_v45, %v10049_v43 }
 0x2b9   :  { %v10990_v31 = vpop.permute.xlu2 %10071 }
 0x2ba   :  { %v10073_v36 = vunpack.i.l.bf16 %v10990_v31 }
 0x2c1   :  { %v11001_v42 = vpop.permute.xlu1 %683  ;;  %v11006_v47 = vpop.permute.xlu2 %10081 }
 0x2c2   :  { %v10084_v12 = vunpack.i.h.bf16 %v11006_v47  ;;  %v10083_v23 = vunpack.i.l.bf16 %v11006_v47 }
 0x2c3   :  { %v10992_v34 = vpop.permute.xlu0 %10041 }
 0x2c4   :  { %v10044_v24 = vunpack.i.h.bf16 %v10992_v34  ;;  %v10043_v52 = vunpack.i.l.bf16 %v10992_v34  ;;  %v724_v53 = vsel %vm718_vm14, %v10084_v12, %v10083_v23 }
 0x2c6   :  { %v854_v35 = vsel %vm849_vm10, %v10043_v52, %v10044_v24 }
 0x2c7   :  { %v940_v39 = vpack.c.bf16 %v854_v35, %v854_v35 }
 0x2c9   :  { %v969_v4 = vsel %vm485_vm1, %v940_v39, 0  ;;  %v11032_v2 = vpop.permute.xlu2 %10096 }
 0x2ca   :  { %989 = vmatpush.bf16.msrb.mxu2 %v969_v4  ;;  %v10098_v35 = vunpack.i.l.bf16 %v11032_v2 }
 0x2cb   :  { %v11008_v48 = vpop.permute.xlu0 %10051 }
 0x2cc   :  { %v10054_v16 = vunpack.i.h.bf16 %v11008_v48  ;;  %v10053_v11 = vunpack.i.l.bf16 %v11008_v48 }
 0x2ce   :  { %v829_v32 = vsel %vm824_vm12, %v10053_v11, %v10054_v16  ;;  %v828_v1 = vsel %vm824_vm12, %v10054_v16, %v10073_v36 }
 0x2cf   :  { %v934_v55 = vpack.c.bf16 %v829_v32, %v804_v19 }
 0x2d1   :  { %v11022_v41 = vpop.permute.xlu1 %10061  ;;  %990 = vmatpush.bf16.msrb.mxu2 %v934_v55  ;;  %v11068_v51 = vpop.permute.xlu2 %10111 }
 0x2d2   :  { %v10063_v57 = vunpack.i.l.bf16 %v11022_v41  ;;  %v10064_v10 = vunpack.i.h.bf16 %v11022_v41  ;;  %v10114_v32 = vunpack.i.h.bf16 %v11068_v51  ;;  %v10113_v55 = vunpack.i.l.bf16 %v11068_v51 }
 0x2d3   :  { %v11025_v59 = vpop.permute.xlu0 %10056 }
 0x2d4   :  { %v10059_v22 = vunpack.i.h.bf16 %v11025_v59  ;;  %v10058_v60 = vunpack.i.l.bf16 %v11025_v59  ;;  %v853_v63 = vsel %vm849_vm10, %v10044_v24, %v10063_v57 }
 0x2d5   :  { %v941_v5 = vpack.c.bf16 %v853_v63, %v853_v63  ;;  %v949_v63 = vld [vmem:[%s11877_s4 + $0x8] sm:$0xff] }
 0x2d6   :  { %v779_v29 = vsel %vm774_vm13, %v10058_v60, %v10059_v22  ;;  %957 = vperm.xlu1 %10146, %v949_v63  }
 0x2d7   :  { %v972_v33 = vsel %vm485_vm1, %v941_v5, 0  ;;  %v928_v15 = vpack.c.bf16 %v779_v29, %v10930_v44  ;;  %v10074_v5 = vunpack.i.h.bf16 %v10990_v31 }
 0x2d8   :  { %1003 = vmatpush.bf16.msrb.mxu3 %v972_v33 }
 0x2d9   :  { %v11040_v25 = vpop.permute.xlu1 %10066  ;;  %991 = vmatpush.bf16.msrb.mxu2 %v928_v15  ;;  %v11083_v56 = vpop.permute.xlu2 %10121 }
 0x2da   :  { %v10068_v3 = vunpack.i.l.bf16 %v11040_v25  ;;  %v10069_v29 = vunpack.i.h.bf16 %v11040_v25  ;;  %v10124_v33 = vunpack.i.h.bf16 %v11083_v56 }
 0x2db   :  { %v11046_v27 = vpop.permute.xlu0 %10086 }
 0x2dc   :  { %v10089_v44 = vunpack.i.h.bf16 %v11046_v27  ;;  %v10088_v46 = vunpack.i.l.bf16 %v11046_v27  ;;  %v803_v58 = vsel %vm799_vm11, %v10049_v43, %v10068_v3 }
 0x2dd   :  { %v935_v50 = vpack.c.bf16 %v828_v1, %v803_v58  ;;  %v10123_v58 = vunpack.i.l.bf16 %v11083_v56 }
 0x2de   :  { %v749_v49 = vsel %vm743_vm15, %v10089_v44, %v10088_v46  ;;  %v748_v16 = vsel %vm743_vm15, %v10088_v46, %v10098_v35 }
 0x2df   :  { %1004 = vmatpush.bf16.msrb.mxu3 %v935_v50  ;;  %v922_v62 = vpack.c.bf16 %v749_v49, %v724_v53  ;;  %v699_v53 = vsel %vm693_vm0, %v10114_v32, %v10113_v55  ;;  %v698_v49 = vsel %vm693_vm0, %v10113_v55, %v11001_v42 }
 0x2e1   :  { %v11070_v37 = vpop.permute.xlu1 %10076  ;;  %992 = vmatpush.bf16.msrb.mxu2 %v922_v62  ;;  %v11126_v1 = vpop.permute.xlu2 %10136 }
 0x2e2   :  { %v10078_v8 = vunpack.i.l.bf16 %v11070_v37  ;;  %v10138_v63 = vunpack.i.l.bf16 %v11126_v1 }
 0x2e3   :  { %v10102_v9 = vpop.permute.xlu0 %10101 }
 0x2e4   :  { %v10104_v40 = vunpack.i.h.bf16 %v10102_v9  ;;  %v778_v13 = vsel %vm774_vm13, %v10059_v22, %v10078_v8  ;;  %v10103_v39 = vunpack.i.l.bf16 %v10102_v9  ;;  %v948_v22 = vld [vmem:[%s11877_s4] sm:$0xff]  ;;  %v719_v59 = vsel %vm718_vm14, %v10138_v63, %v10084_v12 }
 0x2e5   :  { %v929_v17 = vpack.c.bf16 %v778_v13, %v10928_v0  ;;  %952 = vperm.xlu0 %10145, %v948_v22  }
 0x2e6   :  { %v852_v7 = vsel %vm849_vm10, %v10063_v57, %v10104_v40  ;;  %v851_v18 = vsel %vm849_vm10, %v10104_v40, %v10064_v10  ;;  %v850_v41 = vsel %vm849_vm10, %v10064_v10, %v10103_v39  ;;  %v855_v57 = vsel %vm849_vm10, %v10103_v39, %v10043_v52 }
 0x2e7   :  { %1005 = vmatpush.bf16.msrb.mxu3 %v929_v17  ;;  %v942_v20 = vpack.c.bf16 %v852_v7, %v852_v7  ;;  %v943_v54 = vpack.c.bf16 %v851_v18, %v851_v18  ;;  %v944_v46 = vpack.c.bf16 %v850_v41, %v850_v41  ;;  %v945_v62 = vpack.c.bf16 %v855_v57, %v855_v57 }
 0x2e8   :  { %v802_v18 = vsel %vm799_vm11, %v10068_v3, %v10124_v33  ;;  %v10079_v57 = vunpack.i.h.bf16 %v11070_v37 }
 0x2e9   :  { %v11085_v26 = vpop.permute.xlu1 %10091  ;;  %v975_v28 = vsel %vm485_vm1, %v942_v20, 0  ;;  %v978_v24 = vsel %vm485_vm1, %v943_v54, 0  ;;  %v801_v20 = vsel %vm799_vm11, %v10124_v33, %v10069_v29  ;;  %v981_v54 = vsel %vm485_vm1, %v944_v46, 0 }
 0x2ea   :  { %v10093_v0 = vunpack.i.l.bf16 %v11085_v26  ;;  %1017 = vmatpush.bf16.msra.mxu0 %v975_v28  ;;  %1031 = vmatpush.bf16.msra.mxu1 %v978_v24  ;;  %v11156_v24 = vld [vmem:[#allocation6] sm:$0xff]  ;;  %v984_v3 = vsel %vm485_vm1, %v945_v62, 0  ;;  %vm1429_vm1 = vcmask 130048  }
 0x2eb   :  { %v11091_v4 = vpop.permute.xlu0 %10116 }
 0x2ec   :  { %v723_v43 = vsel %vm718_vm14, %v10083_v23, %v10093_v0  ;;  %v10118_v34 = vunpack.i.l.bf16 %v11091_v4  ;;  %v10119_v27 = vunpack.i.h.bf16 %v11091_v4 }
 0x2ed   :  { %v923_v19 = vpack.c.bf16 %v748_v16, %v723_v43  ;;  %v800_v16 = vsel %vm799_vm11, %v10069_v29, %v10123_v58 }
 0x2ef   :  { %1006 = vmatpush.bf16.msrb.mxu3 %v923_v19  ;;  %v805_v19 = vsel %vm799_vm11, %v10123_v58, %v10048_v45  ;;  %v10099_v45 = vunpack.i.h.bf16 %v11032_v2 }
 0x2f1   :  { %v11119_v15 = vpop.permute.xlu1 %10106 }
 0x2f2   :  { %v10109_v52 = vunpack.i.h.bf16 %v11119_v15  ;;  %v10108_v23 = vunpack.i.l.bf16 %v11119_v15 }
 0x2f3   :  { %v10127_v50 = vpop.permute.xlu0 %10126 }
 0x2f4   :  { %v10129_v9 = vunpack.i.h.bf16 %v10127_v50  ;;  %v10128_v10 = vunpack.i.l.bf16 %v10127_v50  ;;  %v674_v40 = vsel %vm668_vm2, %v10109_v52, %v10108_v23  ;;  %v673_v13 = vsel %vm668_vm2, %v10108_v23, %v10118_v34 }
 0x2f5   :  { %v916_v17 = vpack.c.bf16 %v699_v53, %v674_v40  ;;  %v917_v7 = vpack.c.bf16 %v698_v49, %v673_v13  ;;  %v10094_v23 = vunpack.i.h.bf16 %v11085_v26  ;;  %v10139_v53 = vunpack.i.h.bf16 %v11126_v1 }
 0x2f6   :  { %v827_v56 = vsel %vm824_vm12, %v10073_v36, %v10129_v9  ;;  %v826_v28 = vsel %vm824_vm12, %v10129_v9, %v10074_v5  ;;  %v825_v25 = vsel %vm824_vm12, %v10074_v5, %v10128_v10  ;;  %v830_v31 = vsel %vm824_vm12, %v10128_v10, %v10053_v11  ;;  %v10142_v5 = vpop.permute.xlu2 %10141 }
 0x2f7   :  { %993 = vmatpush.bf16.msrb.mxu2 %v916_v17  ;;  %1007 = vmatpush.bf16.msrb.mxu3 %v917_v7  ;;  %v936_v39 = vpack.c.bf16 %v827_v56, %v802_v18  ;;  %v937_v43 = vpack.c.bf16 %v826_v28, %v801_v20  ;;  %v938_v48 = vpack.c.bf16 %v825_v25, %v800_v16 }
 0x2f8   :  { %v939_v11 = vpack.c.bf16 %v830_v31, %v805_v19  ;;  %v721_v1 = vsel %vm718_vm14, %v10139_v53, %v10094_v23  ;;  %v722_v47 = vsel %vm718_vm14, %v10093_v0, %v10139_v53 }
 0x2f9   :  { %v10132_v36 = vpop.permute.xlu1 %10131  ;;  %1018 = vmatpush.bf16.msra.mxu0 %v936_v39  ;;  %1032 = vmatpush.bf16.msra.mxu1 %v937_v43 }
 0x2fa   :  { %v10134_v55 = vunpack.i.h.bf16 %v10132_v36  ;;  %v10133_v41 = vunpack.i.l.bf16 %v10132_v36  ;;  %6833 = vmatmul.msk.bf16.vlgmr.msrb.gmra.mxu2 %vm481_vm9, %v11156_v24  ;;  %6834 = vmatmul.msk.bf16.vlgmr.msrb.gmra.mxu3 %vm481_vm9, %v11156_v24 }
 0x2fb   :  { %1045 = vmatpush.bf16.msra.mxu2 %v981_v54  ;;  %1059 = vmatpush.bf16.msra.mxu3 %v984_v3  ;;  %v740_v22 = vpop.permute.xlu0 %739 }
 0x2fc   :  { %v777_v30 = vsel %vm774_vm13, %v10078_v8, %v10134_v55  ;;  %v776_v33 = vsel %vm774_vm13, %v10134_v55, %v10079_v57  ;;  %v775_v37 = vsel %vm774_vm13, %v10079_v57, %v10133_v41  ;;  %v780_v8 = vsel %vm774_vm13, %v10133_v41, %v10058_v60 }
 0x2fd   :  { %v930_v29 = vpack.c.bf16 %v777_v30, %v10947_v38  ;;  %v931_v46 = vpack.c.bf16 %v776_v33, %v10961_v21  ;;  %v932_v58 = vpack.c.bf16 %v775_v37, %v10945_v6  ;;  %v933_v38 = vpack.c.bf16 %v780_v8, %v10953_v61 }
 0x2fe   :  { %v744_v50 = vsel %vm743_vm15, %v740_v22, %v10089_v44  ;;  %v745_v21 = vsel %vm743_vm15, %v10099_v45, %v740_v22  ;;  %v10144_v61 = vunpack.i.h.bf16 %v10142_v5  ;;  %v10143_v60 = vunpack.i.l.bf16 %v10142_v5 }
 0x2ff   :  { %1046 = vmatpush.bf16.msra.mxu2 %v938_v48  ;;  %1060 = vmatpush.bf16.msra.mxu3 %v939_v11  ;;  %v720_v44 = vsel %vm718_vm14, %v10094_v23, %v10138_v63  ;;  %v927_v62 = vpack.c.bf16 %v744_v50, %v719_v59 }
 0x300   :  { %1019 = vmatpush.bf16.msra.mxu0 %v930_v29  ;;  %1033 = vmatpush.bf16.msra.mxu1 %v931_v46  ;;  %v926_v49 = vpack.c.bf16 %v745_v21, %v720_v44  ;;  %v694_v0 = vsel %vm693_vm0, %v10144_v61, %v10114_v32  ;;  %v695_v15 = vsel %vm693_vm0, %v10143_v60, %v10144_v61 }
 0x301   :  { %v665_v6 = vpop.permute.xlu1 %664 }
 0x302   :  { %v669_v9 = vsel %vm668_vm2, %v665_v6, %v10109_v52  ;;  %v670_v10 = vsel %vm668_vm2, %v10119_v27, %v665_v6  ;;  %v686_v52 = vpop.permute.xlu2 %685 }
 0x303   :  { %1047 = vmatpush.bf16.msra.mxu2 %v932_v58  ;;  %1061 = vmatpush.bf16.msra.mxu3 %v933_v38  ;;  %v736_v12 = vpop.permute.xlu0 %735  ;;  %v920_v7 = vpack.c.bf16 %v695_v15, %v670_v10  ;;  %v921_v18 = vpack.c.bf16 %v694_v0, %v669_v9  ;;  %v697_v51 = vsel %vm693_vm0, %v11001_v42, %v686_v52 }
 0x304   :  { %v746_v40 = vsel %vm743_vm15, %v736_v12, %v10099_v45  ;;  %v747_v26 = vsel %vm743_vm15, %v10098_v35, %v736_v12  ;;  %v696_v35 = vsel %vm693_vm0, %v686_v52, %v10143_v60 }
 0x305   :  { %v924_v13 = vpack.c.bf16 %v747_v26, %v722_v47  ;;  %v925_v17 = vpack.c.bf16 %v746_v40, %v721_v1 }
 0x307   :  { %1048 = vmatpush.bf16.msra.mxu2 %v926_v49  ;;  %1062 = vmatpush.bf16.msra.mxu3 %v927_v62 }
 0x308   :  { %1020 = vmatpush.bf16.msra.mxu0 %v924_v13  ;;  %1034 = vmatpush.bf16.msra.mxu1 %v925_v17 }
 0x309   :  { %v661_v2 = vpop.permute.xlu1 %660 }
 0x30a   :  { %v671_v32 = vsel %vm668_vm2, %v661_v2, %v10119_v27  ;;  %v672_v20 = vsel %vm668_vm2, %v10118_v34, %v661_v2 }
 0x30b   :  { %1049 = vmatpush.bf16.msra.mxu2 %v920_v7  ;;  %1063 = vmatpush.bf16.msra.mxu3 %v921_v18  ;;  %v918_v54 = vpack.c.bf16 %v697_v51, %v672_v20  ;;  %v919_v56 = vpack.c.bf16 %v696_v35, %v671_v32 }
 0x30d   :  { %1021 = vmatpush.bf16.msra.mxu0 %v918_v54  ;;  %1035 = vmatpush.bf16.msra.mxu1 %v919_v56 }
 0x30e   :  { %6837 = vmatmul.msk.bf16.vlgmr.msra.gmra.mxu2 %vm481_vm9, %v11156_v24  ;;  %6838 = vmatmul.msk.bf16.vlgmr.msra.gmra.mxu3 %vm481_vm9, %v11156_v24 }
 0x310   :  { %6835 = vmatmul.msk.bf16.vlgmr.msra.gmra.mxu0 %vm481_vm9, %v11156_v24  ;;  %6836 = vmatmul.msk.bf16.vlgmr.msra.gmra.mxu1 %vm481_vm9, %v11156_v24 }
 0x348   :  { %v958_v25 = vpop.permute.xlu1 %957 }
 0x357   :  { %v953_v4 = vpop.permute.xlu0 %952 }
 0x37d   :  { %v995_v42 = vpop.f32.mrf.mxu2  ;;  %v1009_v28 = vpop.f32.mrf.mxu3 }
 0x37e   :  { %v11252_v34 = vadd.f32 %v995_v42, %v953_v4  ;;  %v1010_v46 = vadd.f32 %v1009_v28, %v953_v4 }
 0x380   :  { %v1070_v43 = vmax.f32 %v11252_v34, 0.0  ;;  %v1071_v59 = vmax.f32 %v1010_v46, 0.0 }
 0x385   :  { %v997_v3 = vpop.f32.mrf.mxu2  ;;  %v1011_v36 = vpop.f32.mrf.mxu3 }
 0x386   :  { %v11254_v39 = vadd.f32 %v997_v3, %v958_v25  ;;  %v1012_v37 = vadd.f32 %v1011_v36, %v958_v25 }
 0x388   :  { %v1076_v31 = vmax.f32 %v11254_v39, 0.0  ;;  %v1077_v6 = vmax.f32 %v1012_v37, 0.0 }
 0x38a   :  { %v10147_v16 = vpack.i.bf16 %v1076_v31, %v1070_v43  ;;  %v10162_v44 = vpack.i.bf16 %v1077_v6, %v1071_v59 }
 0x38c   :  { %10148 = vrot.lane.b32.xlu0 %v10147_v16, %s10490_s8 }
 0x38d   :  { %v1023_v24 = vpop.f32.mrf.mxu0  ;;  %v1037_v19 = vpop.f32.mrf.mxu1 }
 0x38e   :  { %v1024_v41 = vadd.f32 %v1023_v24, %v953_v4  ;;  %v1038_v48 = vadd.f32 %v1037_v19, %v953_v4 }
 0x390   :  { %v1072_v30 = vmax.f32 %v1024_v41, 0.0  ;;  %v1073_v29 = vmax.f32 %v1038_v48, 0.0 }
 0x391   :  { %v1051_v55 = vpop.f32.mrf.mxu2  ;;  %v1065_v11 = vpop.f32.mrf.mxu3 }
 0x392   :  { %v1052_v8 = vadd.f32 %v1051_v55, %v953_v4  ;;  %v1066_v60 = vadd.f32 %v1065_v11, %v953_v4 }
 0x394   :  { %v1074_v21 = vmax.f32 %v1052_v8, 0.0  ;;  %v1075_v62 = vmax.f32 %v1066_v60, 0.0  ;;  %v1287_v60 = vld [vmem:[#allocation9 + $0x6] sm:$0x3f] }
 0x395   :  { %v1025_v57 = vpop.f32.mrf.mxu0  ;;  %v1039_v22 = vpop.f32.mrf.mxu1 }
 0x396   :  { %v1026_v45 = vadd.f32 %v1025_v57, %v958_v25  ;;  %v1040_v63 = vadd.f32 %v1039_v22, %v958_v25 }
 0x398   :  { %v1078_v33 = vmax.f32 %v1026_v45, 0.0  ;;  %v1079_v23 = vmax.f32 %v1040_v63, 0.0 }
 0x399   :  { %v1053_v5 = vpop.f32.mrf.mxu2  ;;  %v1067_v61 = vpop.f32.mrf.mxu3 }
 0x39a   :  { %v1054_v58 = vadd.f32 %v1053_v5, %v958_v25  ;;  %v10152_v38 = vpack.i.bf16 %v1078_v33, %v1072_v30  ;;  %v10157_v50 = vpack.i.bf16 %v1079_v23, %v1073_v29  ;;  %v1068_v27 = vadd.f32 %v1067_v61, %v958_v25 }
 0x39c   :  { %10153 = vrot.lane.b32.xlu2 %v10152_v38, %s10490_s8  ;;  %10158 = vrot.lane.b32.xlu1 %v10157_v50, %s10490_s8  ;;  %v1080_v53 = vmax.f32 %v1054_v58, 0.0  ;;  %v1081_v1 = vmax.f32 %v1068_v27, 0.0  ;;  %v1184_v58 = vld [vmem:[#allocation9] sm:$0x3f] }
 0x39d   :  { %1186 = vst [vmem:[#allocation1] ss:$9 sm:$0xff] %v1184_v58 }
 0x39e   :  { %v10167_v49 = vpack.i.bf16 %v1080_v53, %v1074_v21  ;;  %v10172_v47 = vpack.i.bf16 %v1081_v1, %v1075_v62 }
 0x3a4   :  { %10163 = vrot.lane.b32.xlu1 %v10162_v44, %s10490_s8  ;;  %10168 = vrot.lane.b32.xlu2 %v10167_v49, %s10490_s8  ;;  %v11335_v50 = vld [vmem:[#allocation1] sm:$0xff]  ;;  %v11341_v61 = vld [vmem:[#allocation1 + $0x2d] sm:$0xff] }
 0x3ac   :  { %10173 = vrot.lane.b32.xlu2 %v10172_v47, %s10490_s8 }
 0x3f6   :  { %v10154_v12 = vpop.permute.xlu2 %10153 }
 0x3f7   :  { %v10156_v40 = vunpack.i.h.bf16 %v10154_v12  ;;  %v10155_v26 = vunpack.i.l.bf16 %v10154_v12 }
 0x3fe   :  { %v10169_v9 = vpop.permute.xlu2 %10168  ;;  %v10149_v4 = vpop.permute.xlu0 %10148 }
 0x3ff   :  { %v10171_v17 = vunpack.i.h.bf16 %v10169_v9  ;;  %v10170_v0 = vunpack.i.l.bf16 %v10169_v9  ;;  %v10151_v24 = vunpack.i.h.bf16 %v10149_v4  ;;  %v10150_v19 = vunpack.i.l.bf16 %v10149_v4 }
 0x406   :  { %v10174_v10 = vpop.permute.xlu2 %10173 }
 0x407   :  { %v10176_v7 = vunpack.i.h.bf16 %v10174_v10  ;;  %v10175_v18 = vunpack.i.l.bf16 %v10174_v10 }
 0x409   :  { %v1106_v3 = vsel %vm774_vm13, %v10170_v0, %v10175_v18  ;;  %v1107_v36 = vsel %vm774_vm13, %v10171_v17, %v10176_v7  ;;  %v1117_v8 = vsel %vm774_vm13, %v10176_v7, %v10151_v24  ;;  %v1116_v34 = vsel %vm774_vm13, %v10175_v18, %v10150_v19 }
 0x40a   :  { %v11291_v48 = vmax.f32 %v1074_v21, %v1106_v3  ;;  %v11293_v11 = vmax.f32 %v1080_v53, %v1107_v36  ;;  %v11328_v39 = vmax.f32 %v1075_v62, %v1116_v34  ;;  %v11337_v21 = vld [vmem:[#allocation1 + $0x9] sm:$0xff]  ;;  %v1190_v53 = vld [vmem:[#allocation1 + $0x1b] sm:$0xff] }
 0x40e   :  { %v10159_v13 = vpop.permute.xlu1 %10158 }
 0x40f   :  { %v10161_v15 = vunpack.i.h.bf16 %v10159_v13  ;;  %v10160_v52 = vunpack.i.l.bf16 %v10159_v13 }
 0x411   :  { %v1111_v2 = vsel %vm774_vm13, %v10156_v40, %v10161_v15  ;;  %v1108_v35 = vsel %vm774_vm13, %v10160_v52, %v10170_v0  ;;  %v1109_v51 = vsel %vm774_vm13, %v10161_v15, %v10171_v17  ;;  %v1110_v32 = vsel %vm774_vm13, %v10155_v26, %v10160_v52 }
 0x412   :  { %v11276_v20 = vmax.f32 %v1073_v29, %v1108_v35  ;;  %v11278_v54 = vmax.f32 %v1079_v23, %v1109_v51  ;;  %v11280_v56 = vmax.f32 %v1072_v30, %v1110_v32  ;;  %v1126_v42 = vmax.f32 %v1078_v33, %v1111_v2 }
 0x413   :  { %v10197_v23 = vpack.i.bf16 %v11293_v11, %v11291_v48 }
 0x414   :  { %v10187_v28 = vpack.i.bf16 %v11278_v54, %v11276_v20  ;;  %v10177_v25 = vpack.i.bf16 %v1126_v42, %v11280_v56 }
 0x416   :  { %v10164_v16 = vpop.permute.xlu1 %10163  ;;  %10188 = vrot.lane.b32.xlu1 %v10187_v28, %s10489_s15  ;;  %10178 = vrot.lane.b32.xlu0 %v10177_v25, %s10489_s15 }
 0x417   :  { %v10166_v55 = vunpack.i.h.bf16 %v10164_v16  ;;  %v10165_v41 = vunpack.i.l.bf16 %v10164_v16 }
 0x419   :  { %v1113_v57 = vsel %vm774_vm13, %v10166_v55, %v10156_v40  ;;  %v1112_v22 = vsel %vm774_vm13, %v10165_v41, %v10155_v26  ;;  %v1114_v30 = vsel %vm774_vm13, %v10150_v19, %v10165_v41  ;;  %v1115_v45 = vsel %vm774_vm13, %v10151_v24, %v10166_v55 }
 0x41a   :  { %v11303_v63 = vmax.f32 %v1071_v59, %v1112_v22  ;;  %v11305_v5 = vmax.f32 %v1077_v6, %v1113_v57  ;;  %v11309_v29 = vmax.f32 %v1070_v43, %v1114_v30  ;;  %v11313_v33 = vmax.f32 %v1076_v31, %v1115_v45  ;;  %v11339_v59 = vld [vmem:[#allocation1 + $0x24] sm:$0xff]  ;;  %v1189_v6 = vld [vmem:[#allocation1 + $0x12] sm:$0xff] }
 0x41b   :  { %v11330_v43 = vmax.f32 %v1081_v1, %v1117_v8  ;;  %1289 = vst [vmem:[#allocation1] ss:$9 sm:$0xff] %v1287_v60 }
 0x41c   :  { %v10192_v46 = vpack.i.bf16 %v11305_v5, %v11303_v63  ;;  %v10182_v37 = vpack.i.bf16 %v11313_v33, %v11309_v29 }
 0x41d   :  { %v10202_v31 = vpack.i.bf16 %v11330_v43, %v11328_v39 }
 0x41e   :  { %10198 = vrot.lane.b32.xlu1 %v10197_v23, %s10489_s15  ;;  %10193 = vrot.lane.b32.xlu0 %v10192_v46, %s10489_s15 }
 0x41f   :  { %10183 = vrot.lane.b32.xlu2 %v10182_v37, %s10489_s15 }
 0x422   :  { %v1292_v34 = vld [vmem:[#allocation1 + $0x12] sm:$0xff] }
 0x427   :  { %10203 = vrot.lane.b32.xlu2 %v10202_v31, %s10489_s15 }
 0x479   :  { %v10184_v38 = vpop.permute.xlu2 %10183 }
 0x47a   :  { %v10186_v0 = vunpack.i.h.bf16 %v10184_v38  ;;  %v10185_v15 = vunpack.i.l.bf16 %v10184_v38 }
 0x481   :  { %v10204_v27 = vpop.permute.xlu2 %10203 }
 0x482   :  { %v10206_v9 = vunpack.i.h.bf16 %v10204_v27  ;;  %v10205_v10 = vunpack.i.l.bf16 %v10204_v27  ;;  %v6843_v27 = vld [vmem:[#allocation11 + $0x60] sm:$0xf0] }
 0x484   :  { %v1164_v7 = vsel %vm824_vm12, %v10205_v10, %v10185_v15  ;;  %v1165_v18 = vsel %vm824_vm12, %v10206_v9, %v10186_v0 }
 0x485   :  { %v1177_v28 = vmax.f32 %v11330_v43, %v1165_v18  ;;  %v9319_v18 = vld [vmem:[#allocation11 + $0x74] sm:$0xf0] }
 0x488   :  { %v10189_v44 = vpop.permute.xlu1 %10188  ;;  %v10179_v49 = vpop.permute.xlu0 %10178 }
 0x489   :  { %v10191_v62 = vunpack.i.h.bf16 %v10189_v44  ;;  %v10190_v1 = vunpack.i.l.bf16 %v10189_v44  ;;  %v10181_v47 = vunpack.i.h.bf16 %v10179_v49  ;;  %v10180_v12 = vunpack.i.l.bf16 %v10179_v49  ;;  %v6849_v44 = vld [vmem:[#allocation11 + $0x48] sm:$0xf] }
 0x48a   :  { %v9317_v49 = vld [vmem:[#allocation11 + $0x64] sm:$0xf0] }
 0x48b   :  { %v1159_v40 = vsel %vm824_vm12, %v10181_v47, %v10191_v62  ;;  %v1158_v26 = vsel %vm824_vm12, %v10180_v12, %v10190_v1 }
 0x48c   :  { %v1174_v13 = vmax.f32 %v1126_v42, %v1159_v40  ;;  %v1168_v17 = vmax.f32 %v11280_v56, %v1158_v26  ;;  %v1171_v56 = vmax.f32 %v11328_v39, %v1164_v7  ;;  %v1293_v39 = vld [vmem:[#allocation1 + $0x1b] sm:$0xff]  ;;  %v6865_v7 = vld [vmem:[#allocation11 + $0x58] sm:$0xf] }
 0x48d   :  { %v6857_v26 = vld [vmem:[#allocation11 + $0x50] sm:$0xf] }
 0x48e   :  { %v11348_v52 = vpack.c.bf16 %v1174_v13, %v1168_v17  ;;  %v11392_v14 = vpack.c.bf16 %v1177_v28, %v1171_v56  ;;  %v9318_v13 = vld [vmem:[#allocation11 + $0x6c] sm:$0xf0]  ;;  %v9314_v17 = vld [vmem:[#allocation11 + $0x54] sm:$0xf] }
 0x490   :  { %v10199_v2 = vpop.permute.xlu1 %10198  ;;  %v10194_v35 = vpop.permute.xlu0 %10193  ;;  %1232 = vmatpush.bf16.xpose.msrb.mxu2 %v11348_v52 }
 0x491   :  { %v10201_v51 = vunpack.i.h.bf16 %v10199_v2  ;;  %v10200_v32 = vunpack.i.l.bf16 %v10199_v2  ;;  %v10196_v4 = vunpack.i.h.bf16 %v10194_v35  ;;  %v10195_v42 = vunpack.i.l.bf16 %v10194_v35 }
 0x492   :  { %v6866_v35 = vor.u32 %v9319_v18, %v6865_v7  ;;  %v1685_v7 = vld [vmem:[#allocation9 + $0xc] sm:$0x3f] }
 0x493   :  { %v1157_v25 = vsel %vm824_vm12, %v10191_v62, %v10201_v51  ;;  %v1154_v3 = vsel %vm824_vm12, %v10200_v32, %v10205_v10  ;;  %v1155_v36 = vsel %vm824_vm12, %v10201_v51, %v10206_v9  ;;  %v1156_v16 = vsel %vm824_vm12, %v10190_v1, %v10200_v32  ;;  %v9315_v51 = vld [vmem:[#allocation11 + $0x5c] sm:$0xf] }
 0x494   :  { %v1175_v24 = vmax.f32 %v11278_v54, %v1157_v25  ;;  %v1169_v19 = vmax.f32 %v11276_v20, %v1156_v16  ;;  %v1170_v55 = vmax.f32 %v11291_v48, %v1154_v3  ;;  %v1176_v41 = vmax.f32 %v11293_v11, %v1155_v36  ;;  %v6867_v32 = vld [vmem:[#allocation11 + $0x78] sm:$0xf0] }
 0x495   :  { %v1160_v57 = vsel %vm824_vm12, %v10195_v42, %v10180_v12  ;;  %v1161_v22 = vsel %vm824_vm12, %v10196_v4, %v10181_v47  ;;  %v1162_v30 = vsel %vm824_vm12, %v10185_v15, %v10195_v42  ;;  %v1163_v45 = vsel %vm824_vm12, %v10186_v0, %v10196_v4  ;;  %v9313_v47 = vld [vmem:[#allocation11 + $0x4c] sm:$0xf]  ;;  %v6859_v15 = vld [vmem:[#allocation11 + $0x70] sm:$0xf0] }
 0x496   :  { %v1166_v54 = vmax.f32 %v11309_v29, %v1162_v30  ;;  %v1167_v20 = vmax.f32 %v11303_v63, %v1160_v57  ;;  %v1172_v48 = vmax.f32 %v11313_v33, %v1163_v45  ;;  %v1173_v11 = vmax.f32 %v11305_v5, %v1161_v22  ;;  %v1290_v63 = vld [vmem:[#allocation1] sm:$0xff]  ;;  %v1291_v5 = vld [vmem:[#allocation1 + $0x9] sm:$0xff] }
 0x497   :  { %1233 = vmatmul.bf16.vlgmr.msrb.gmra.mxu2 %v1189_v6  ;;  %v11381_v23 = vpack.c.bf16 %v1175_v24, %v1169_v19  ;;  %v11383_v46 = vpack.c.bf16 %v1176_v41, %v1170_v55  ;;  %v1294_v29 = vld [vmem:[#allocation1 + $0x24] sm:$0xff]  ;;  %v1295_v33 = vld [vmem:[#allocation1 + $0x2d] sm:$0xff]  ;;  %v6850_v1 = vor.u32 %v9317_v49, %v6849_v44  ;;  %v6851_v12 = vld [vmem:[#allocation11 + $0x68] sm:$0xf0]  ;;  %v6858_v0 = vor.u32 %v9318_v13, %v6857_v26 }
 0x498   :  { %v11385_v37 = vpack.c.bf16 %v1172_v48, %v1166_v54  ;;  %v11387_v8 = vpack.c.bf16 %v1173_v11, %v1167_v20  ;;  %v6854_v9 = vor.u32 %v9313_v47, %v6851_v12  ;;  %v6862_v2 = vor.u32 %v9314_v17, %v6859_v15  ;;  %v6881_v20 = vld [vmem:[#allocation11] sm:$0xf]  ;;  %v9304_v11 = vld [vmem:[#allocation11 + $0x4] sm:$0xf]  ;;  %v6897_v44 = vld [vmem:[#allocation11 + $0x10] sm:$0xf] }
 0x499   :  { %1245 = vmatpush.bf16.xpose.msrb.mxu3 %v11381_v23  ;;  %v6870_v56 = vor.u32 %v9315_v51, %v6867_v32  ;;  %v9308_v48 = vld [vmem:[#allocation11 + $0x1c] sm:$0xf0]  ;;  %v9310_v49 = vld [vmem:[#allocation11 + $0x2c] sm:$0xf0]  ;;  %v6905_v47 = vld [vmem:[#allocation11 + $0x18] sm:$0xf] }
 0x49a   :  { %1206 = vmatpush.bf16.xpose.msrb.mxu0 %v11385_v37  ;;  %1219 = vmatpush.bf16.xpose.msrb.mxu1 %v11387_v8  ;;  %v9311_v12 = vld [vmem:[#allocation11 + $0x34] sm:$0xf0]  ;;  %v6898_v26 = vor.u32 %v9310_v49, %v6897_v44  ;;  %1687 = vst [vmem:[#allocation1] ss:$9 sm:$0xff] %v1685_v7  ;;  %v9324_v44 = vld [vmem:[#allocation11 + $0x9c] sm:$0xf0] }
 0x49b   :  { %1309 = vmatpush.bf16.xpose.msra.mxu2 %v11385_v37  ;;  %v6906_v17 = vor.u32 %v9311_v12, %v6905_v47  ;;  %v9320_v49 = vld [vmem:[#allocation11 + $0x84] sm:$0xf]  ;;  %v6929_v47 = vld [vmem:[#allocation11 + $0x88] sm:$0xf]  ;;  %v6939_v7 = vld [vmem:[#allocation11 + $0xb0] sm:$0xf0] }
 0x49c   :  { %v9325_v12 = vld [vmem:[#allocation11 + $0xa4] sm:$0xf0] }
 0x4a0   :  { %1246 = vmatmul.bf16.vlgmr.msrb.gmra.mxu3 %v1190_v53  ;;  %v9316_v53 = vld [vmem:[#allocation11 + $0x5c] sm:$0xf0] }
 0x4a1   :  { %1322 = vmatpush.bf16.xpose.msra.mxu3 %v11387_v8  ;;  %1207 = vmatmul.bf16.vlgmr.msrb.gmra.mxu0 %v11335_v50  ;;  %v1691_v51 = vld [vmem:[#allocation1 + $0x1b] sm:$0xff]  ;;  %v1692_v32 = vld [vmem:[#allocation1 + $0x24] sm:$0xff] }
 0x4a2   :  { %1258 = vmatpush.bf16.xpose.msra.mxu0 %v11383_v46  ;;  %1271 = vmatpush.bf16.xpose.msra.mxu1 %v11392_v14 }
 0x4a3   :  { %1361 = vmatpush.bf16.xpose.msrb.mxu2 %v11383_v46  ;;  %1220 = vmatmul.bf16.vlgmr.msrb.gmra.mxu1 %v11337_v21  ;;  %v6841_v21 = vld [vmem:[#allocation11 + $0x40] sm:$0xf] }
 0x4a4   :  { %v6842_v60 = vor.u32 %v9316_v53, %v6841_v21 }
 0x4a7   :  { %1310 = vmatmul.bf16.vlgmr.msra.gmra.mxu2 %v1290_v63  ;;  %v6883_v63 = vld [vmem:[#allocation11 + $0x20] sm:$0xf0] }
 0x4a9   :  { %1374 = vmatpush.bf16.xpose.msrb.mxu3 %v11392_v14 }
 0x4aa   :  { %1335 = vmatpush.bf16.xpose.msrb.mxu0 %v11348_v52  ;;  %1348 = vmatpush.bf16.xpose.msrb.mxu1 %v11381_v23 }
 0x4ab   :  { %1466 = vmatpush.bf16.msra.mxu2 %v6850_v1  ;;  %v6899_v1 = vld [vmem:[#allocation11 + $0x30] sm:$0xf0] }
 0x4b0   :  { %1323 = vmatmul.bf16.vlgmr.msra.gmra.mxu3 %v1291_v5  ;;  %v6889_v5 = vld [vmem:[#allocation11 + $0x8] sm:$0xf] }
 0x4b1   :  { %1259 = vmatmul.bf16.vlgmr.msra.gmra.mxu0 %v11339_v59  ;;  %v9312_v59 = vld [vmem:[#allocation11 + $0x44] sm:$0xf]  ;;  %1479 = vmatpush.bf16.msra.mxu3 %v6854_v9  ;;  %v9307_v9 = vld [vmem:[#allocation11 + $0x1c] sm:$0xf] }
 0x4b2   :  { %v6846_v62 = vor.u32 %v9312_v59, %v6843_v27  ;;  %1440 = vmatpush.bf16.msra.mxu0 %v6842_v60  ;;  %v6882_v59 = vor.u32 %v9308_v48, %v6881_v20 }
 0x4b3   :  { %1272 = vmatmul.bf16.vlgmr.msra.gmra.mxu1 %v11341_v61 }
 0x4b4   :  { %1453 = vmatpush.bf16.msra.mxu1 %v6846_v62  ;;  %v9306_v62 = vld [vmem:[#allocation11 + $0x14] sm:$0xf] }
 0x4b5   :  { %v6902_v13 = vor.u32 %v9306_v62, %v6899_v1  ;;  %v6923_v1 = vld [vmem:[#allocation11 + $0xa0] sm:$0xf0] }
 0x4b7   :  { %1362 = vmatmul.bf16.vlgmr.msrb.gmra.mxu2 %v1294_v29 }
 0x4b8   :  { %1518 = vmatpush.bf16.msrb.mxu2 %v6866_v35  ;;  %v1690_v35 = vld [vmem:[#allocation1 + $0x12] sm:$0xff] }
 0x4c0   :  { %1375 = vmatmul.bf16.vlgmr.msrb.gmra.mxu3 %v1295_v33  ;;  %v9309_v33 = vld [vmem:[#allocation11 + $0x24] sm:$0xf0] }
 0x4c1   :  { %1336 = vmatmul.bf16.vlgmr.msrb.gmra.mxu0 %v1292_v34  ;;  %1531 = vmatpush.bf16.msrb.mxu3 %v6870_v56  ;;  %v9305_v34 = vld [vmem:[#allocation11 + $0xc] sm:$0xf] }
 0x4c2   :  { %1492 = vmatpush.bf16.msrb.mxu0 %v6858_v0 }
 0x4c3   :  { %1349 = vmatmul.bf16.vlgmr.msrb.gmra.mxu1 %v1293_v39  ;;  %v6891_v39 = vld [vmem:[#allocation11 + $0x28] sm:$0xf0] }
 0x4c4   :  { %1505 = vmatpush.bf16.msrb.mxu1 %v6862_v2  ;;  %v6894_v60 = vor.u32 %v9305_v34, %v6891_v39 }
 0x51a   :  { %v11406_v43 = vpop.f32.mrf.mxu2 }
 0x51e   :  { %v11408_v31 = vpop.f32.mrf.mxu0 }
 0x520   :  { %v11410_v58 = vpop.f32.mrf.mxu1 }
 0x522   :  { %v1236_v38 = vpop.f32.mrf.mxu2 }
 0x523   :  { %v11412_v50 = vpop.f32.mrf.mxu3 }
 0x526   :  { %v1210_v6 = vpop.f32.mrf.mxu0 }
 0x527   :  { %v6886_v6 = vor.u32 %v9304_v11, %v6883_v63 }
 0x528   :  { %v1223_v61 = vpop.f32.mrf.mxu1 }
 0x529   :  { %v6890_v61 = vor.u32 %v9309_v33, %v6889_v5 }
 0x52a   :  { %v1311_v10 = vpop.f32.mrf.mxu2 }
 0x52b   :  { %v1249_v40 = vpop.f32.mrf.mxu3 }
 0x52c   :  { %v1222_v40 = vadd.f32 %v11410_v58, %v11408_v31 }
 0x52e   :  { %v11414_v4 = vpop.f32.mrf.mxu0  ;;  %v1235_v15 = vadd.f32 %v11406_v43, %v1222_v40  ;;  %v1688_v43 = vld [vmem:[#allocation1] sm:$0xff] }
 0x52f   :  { %v9321_v40 = vld [vmem:[#allocation11 + $0x8c] sm:$0xf] }
 0x530   :  { %v11416_v42 = vpop.f32.mrf.mxu1  ;;  %v1248_v31 = vadd.f32 %v11412_v50, %v1235_v15  ;;  %v1689_v50 = vld [vmem:[#allocation1 + $0x9] sm:$0xff] }
 0x531   :  { %v9322_v15 = vld [vmem:[#allocation11 + $0x94] sm:$0xf] }
 0x532   :  { %v1313_v28 = vpop.f32.mrf.mxu2  ;;  %v1261_v58 = vadd.f32 %v11414_v4, %v1248_v31  ;;  %v1693_v4 = vld [vmem:[#allocation1 + $0x2d] sm:$0xff] }
 0x533   :  { %v1324_v25 = vpop.f32.mrf.mxu3 }
 0x534   :  { %v1325_v19 = vadd.f32 %v1324_v25, %v1311_v10  ;;  %v6907_v10 = vld [vmem:[#allocation11 + $0x38] sm:$0xf0]  ;;  %v1274_v18 = vadd.f32 %v11416_v42, %v1261_v58 }
 0x535   :  { %v6910_v0 = vor.u32 %v9307_v9, %v6907_v10  ;;  %v6926_v9 = vor.u32 %v9320_v49, %v6923_v1  ;;  %v6930_v10 = vor.u32 %v9325_v12, %v6929_v47 }
 0x536   :  { %v1262_v3 = vpop.f32.mrf.mxu0  ;;  %v1277_v2 = vpack.c.bf16 %v1274_v18, %v1274_v18 }
 0x538   :  { %v1275_v36 = vpop.f32.mrf.mxu1 }
 0x53a   :  { %v1363_v16 = vpop.f32.mrf.mxu2 }
 0x53b   :  { %v1326_v24 = vpop.f32.mrf.mxu3 }
 0x53e   :  { %v1337_v55 = vpop.f32.mrf.mxu0 }
 0x53f   :  { %v1338_v57 = vadd.f32 %v1337_v55, %v1325_v19 }
 0x540   :  { %v1350_v41 = vpop.f32.mrf.mxu1 }
 0x541   :  { %v1351_v22 = vadd.f32 %v1350_v41, %v1338_v57 }
 0x542   :  { %v1365_v30 = vpop.f32.mrf.mxu2 }
 0x543   :  { %v1364_v45 = vadd.f32 %v1363_v16, %v1351_v22  ;;  %v1376_v54 = vpop.f32.mrf.mxu3 }
 0x545   :  { %v1377_v29 = vadd.f32 %v1376_v54, %v1364_v45 }
 0x546   :  { %v1339_v38 = vpop.f32.mrf.mxu0 }
 0x547   :  { %v1380_v53 = vpack.c.bf16 %v1377_v29, %v1377_v29 }
 0x548   :  { %v1352_v21 = vpop.f32.mrf.mxu1 }
 0x549   :  { %6871 = vmatmul.msk.bf16.vlgmr.msra.gmra.mxu0 %vm1429_vm1, %v1380_v53  ;;  %6872 = vmatmul.msk.bf16.vlgmr.msra.gmra.mxu1 %vm1429_vm1, %v1380_v53 }
 0x54a   :  { %6873 = vmatmul.msk.bf16.vlgmr.msra.gmra.mxu2 %vm1429_vm1, %v1380_v53  ;;  %6874 = vmatmul.msk.bf16.vlgmr.msra.gmra.mxu3 %vm1429_vm1, %v1380_v53 }
 0x54b   :  { %v1378_v27 = vpop.f32.mrf.mxu3  ;;  %1587 = vmatpush.bf16.msra.mxu0 %v6882_v59  ;;  %1600 = vmatpush.bf16.msra.mxu1 %v6886_v6 }
 0x54c   :  { %1613 = vmatpush.bf16.msra.mxu2 %v6890_v61  ;;  %1626 = vmatpush.bf16.msra.mxu3 %v6894_v60  ;;  %v6921_v27 = vld [vmem:[#allocation11 + $0x80] sm:$0xf] }
 0x54d   :  { %v6922_v62 = vor.u32 %v9324_v44, %v6921_v27 }
 0x559   :  { %6875 = vmatmul.msk.bf16.vlgmr.msrb.gmra.mxu0 %vm1429_vm1, %v1380_v53  ;;  %6876 = vmatmul.msk.bf16.vlgmr.msrb.gmra.mxu1 %vm1429_vm1, %v1380_v53 }
 0x55a   :  { %6877 = vmatmul.msk.bf16.vlgmr.msrb.gmra.mxu2 %vm1429_vm1, %v1380_v53  ;;  %6878 = vmatmul.msk.bf16.vlgmr.msrb.gmra.mxu3 %vm1429_vm1, %v1380_v53 }
 0x55b   :  { %1639 = vmatpush.bf16.msrb.mxu0 %v6898_v26  ;;  %1652 = vmatpush.bf16.msrb.mxu1 %v6902_v13  ;;  %v6931_v26 = vld [vmem:[#allocation11 + $0xa8] sm:$0xf0]  ;;  %v6937_v13 = vld [vmem:[#allocation11 + $0x90] sm:$0xf] }
 0x55c   :  { %1665 = vmatpush.bf16.msrb.mxu2 %v6906_v17  ;;  %1678 = vmatpush.bf16.msrb.mxu3 %v6910_v0  ;;  %v6934_v17 = vor.u32 %v9321_v40, %v6931_v26  ;;  %v9326_v0 = vld [vmem:[#allocation11 + $0xac] sm:$0xf0] }
 0x55d   :  { %v6938_v18 = vor.u32 %v9326_v0, %v6937_v13 }
 0x569   :  { %6911 = vmatmul.msk.bf16.vlgmr.msra.gmra.mxu0 %vm1429_vm1, %v1277_v2  ;;  %6912 = vmatmul.msk.bf16.vlgmr.msra.gmra.mxu1 %vm1429_vm1, %v1277_v2 }
 0x56a   :  { %6913 = vmatmul.msk.bf16.vlgmr.msra.gmra.mxu2 %vm1429_vm1, %v1277_v2  ;;  %6914 = vmatmul.msk.bf16.vlgmr.msra.gmra.mxu3 %vm1429_vm1, %v1277_v2 }
 0x56b   :  { %1707 = vmatpush.bf16.xpose.msra.mxu0 %v11385_v37  ;;  %1720 = vmatpush.bf16.xpose.msra.mxu1 %v11387_v8 }
 0x56c   :  { %1733 = vmatpush.bf16.xpose.msra.mxu2 %v11348_v52  ;;  %1746 = vmatpush.bf16.xpose.msra.mxu3 %v11381_v23 }
 0x579   :  { %6915 = vmatmul.msk.bf16.vlgmr.msrb.gmra.mxu0 %vm1429_vm1, %v1277_v2  ;;  %6916 = vmatmul.msk.bf16.vlgmr.msrb.gmra.mxu1 %vm1429_vm1, %v1277_v2 }
 0x57a   :  { %6917 = vmatmul.msk.bf16.vlgmr.msrb.gmra.mxu2 %vm1429_vm1, %v1277_v2  ;;  %6918 = vmatmul.msk.bf16.vlgmr.msrb.gmra.mxu3 %vm1429_vm1, %v1277_v2  ;;  %v6942_v2 = vor.u32 %v9322_v15, %v6939_v7 }
 0x57b   :  { %1759 = vmatpush.bf16.xpose.msrb.mxu0 %v11383_v46  ;;  %1772 = vmatpush.bf16.xpose.msrb.mxu1 %v11392_v14 }
 0x57c   :  { %1837 = vmatpush.bf16.msrb.mxu2 %v6922_v62  ;;  %1850 = vmatpush.bf16.msrb.mxu3 %v6926_v9 }
 0x589   :  { %1708 = vmatmul.bf16.vlgmr.msra.gmra.mxu0 %v1688_v43  ;;  %1721 = vmatmul.bf16.vlgmr.msra.gmra.mxu1 %v1689_v50  ;;  %v6945_v43 = vld [vmem:[#allocation11 + $0x98] sm:$0xf] }
 0x58a   :  { %1734 = vmatmul.bf16.vlgmr.msra.gmra.mxu2 %v1690_v35  ;;  %1747 = vmatmul.bf16.vlgmr.msra.gmra.mxu3 %v1691_v51  ;;  %v9327_v50 = vld [vmem:[#allocation11 + $0xb4] sm:$0xf0]  ;;  %v9323_v35 = vld [vmem:[#allocation11 + $0x9c] sm:$0xf] }
 0x58b   :  { %1863 = vmatpush.bf16.msra.mxu0 %v6930_v10  ;;  %1876 = vmatpush.bf16.msra.mxu1 %v6934_v17 }
 0x58c   :  { %1889 = vmatpush.bf16.msra.mxu2 %v6938_v18  ;;  %1902 = vmatpush.bf16.msra.mxu3 %v6942_v2  ;;  %v9332_v18 = vld [vmem:[#allocation11 + $0xdc] sm:$0xf0]  ;;  %v9328_v2 = vld [vmem:[#allocation11 + $0xc4] sm:$0xf] }
 0x599   :  { %1760 = vmatmul.bf16.vlgmr.msrb.gmra.mxu0 %v1692_v32  ;;  %1773 = vmatmul.bf16.vlgmr.msrb.gmra.mxu1 %v1693_v4 }
 0x5c6   :  { %v1442_v42 = vpop.f32.mrf.mxu0  ;;  %v1455_v56 = vpop.f32.mrf.mxu1 }
 0x5cd   :  { %v1468_v28 = vpop.f32.mrf.mxu2  ;;  %v1481_v25 = vpop.f32.mrf.mxu3 }
 0x5ce   :  { %v1444_v3 = vpop.f32.mrf.mxu0  ;;  %v1457_v36 = vpop.f32.mrf.mxu1 }
 0x5d5   :  { %v1470_v16 = vpop.f32.mrf.mxu2  ;;  %v1483_v24 = vpop.f32.mrf.mxu3 }
 0x5d6   :  { %v1494_v19 = vpop.f32.mrf.mxu0  ;;  %v1507_v55 = vpop.f32.mrf.mxu1 }
 0x5dd   :  { %v1520_v41 = vpop.f32.mrf.mxu2  ;;  %v1533_v57 = vpop.f32.mrf.mxu3 }
 0x5de   :  { %v1496_v22 = vpop.f32.mrf.mxu0  ;;  %v1509_v30 = vpop.f32.mrf.mxu1 }
 0x5df   :  { %v1943_v30 = vld [vmem:[#allocation9 + $0x12] sm:$0x3f] }
 0x5e0   :  { %1945 = vst [vmem:[#allocation1] ss:$9 sm:$0xff] %v1943_v30  ;;  %v6987_v30 = vld [vmem:[#allocation11 + $0xf8] sm:$0xf0] }
 0x5e5   :  { %v1522_v45 = vpop.f32.mrf.mxu2  ;;  %v1535_v54 = vpop.f32.mrf.mxu3 }
 0x5e6   :  { %v1589_v20 = vpop.f32.mrf.mxu0  ;;  %v1602_v48 = vpop.f32.mrf.mxu1 }
 0x5e7   :  { %v11446_v11 = vadd.f32 %v1589_v20, %v1442_v42  ;;  %v11448_v63 = vadd.f32 %v1602_v48, %v1455_v56  ;;  %v6946_v56 = vor.u32 %v9327_v50, %v6945_v43  ;;  %v1948_v27 = vld [vmem:[#allocation1 + $0x12] sm:$0xff] }
 0x5e8   :  { %v6963_v50 = vld [vmem:[#allocation11 + $0xe0] sm:$0xf0] }
 0x5e9   :  { %1915 = vmatpush.bf16.msrb.mxu0 %v6946_v56  ;;  %v6971_v56 = vld [vmem:[#allocation11 + $0xe8] sm:$0xf0] }
 0x5ed   :  { %v1615_v5 = vpop.f32.mrf.mxu2  ;;  %v1628_v29 = vpop.f32.mrf.mxu3 }
 0x5ee   :  { %v11450_v33 = vadd.f32 %v1615_v5, %v1468_v28  ;;  %v11452_v34 = vadd.f32 %v1628_v29, %v1481_v25  ;;  %v1591_v39 = vpop.f32.mrf.mxu0  ;;  %v1604_v38 = vpop.f32.mrf.mxu1  ;;  %v6947_v28 = vld [vmem:[#allocation11 + $0xb8] sm:$0xf0] }
 0x5ef   :  { %v6950_v25 = vor.u32 %v9323_v35, %v6947_v28  ;;  %v6969_v35 = vld [vmem:[#allocation11 + $0xc8] sm:$0xf] }
 0x5f1   :  { %1928 = vmatpush.bf16.msrb.mxu1 %v6950_v25 }
 0x5f5   :  { %v1617_v21 = vpop.f32.mrf.mxu2  ;;  %v1630_v53 = vpop.f32.mrf.mxu3 }
 0x5f6   :  { %v1641_v59 = vpop.f32.mrf.mxu0  ;;  %v1654_v6 = vpop.f32.mrf.mxu1 }
 0x5f7   :  { %v11454_v61 = vadd.f32 %v1641_v59, %v1494_v19  ;;  %v11456_v60 = vadd.f32 %v1654_v6, %v1507_v55  ;;  %v1946_v6 = vld [vmem:[#allocation1] sm:$0xff] }
 0x5fd   :  { %v1667_v31 = vpop.f32.mrf.mxu2  ;;  %v1680_v58 = vpop.f32.mrf.mxu3 }
 0x5fe   :  { %v11458_v51 = vadd.f32 %v1667_v31, %v1520_v41  ;;  %v11460_v32 = vadd.f32 %v1680_v58, %v1533_v57  ;;  %v1643_v4 = vpop.f32.mrf.mxu0  ;;  %v1656_v42 = vpop.f32.mrf.mxu1  ;;  %v6961_v58 = vld [vmem:[#allocation11 + $0xc0] sm:$0xf] }
 0x5ff   :  { %v6962_v43 = vor.u32 %v9332_v18, %v6961_v58  ;;  %v6966_v4 = vor.u32 %v9328_v2, %v6963_v50  ;;  %v9329_v42 = vld [vmem:[#allocation11 + $0xcc] sm:$0xf]  ;;  %v7705_v2 = vld [vmem:[#allocation14 + $0x580] sm:$0xf] }
 0x600   :  { %v6974_v28 = vor.u32 %v9329_v42, %v6971_v56  ;;  %v7961_v50 = vld [vmem:[#allocation14 + $0x780] sm:$0xf] }
 0x601   :  { %v7161_v56 = vld [vmem:[#allocation14 + $0x140] sm:$0xf] }
 0x605   :  { %v1669_v3 = vpop.f32.mrf.mxu2  ;;  %v1682_v36 = vpop.f32.mrf.mxu3 }
 0x606   :  { %v1709_v16 = vpop.f32.mrf.mxu0  ;;  %v1722_v24 = vpop.f32.mrf.mxu1  ;;  %v9334_v3 = vld [vmem:[#allocation11 + $0xec] sm:$0xf0]  ;;  %v9330_v36 = vld [vmem:[#allocation11 + $0xd4] sm:$0xf] }
 0x607   :  { %v1723_v57 = vadd.f32 %v1722_v24, %v1709_v16  ;;  %v6979_v24 = vld [vmem:[#allocation11 + $0xf0] sm:$0xf0] }
 0x60d   :  { %v1735_v19 = vpop.f32.mrf.mxu2  ;;  %v1748_v55 = vpop.f32.mrf.mxu3 }
 0x60e   :  { %v1711_v41 = vpop.f32.mrf.mxu0  ;;  %v1724_v22 = vpop.f32.mrf.mxu1  ;;  %v1736_v45 = vadd.f32 %v1735_v19, %v1723_v57  ;;  %v6985_v19 = vld [vmem:[#allocation11 + $0xd8] sm:$0xf]  ;;  %v9331_v57 = vld [vmem:[#allocation11 + $0xdc] sm:$0xf] }
 0x60f   :  { %v6982_v41 = vor.u32 %v9330_v36, %v6979_v24  ;;  %v7673_v36 = vld [vmem:[#allocation14 + $0x540] sm:$0xf] }
 0x610   :  { %v1749_v54 = vadd.f32 %v1748_v55, %v1736_v45  ;;  %v9335_v55 = vld [vmem:[#allocation11 + $0xf4] sm:$0xf0]  ;;  %v7929_v24 = vld [vmem:[#allocation14 + $0x740] sm:$0xf] }
 0x611   :  { %v6986_v22 = vor.u32 %v9335_v55, %v6985_v19  ;;  %v9572_v19 = vld [vmem:[#allocation14 + $0x75c] sm:$0xf0] }
 0x615   :  { %v1737_v20 = vpop.f32.mrf.mxu2  ;;  %v1750_v48 = vpop.f32.mrf.mxu3 }
 0x616   :  { %v1761_v5 = vpop.f32.mrf.mxu0  ;;  %v1774_v29 = vpop.f32.mrf.mxu1  ;;  %v6990_v20 = vor.u32 %v9331_v57, %v6987_v30  ;;  %v9372_v57 = vld [vmem:[#allocation14 + $0x11c] sm:$0xf0] }
 0x617   :  { %v1762_v39 = vadd.f32 %v1761_v5, %v1749_v54  ;;  %v7385_v30 = vld [vmem:[#allocation14 + $0x300] sm:$0xf] }
 0x619   :  { %v1775_v38 = vadd.f32 %v1774_v29, %v1762_v39 }
 0x61b   :  { %v1778_v21 = vpack.c.bf16 %v1775_v38, %v1775_v38 }
 0x61d   :  { %6951 = vmatmul.msk.bf16.vlgmr.msrb.gmra.mxu2 %vm1429_vm1, %v1778_v21  ;;  %6952 = vmatmul.msk.bf16.vlgmr.msrb.gmra.mxu3 %vm1429_vm1, %v1778_v21 }
 0x61e   :  { %6953 = vmatmul.msk.bf16.vlgmr.msra.gmra.mxu0 %vm1429_vm1, %v1778_v21  ;;  %6954 = vmatmul.msk.bf16.vlgmr.msra.gmra.mxu1 %vm1429_vm1, %v1778_v21  ;;  %v1763_v53 = vpop.f32.mrf.mxu0  ;;  %v1776_v59 = vpop.f32.mrf.mxu1 }
 0x61f   :  { %1965 = vmatpush.bf16.xpose.msrb.mxu2 %v11385_v37  ;;  %1978 = vmatpush.bf16.xpose.msrb.mxu3 %v11387_v8  ;;  %v1947_v37 = vld [vmem:[#allocation1 + $0x9] sm:$0xff]  ;;  %v1949_v8 = vld [vmem:[#allocation1 + $0x1b] sm:$0xff] }
 0x620   :  { %1991 = vmatpush.bf16.xpose.msra.mxu0 %v11348_v52  ;;  %2004 = vmatpush.bf16.xpose.msra.mxu1 %v11381_v23  ;;  %v1950_v52 = vld [vmem:[#allocation1 + $0x24] sm:$0xff]  ;;  %v1951_v23 = vld [vmem:[#allocation1 + $0x2d] sm:$0xff] }
 0x62d   :  { %6955 = vmatmul.msk.bf16.vlgmr.msra.gmra.mxu2 %vm1429_vm1, %v1778_v21  ;;  %6956 = vmatmul.msk.bf16.vlgmr.msra.gmra.mxu3 %vm1429_vm1, %v1778_v21 }
 0x62e   :  { %6957 = vmatmul.msk.bf16.vlgmr.msrb.gmra.mxu0 %vm1429_vm1, %v1778_v21  ;;  %6958 = vmatmul.msk.bf16.vlgmr.msrb.gmra.mxu1 %vm1429_vm1, %v1778_v21 }
 0x62f   :  { %2017 = vmatpush.bf16.xpose.msra.mxu2 %v11383_v46  ;;  %2030 = vmatpush.bf16.xpose.msra.mxu3 %v11392_v14 }
 0x630   :  { %2095 = vmatpush.bf16.msrb.mxu0 %v6962_v43  ;;  %2108 = vmatpush.bf16.msrb.mxu1 %v6966_v4  ;;  %v9516_v43 = vld [vmem:[#allocation14 + $0x59c] sm:$0xf0] }
 0x63d   :  { %1966 = vmatmul.bf16.vlgmr.msrb.gmra.mxu2 %v1946_v6  ;;  %1979 = vmatmul.bf16.vlgmr.msrb.gmra.mxu3 %v1947_v37 }
 0x63e   :  { %1992 = vmatmul.bf16.vlgmr.msra.gmra.mxu0 %v1948_v27  ;;  %2005 = vmatmul.bf16.vlgmr.msra.gmra.mxu1 %v1949_v8 }
 0x63f   :  { %2134 = vmatpush.bf16.msrb.mxu3 %v6974_v28  ;;  %2160 = vmatpush.bf16.msra.mxu1 %v6982_v41  ;;  %v9380_v28 = vld [vmem:[#allocation14 + $0x15c] sm:$0xf0] }
 0x640   :  { %v7162_v55 = vor.u32 %v9380_v28, %v7161_v56  ;;  %v9476_v56 = vld [vmem:[#allocation14 + $0x45c] sm:$0xf0] }
 0x641   :  { %v7801_v28 = vld [vmem:[#allocation14 + $0x640] sm:$0xf] }
 0x64d   :  { %2018 = vmatmul.bf16.vlgmr.msra.gmra.mxu2 %v1950_v52  ;;  %2031 = vmatmul.bf16.vlgmr.msra.gmra.mxu3 %v1951_v23  ;;  %v7225_v52 = vld [vmem:[#allocation14 + $0x1c0] sm:$0xf] }
 0x64e   :  { %2186 = vmatpush.bf16.msra.mxu3 %v6990_v20  ;;  %v9396_v23 = vld [vmem:[#allocation14 + $0x1dc] sm:$0xf0]  ;;  %v7930_v20 = vor.u32 %v9572_v19, %v7929_v24 }
 0x64f   :  { %v8249_v24 = vld [vmem:[#allocation14 + $0x9c0] sm:$0xf] }
 0x650   :  { %v9652_v19 = vld [vmem:[#allocation14 + $0x9dc] sm:$0xf0] }
 0x69b   :  { %v1865_v44 = vpop.f32.mrf.mxu0  ;;  %v1878_v49 = vpop.f32.mrf.mxu1 }
 0x69c   :  { %v11477_v62 = vadd.f32 %v1865_v44, %v11450_v33  ;;  %v11480_v46 = vadd.f32 %v1878_v49, %v11452_v34  ;;  %v7481_v44 = vld [vmem:[#allocation14 + $0x3c0] sm:$0xf] }
 0x69d   :  { %v9460_v49 = vld [vmem:[#allocation14 + $0x3dc] sm:$0xf0] }
 0x6a0   :  { %v1839_v14 = vpop.f32.mrf.mxu2  ;;  %v1852_v1 = vpop.f32.mrf.mxu3 }
 0x6a1   :  { %v11483_v47 = vadd.f32 %v1839_v14, %v11446_v11  ;;  %v11486_v12 = vadd.f32 %v1852_v1, %v11448_v63  ;;  %v7737_v14 = vld [vmem:[#allocation14 + $0x5c0] sm:$0xf] }
 0x6a3   :  { %v1867_v9 = vpop.f32.mrf.mxu0  ;;  %v1880_v10 = vpop.f32.mrf.mxu1 }
 0x6a4   :  { %v9524_v9 = vld [vmem:[#allocation14 + $0x5dc] sm:$0xf0] }
 0x6a5   :  { %v7993_v10 = vld [vmem:[#allocation14 + $0x7c0] sm:$0xf]  ;;  %v7738_v58 = vor.u32 %v9524_v9, %v7737_v14 }
 0x6a6   :  { %v7065_v9 = vld [vmem:[#allocation14 + $0x80] sm:$0xf] }
 0x6a8   :  { %v1841_v40 = vpop.f32.mrf.mxu2  ;;  %v1854_v26 = vpop.f32.mrf.mxu3 }
 0x6a9   :  { %v9588_v40 = vld [vmem:[#allocation14 + $0x7dc] sm:$0xf0] }
 0x6aa   :  { %v7994_v18 = vor.u32 %v9588_v40, %v7993_v10  ;;  %v9356_v10 = vld [vmem:[#allocation14 + $0x9c] sm:$0xf0] }
 0x6ab   :  { %v1917_v13 = vpop.f32.mrf.mxu0  ;;  %v1930_v17 = vpop.f32.mrf.mxu1  ;;  %v7321_v40 = vld [vmem:[#allocation14 + $0x280] sm:$0xf] }
 0x6ac   :  { %v11489_v33 = vadd.f32 %v1917_v13, %v11458_v51  ;;  %v11492_v34 = vadd.f32 %v1930_v17, %v11460_v32  ;;  %v9333_v51 = vld [vmem:[#allocation11 + $0xe4] sm:$0xf0]  ;;  %v7226_v13 = vor.u32 %v9396_v23, %v7225_v52  ;;  %v7482_v17 = vor.u32 %v9460_v49, %v7481_v44 }
 0x6ad   :  { %v6970_v32 = vor.u32 %v9333_v51, %v6969_v35  ;;  %v9580_v35 = vld [vmem:[#allocation14 + $0x79c] sm:$0xf0] }
 0x6ae   :  { %v7609_v52 = vld [vmem:[#allocation14 + $0x4c0] sm:$0xf] }
 0x6af   :  { %2121 = vmatpush.bf16.msrb.mxu2 %v6970_v32  ;;  %v9492_v23 = vld [vmem:[#allocation14 + $0x4dc] sm:$0xf0] }
 0x6b0   :  { %v1891_v0 = vpop.f32.mrf.mxu2  ;;  %v1904_v15 = vpop.f32.mrf.mxu3  ;;  %v7865_v44 = vld [vmem:[#allocation14 + $0x6c0] sm:$0xf] }
 0x6b1   :  { %v11495_v11 = vadd.f32 %v1891_v0, %v11454_v61  ;;  %v11498_v63 = vadd.f32 %v1904_v15, %v11456_v60  ;;  %v6977_v60 = vld [vmem:[#allocation11 + $0xd0] sm:$0xf]  ;;  %v7193_v0 = vld [vmem:[#allocation14 + $0x180] sm:$0xf] }
 0x6b2   :  { %v6978_v16 = vor.u32 %v9334_v3, %v6977_v60  ;;  %v9388_v15 = vld [vmem:[#allocation14 + $0x19c] sm:$0xf0]  ;;  %v7706_v60 = vor.u32 %v9516_v43, %v7705_v2  ;;  %v7962_v3 = vor.u32 %v9580_v35, %v7961_v50 }
 0x6b3   :  { %v1919_v7 = vpop.f32.mrf.mxu0  ;;  %v1932_v31 = vpop.f32.mrf.mxu1  ;;  %2173 = vmatpush.bf16.msra.mxu2 %v6986_v22  ;;  %v7194_v32 = vor.u32 %v9388_v15, %v7193_v0  ;;  %v7129_v22 = vld [vmem:[#allocation14 + $0x100] sm:$0xf] }
 0x6b4   :  { %2147 = vmatpush.bf16.msra.mxu0 %v6978_v16  ;;  %v7449_v7 = vld [vmem:[#allocation14 + $0x380] sm:$0xf] }
 0x6b5   :  { %v9452_v31 = vld [vmem:[#allocation14 + $0x39c] sm:$0xf0] }
 0x6b6   :  { %v7450_v42 = vor.u32 %v9452_v31, %v7449_v7  ;;  %v9508_v16 = vld [vmem:[#allocation14 + $0x55c] sm:$0xf0] }
 0x6b7   :  { %v9556_v49 = vld [vmem:[#allocation14 + $0x6dc] sm:$0xf0] }
 0x6b8   :  { %v1893_v61 = vpop.f32.mrf.mxu2  ;;  %v1906_v25 = vpop.f32.mrf.mxu3  ;;  %v7866_v0 = vor.u32 %v9556_v49, %v7865_v44  ;;  %v7577_v15 = vld [vmem:[#allocation14 + $0x480] sm:$0xf] }
 0x6b9   :  { %v7417_v61 = vld [vmem:[#allocation14 + $0x340] sm:$0xf] }
 0x6ba   :  { %v9444_v25 = vld [vmem:[#allocation14 + $0x35c] sm:$0xf0] }
 0x6bb   :  { %v1993_v45 = vpop.f32.mrf.mxu0  ;;  %v2006_v54 = vpop.f32.mrf.mxu1  ;;  %v7418_v41 = vor.u32 %v9444_v25, %v7417_v61  ;;  %v9484_v7 = vld [vmem:[#allocation14 + $0x49c] sm:$0xf0] }
 0x6bc   :  { %v7833_v31 = vld [vmem:[#allocation14 + $0x680] sm:$0xf] }
 0x6bd   :  { %v7033_v43 = vld [vmem:[#allocation14 + $0x40] sm:$0xf] }
 0x6be   :  { %v9348_v50 = vld [vmem:[#allocation14 + $0x5c] sm:$0xf0] }
 0x6bf   :  { %v7289_v35 = vld [vmem:[#allocation14 + $0x240] sm:$0xf] }
 0x6c0   :  { %v1967_v48 = vpop.f32.mrf.mxu2  ;;  %v1980_v5 = vpop.f32.mrf.mxu3  ;;  %v9540_v61 = vld [vmem:[#allocation14 + $0x65c] sm:$0xf0] }
 0x6c1   :  { %v1981_v38 = vadd.f32 %v1980_v5, %v1967_v48  ;;  %v7641_v48 = vld [vmem:[#allocation14 + $0x500] sm:$0xf] }
 0x6c2   :  { %v9500_v5 = vld [vmem:[#allocation14 + $0x51c] sm:$0xf0] }
 0x6c3   :  { %v1995_v29 = vpop.f32.mrf.mxu0  ;;  %v2008_v39 = vpop.f32.mrf.mxu1  ;;  %v1994_v59 = vadd.f32 %v1993_v45, %v1981_v38  ;;  %v9436_v45 = vld [vmem:[#allocation14 + $0x31c] sm:$0xf0]  ;;  %v7130_v38 = vor.u32 %v9372_v57, %v7129_v22  ;;  %v7802_v22 = vor.u32 %v9540_v61, %v7801_v28 }
 0x6c4   :  { %v7897_v29 = vld [vmem:[#allocation14 + $0x700] sm:$0xf] }
 0x6c5   :  { %v2007_v6 = vadd.f32 %v2006_v54, %v1994_v59  ;;  %v7674_v54 = vor.u32 %v9508_v16, %v7673_v36  ;;  %v9564_v39 = vld [vmem:[#allocation14 + $0x71c] sm:$0xf0] }
 0x6c6   :  { %v9364_v59 = vld [vmem:[#allocation14 + $0xdc] sm:$0xf0] }
 0x6c7   :  { %v7001_v25 = vld [vmem:[#allocation14] sm:$0xf] }
 0x6c8   :  { %v1969_v21 = vpop.f32.mrf.mxu2  ;;  %v1982_v53 = vpop.f32.mrf.mxu3  ;;  %v7257_v36 = vld [vmem:[#allocation14 + $0x200] sm:$0xf] }
 0x6c9   :  { %v7386_v21 = vor.u32 %v9436_v45, %v7385_v30  ;;  %v7097_v53 = vld [vmem:[#allocation14 + $0xc0] sm:$0xf] }
 0x6ca   :  { %v7098_v14 = vor.u32 %v9364_v59, %v7097_v53  ;;  %v9404_v16 = vld [vmem:[#allocation14 + $0x21c] sm:$0xf0]  ;;  %v8250_v53 = vor.u32 %v9652_v19, %v8249_v24 }
 0x6cb   :  { %v9716_v57 = vld [vmem:[#allocation14 + $0xbdc] sm:$0xf0] }
 0x6cc   :  { %v7513_v30 = vld [vmem:[#allocation14 + $0x400] sm:$0xf] }
 0x6cd   :  { %v9468_v45 = vld [vmem:[#allocation14 + $0x41c] sm:$0xf0] }
 0x6ce   :  { %v8121_v24 = vld [vmem:[#allocation14 + $0x8c0] sm:$0xf] }
 0x6cf   :  { %v9620_v19 = vld [vmem:[#allocation14 + $0x8dc] sm:$0xf0] }
 0x6d0   :  { %v2019_v37 = vpop.f32.mrf.mxu2  ;;  %v2032_v27 = vpop.f32.mrf.mxu3 }
 0x6d1   :  { %v2020_v8 = vadd.f32 %v2019_v37, %v2007_v6  ;;  %v7353_v6 = vld [vmem:[#allocation14 + $0x2c0] sm:$0xf] }
 0x6d2   :  { %v9428_v37 = vld [vmem:[#allocation14 + $0x2dc] sm:$0xf0] }
 0x6d3   :  { %v2033_v1 = vadd.f32 %v2032_v27, %v2020_v8  ;;  %v7642_v27 = vor.u32 %v9500_v5, %v7641_v48  ;;  %v7898_v8 = vor.u32 %v9564_v39, %v7897_v29  ;;  %v8761_v48 = vld [vmem:[#allocation14 + $0xdc0] sm:$0xf]  ;;  %v7258_v29 = vor.u32 %v9404_v16, %v7257_v36 }
 0x6d4   :  { %v9780_v39 = vld [vmem:[#allocation14 + $0xddc] sm:$0xf0] }
 0x6d5   :  { %v11500_v26 = vpack.c.bf16 %v2033_v1, %v2033_v1  ;;  %v7354_v1 = vor.u32 %v9428_v37, %v7353_v6  ;;  %v8217_v6 = vld [vmem:[#allocation14 + $0x980] sm:$0xf]  ;;  %v8762_v44 = vor.u32 %v9780_v39, %v8761_v48 }
 0x6d6   :  { %v9644_v37 = vld [vmem:[#allocation14 + $0x99c] sm:$0xf0] }
 0x6d7   :  { %6991 = vmatmul.msk.bf16.vlgmr.msrb.gmra.mxu0 %vm1429_vm1, %v11500_v26  ;;  %6992 = vmatmul.msk.bf16.vlgmr.msrb.gmra.mxu1 %vm1429_vm1, %v11500_v26  ;;  %v8345_v48 = vld [vmem:[#allocation14 + $0xa80] sm:$0xf] }
 0x6d8   :  { %6993 = vmatmul.msk.bf16.vlgmr.msrb.gmra.mxu2 %vm1429_vm1, %v11500_v26  ;;  %6994 = vmatmul.msk.bf16.vlgmr.msrb.gmra.mxu3 %vm1429_vm1, %v11500_v26  ;;  %v2021_v51 = vpop.f32.mrf.mxu2  ;;  %v2034_v4 = vpop.f32.mrf.mxu3 }
 0x6d9   :  { %5332 = vmatpush.bf16.msrb.mxu0 %v7226_v13  ;;  %5345 = vmatpush.bf16.msrb.mxu1 %v7482_v17  ;;  %v9420_v13 = vld [vmem:[#allocation14 + $0x29c] sm:$0xf0]  ;;  %v7610_v17 = vor.u32 %v9492_v23, %v7609_v52  ;;  %v7578_v4 = vor.u32 %v9484_v7, %v7577_v15  ;;  %v7514_v52 = vor.u32 %v9468_v45, %v7513_v30 }
 0x6da   :  { %5358 = vmatpush.bf16.msrb.mxu2 %v7738_v58  ;;  %5371 = vmatpush.bf16.msrb.mxu3 %v7994_v18  ;;  %v9548_v58 = vld [vmem:[#allocation14 + $0x69c] sm:$0xf0]  ;;  %v7066_v18 = vor.u32 %v9356_v10, %v7065_v9  ;;  %v7322_v2 = vor.u32 %v9420_v13, %v7321_v40  ;;  %v8218_v40 = vor.u32 %v9644_v37, %v8217_v6 }
 0x6db   :  { %v9412_v51 = vld [vmem:[#allocation14 + $0x25c] sm:$0xf0]  ;;  %v8122_v30 = vor.u32 %v9620_v19, %v8121_v24  ;;  %v9392_v19 = vld [vmem:[#allocation14 + $0x1c4] sm:$0xf] }
 0x6dc   :  { %v8985_v9 = vld [vmem:[#allocation14 + $0xf80] sm:$0xf] }
 0x6dd   :  { %5333 = vmatpush.bf16.msrb.mxu0 %v7194_v32  ;;  %5346 = vmatpush.bf16.msrb.mxu1 %v7450_v42  ;;  %v7834_v32 = vor.u32 %v9548_v58, %v7833_v31  ;;  %v7545_v42 = vld [vmem:[#allocation14 + $0x440] sm:$0xf] }
 0x6de   :  { %5359 = vmatpush.bf16.msrb.mxu2 %v7706_v60  ;;  %5372 = vmatpush.bf16.msrb.mxu3 %v7962_v3  ;;  %v7290_v60 = vor.u32 %v9412_v51, %v7289_v35  ;;  %v9340_v3 = vld [vmem:[#allocation14 + $0x1c] sm:$0xf0] }
 0x6df   :  { %v7002_v5 = vor.u32 %v9340_v3, %v7001_v25  ;;  %v9836_v10 = vld [vmem:[#allocation14 + $0xf9c] sm:$0xf0] }
 0x6e0   :  { %v8441_v15 = vld [vmem:[#allocation14 + $0xb40] sm:$0xf]  ;;  %v8986_v58 = vor.u32 %v9836_v10, %v8985_v9 }
 0x6e1   :  { %5334 = vmatpush.bf16.msrb.mxu0 %v7162_v55  ;;  %5347 = vmatpush.bf16.msrb.mxu1 %v7418_v41  ;;  %v8505_v55 = vld [vmem:[#allocation14 + $0xbc0] sm:$0xf]  ;;  %v7546_v41 = vor.u32 %v9476_v56, %v7545_v42 }
 0x6e2   :  { %5360 = vmatpush.bf16.msrb.mxu2 %v7674_v54  ;;  %5373 = vmatpush.bf16.msrb.mxu3 %v7930_v20  ;;  %v7769_v54 = vld [vmem:[#allocation14 + $0x600] sm:$0xf]  ;;  %v8506_v59 = vor.u32 %v9716_v57, %v8505_v55 }
 0x6e3   :  { %v9532_v20 = vld [vmem:[#allocation14 + $0x61c] sm:$0xf0] }
 0x6e4   :  { %v7770_v23 = vor.u32 %v9532_v20, %v7769_v54  ;;  %v9700_v7 = vld [vmem:[#allocation14 + $0xb5c] sm:$0xf0] }
 0x6e5   :  { %5335 = vmatpush.bf16.msrb.mxu0 %v7130_v38  ;;  %5348 = vmatpush.bf16.msrb.mxu1 %v7386_v21  ;;  %v9017_v38 = vld [vmem:[#allocation14 + $0xfc0] sm:$0xf]  ;;  %v8442_v51 = vor.u32 %v9700_v7, %v8441_v15 }
 0x6e6   :  { %5361 = vmatpush.bf16.msrb.mxu2 %v7642_v27  ;;  %5374 = vmatpush.bf16.msrb.mxu3 %v7898_v8  ;;  %v9844_v21 = vld [vmem:[#allocation14 + $0xfdc] sm:$0xf0] }
 0x6e7   :  { %6995 = vmatmul.msk.bf16.vlgmr.msra.gmra.mxu0 %vm1429_vm1, %v11500_v26  ;;  %6996 = vmatmul.msk.bf16.vlgmr.msra.gmra.mxu1 %vm1429_vm1, %v11500_v26  ;;  %v8473_v27 = vld [vmem:[#allocation14 + $0xb80] sm:$0xf]  ;;  %v9018_v49 = vor.u32 %v9844_v21, %v9017_v38 }
 0x6e8   :  { %6997 = vmatmul.msk.bf16.vlgmr.msra.gmra.mxu2 %vm1429_vm1, %v11500_v26  ;;  %6998 = vmatmul.msk.bf16.vlgmr.msra.gmra.mxu3 %vm1429_vm1, %v11500_v26  ;;  %v7034_v26 = vor.u32 %v9348_v50, %v7033_v43  ;;  %v9708_v8 = vld [vmem:[#allocation14 + $0xb9c] sm:$0xf0] }
 0x6e9   :  { %5336 = vmatpush.bf16.msrb.mxu0 %v7098_v14  ;;  %5349 = vmatpush.bf16.msrb.mxu1 %v7354_v1  ;;  %v8729_v14 = vld [vmem:[#allocation14 + $0xd80] sm:$0xf]  ;;  %v8474_v13 = vor.u32 %v9708_v8, %v8473_v27 }
 0x6ea   :  { %5362 = vmatpush.bf16.msrb.mxu2 %v7610_v17  ;;  %5375 = vmatpush.bf16.msrb.mxu3 %v7866_v0  ;;  %v9772_v1 = vld [vmem:[#allocation14 + $0xd9c] sm:$0xf0] }
 0x6eb   :  { %v8185_v17 = vld [vmem:[#allocation14 + $0x940] sm:$0xf]  ;;  %v8730_v31 = vor.u32 %v9772_v1, %v8729_v14 }
 0x6ec   :  { %v9636_v0 = vld [vmem:[#allocation14 + $0x95c] sm:$0xf0] }
 0x6ed   :  { %5337 = vmatpush.bf16.msrb.mxu0 %v7066_v18  ;;  %5350 = vmatpush.bf16.msrb.mxu1 %v7322_v2  ;;  %v8697_v18 = vld [vmem:[#allocation14 + $0xd40] sm:$0xf]  ;;  %v8186_v35 = vor.u32 %v9636_v0, %v8185_v17 }
 0x6ee   :  { %5363 = vmatpush.bf16.msrb.mxu2 %v7578_v4  ;;  %5376 = vmatpush.bf16.msrb.mxu3 %v7834_v32  ;;  %v9764_v2 = vld [vmem:[#allocation14 + $0xd5c] sm:$0xf0] }
 0x6ef   :  { %v8953_v43 = vld [vmem:[#allocation14 + $0xf40] sm:$0xf]  ;;  %v8698_v28 = vor.u32 %v9764_v2, %v8697_v18 }
 0x6f0   :  { %v9828_v50 = vld [vmem:[#allocation14 + $0xf5c] sm:$0xf0] }
 0x6f1   :  { %5338 = vmatpush.bf16.msrb.mxu0 %v7034_v26  ;;  %5351 = vmatpush.bf16.msrb.mxu1 %v7290_v60  ;;  %v8153_v4 = vld [vmem:[#allocation14 + $0x900] sm:$0xf]  ;;  %v8954_v61 = vor.u32 %v9828_v50, %v8953_v43 }
 0x6f2   :  { %5364 = vmatpush.bf16.msrb.mxu2 %v7546_v41  ;;  %5377 = vmatpush.bf16.msrb.mxu3 %v7802_v22  ;;  %v9628_v32 = vld [vmem:[#allocation14 + $0x91c] sm:$0xf0] }
 0x6f3   :  { %v8409_v42 = vld [vmem:[#allocation14 + $0xb00] sm:$0xf]  ;;  %v8154_v36 = vor.u32 %v9628_v32, %v8153_v4 }
 0x6f4   :  { %v9692_v56 = vld [vmem:[#allocation14 + $0xb1c] sm:$0xf0] }
 0x6f5   :  { %5339 = vmatpush.bf16.msrb.mxu0 %v7002_v5  ;;  %5352 = vmatpush.bf16.msrb.mxu1 %v7258_v29  ;;  %v8665_v25 = vld [vmem:[#allocation14 + $0xd00] sm:$0xf]  ;;  %v8410_v16 = vor.u32 %v9692_v56, %v8409_v42 }
 0x6f6   :  { %5365 = vmatpush.bf16.msrb.mxu2 %v7514_v52  ;;  %5378 = vmatpush.bf16.msrb.mxu3 %v7770_v23  ;;  %v9756_v26 = vld [vmem:[#allocation14 + $0xd1c] sm:$0xf0] }
 0x6f7   :  { %v8921_v60 = vld [vmem:[#allocation14 + $0xf00] sm:$0xf]  ;;  %v8666_v22 = vor.u32 %v9756_v26, %v8665_v25  ;;  %v11518_v25 = vld [vmem:[#allocation12] sm:$0xff] }
 0x6f8   :  { %v9820_v3 = vld [vmem:[#allocation14 + $0xf1c] sm:$0xf0]  ;;  %v2202_v26 = vperm.slane %v11518_v25, 0 }
 0x6f9   :  { %5384 = vmatpush.bf16.msra.mxu0 %v8250_v53  ;;  %5397 = vmatpush.bf16.msra.mxu1 %v8506_v59  ;;  %v8377_v55 = vld [vmem:[#allocation14 + $0xac0] sm:$0xf]  ;;  %v8922_v57 = vor.u32 %v9820_v3, %v8921_v60  ;;  %v2203_v60 = vperm.slane %v11518_v25, 1 }
 0x6fa   :  { %5410 = vmatpush.bf16.msra.mxu2 %v8762_v44  ;;  %5423 = vmatpush.bf16.msra.mxu3 %v9018_v49  ;;  %v9684_v41 = vld [vmem:[#allocation14 + $0xadc] sm:$0xf0] }
 0x6fb   :  { %v8378_v45 = vor.u32 %v9684_v41, %v8377_v55  ;;  %v8089_v54 = vld [vmem:[#allocation14 + $0x880] sm:$0xf] }
 0x6fc   :  { %v9612_v20 = vld [vmem:[#allocation14 + $0x89c] sm:$0xf0] }
 0x6fd   :  { %5385 = vmatpush.bf16.msra.mxu0 %v8218_v40  ;;  %5398 = vmatpush.bf16.msra.mxu1 %v8474_v13  ;;  %v8090_v5 = vor.u32 %v9612_v20, %v8089_v54  ;;  %v9676_v29 = vld [vmem:[#allocation14 + $0xa9c] sm:$0xf0]  ;;  %v2204_v20 = vperm.slane %v11518_v25, 2 }
 0x6fe   :  { %5411 = vmatpush.bf16.msra.mxu2 %v8730_v31  ;;  %5424 = vmatpush.bf16.msra.mxu3 %v8986_v58  ;;  %v8346_v39 = vor.u32 %v9676_v29, %v8345_v48  ;;  %v8633_v38 = vld [vmem:[#allocation14 + $0xcc0] sm:$0xf]  ;;  %v2205_v48 = vperm.slane %v11518_v25, 3 }
 0x6ff   :  { %v9748_v21 = vld [vmem:[#allocation14 + $0xcdc] sm:$0xf0] }
 0x700   :  { %v8634_v53 = vor.u32 %v9748_v21, %v8633_v38  ;;  %v8889_v59 = vld [vmem:[#allocation14 + $0xec0] sm:$0xf]  ;;  %v7195_v38 = vld [vmem:[#allocation14 + $0x1a0] sm:$0xf0] }
 0x701   :  { %5386 = vmatpush.bf16.msra.mxu0 %v8186_v35  ;;  %5399 = vmatpush.bf16.msra.mxu1 %v8442_v51  ;;  %v9812_v6 = vld [vmem:[#allocation14 + $0xedc] sm:$0xf0] }
 0x702   :  { %5412 = vmatpush.bf16.msra.mxu2 %v8698_v28  ;;  %5425 = vmatpush.bf16.msra.mxu3 %v8954_v61  ;;  %v8890_v37 = vor.u32 %v9812_v6, %v8889_v59  ;;  %v8057_v27 = vld [vmem:[#allocation14 + $0x840] sm:$0xf]  ;;  %v9448_v59 = vld [vmem:[#allocation14 + $0x384] sm:$0xf] }
 0x703   :  { %v9604_v8 = vld [vmem:[#allocation14 + $0x85c] sm:$0xf0]  ;;  %v7451_v6 = vld [vmem:[#allocation14 + $0x3a0] sm:$0xf0] }
 0x704   :  { %v8058_v52 = vor.u32 %v9604_v8, %v8057_v27  ;;  %v8313_v23 = vld [vmem:[#allocation14 + $0xa40] sm:$0xf] }
 0x705   :  { %5387 = vmatpush.bf16.msra.mxu0 %v8154_v36  ;;  %5400 = vmatpush.bf16.msra.mxu1 %v8410_v16  ;;  %v9668_v44 = vld [vmem:[#allocation14 + $0xa5c] sm:$0xf0] }
 0x706   :  { %5413 = vmatpush.bf16.msra.mxu2 %v8666_v22  ;;  %5426 = vmatpush.bf16.msra.mxu3 %v8922_v57  ;;  %v8314_v49 = vor.u32 %v9668_v44, %v8313_v23  ;;  %v8601_v14 = vld [vmem:[#allocation14 + $0xc80] sm:$0xf]  ;;  %v7227_v22 = vld [vmem:[#allocation14 + $0x1e0] sm:$0xf0] }
 0x707   :  { %v9740_v1 = vld [vmem:[#allocation14 + $0xc9c] sm:$0xf0]  ;;  %v9456_v57 = vld [vmem:[#allocation14 + $0x3c4] sm:$0xf] }
 0x708   :  { %v8857_v9 = vld [vmem:[#allocation14 + $0xe80] sm:$0xf]  ;;  %v8602_v10 = vor.u32 %v9740_v1, %v8601_v14  ;;  %v9520_v44 = vld [vmem:[#allocation14 + $0x5c4] sm:$0xf] }
 0x709   :  { %5388 = vmatpush.bf16.msra.mxu0 %v8122_v30  ;;  %5401 = vmatpush.bf16.msra.mxu1 %v8378_v45  ;;  %v9804_v40 = vld [vmem:[#allocation14 + $0xe9c] sm:$0xf0]  ;;  %v7483_v30 = vld [vmem:[#allocation14 + $0x3e0] sm:$0xf0] }
 0x70a   :  { %5414 = vmatpush.bf16.msra.mxu2 %v8634_v53  ;;  %5427 = vmatpush.bf16.msra.mxu3 %v8890_v37  ;;  %v8858_v13 = vor.u32 %v9804_v40, %v8857_v9  ;;  %v8025_v17 = vld [vmem:[#allocation14 + $0x800] sm:$0xf]  ;;  %v7486_v29 = vor.u32 %v9456_v57, %v7483_v30  ;;  %v9584_v14 = vld [vmem:[#allocation14 + $0x7c4] sm:$0xf] }
 0x70b   :  { %v9596_v0 = vld [vmem:[#allocation14 + $0x81c] sm:$0xf0]  ;;  %v7995_v40 = vld [vmem:[#allocation14 + $0x7e0] sm:$0xf0] }
 0x70c   :  { %v8026_v15 = vor.u32 %v9596_v0, %v8025_v17  ;;  %v8281_v7 = vld [vmem:[#allocation14 + $0xa00] sm:$0xf]  ;;  %v9440_v17 = vld [vmem:[#allocation14 + $0x344] sm:$0xf] }
 0x70d   :  { %5389 = vmatpush.bf16.msra.mxu0 %v8090_v5  ;;  %5402 = vmatpush.bf16.msra.mxu1 %v8346_v39  ;;  %v9660_v31 = vld [vmem:[#allocation14 + $0xa1c] sm:$0xf0]  ;;  %v7230_v5 = vor.u32 %v9392_v19, %v7227_v22  ;;  %v9384_v39 = vld [vmem:[#allocation14 + $0x184] sm:$0xf] }
 0x70e   :  { %5415 = vmatpush.bf16.msra.mxu2 %v8602_v10  ;;  %5428 = vmatpush.bf16.msra.mxu3 %v8858_v13  ;;  %v8282_v58 = vor.u32 %v9660_v31, %v8281_v7  ;;  %v8569_v18 = vld [vmem:[#allocation14 + $0xc40] sm:$0xf]  ;;  %v7198_v23 = vor.u32 %v9384_v39, %v7195_v38  ;;  %v7454_v10 = vor.u32 %v9448_v59, %v7451_v6  ;;  %v9376_v13 = vld [vmem:[#allocation14 + $0x144] sm:$0xf]  ;;  %v2206_v7 = vperm.slane %v11518_v25, 4 }
 0x70f   :  { %v9732_v2 = vld [vmem:[#allocation14 + $0xc5c] sm:$0xf0]  ;;  %v9504_v22 = vld [vmem:[#allocation14 + $0x544] sm:$0xf]  ;;  %v2209_v6 = vperm.slane %v11518_v25, 7 }
 0x710   :  { %v8570_v43 = vor.u32 %v9732_v2, %v8569_v18  ;;  %v8825_v50 = vld [vmem:[#allocation14 + $0xe40] sm:$0xf]  ;;  %v9512_v2 = vld [vmem:[#allocation14 + $0x584] sm:$0xf] }
 0x711   :  { %5390 = vmatpush.bf16.msra.mxu0 %v8058_v52  ;;  %5403 = vmatpush.bf16.msra.mxu1 %v8314_v49  ;;  %v9796_v35 = vld [vmem:[#allocation14 + $0xe5c] sm:$0xf0]  ;;  %v7739_v49 = vld [vmem:[#allocation14 + $0x5e0] sm:$0xf0] }
 0x712   :  { %v8826_v51 = vor.u32 %v9796_v35, %v8825_v50  ;;  %5416 = vmatpush.bf16.msra.mxu2 %v8570_v43  ;;  %v8537_v4 = vld [vmem:[#allocation14 + $0xc00] sm:$0xf]  ;;  %v7742_v31 = vor.u32 %v9520_v44, %v7739_v49  ;;  %v7707_v43 = vld [vmem:[#allocation14 + $0x5a0] sm:$0xf0] }
 0x713   :  { %v9724_v32 = vld [vmem:[#allocation14 + $0xc1c] sm:$0xf0]  ;;  %v9576_v50 = vld [vmem:[#allocation14 + $0x784] sm:$0xf] }
 0x714   :  { %5429 = vmatpush.bf16.msra.mxu3 %v8826_v51  ;;  %v8538_v42 = vor.u32 %v9724_v32, %v8537_v4  ;;  %v8793_v56 = vld [vmem:[#allocation14 + $0xe00] sm:$0xf]  ;;  %v2207_v4 = vperm.slane %v11518_v25, 5  ;;  %v7675_v57 = vld [vmem:[#allocation14 + $0x560] sm:$0xf0] }
 0x715   :  { %5391 = vmatpush.bf16.msra.mxu0 %v8026_v15  ;;  %5404 = vmatpush.bf16.msra.mxu1 %v8282_v58  ;;  %v9788_v28 = vld [vmem:[#allocation14 + $0xe1c] sm:$0xf0]  ;;  %v7998_v58 = vor.u32 %v9584_v14, %v7995_v40  ;;  %v9360_v39 = vld [vmem:[#allocation14 + $0xc4] sm:$0xf]  ;;  %v7678_v38 = vor.u32 %v9504_v22, %v7675_v57 }
 0x716   :  { %v8794_v61 = vor.u32 %v9788_v28, %v8793_v56  ;;  %5417 = vmatpush.bf16.msra.mxu2 %v8538_v42  ;;  %v7963_v42 = vld [vmem:[#allocation14 + $0x7a0] sm:$0xf0] }
 0x717   :  { %v9368_v56 = vld [vmem:[#allocation14 + $0x104] sm:$0xf] }
 0x718   :  { %5430 = vmatpush.bf16.msra.mxu3 %v8794_v61  ;;  %v9352_v40 = vld [vmem:[#allocation14 + $0x84] sm:$0xf] }
 0x754   :  { %v2097_v3 = vpop.f32.mrf.mxu0  ;;  %v2110_v36 = vpop.f32.mrf.mxu1 }
 0x755   :  { %v2192_v16 = vadd.f32 %v2097_v3, %v11483_v47  ;;  %v2193_v24 = vadd.f32 %v2110_v36, %v11486_v12  ;;  %v7387_v3 = vld [vmem:[#allocation14 + $0x320] sm:$0xf0] }
 0x757   :  { %v2218_v55 = vadd.f32 %v2202_v26, %v2192_v16  ;;  %v2219_v41 = vadd.f32 %v2203_v60, %v2193_v24  ;;  %v7131_v26 = vld [vmem:[#allocation14 + $0x120] sm:$0xf0]  ;;  %v7710_v24 = vor.u32 %v9512_v2, %v7707_v43 }
 0x758   :  { %v9432_v60 = vld [vmem:[#allocation14 + $0x304] sm:$0xf]  ;;  %v7134_v30 = vor.u32 %v9368_v56, %v7131_v26 }
 0x759   :  { %v2226_v45 = vmax.f32 %v2218_v55, 0.0  ;;  %v2227_v54 = vmax.f32 %v2219_v41, 0.0  ;;  %v7966_v41 = vor.u32 %v9576_v50, %v7963_v42  ;;  %v7611_v43 = vld [vmem:[#allocation14 + $0x4e0] sm:$0xf0] }
 0x75a   :  { %v7867_v50 = vld [vmem:[#allocation14 + $0x6e0] sm:$0xf0] }
 0x75b   :  { %v11526_v21 = vpack.c.bf16 %v2226_v45, %v2226_v45  ;;  %v11528_v47 = vpack.c.bf16 %v2227_v54, %v2227_v54  ;;  %v2123_v12 = vpop.f32.mrf.mxu2  ;;  %v2136_v53 = vpop.f32.mrf.mxu3  ;;  %v7390_v45 = vor.u32 %v9432_v60, %v7387_v3  ;;  %v9568_v54 = vld [vmem:[#allocation14 + $0x744] sm:$0xf] }
 0x75c   :  { %v2194_v37 = vadd.f32 %v2123_v12, %v11477_v62  ;;  %v2195_v27 = vadd.f32 %v2136_v53, %v11480_v46  ;;  %v2099_v8 = vpop.f32.mrf.mxu0  ;;  %v2112_v52 = vpop.f32.mrf.mxu1  ;;  %v7163_v62 = vld [vmem:[#allocation14 + $0x160] sm:$0xf0] }
 0x75d   :  { %5340 = vmatmul.bf16.vlgmr.msrb.gmra.mxu0 %v11526_v21  ;;  %5353 = vmatmul.bf16.vlgmr.msrb.gmra.mxu1 %v11528_v47  ;;  %v7419_v46 = vld [vmem:[#allocation14 + $0x360] sm:$0xf0]  ;;  %v7166_v18 = vor.u32 %v9376_v13, %v7163_v62 }
 0x75e   :  { %v2220_v1 = vadd.f32 %v2204_v20, %v2194_v37  ;;  %v2221_v9 = vadd.f32 %v2205_v48, %v2195_v27  ;;  %5436 = vmatpush.bf16.msrb.mxu0 %v7230_v5  ;;  %5449 = vmatpush.bf16.msrb.mxu1 %v7486_v29  ;;  %v7422_v32 = vor.u32 %v9440_v17, %v7419_v46  ;;  %v7931_v20 = vld [vmem:[#allocation14 + $0x760] sm:$0xf0]  ;;  %v2208_v29 = vperm.slane %v11518_v25, 6 }
 0x75f   :  { %v7099_v12 = vld [vmem:[#allocation14 + $0xe0] sm:$0xf0]  ;;  %v7934_v37 = vor.u32 %v9568_v54, %v7931_v20 }
 0x760   :  { %v2228_v0 = vmax.f32 %v2220_v1, 0.0  ;;  %v2229_v15 = vmax.f32 %v2221_v9, 0.0  ;;  %v9424_v53 = vld [vmem:[#allocation14 + $0x2c4] sm:$0xf]  ;;  %v7102_v9 = vor.u32 %v9360_v39, %v7099_v12 }
 0x761   :  { %v9496_v27 = vld [vmem:[#allocation14 + $0x504] sm:$0xf] }
 0x762   :  { %v11535_v35 = vpack.c.bf16 %v2228_v0, %v2228_v0  ;;  %v11537_v51 = vpack.c.bf16 %v2229_v15, %v2229_v15  ;;  %5437 = vmatpush.bf16.msrb.mxu0 %v7198_v23  ;;  %5450 = vmatpush.bf16.msrb.mxu1 %v7454_v10  ;;  %v7643_v8 = vld [vmem:[#allocation14 + $0x520] sm:$0xf0] }
 0x763   :  { %v2125_v28 = vpop.f32.mrf.mxu2  ;;  %v2138_v61 = vpop.f32.mrf.mxu3  ;;  %v9560_v52 = vld [vmem:[#allocation14 + $0x704] sm:$0xf] }
 0x764   :  { %5366 = vmatmul.bf16.vlgmr.msrb.gmra.mxu2 %v11535_v35  ;;  %5379 = vmatmul.bf16.vlgmr.msrb.gmra.mxu3 %v11537_v51  ;;  %v2149_v36 = vpop.f32.mrf.mxu0  ;;  %v2162_v16 = vpop.f32.mrf.mxu1  ;;  %v7899_v23 = vld [vmem:[#allocation14 + $0x720] sm:$0xf0] }
 0x765   :  { %5462 = vmatpush.bf16.msrb.mxu2 %v7742_v31  ;;  %5475 = vmatpush.bf16.msrb.mxu3 %v7998_v58  ;;  %v2196_v19 = vadd.f32 %v2149_v36, %v11495_v11  ;;  %v2197_v55 = vadd.f32 %v2162_v16, %v11498_v63  ;;  %v7355_v11 = vld [vmem:[#allocation14 + $0x2e0] sm:$0xf0]  ;;  %v7902_v31 = vor.u32 %v9560_v52, %v7899_v23 }
 0x766   :  { %5438 = vmatpush.bf16.msrb.mxu0 %v7166_v18  ;;  %5451 = vmatpush.bf16.msrb.mxu1 %v7422_v32  ;;  %v7358_v10 = vor.u32 %v9424_v53, %v7355_v11  ;;  %v7067_v46 = vld [vmem:[#allocation14 + $0xa0] sm:$0xf0] }
 0x767   :  { %v2222_v48 = vadd.f32 %v2206_v7, %v2196_v19  ;;  %v2223_v5 = vadd.f32 %v2207_v4, %v2197_v55  ;;  %v9416_v0 = vld [vmem:[#allocation14 + $0x284] sm:$0xf]  ;;  %v7646_v7 = vor.u32 %v9496_v27, %v7643_v8 }
 0x768   :  { %v7323_v15 = vld [vmem:[#allocation14 + $0x2a0] sm:$0xf0] }
 0x769   :  { %v2230_v59 = vmax.f32 %v2222_v48, 0.0  ;;  %v2231_v63 = vmax.f32 %v2223_v5, 0.0  ;;  %5463 = vmatpush.bf16.msrb.mxu2 %v7710_v24  ;;  %5476 = vmatpush.bf16.msrb.mxu3 %v7966_v41  ;;  %v9488_v58 = vld [vmem:[#allocation14 + $0x4c4] sm:$0xf]  ;;  %v7326_v4 = vor.u32 %v9416_v0, %v7323_v15 }
 0x76a   :  { %5439 = vmatpush.bf16.msrb.mxu0 %v7134_v30  ;;  %5452 = vmatpush.bf16.msrb.mxu1 %v7390_v45  ;;  %v9344_v32 = vld [vmem:[#allocation14 + $0x44] sm:$0xf]  ;;  %v7614_v60 = vor.u32 %v9488_v58, %v7611_v43 }
 0x76b   :  { %v11546_v44 = vpack.c.bf16 %v2230_v59, %v2230_v59  ;;  %v11548_v49 = vpack.c.bf16 %v2231_v63, %v2231_v63  ;;  %v2175_v14 = vpop.f32.mrf.mxu2  ;;  %v2188_v1 = vpop.f32.mrf.mxu3  ;;  %v7035_v42 = vld [vmem:[#allocation14 + $0x60] sm:$0xf0] }
 0x76c   :  { %v2198_v13 = vadd.f32 %v2175_v14, %v11489_v33  ;;  %v2199_v25 = vadd.f32 %v2188_v1, %v11492_v34  ;;  %v2151_v62 = vpop.f32.mrf.mxu0  ;;  %v2164_v17 = vpop.f32.mrf.mxu1  ;;  %v9552_v33 = vld [vmem:[#allocation14 + $0x6c4] sm:$0xf]  ;;  %v7070_v34 = vor.u32 %v9352_v40, %v7067_v46  ;;  %v7038_v30 = vor.u32 %v9344_v32, %v7035_v42 }
 0x76d   :  { %5464 = vmatpush.bf16.msrb.mxu2 %v7678_v38  ;;  %5477 = vmatpush.bf16.msrb.mxu3 %v7934_v37  ;;  %v9408_v61 = vld [vmem:[#allocation14 + $0x244] sm:$0xf]  ;;  %v7870_v3 = vor.u32 %v9552_v33, %v7867_v50 }
 0x76e   :  { %v2224_v18 = vadd.f32 %v2208_v29, %v2198_v13  ;;  %v2225_v2 = vadd.f32 %v2209_v6, %v2199_v25  ;;  %5392 = vmatmul.bf16.vlgmr.msra.gmra.mxu0 %v11546_v44  ;;  %5405 = vmatmul.bf16.vlgmr.msra.gmra.mxu1 %v11548_v49  ;;  %v7291_v26 = vld [vmem:[#allocation14 + $0x260] sm:$0xf0] }
 0x76f   :  { %5440 = vmatpush.bf16.msrb.mxu0 %v7102_v9  ;;  %5453 = vmatpush.bf16.msrb.mxu1 %v7358_v10  ;;  %v9480_v36 = vld [vmem:[#allocation14 + $0x484] sm:$0xf]  ;;  %v7294_v45 = vor.u32 %v9408_v61, %v7291_v26 }
 0x770   :  { %v2232_v56 = vmax.f32 %v2224_v18, 0.0  ;;  %v2233_v28 = vmax.f32 %v2225_v2, 0.0  ;;  %v7579_v19 = vld [vmem:[#allocation14 + $0x4a0] sm:$0xf0] }
 0x771   :  { %5465 = vmatpush.bf16.msrb.mxu2 %v7646_v7  ;;  %5478 = vmatpush.bf16.msrb.mxu3 %v7902_v31  ;;  %v9544_v55 = vld [vmem:[#allocation14 + $0x684] sm:$0xf]  ;;  %v7582_v38 = vor.u32 %v9480_v36, %v7579_v19 }
 0x772   :  { %v11554_v16 = vpack.c.bf16 %v2232_v56, %v2232_v56  ;;  %v11556_v24 = vpack.c.bf16 %v2233_v28, %v2233_v28  ;;  %v7835_v41 = vld [vmem:[#allocation14 + $0x6a0] sm:$0xf0] }
 0x773   :  { %5441 = vmatpush.bf16.msrb.mxu0 %v7070_v34  ;;  %5454 = vmatpush.bf16.msrb.mxu1 %v7326_v4  ;;  %v2177_v22 = vpop.f32.mrf.mxu2  ;;  %v2190_v57 = vpop.f32.mrf.mxu3  ;;  %v9336_v54 = vld [vmem:[#allocation14 + $0x4] sm:$0xf]  ;;  %v7838_v12 = vor.u32 %v9544_v55, %v7835_v41 }
 0x774   :  { %v7003_v20 = vld [vmem:[#allocation14 + $0x20] sm:$0xf0]  ;;  %5418 = vmatmul.bf16.vlgmr.msra.gmra.mxu2 %v11554_v16  ;;  %5431 = vmatmul.bf16.vlgmr.msra.gmra.mxu3 %v11556_v24 }
 0x775   :  { %v9400_v48 = vld [vmem:[#allocation14 + $0x204] sm:$0xf]  ;;  %5466 = vmatpush.bf16.msrb.mxu2 %v7614_v60  ;;  %5479 = vmatpush.bf16.msrb.mxu3 %v7870_v3  ;;  %v7006_v27 = vor.u32 %v9336_v54, %v7003_v20 }
 0x776   :  { %v7259_v5 = vld [vmem:[#allocation14 + $0x220] sm:$0xf0] }
 0x777   :  { %v9648_v29 = vld [vmem:[#allocation14 + $0x9c4] sm:$0xf]  ;;  %5442 = vmatpush.bf16.msrb.mxu0 %v7038_v30  ;;  %5455 = vmatpush.bf16.msrb.mxu1 %v7294_v45  ;;  %v7262_v8 = vor.u32 %v9400_v48, %v7259_v5 }
 0x778   :  { %v8251_v39 = vld [vmem:[#allocation14 + $0x9e0] sm:$0xf0] }
 0x779   :  { %v9712_v53 = vld [vmem:[#allocation14 + $0xbc4] sm:$0xf]  ;;  %v8254_v52 = vor.u32 %v9648_v29, %v8251_v39  ;;  %5467 = vmatpush.bf16.msrb.mxu2 %v7582_v38  ;;  %5480 = vmatpush.bf16.msrb.mxu3 %v7838_v12 }
 0x77a   :  { %v8507_v11 = vld [vmem:[#allocation14 + $0xbe0] sm:$0xf0] }
 0x77b   :  { %v9472_v59 = vld [vmem:[#allocation14 + $0x444] sm:$0xf]  ;;  %v8510_v23 = vor.u32 %v9712_v53, %v8507_v11  ;;  %5443 = vmatpush.bf16.msrb.mxu0 %v7006_v27  ;;  %5456 = vmatpush.bf16.msrb.mxu1 %v7262_v8 }
 0x77c   :  { %v7547_v63 = vld [vmem:[#allocation14 + $0x460] sm:$0xf0] }
 0x77d   :  { %v9536_v6 = vld [vmem:[#allocation14 + $0x644] sm:$0xf]  ;;  %v7550_v10 = vor.u32 %v9472_v59, %v7547_v63 }
 0x77e   :  { %v7803_v37 = vld [vmem:[#allocation14 + $0x660] sm:$0xf0]  ;;  %5444 = vmatmul.bf16.vlgmr.msrb.gmra.mxu0 %v11526_v21  ;;  %5457 = vmatmul.bf16.vlgmr.msrb.gmra.mxu1 %v11528_v47 }
 0x77f   :  { %v9640_v14 = vld [vmem:[#allocation14 + $0x984] sm:$0xf]  ;;  %v7806_v40 = vor.u32 %v9536_v6, %v7803_v37  ;;  %5488 = vmatpush.bf16.msra.mxu0 %v8254_v52  ;;  %5501 = vmatpush.bf16.msra.mxu1 %v8510_v23 }
 0x780   :  { %v8219_v1 = vld [vmem:[#allocation14 + $0x9a0] sm:$0xf0]  ;;  %5468 = vmatpush.bf16.msrb.mxu2 %v7550_v10 }
 0x781   :  { %v9704_v9 = vld [vmem:[#allocation14 + $0xb84] sm:$0xf]  ;;  %v8222_v58 = vor.u32 %v9640_v14, %v8219_v1  ;;  %5481 = vmatpush.bf16.msrb.mxu3 %v7806_v40 }
 0x782   :  { %v8475_v13 = vld [vmem:[#allocation14 + $0xba0] sm:$0xf0] }
 0x783   :  { %v9464_v25 = vld [vmem:[#allocation14 + $0x404] sm:$0xf]  ;;  %v8478_v18 = vor.u32 %v9704_v9, %v8475_v13  ;;  %5489 = vmatpush.bf16.msra.mxu0 %v8222_v58 }
 0x784   :  { %v7515_v62 = vld [vmem:[#allocation14 + $0x420] sm:$0xf0] }
 0x785   :  { %v9528_v17 = vld [vmem:[#allocation14 + $0x604] sm:$0xf]  ;;  %v7518_v43 = vor.u32 %v9464_v25, %v7515_v62  ;;  %5502 = vmatpush.bf16.msra.mxu1 %v8478_v18 }
 0x786   :  { %v7771_v46 = vld [vmem:[#allocation14 + $0x620] sm:$0xf0] }
 0x787   :  { %v9776_v0 = vld [vmem:[#allocation14 + $0xdc4] sm:$0xf]  ;;  %v7774_v33 = vor.u32 %v9528_v17, %v7771_v46  ;;  %5469 = vmatpush.bf16.msrb.mxu2 %v7518_v43 }
 0x788   :  { %v8763_v15 = vld [vmem:[#allocation14 + $0xde0] sm:$0xf0] }
 0x789   :  { %v9840_v7 = vld [vmem:[#allocation14 + $0xfc4] sm:$0xf]  ;;  %v8766_v32 = vor.u32 %v9776_v0, %v8763_v15  ;;  %5482 = vmatpush.bf16.msrb.mxu3 %v7774_v33 }
 0x78a   :  { %v9019_v31 = vld [vmem:[#allocation14 + $0xfe0] sm:$0xf0]  ;;  %5470 = vmatmul.bf16.vlgmr.msrb.gmra.mxu2 %v11535_v35 }
 0x78b   :  { %v9632_v2 = vld [vmem:[#allocation14 + $0x944] sm:$0xf]  ;;  %v9022_v42 = vor.u32 %v9840_v7, %v9019_v31  ;;  %5514 = vmatpush.bf16.msra.mxu2 %v8766_v32 }
 0x78c   :  { %v8187_v50 = vld [vmem:[#allocation14 + $0x960] sm:$0xf0]  ;;  %5483 = vmatmul.bf16.vlgmr.msrb.gmra.mxu3 %v11537_v51 }
 0x78d   :  { %v9696_v34 = vld [vmem:[#allocation14 + $0xb44] sm:$0xf]  ;;  %v8190_v60 = vor.u32 %v9632_v2, %v8187_v50  ;;  %5527 = vmatpush.bf16.msra.mxu3 %v9022_v42 }
 0x78e   :  { %v8443_v4 = vld [vmem:[#allocation14 + $0xb60] sm:$0xf0] }
 0x78f   :  { %v9768_v56 = vld [vmem:[#allocation14 + $0xd84] sm:$0xf]  ;;  %v8446_v3 = vor.u32 %v9696_v34, %v8443_v4  ;;  %5490 = vmatpush.bf16.msra.mxu0 %v8190_v60 }
 0x790   :  { %v8731_v28 = vld [vmem:[#allocation14 + $0xda0] sm:$0xf0] }
 0x791   :  { %v9832_v61 = vld [vmem:[#allocation14 + $0xf84] sm:$0xf]  ;;  %v8734_v22 = vor.u32 %v9768_v56, %v8731_v28  ;;  %5503 = vmatpush.bf16.msra.mxu1 %v8446_v3 }
 0x792   :  { %v8987_v26 = vld [vmem:[#allocation14 + $0xfa0] sm:$0xf0] }
 0x793   :  { %v9624_v36 = vld [vmem:[#allocation14 + $0x904] sm:$0xf]  ;;  %v8990_v57 = vor.u32 %v9832_v61, %v8987_v26  ;;  %5515 = vmatpush.bf16.msra.mxu2 %v8734_v22  ;;  %v7233_v61 = vld [vmem:[#allocation14 + $0x1c8] sm:$0xf] }
 0x794   :  { %v8155_v19 = vld [vmem:[#allocation14 + $0x920] sm:$0xf0]  ;;  %v9397_v26 = vld [vmem:[#allocation14 + $0x1e4] sm:$0xf0] }
 0x795   :  { %v9688_v55 = vld [vmem:[#allocation14 + $0xb04] sm:$0xf]  ;;  %v8158_v48 = vor.u32 %v9624_v36, %v8155_v19  ;;  %5528 = vmatpush.bf16.msra.mxu3 %v8990_v57  ;;  %v7489_v36 = vld [vmem:[#allocation14 + $0x3c8] sm:$0xf] }
 0x796   :  { %v8411_v41 = vld [vmem:[#allocation14 + $0xb20] sm:$0xf0]  ;;  %v9461_v19 = vld [vmem:[#allocation14 + $0x3e4] sm:$0xf0] }
 0x797   :  { %v9760_v30 = vld [vmem:[#allocation14 + $0xd44] sm:$0xf]  ;;  %v8414_v5 = vor.u32 %v9688_v55, %v8411_v41  ;;  %5491 = vmatpush.bf16.msra.mxu0 %v8158_v48  ;;  %v7201_v48 = vld [vmem:[#allocation14 + $0x188] sm:$0xf] }
 0x798   :  { %v8699_v45 = vld [vmem:[#allocation14 + $0xd60] sm:$0xf0] }
 0x799   :  { %v9824_v54 = vld [vmem:[#allocation14 + $0xf44] sm:$0xf]  ;;  %v8702_v53 = vor.u32 %v9760_v30, %v8699_v45  ;;  %5504 = vmatpush.bf16.msra.mxu1 %v8414_v5  ;;  %v9389_v5 = vld [vmem:[#allocation14 + $0x1a4] sm:$0xf0] }
 0x79a   :  { %v8955_v20 = vld [vmem:[#allocation14 + $0xf60] sm:$0xf0] }
 0x79b   :  { %v9616_v29 = vld [vmem:[#allocation14 + $0x8c4] sm:$0xf]  ;;  %v8958_v11 = vor.u32 %v9824_v54, %v8955_v20  ;;  %5516 = vmatpush.bf16.msra.mxu2 %v8702_v53  ;;  %v7234_v54 = vor.u32 %v9397_v26, %v7233_v61  ;;  %v7490_v20 = vor.u32 %v9461_v19, %v7489_v36  ;;  %v7105_v61 = vld [vmem:[#allocation14 + $0xc8] sm:$0xf] }
 0x79c   :  { %v8123_v39 = vld [vmem:[#allocation14 + $0x8e0] sm:$0xf0]  ;;  %v9365_v26 = vld [vmem:[#allocation14 + $0xe4] sm:$0xf0] }
 0x79d   :  { %v9680_v38 = vld [vmem:[#allocation14 + $0xac4] sm:$0xf]  ;;  %v8126_v27 = vor.u32 %v9616_v29, %v8123_v39  ;;  %5529 = vmatpush.bf16.msra.mxu3 %v8958_v11  ;;  %v7457_v29 = vld [vmem:[#allocation14 + $0x388] sm:$0xf] }
 0x79e   :  { %v8379_v12 = vld [vmem:[#allocation14 + $0xae0] sm:$0xf0]  ;;  %v7361_v36 = vld [vmem:[#allocation14 + $0x2c8] sm:$0xf] }
 0x79f   :  { %v9752_v59 = vld [vmem:[#allocation14 + $0xd04] sm:$0xf]  ;;  %v8382_v8 = vor.u32 %v9680_v38, %v8379_v12  ;;  %5492 = vmatpush.bf16.msra.mxu0 %v8126_v27  ;;  %v9453_v12 = vld [vmem:[#allocation14 + $0x3a4] sm:$0xf0] }
 0x7a0   :  { %v8667_v63 = vld [vmem:[#allocation14 + $0xd20] sm:$0xf0]  ;;  %v8001_v27 = vld [vmem:[#allocation14 + $0x7c8] sm:$0xf] }
 0x7a1   :  { %v9816_v6 = vld [vmem:[#allocation14 + $0xf04] sm:$0xf]  ;;  %v8670_v9 = vor.u32 %v9752_v59, %v8667_v63  ;;  %5505 = vmatpush.bf16.msra.mxu1 %v8382_v8  ;;  %v9589_v8 = vld [vmem:[#allocation14 + $0x7e4] sm:$0xf0] }
 0x7a2   :  { %v8923_v37 = vld [vmem:[#allocation14 + $0xf20] sm:$0xf0]  ;;  %v9429_v19 = vld [vmem:[#allocation14 + $0x2e4] sm:$0xf0] }
 0x7a3   :  { %v9608_v52 = vld [vmem:[#allocation14 + $0x884] sm:$0xf]  ;;  %v8926_v10 = vor.u32 %v9816_v6, %v8923_v37  ;;  %5517 = vmatpush.bf16.msra.mxu2 %v8670_v9  ;;  %v7745_v6 = vld [vmem:[#allocation14 + $0x5c8] sm:$0xf] }
 0x7a4   :  { %v8091_v23 = vld [vmem:[#allocation14 + $0x8a0] sm:$0xf0]  ;;  %v9525_v37 = vld [vmem:[#allocation14 + $0x5e4] sm:$0xf0] }
 0x7a5   :  { %v9672_v14 = vld [vmem:[#allocation14 + $0xa84] sm:$0xf]  ;;  %v8094_v17 = vor.u32 %v9608_v52, %v8091_v23  ;;  %5530 = vmatpush.bf16.msra.mxu3 %v8926_v10  ;;  %v7202_v52 = vor.u32 %v9389_v5, %v7201_v48  ;;  %v7458_v23 = vor.u32 %v9453_v12, %v7457_v29  ;;  %v7169_v9 = vld [vmem:[#allocation14 + $0x148] sm:$0xf] }
 0x7a6   :  { %v8347_v1 = vld [vmem:[#allocation14 + $0xaa0] sm:$0xf0]  ;;  %v9381_v10 = vld [vmem:[#allocation14 + $0x164] sm:$0xf0] }
 0x7a7   :  { %v9744_v40 = vld [vmem:[#allocation14 + $0xcc4] sm:$0xf]  ;;  %v8350_v46 = vor.u32 %v9672_v14, %v8347_v1  ;;  %5493 = vmatpush.bf16.msra.mxu0 %v8094_v17  ;;  %v7713_v17 = vld [vmem:[#allocation14 + $0x588] sm:$0xf] }
 0x7a8   :  { %v8635_v13 = vld [vmem:[#allocation14 + $0xce0] sm:$0xf0]  ;;  %v7329_v29 = vld [vmem:[#allocation14 + $0x288] sm:$0xf] }
 0x7a9   :  { %v9808_v25 = vld [vmem:[#allocation14 + $0xec4] sm:$0xf]  ;;  %v8638_v58 = vor.u32 %v9744_v40, %v8635_v13  ;;  %5506 = vmatpush.bf16.msra.mxu1 %v8350_v46  ;;  %v7746_v40 = vor.u32 %v9525_v37, %v7745_v6  ;;  %v8002_v13 = vor.u32 %v9589_v8, %v8001_v27  ;;  %v9517_v46 = vld [vmem:[#allocation14 + $0x5a4] sm:$0xf0] }
 0x7aa   :  { %v8891_v62 = vld [vmem:[#allocation14 + $0xee0] sm:$0xf0]  ;;  %v9493_v12 = vld [vmem:[#allocation14 + $0x4e4] sm:$0xf0] }
 0x7ab   :  { %v9600_v0 = vld [vmem:[#allocation14 + $0x844] sm:$0xf]  ;;  %v8894_v18 = vor.u32 %v9808_v25, %v8891_v62  ;;  %5518 = vmatpush.bf16.msra.mxu2 %v8638_v58  ;;  %v7425_v25 = vld [vmem:[#allocation14 + $0x348] sm:$0xf] }
 0x7ac   :  { %v8059_v15 = vld [vmem:[#allocation14 + $0x860] sm:$0xf0]  ;;  %v9445_v62 = vld [vmem:[#allocation14 + $0x364] sm:$0xf0] }
 0x7ad   :  { %v9664_v7 = vld [vmem:[#allocation14 + $0xa44] sm:$0xf]  ;;  %v8062_v34 = vor.u32 %v9600_v0, %v8059_v15  ;;  %5531 = vmatpush.bf16.msra.mxu3 %v8894_v18  ;;  %v7969_v0 = vld [vmem:[#allocation14 + $0x788] sm:$0xf] }
 0x7ae   :  { %v8315_v31 = vld [vmem:[#allocation14 + $0xa60] sm:$0xf0]  ;;  %v9581_v15 = vld [vmem:[#allocation14 + $0x7a4] sm:$0xf0] }
 0x7af   :  { %v9736_v2 = vld [vmem:[#allocation14 + $0xc84] sm:$0xf]  ;;  %v8318_v4 = vor.u32 %v9664_v7, %v8315_v31  ;;  %5494 = vmatpush.bf16.msra.mxu0 %v8062_v34  ;;  %v7170_v7 = vor.u32 %v9381_v10, %v7169_v9  ;;  %v7426_v31 = vor.u32 %v9445_v62, %v7425_v25  ;;  %v7137_v58 = vld [vmem:[#allocation14 + $0x108] sm:$0xf] }
 0x7b0   :  { %v8603_v43 = vld [vmem:[#allocation14 + $0xca0] sm:$0xf0]  ;;  %v9373_v18 = vld [vmem:[#allocation14 + $0x124] sm:$0xf0] }
 0x7b1   :  { %v9800_v33 = vld [vmem:[#allocation14 + $0xe84] sm:$0xf]  ;;  %v8606_v60 = vor.u32 %v9736_v2, %v8603_v43  ;;  %5507 = vmatpush.bf16.msra.mxu1 %v8318_v4  ;;  %v7714_v2 = vor.u32 %v9517_v46, %v7713_v17  ;;  %v7970_v43 = vor.u32 %v9581_v15, %v7969_v0  ;;  %v7681_v34 = vld [vmem:[#allocation14 + $0x548] sm:$0xf] }
 0x7b2   :  { %v8859_v50 = vld [vmem:[#allocation14 + $0xea0] sm:$0xf0]  ;;  %v9509_v4 = vld [vmem:[#allocation14 + $0x564] sm:$0xf0] }
 0x7b3   :  { %v9592_v32 = vld [vmem:[#allocation14 + $0x804] sm:$0xf]  ;;  %v8862_v3 = vor.u32 %v9800_v33, %v8859_v50  ;;  %5519 = vmatpush.bf16.msra.mxu2 %v8606_v60  ;;  %v7393_v33 = vld [vmem:[#allocation14 + $0x308] sm:$0xf]  ;;  %v7682_v60 = vor.u32 %v9509_v4, %v7681_v34 }
 0x7b4   :  { %v8027_v42 = vld [vmem:[#allocation14 + $0x820] sm:$0xf0]  ;;  %v9437_v50 = vld [vmem:[#allocation14 + $0x324] sm:$0xf0] }
 0x7b5   :  { %v9656_v56 = vld [vmem:[#allocation14 + $0xa04] sm:$0xf]  ;;  %v8030_v30 = vor.u32 %v9592_v32, %v8027_v42  ;;  %5532 = vmatpush.bf16.msra.mxu3 %v8862_v3  ;;  %v7937_v32 = vld [vmem:[#allocation14 + $0x748] sm:$0xf] }
 0x7b6   :  { %v8283_v28 = vld [vmem:[#allocation14 + $0xa20] sm:$0xf0]  ;;  %v9573_v42 = vld [vmem:[#allocation14 + $0x764] sm:$0xf0] }
 0x7b7   :  { %v9728_v55 = vld [vmem:[#allocation14 + $0xc44] sm:$0xf]  ;;  %v8286_v45 = vor.u32 %v9656_v56, %v8283_v28  ;;  %5495 = vmatpush.bf16.msra.mxu0 %v8030_v30  ;;  %v7138_v56 = vor.u32 %v9373_v18, %v7137_v58  ;;  %v7394_v28 = vor.u32 %v9437_v50, %v7393_v33  ;;  %v7938_v3 = vor.u32 %v9573_v42, %v7937_v32  ;;  %v7041_v6 = vld [vmem:[#allocation14 + $0x48] sm:$0xf] }
 0x7b8   :  { %v8571_v41 = vld [vmem:[#allocation14 + $0xc60] sm:$0xf0]  ;;  %v7106_v30 = vor.u32 %v9365_v26, %v7105_v61  ;;  %v9349_v37 = vld [vmem:[#allocation14 + $0x64] sm:$0xf0] }
 0x7b9   :  { %v9792_v22 = vld [vmem:[#allocation14 + $0xe44] sm:$0xf]  ;;  %v8574_v39 = vor.u32 %v9728_v55, %v8571_v41  ;;  %5508 = vmatpush.bf16.msra.mxu1 %v8286_v45  ;;  %v7649_v55 = vld [vmem:[#allocation14 + $0x508] sm:$0xf]  ;;  %v7362_v45 = vor.u32 %v9429_v19, %v7361_v36 }
 0x7ba   :  { %v8827_v57 = vld [vmem:[#allocation14 + $0xe60] sm:$0xf0]  ;;  %5496 = vmatmul.bf16.vlgmr.msra.gmra.mxu0 %v11546_v44  ;;  %v9501_v41 = vld [vmem:[#allocation14 + $0x524] sm:$0xf0] }
 0x7bb   :  { %v8830_v38 = vor.u32 %v9792_v22, %v8827_v57  ;;  %v9720_v53 = vld [vmem:[#allocation14 + $0xc04] sm:$0xf]  ;;  %5540 = vmatpush.bf16.msrb.mxu0 %v7234_v54  ;;  %5520 = vmatpush.bf16.msra.mxu2 %v8574_v39  ;;  %v7905_v22 = vld [vmem:[#allocation14 + $0x708] sm:$0xf]  ;;  %v7650_v48 = vor.u32 %v9501_v41, %v7649_v55 }
 0x7bc   :  { %v8539_v11 = vld [vmem:[#allocation14 + $0xc20] sm:$0xf0]  ;;  %5509 = vmatmul.bf16.vlgmr.msra.gmra.mxu1 %v11548_v49  ;;  %v9565_v57 = vld [vmem:[#allocation14 + $0x724] sm:$0xf0] }
 0x7bd   :  { %v9784_v59 = vld [vmem:[#allocation14 + $0xe04] sm:$0xf]  ;;  %5553 = vmatpush.bf16.msrb.mxu1 %v7490_v20  ;;  %5533 = vmatpush.bf16.msra.mxu3 %v8830_v38  ;;  %v8542_v14 = vor.u32 %v9720_v53, %v8539_v11  ;;  %v7073_v54 = vld [vmem:[#allocation14 + $0x88] sm:$0xf]  ;;  %v7906_v5 = vor.u32 %v9565_v57, %v7905_v22 }
 0x7be   :  { %v8795_v63 = vld [vmem:[#allocation14 + $0xe20] sm:$0xf0]  ;;  %v9357_v20 = vld [vmem:[#allocation14 + $0xa4] sm:$0xf0] }
 0x7bf   :  { %v8798_v1 = vor.u32 %v9784_v59, %v8795_v63  ;;  %5541 = vmatpush.bf16.msrb.mxu0 %v7202_v52  ;;  %5521 = vmatpush.bf16.msra.mxu2 %v8542_v14  ;;  %v9421_v39 = vld [vmem:[#allocation14 + $0x2a4] sm:$0xf0]  ;;  %v7074_v59 = vor.u32 %v9357_v20, %v7073_v54 }
 0x7c0   :  { %v7617_v38 = vld [vmem:[#allocation14 + $0x4c8] sm:$0xf]  ;;  %v7330_v63 = vor.u32 %v9421_v39, %v7329_v29 }
 0x7c1   :  { %5554 = vmatpush.bf16.msrb.mxu1 %v7458_v23  ;;  %5534 = vmatpush.bf16.msra.mxu3 %v8798_v1  ;;  %v7873_v53 = vld [vmem:[#allocation14 + $0x6c8] sm:$0xf]  ;;  %v7618_v27 = vor.u32 %v9493_v12, %v7617_v38 }
 0x7c2   :  { %5522 = vmatmul.bf16.vlgmr.msra.gmra.mxu2 %v11554_v16  ;;  %v9557_v11 = vld [vmem:[#allocation14 + $0x6e4] sm:$0xf0] }
 0x7c3   :  { %5566 = vmatpush.bf16.msrb.mxu2 %v7746_v40  ;;  %5542 = vmatpush.bf16.msrb.mxu0 %v7170_v7  ;;  %v7874_v8 = vor.u32 %v9557_v11, %v7873_v53  ;;  %v7297_v52 = vld [vmem:[#allocation14 + $0x248] sm:$0xf]  ;;  %v7042_v40 = vor.u32 %v9349_v37, %v7041_v6 }
 0x7c4   :  { %5535 = vmatmul.bf16.vlgmr.msra.gmra.mxu3 %v11556_v24  ;;  %v9413_v23 = vld [vmem:[#allocation14 + $0x264] sm:$0xf0] }
 0x7c5   :  { %5579 = vmatpush.bf16.msrb.mxu3 %v8002_v13  ;;  %5555 = vmatpush.bf16.msrb.mxu1 %v7426_v31  ;;  %v7585_v14 = vld [vmem:[#allocation14 + $0x488] sm:$0xf]  ;;  %v7298_v13 = vor.u32 %v9413_v23, %v7297_v52 }
 0x7c6   :  { %v9485_v1 = vld [vmem:[#allocation14 + $0x4a4] sm:$0xf0] }
 0x7c7   :  { %5567 = vmatpush.bf16.msrb.mxu2 %v7714_v2  ;;  %5543 = vmatpush.bf16.msrb.mxu0 %v7138_v56  ;;  %v7841_v9 = vld [vmem:[#allocation14 + $0x688] sm:$0xf]  ;;  %v7586_v46 = vor.u32 %v9485_v1, %v7585_v14 }
 0x7c8   :  { %v9549_v10 = vld [vmem:[#allocation14 + $0x6a4] sm:$0xf0] }
 0x7c9   :  { %5580 = vmatpush.bf16.msrb.mxu3 %v7970_v43  ;;  %5556 = vmatpush.bf16.msrb.mxu1 %v7394_v28  ;;  %v7009_v25 = vld [vmem:[#allocation14 + $0x8] sm:$0xf]  ;;  %v7842_v0 = vor.u32 %v9549_v10, %v7841_v9 }
 0x7ca   :  { %v9341_v62 = vld [vmem:[#allocation14 + $0x24] sm:$0xf0] }
 0x7cb   :  { %5568 = vmatpush.bf16.msrb.mxu2 %v7682_v60  ;;  %5544 = vmatpush.bf16.msrb.mxu0 %v7106_v30  ;;  %v7265_v17 = vld [vmem:[#allocation14 + $0x208] sm:$0xf]  ;;  %v7010_v34 = vor.u32 %v9341_v62, %v7009_v25 }
 0x7cc   :  { %v9405_v15 = vld [vmem:[#allocation14 + $0x224] sm:$0xf0] }
 0x7cd   :  { %5581 = vmatpush.bf16.msrb.mxu3 %v7938_v3  ;;  %5557 = vmatpush.bf16.msrb.mxu1 %v7362_v45  ;;  %v8257_v7 = vld [vmem:[#allocation14 + $0x9c8] sm:$0xf]  ;;  %v7266_v4 = vor.u32 %v9405_v15, %v7265_v17 }
 0x7ce   :  { %v9653_v31 = vld [vmem:[#allocation14 + $0x9e4] sm:$0xf0] }
 0x7cf   :  { %5569 = vmatpush.bf16.msrb.mxu2 %v7650_v48  ;;  %5545 = vmatpush.bf16.msrb.mxu0 %v7074_v59  ;;  %v8513_v58 = vld [vmem:[#allocation14 + $0xbc8] sm:$0xf]  ;;  %v8258_v32 = vor.u32 %v9653_v31, %v8257_v7 }
 0x7d0   :  { %v9717_v18 = vld [vmem:[#allocation14 + $0xbe4] sm:$0xf0] }
 0x7d1   :  { %5582 = vmatpush.bf16.msrb.mxu3 %v7906_v5  ;;  %5558 = vmatpush.bf16.msrb.mxu1 %v7330_v63  ;;  %v7553_v2 = vld [vmem:[#allocation14 + $0x448] sm:$0xf]  ;;  %v8514_v42 = vor.u32 %v9717_v18, %v8513_v58 }
 0x7d2   :  { %v9477_v43 = vld [vmem:[#allocation14 + $0x464] sm:$0xf0] }
 0x7d3   :  { %5570 = vmatpush.bf16.msrb.mxu2 %v7618_v27  ;;  %v7809_v33 = vld [vmem:[#allocation14 + $0x648] sm:$0xf]  ;;  %5546 = vmatpush.bf16.msrb.mxu0 %v7042_v40  ;;  %v7554_v26 = vor.u32 %v9477_v43, %v7553_v2 }
 0x7d4   :  { %v9541_v50 = vld [vmem:[#allocation14 + $0x664] sm:$0xf0] }
 0x7d5   :  { %5583 = vmatpush.bf16.msrb.mxu3 %v7874_v8  ;;  %5559 = vmatpush.bf16.msrb.mxu1 %v7298_v13  ;;  %v8225_v56 = vld [vmem:[#allocation14 + $0x988] sm:$0xf]  ;;  %v7810_v60 = vor.u32 %v9541_v50, %v7809_v33 }
 0x7d6   :  { %v9645_v28 = vld [vmem:[#allocation14 + $0x9a4] sm:$0xf0] }
 0x7d7   :  { %5571 = vmatpush.bf16.msrb.mxu2 %v7586_v46  ;;  %v8481_v61 = vld [vmem:[#allocation14 + $0xb88] sm:$0xf]  ;;  %5547 = vmatpush.bf16.msrb.mxu0 %v7010_v34  ;;  %v8226_v54 = vor.u32 %v9645_v28, %v8225_v56 }
 0x7d8   :  { %v9709_v3 = vld [vmem:[#allocation14 + $0xba4] sm:$0xf0] }
 0x7d9   :  { %5584 = vmatpush.bf16.msrb.mxu3 %v7842_v0  ;;  %v7521_v36 = vld [vmem:[#allocation14 + $0x408] sm:$0xf]  ;;  %5560 = vmatpush.bf16.msrb.mxu1 %v7266_v4  ;;  %v8482_v20 = vor.u32 %v9709_v3, %v8481_v61 }
 0x7da   :  { %v9469_v19 = vld [vmem:[#allocation14 + $0x424] sm:$0xf0]  ;;  %5548 = vmatmul.bf16.vlgmr.msrb.gmra.mxu0 %v11526_v21 }
 0x7db   :  { %v7777_v55 = vld [vmem:[#allocation14 + $0x608] sm:$0xf]  ;;  %5592 = vmatpush.bf16.msra.mxu0 %v8258_v32  ;;  %5572 = vmatpush.bf16.msrb.mxu2 %v7554_v26  ;;  %v7522_v48 = vor.u32 %v9469_v19, %v7521_v36 }
 0x7dc   :  { %v9533_v41 = vld [vmem:[#allocation14 + $0x624] sm:$0xf0]  ;;  %5561 = vmatmul.bf16.vlgmr.msrb.gmra.mxu1 %v11528_v47 }
 0x7dd   :  { %v8769_v22 = vld [vmem:[#allocation14 + $0xdc8] sm:$0xf]  ;;  %5605 = vmatpush.bf16.msra.mxu1 %v8514_v42  ;;  %5585 = vmatpush.bf16.msrb.mxu3 %v7810_v60  ;;  %v7778_v5 = vor.u32 %v9533_v41, %v7777_v55 }
 0x7de   :  { %v9781_v57 = vld [vmem:[#allocation14 + $0xde4] sm:$0xf0] }
 0x7df   :  { %v9025_v30 = vld [vmem:[#allocation14 + $0xfc8] sm:$0xf]  ;;  %v8770_v38 = vor.u32 %v9781_v57, %v8769_v22  ;;  %5593 = vmatpush.bf16.msra.mxu0 %v8226_v54  ;;  %5573 = vmatpush.bf16.msrb.mxu2 %v7522_v48 }
 0x7e0   :  { %v9845_v45 = vld [vmem:[#allocation14 + $0xfe4] sm:$0xf0] }
 0x7e1   :  { %v8193_v29 = vld [vmem:[#allocation14 + $0x948] sm:$0xf]  ;;  %v9026_v12 = vor.u32 %v9845_v45, %v9025_v30  ;;  %5606 = vmatpush.bf16.msra.mxu1 %v8482_v20  ;;  %5586 = vmatpush.bf16.msrb.mxu3 %v7778_v5 }
 0x7e2   :  { %v9637_v39 = vld [vmem:[#allocation14 + $0x964] sm:$0xf0]  ;;  %5574 = vmatmul.bf16.vlgmr.msrb.gmra.mxu2 %v11535_v35 }
 0x7e3   :  { %v8449_v53 = vld [vmem:[#allocation14 + $0xb48] sm:$0xf]  ;;  %v8194_v27 = vor.u32 %v9637_v39, %v8193_v29  ;;  %5618 = vmatpush.bf16.msra.mxu2 %v8770_v38 }
 0x7e4   :  { %v9701_v11 = vld [vmem:[#allocation14 + $0xb64] sm:$0xf0]  ;;  %5587 = vmatmul.bf16.vlgmr.msrb.gmra.mxu3 %v11537_v51 }
 0x7e5   :  { %v8737_v59 = vld [vmem:[#allocation14 + $0xd88] sm:$0xf]  ;;  %v8450_v8 = vor.u32 %v9701_v11, %v8449_v53  ;;  %5631 = vmatpush.bf16.msra.mxu3 %v9026_v12  ;;  %5594 = vmatpush.bf16.msra.mxu0 %v8194_v27  ;;  %v9393_v27 = vld [vmem:[#allocation14 + $0x1cc] sm:$0xf] }
 0x7e6   :  { %v9773_v63 = vld [vmem:[#allocation14 + $0xda4] sm:$0xf0] }
 0x7e7   :  { %v8993_v6 = vld [vmem:[#allocation14 + $0xf88] sm:$0xf]  ;;  %v8738_v14 = vor.u32 %v9773_v63, %v8737_v59  ;;  %5607 = vmatpush.bf16.msra.mxu1 %v8450_v8  ;;  %v7235_v8 = vld [vmem:[#allocation14 + $0x1e8] sm:$0xf0] }
 0x7e8   :  { %v9837_v37 = vld [vmem:[#allocation14 + $0xfa4] sm:$0xf0] }
 0x7e9   :  { %v8161_v52 = vld [vmem:[#allocation14 + $0x908] sm:$0xf]  ;;  %v8994_v1 = vor.u32 %v9837_v37, %v8993_v6  ;;  %5619 = vmatpush.bf16.msra.mxu2 %v8738_v14 }
 0x7ea   :  { %v9629_v23 = vld [vmem:[#allocation14 + $0x924] sm:$0xf0] }
 0x7eb   :  { %v8417_v9 = vld [vmem:[#allocation14 + $0xb08] sm:$0xf]  ;;  %v8162_v17 = vor.u32 %v9629_v23, %v8161_v52  ;;  %5632 = vmatpush.bf16.msra.mxu3 %v8994_v1  ;;  %v9457_v52 = vld [vmem:[#allocation14 + $0x3cc] sm:$0xf] }
 0x7ec   :  { %v9693_v10 = vld [vmem:[#allocation14 + $0xb24] sm:$0xf0]  ;;  %v7491_v23 = vld [vmem:[#allocation14 + $0x3e8] sm:$0xf0] }
 0x7ed   :  { %v8705_v40 = vld [vmem:[#allocation14 + $0xd48] sm:$0xf]  ;;  %v8418_v46 = vor.u32 %v9693_v10, %v8417_v9  ;;  %5595 = vmatpush.bf16.msra.mxu0 %v8162_v17  ;;  %v7494_v17 = vor.u32 %v9457_v52, %v7491_v23 }
 0x7ee   :  { %v9765_v13 = vld [vmem:[#allocation14 + $0xd64] sm:$0xf0] }
 0x7ef   :  { %v8961_v25 = vld [vmem:[#allocation14 + $0xf48] sm:$0xf]  ;;  %v8706_v7 = vor.u32 %v9765_v13, %v8705_v40  ;;  %5608 = vmatpush.bf16.msra.mxu1 %v8418_v46  ;;  %v7203_v46 = vld [vmem:[#allocation14 + $0x1a8] sm:$0xf0] }
 0x7f0   :  { %v9829_v62 = vld [vmem:[#allocation14 + $0xf64] sm:$0xf0] }
 0x7f1   :  { %v8129_v0 = vld [vmem:[#allocation14 + $0x8c8] sm:$0xf]  ;;  %v8962_v31 = vor.u32 %v9829_v62, %v8961_v25  ;;  %5620 = vmatpush.bf16.msra.mxu2 %v8706_v7  ;;  %v9385_v25 = vld [vmem:[#allocation14 + $0x18c] sm:$0xf]  ;;  %v7238_v62 = vor.u32 %v9393_v27, %v7235_v8 }
 0x7f2   :  { %v9621_v15 = vld [vmem:[#allocation14 + $0x8e4] sm:$0xf0]  ;;  %v7939_v27 = vld [vmem:[#allocation14 + $0x768] sm:$0xf0] }
 0x7f3   :  { %v8385_v58 = vld [vmem:[#allocation14 + $0xac8] sm:$0xf]  ;;  %v8130_v34 = vor.u32 %v9621_v15, %v8129_v0  ;;  %5633 = vmatpush.bf16.msra.mxu3 %v8962_v31  ;;  %v9449_v0 = vld [vmem:[#allocation14 + $0x38c] sm:$0xf] }
 0x7f4   :  { %v9685_v18 = vld [vmem:[#allocation14 + $0xae4] sm:$0xf0]  ;;  %v7459_v15 = vld [vmem:[#allocation14 + $0x3a8] sm:$0xf0] }
 0x7f5   :  { %v8673_v2 = vld [vmem:[#allocation14 + $0xd08] sm:$0xf]  ;;  %v8386_v4 = vor.u32 %v9685_v18, %v8385_v58  ;;  %5596 = vmatpush.bf16.msra.mxu0 %v8130_v34  ;;  %v9585_v34 = vld [vmem:[#allocation14 + $0x7cc] sm:$0xf] }
 0x7f6   :  { %v9757_v43 = vld [vmem:[#allocation14 + $0xd24] sm:$0xf0] }
 0x7f7   :  { %v8929_v33 = vld [vmem:[#allocation14 + $0xf08] sm:$0xf]  ;;  %v8674_v56 = vor.u32 %v9757_v43, %v8673_v2  ;;  %5609 = vmatpush.bf16.msra.mxu1 %v8386_v4  ;;  %v8003_v4 = vld [vmem:[#allocation14 + $0x7e8] sm:$0xf0] }
 0x7f8   :  { %v9821_v50 = vld [vmem:[#allocation14 + $0xf24] sm:$0xf0] }
 0x7f9   :  { %v8097_v32 = vld [vmem:[#allocation14 + $0x888] sm:$0xf]  ;;  %v8930_v28 = vor.u32 %v9821_v50, %v8929_v33  ;;  %5621 = vmatpush.bf16.msra.mxu2 %v8674_v56  ;;  %v9521_v33 = vld [vmem:[#allocation14 + $0x5cc] sm:$0xf]  ;;  %v7462_v56 = vor.u32 %v9449_v0, %v7459_v15 }
 0x7fa   :  { %v9613_v42 = vld [vmem:[#allocation14 + $0x8a4] sm:$0xf0]  ;;  %v7747_v50 = vld [vmem:[#allocation14 + $0x5e8] sm:$0xf0] }
 0x7fb   :  { %v8353_v61 = vld [vmem:[#allocation14 + $0xa88] sm:$0xf]  ;;  %v8098_v55 = vor.u32 %v9613_v42, %v8097_v32  ;;  %5634 = vmatpush.bf16.msra.mxu3 %v8930_v28  ;;  %v11572_v32 = vld [vmem:[#allocation15] sm:$0xff]  ;;  %v7206_v42 = vor.u32 %v9385_v25, %v7203_v46  ;;  %v9497_v25 = vld [vmem:[#allocation14 + $0x50c] sm:$0xf] }
 0x7fc   :  { %v9677_v26 = vld [vmem:[#allocation14 + $0xaa4] sm:$0xf0]  ;;  %v7907_v46 = vld [vmem:[#allocation14 + $0x728] sm:$0xf0] }
 0x7fd   :  { %v8641_v60 = vld [vmem:[#allocation14 + $0xcc8] sm:$0xf]  ;;  %v8354_v41 = vor.u32 %v9677_v26, %v8353_v61  ;;  %5597 = vmatpush.bf16.msra.mxu0 %v8098_v55  ;;  %v9377_v26 = vld [vmem:[#allocation14 + $0x14c] sm:$0xf] }
 0x7fe   :  { %v9749_v3 = vld [vmem:[#allocation14 + $0xce4] sm:$0xf0]  ;;  %v7427_v55 = vld [vmem:[#allocation14 + $0x368] sm:$0xf0] }
 0x7ff   :  { %v8897_v36 = vld [vmem:[#allocation14 + $0xec8] sm:$0xf]  ;;  %v8642_v30 = vor.u32 %v9749_v3, %v8641_v60  ;;  %5610 = vmatpush.bf16.msra.mxu1 %v8354_v41  ;;  %v7171_v60 = vld [vmem:[#allocation14 + $0x168] sm:$0xf0]  ;;  %v2756_v41 = vperm.slane %v11572_v32, 0 }
 0x800   :  { %v9813_v19 = vld [vmem:[#allocation14 + $0xee4] sm:$0xf0]  ;;  %v9441_v3 = vld [vmem:[#allocation14 + $0x34c] sm:$0xf] }
 0x801   :  { %v8065_v22 = vld [vmem:[#allocation14 + $0x848] sm:$0xf]  ;;  %v8898_v45 = vor.u32 %v9813_v19, %v8897_v36  ;;  %5622 = vmatpush.bf16.msra.mxu2 %v8642_v30  ;;  %v7750_v36 = vor.u32 %v9521_v33, %v7747_v50  ;;  %v8006_v19 = vor.u32 %v9585_v34, %v8003_v4  ;;  %v9577_v30 = vld [vmem:[#allocation14 + $0x78c] sm:$0xf] }
 0x802   :  { %v9605_v57 = vld [vmem:[#allocation14 + $0x864] sm:$0xf0]  ;;  %v9417_v33 = vld [vmem:[#allocation14 + $0x28c] sm:$0xf] }
 0x803   :  { %v8321_v54 = vld [vmem:[#allocation14 + $0xa48] sm:$0xf]  ;;  %v8066_v38 = vor.u32 %v9605_v57, %v8065_v22  ;;  %5635 = vmatpush.bf16.msra.mxu3 %v8898_v45  ;;  %v9513_v22 = vld [vmem:[#allocation14 + $0x58c] sm:$0xf] }
 0x804   :  { %v9669_v20 = vld [vmem:[#allocation14 + $0xa64] sm:$0xf0]  ;;  %v7715_v57 = vld [vmem:[#allocation14 + $0x5a8] sm:$0xf0] }
 0x805   :  { %v8609_v48 = vld [vmem:[#allocation14 + $0xc88] sm:$0xf]  ;;  %v8322_v12 = vor.u32 %v9669_v20, %v8321_v54  ;;  %5598 = vmatpush.bf16.msra.mxu0 %v8066_v38  ;;  %v7971_v45 = vld [vmem:[#allocation14 + $0x7a8] sm:$0xf0]  ;;  %v7174_v54 = vor.u32 %v9377_v26, %v7171_v60  ;;  %v7430_v20 = vor.u32 %v9441_v3, %v7427_v55  ;;  %v5367_v3 = vpop.f32.mrf.mxu2 }
 0x806   :  { %v9741_v5 = vld [vmem:[#allocation14 + $0xca4] sm:$0xf0]  ;;  %v7331_v50 = vld [vmem:[#allocation14 + $0x2a8] sm:$0xf0] }
 0x807   :  { %v8865_v29 = vld [vmem:[#allocation14 + $0xe88] sm:$0xf]  ;;  %v8610_v63 = vor.u32 %v9741_v5, %v8609_v48  ;;  %5611 = vmatpush.bf16.msra.mxu1 %v8322_v12  ;;  %v5341_v48 = vpop.f32.mrf.mxu0  ;;  %v5354_v5 = vpop.f32.mrf.mxu1  ;;  %v7718_v12 = vor.u32 %v9513_v22, %v7715_v57  ;;  %v9489_v34 = vld [vmem:[#allocation14 + $0x4cc] sm:$0xf] }
 0x808   :  { %v9805_v39 = vld [vmem:[#allocation14 + $0xea4] sm:$0xf0]  ;;  %v5342_v38 = vadd.f32 %v5341_v48, %v2756_v41  ;;  %v7619_v4 = vld [vmem:[#allocation14 + $0x4e8] sm:$0xf0] }
 0x809   :  { %v8033_v53 = vld [vmem:[#allocation14 + $0x808] sm:$0xf]  ;;  %v8866_v6 = vor.u32 %v9805_v39, %v8865_v29  ;;  %5623 = vmatpush.bf16.msra.mxu2 %v8610_v63  ;;  %v9369_v29 = vld [vmem:[#allocation14 + $0x10c] sm:$0xf] }
 0x80a   :  { %v9597_v11 = vld [vmem:[#allocation14 + $0x824] sm:$0xf0]  ;;  %v7139_v39 = vld [vmem:[#allocation14 + $0x128] sm:$0xf0]  ;;  %v5355_v8 = vadd.f32 %v5354_v5, %v5342_v38 }
 0x80b   :  { %v8289_v59 = vld [vmem:[#allocation14 + $0xa08] sm:$0xf]  ;;  %v8034_v40 = vor.u32 %v9597_v11, %v8033_v53  ;;  %5636 = vmatpush.bf16.msra.mxu3 %v8866_v6  ;;  %v7974_v53 = vor.u32 %v9577_v30, %v7971_v45  ;;  %v9433_v11 = vld [vmem:[#allocation14 + $0x30c] sm:$0xf]  ;;  %v7142_v52 = vor.u32 %v9369_v29, %v7139_v39 }
 0x80c   :  { %v9661_v37 = vld [vmem:[#allocation14 + $0xa24] sm:$0xf0]  ;;  %v9505_v63 = vld [vmem:[#allocation14 + $0x54c] sm:$0xf]  ;;  %v5368_v30 = vadd.f32 %v5367_v3, %v5355_v8 }
 0x80d   :  { %v8577_v14 = vld [vmem:[#allocation14 + $0xc48] sm:$0xf]  ;;  %v8290_v13 = vor.u32 %v9661_v37, %v8289_v59  ;;  %5599 = vmatpush.bf16.msra.mxu0 %v8034_v40  ;;  %v7395_v59 = vld [vmem:[#allocation14 + $0x328] sm:$0xf0] }
 0x80e   :  { %v9733_v1 = vld [vmem:[#allocation14 + $0xc64] sm:$0xf0]  ;;  %v7683_v6 = vld [vmem:[#allocation14 + $0x568] sm:$0xf0]  ;;  %v7398_v23 = vor.u32 %v9433_v11, %v7395_v59 }
 0x80f   :  { %v8833_v9 = vld [vmem:[#allocation14 + $0xe48] sm:$0xf]  ;;  %v8578_v7 = vor.u32 %v9733_v1, %v8577_v14  ;;  %5612 = vmatpush.bf16.msra.mxu1 %v8290_v13  ;;  %v9569_v37 = vld [vmem:[#allocation14 + $0x74c] sm:$0xf] }
 0x810   :  { %v9797_v10 = vld [vmem:[#allocation14 + $0xe64] sm:$0xf0]  ;;  %5600 = vmatmul.bf16.vlgmr.msra.gmra.mxu0 %v11546_v44  ;;  %v9361_v14 = vld [vmem:[#allocation14 + $0xcc] sm:$0xf] }
 0x811   :  { %v8834_v31 = vor.u32 %v9797_v10, %v8833_v9  ;;  %v8545_v58 = vld [vmem:[#allocation14 + $0xc08] sm:$0xf]  ;;  %5644 = vmatpush.bf16.msrb.mxu0 %v7238_v62  ;;  %5624 = vmatpush.bf16.msra.mxu2 %v8578_v7  ;;  %v7107_v1 = vld [vmem:[#allocation14 + $0xe8] sm:$0xf0]  ;;  %v7686_v9 = vor.u32 %v9505_v63, %v7683_v6  ;;  %v7942_v10 = vor.u32 %v9569_v37, %v7939_v27  ;;  %v5343_v7 = vpop.f32.mrf.mxu0 }
 0x812   :  { %v9725_v18 = vld [vmem:[#allocation14 + $0xc24] sm:$0xf0]  ;;  %5613 = vmatmul.bf16.vlgmr.msra.gmra.mxu1 %v11548_v49  ;;  %v9425_v40 = vld [vmem:[#allocation14 + $0x2cc] sm:$0xf]  ;;  %v7110_v0 = vor.u32 %v9361_v14, %v7107_v1 }
 0x813   :  { %v8801_v2 = vld [vmem:[#allocation14 + $0xe08] sm:$0xf]  ;;  %5657 = vmatpush.bf16.msrb.mxu1 %v7494_v17  ;;  %5637 = vmatpush.bf16.msra.mxu3 %v8834_v31  ;;  %v8546_v28 = vor.u32 %v9725_v18, %v8545_v58  ;;  %v7363_v13 = vld [vmem:[#allocation14 + $0x2e8] sm:$0xf0]  ;;  %v5356_v31 = vpop.f32.mrf.mxu1 }
 0x814   :  { %v9789_v43 = vld [vmem:[#allocation14 + $0xe24] sm:$0xf0]  ;;  %v7651_v62 = vld [vmem:[#allocation14 + $0x528] sm:$0xf0]  ;;  %v7366_v15 = vor.u32 %v9425_v40, %v7363_v13 }
 0x815   :  { %v8802_v61 = vor.u32 %v9789_v43, %v8801_v2  ;;  %5645 = vmatpush.bf16.msrb.mxu0 %v7206_v42  ;;  %5625 = vmatpush.bf16.msra.mxu2 %v8546_v28  ;;  %v9561_v17 = vld [vmem:[#allocation14 + $0x70c] sm:$0xf]  ;;  %v7654_v2 = vor.u32 %v9497_v25, %v7651_v62  ;;  %v5369_v62 = vpop.f32.mrf.mxu2 }
 0x816   :  { %v9353_v58 = vld [vmem:[#allocation14 + $0x8c] sm:$0xf]  ;;  %v7910_v43 = vor.u32 %v9561_v17, %v7907_v46 }
 0x817   :  { %5658 = vmatpush.bf16.msrb.mxu1 %v7462_v56  ;;  %5638 = vmatpush.bf16.msra.mxu3 %v8802_v61  ;;  %v7075_v18 = vld [vmem:[#allocation14 + $0xa8] sm:$0xf0]  ;;  %v7334_v61 = vor.u32 %v9417_v33, %v7331_v50 }
 0x818   :  { %5626 = vmatmul.bf16.vlgmr.msra.gmra.mxu2 %v11554_v16  ;;  %v9553_v42 = vld [vmem:[#allocation14 + $0x6cc] sm:$0xf]  ;;  %v7078_v28 = vor.u32 %v9353_v58, %v7075_v18 }
 0x819   :  { %5670 = vmatpush.bf16.msrb.mxu2 %v7750_v36  ;;  %5646 = vmatpush.bf16.msrb.mxu0 %v7174_v54  ;;  %v7875_v56 = vld [vmem:[#allocation14 + $0x6e8] sm:$0xf0]  ;;  %v5380_v36 = vpop.f32.mrf.mxu3 }
 0x81a   :  { %5639 = vmatmul.bf16.vlgmr.msra.gmra.mxu3 %v11556_v24  ;;  %v9345_v26 = vld [vmem:[#allocation14 + $0x4c] sm:$0xf]  ;;  %v7878_v55 = vor.u32 %v9553_v42, %v7875_v56  ;;  %v5381_v48 = vadd.f32 %v5380_v36, %v5368_v30 }
 0x81b   :  { %5683 = vmatpush.bf16.msrb.mxu3 %v8006_v19  ;;  %5659 = vmatpush.bf16.msrb.mxu1 %v7430_v20  ;;  %v7043_v60 = vld [vmem:[#allocation14 + $0x68] sm:$0xf0]  ;;  %v7622_v19 = vor.u32 %v9489_v34, %v7619_v4  ;;  %v5406_v11 = vpop.f32.mrf.mxu1 }
 0x81c   :  { %v9409_v41 = vld [vmem:[#allocation14 + $0x24c] sm:$0xf]  ;;  %v7046_v5 = vor.u32 %v9345_v26, %v7043_v60 }
 0x81d   :  { %5671 = vmatpush.bf16.msrb.mxu2 %v7718_v12  ;;  %5647 = vmatpush.bf16.msrb.mxu0 %v7142_v52  ;;  %v7299_v22 = vld [vmem:[#allocation14 + $0x268] sm:$0xf0] }
 0x81e   :  { %v9481_v57 = vld [vmem:[#allocation14 + $0x48c] sm:$0xf]  ;;  %v7302_v29 = vor.u32 %v9409_v41, %v7299_v22 }
 0x81f   :  { %5684 = vmatpush.bf16.msrb.mxu3 %v7974_v53  ;;  %5660 = vmatpush.bf16.msrb.mxu1 %v7398_v23  ;;  %v7587_v45 = vld [vmem:[#allocation14 + $0x4a8] sm:$0xf0]  ;;  %v5393_v53 = vpop.f32.mrf.mxu0 }
 0x820   :  { %v9545_v54 = vld [vmem:[#allocation14 + $0x68c] sm:$0xf]  ;;  %v7590_v59 = vor.u32 %v9481_v57, %v7587_v45  ;;  %v5394_v8 = vadd.f32 %v5393_v53, %v5381_v48 }
 0x821   :  { %5672 = vmatpush.bf16.msrb.mxu2 %v7686_v9  ;;  %5648 = vmatpush.bf16.msrb.mxu0 %v7110_v0  ;;  %v7843_v20 = vld [vmem:[#allocation14 + $0x6a8] sm:$0xf0]  ;;  %v5382_v17 = vpop.f32.mrf.mxu3 }
 0x822   :  { %v9337_v39 = vld [vmem:[#allocation14 + $0xc] sm:$0xf]  ;;  %v7846_v63 = vor.u32 %v9545_v54, %v7843_v20  ;;  %v5407_v40 = vadd.f32 %v5406_v11, %v5394_v8  ;;  %v2757_v11 = vperm.slane %v11572_v32, 1 }
 0x823   :  { %5685 = vmatpush.bf16.msrb.mxu3 %v7942_v10  ;;  %5661 = vmatpush.bf16.msrb.mxu1 %v7366_v15  ;;  %v7011_v38 = vld [vmem:[#allocation14 + $0x28] sm:$0xf0]  ;;  %v5408_v26 = vpop.f32.mrf.mxu1 }
 0x824   :  { %v9401_v12 = vld [vmem:[#allocation14 + $0x20c] sm:$0xf]  ;;  %v7014_v13 = vor.u32 %v9337_v39, %v7011_v38 }
 0x825   :  { %5673 = vmatpush.bf16.msrb.mxu2 %v7654_v2  ;;  %5649 = vmatpush.bf16.msrb.mxu0 %v7078_v28  ;;  %v7267_v6 = vld [vmem:[#allocation14 + $0x228] sm:$0xf0] }
 0x826   :  { %v9649_v37 = vld [vmem:[#allocation14 + $0x9cc] sm:$0xf]  ;;  %v7270_v25 = vor.u32 %v9401_v12, %v7267_v6 }
 0x827   :  { %5686 = vmatpush.bf16.msrb.mxu3 %v7910_v43  ;;  %5662 = vmatpush.bf16.msrb.mxu1 %v7334_v61  ;;  %v8259_v27 = vld [vmem:[#allocation14 + $0x9e8] sm:$0xf0]  ;;  %v5395_v61 = vpop.f32.mrf.mxu0 }
 0x828   :  { %v9713_v52 = vld [vmem:[#allocation14 + $0xbcc] sm:$0xf]  ;;  %v8262_v46 = vor.u32 %v9649_v37, %v8259_v27 }
 0x829   :  { %5674 = vmatpush.bf16.msrb.mxu2 %v7622_v19  ;;  %v8515_v23 = vld [vmem:[#allocation14 + $0xbe8] sm:$0xf0]  ;;  %5650 = vmatpush.bf16.msrb.mxu0 %v7046_v5  ;;  %v5432_v39 = vpop.f32.mrf.mxu3 }
 0x82a   :  { %v9473_v14 = vld [vmem:[#allocation14 + $0x44c] sm:$0xf]  ;;  %v8518_v0 = vor.u32 %v9713_v52, %v8515_v23 }
 0x82b   :  { %5687 = vmatpush.bf16.msrb.mxu3 %v7878_v55  ;;  %v7555_v1 = vld [vmem:[#allocation14 + $0x468] sm:$0xf0]  ;;  %5663 = vmatpush.bf16.msrb.mxu1 %v7302_v29  ;;  %v5419_v29 = vpop.f32.mrf.mxu2 }
 0x82c   :  { %v9537_v9 = vld [vmem:[#allocation14 + $0x64c] sm:$0xf]  ;;  %v7558_v58 = vor.u32 %v9473_v14, %v7555_v1  ;;  %v5420_v38 = vadd.f32 %v5419_v29, %v5407_v40  ;;  %v5458_v40 = vpop.f32.mrf.mxu1 }
 0x82d   :  { %v7811_v10 = vld [vmem:[#allocation14 + $0x668] sm:$0xf0]  ;;  %5675 = vmatpush.bf16.msrb.mxu2 %v7590_v59  ;;  %5651 = vmatpush.bf16.msrb.mxu0 %v7014_v13 }
 0x82e   :  { %v9641_v15 = vld [vmem:[#allocation14 + $0x98c] sm:$0xf]  ;;  %v7814_v18 = vor.u32 %v9537_v9, %v7811_v10  ;;  %v11582_v23 = vadd.f32 %v5432_v39, %v5420_v38 }
 0x82f   :  { %5688 = vmatpush.bf16.msrb.mxu3 %v7846_v63  ;;  %v8227_v7 = vld [vmem:[#allocation14 + $0x9a8] sm:$0xf0]  ;;  %5664 = vmatpush.bf16.msrb.mxu1 %v7270_v25  ;;  %v5445_v10 = vpop.f32.mrf.mxu0 }
 0x830   :  { %v9705_v31 = vld [vmem:[#allocation14 + $0xb8c] sm:$0xf]  ;;  %v8230_v60 = vor.u32 %v9641_v15, %v8227_v7  ;;  %5652 = vmatmul.bf16.vlgmr.msrb.gmra.mxu0 %v11526_v21  ;;  %v5446_v13 = vadd.f32 %v5445_v10, %v2757_v11 }
 0x831   :  { %v8483_v2 = vld [vmem:[#allocation14 + $0xba8] sm:$0xf0]  ;;  %5696 = vmatpush.bf16.msra.mxu0 %v8262_v46  ;;  %5676 = vmatpush.bf16.msrb.mxu2 %v7558_v58 }
 0x832   :  { %v9465_v43 = vld [vmem:[#allocation14 + $0x40c] sm:$0xf]  ;;  %v8486_v3 = vor.u32 %v9705_v31, %v8483_v2  ;;  %5665 = vmatmul.bf16.vlgmr.msrb.gmra.mxu1 %v11528_v47 }
 0x833   :  { %v7523_v33 = vld [vmem:[#allocation14 + $0x428] sm:$0xf0]  ;;  %5709 = vmatpush.bf16.msra.mxu1 %v8518_v0  ;;  %5689 = vmatpush.bf16.msrb.mxu3 %v7814_v18  ;;  %v5459_v18 = vadd.f32 %v5458_v40, %v5446_v13  ;;  %v7241_v40 = vld [vmem:[#allocation14 + $0x1d0] sm:$0xf] }
 0x834   :  { %v9529_v50 = vld [vmem:[#allocation14 + $0x60c] sm:$0xf]  ;;  %v7526_v36 = vor.u32 %v9465_v43, %v7523_v33  ;;  %v9398_v13 = vld [vmem:[#allocation14 + $0x1ec] sm:$0xf0] }
 0x835   :  { %v7779_v34 = vld [vmem:[#allocation14 + $0x628] sm:$0xf0]  ;;  %5697 = vmatpush.bf16.msra.mxu0 %v8230_v60 }
 0x836   :  { %v9777_v4 = vld [vmem:[#allocation14 + $0xdcc] sm:$0xf]  ;;  %v7782_v19 = vor.u32 %v9529_v50, %v7779_v34  ;;  %5677 = vmatpush.bf16.msrb.mxu2 %v7526_v36  ;;  %v5421_v50 = vpop.f32.mrf.mxu2  ;;  %v5434_v34 = vpop.f32.mrf.mxu3 }
 0x837   :  { %v8771_v42 = vld [vmem:[#allocation14 + $0xde8] sm:$0xf0]  ;;  %5710 = vmatpush.bf16.msra.mxu1 %v8486_v3  ;;  %v7465_v50 = vld [vmem:[#allocation14 + $0x390] sm:$0xf] }
 0x838   :  { %v9841_v56 = vld [vmem:[#allocation14 + $0xfcc] sm:$0xf]  ;;  %v8774_v22 = vor.u32 %v9777_v4, %v8771_v42  ;;  %5690 = vmatpush.bf16.msrb.mxu3 %v7782_v19 }
 0x839   :  { %v9027_v28 = vld [vmem:[#allocation14 + $0xfe8] sm:$0xf0]  ;;  %5678 = vmatmul.bf16.vlgmr.msrb.gmra.mxu2 %v11535_v35 }
 0x83a   :  { %v9633_v55 = vld [vmem:[#allocation14 + $0x94c] sm:$0xf]  ;;  %v9030_v57 = vor.u32 %v9841_v56, %v9027_v28  ;;  %5722 = vmatpush.bf16.msra.mxu2 %v8774_v22  ;;  %v5447_v22 = vpop.f32.mrf.mxu0 }
 0x83b   :  { %v8195_v41 = vld [vmem:[#allocation14 + $0x968] sm:$0xf0]  ;;  %5691 = vmatmul.bf16.vlgmr.msrb.gmra.mxu3 %v11537_v51 }
 0x83c   :  { %v9697_v30 = vld [vmem:[#allocation14 + $0xb4c] sm:$0xf]  ;;  %v8198_v12 = vor.u32 %v9633_v55, %v8195_v41  ;;  %5735 = vmatpush.bf16.msra.mxu3 %v9030_v57  ;;  %v5460_v57 = vpop.f32.mrf.mxu1 }
 0x83d   :  { %v8451_v45 = vld [vmem:[#allocation14 + $0xb68] sm:$0xf0] }
 0x83e   :  { %v9769_v54 = vld [vmem:[#allocation14 + $0xd8c] sm:$0xf]  ;;  %v8454_v53 = vor.u32 %v9697_v30, %v8451_v45  ;;  %5698 = vmatpush.bf16.msra.mxu0 %v8198_v12 }
 0x83f   :  { %v8739_v20 = vld [vmem:[#allocation14 + $0xda8] sm:$0xf0] }
 0x840   :  { %v9833_v48 = vld [vmem:[#allocation14 + $0xf8c] sm:$0xf]  ;;  %v8742_v6 = vor.u32 %v9769_v54, %v8739_v20  ;;  %5711 = vmatpush.bf16.msra.mxu1 %v8454_v53 }
 0x841   :  { %v8995_v5 = vld [vmem:[#allocation14 + $0xfa8] sm:$0xf0] }
 0x842   :  { %v9625_v59 = vld [vmem:[#allocation14 + $0x90c] sm:$0xf]  ;;  %v8998_v37 = vor.u32 %v9833_v48, %v8995_v5  ;;  %5723 = vmatpush.bf16.msra.mxu2 %v8742_v6 }
 0x843   :  { %v8163_v63 = vld [vmem:[#allocation14 + $0x928] sm:$0xf0] }
 0x844   :  { %v9689_v27 = vld [vmem:[#allocation14 + $0xb0c] sm:$0xf]  ;;  %v8166_v25 = vor.u32 %v9625_v59, %v8163_v63  ;;  %5736 = vmatpush.bf16.msra.mxu3 %v8998_v37  ;;  %v5471_v59 = vpop.f32.mrf.mxu2  ;;  %v5484_v63 = vpop.f32.mrf.mxu3 }
 0x845   :  { %v8419_v8 = vld [vmem:[#allocation14 + $0xb28] sm:$0xf0] }
 0x846   :  { %v9761_v52 = vld [vmem:[#allocation14 + $0xd4c] sm:$0xf]  ;;  %v8422_v62 = vor.u32 %v9689_v27, %v8419_v8  ;;  %5699 = vmatpush.bf16.msra.mxu0 %v8166_v25  ;;  %v7497_v25 = vld [vmem:[#allocation14 + $0x3d0] sm:$0xf] }
 0x847   :  { %v8707_v14 = vld [vmem:[#allocation14 + $0xd68] sm:$0xf0] }
 0x848   :  { %v9825_v1 = vld [vmem:[#allocation14 + $0xf4c] sm:$0xf]  ;;  %v8710_v0 = vor.u32 %v9761_v52, %v8707_v14  ;;  %5712 = vmatpush.bf16.msra.mxu1 %v8422_v62  ;;  %v5472_v14 = vadd.f32 %v5471_v59, %v5459_v18  ;;  %v9462_v62 = vld [vmem:[#allocation14 + $0x3ec] sm:$0xf0]  ;;  %v7242_v18 = vor.u32 %v9398_v13, %v7241_v40 }
 0x849   :  { %v8963_v9 = vld [vmem:[#allocation14 + $0xf68] sm:$0xf0]  ;;  %v9510_v40 = vld [vmem:[#allocation14 + $0x56c] sm:$0xf0] }
 0x84a   :  { %v9617_v17 = vld [vmem:[#allocation14 + $0x8cc] sm:$0xf]  ;;  %v8966_v15 = vor.u32 %v9825_v1, %v8963_v9  ;;  %5724 = vmatpush.bf16.msra.mxu2 %v8710_v0  ;;  %v7945_v13 = vld [vmem:[#allocation14 + $0x750] sm:$0xf] }
 0x84b   :  { %v8131_v46 = vld [vmem:[#allocation14 + $0x8e8] sm:$0xf0] }
 0x84c   :  { %v9681_v7 = vld [vmem:[#allocation14 + $0xacc] sm:$0xf]  ;;  %v8134_v4 = vor.u32 %v9617_v17, %v8131_v46  ;;  %5737 = vmatpush.bf16.msra.mxu3 %v8966_v15  ;;  %v11586_v46 = vadd.f32 %v5484_v63, %v5472_v14  ;;  %v9438_v14 = vld [vmem:[#allocation14 + $0x32c] sm:$0xf0] }
 0x84d   :  { %v8387_v31 = vld [vmem:[#allocation14 + $0xae8] sm:$0xf0] }
 0x84e   :  { %v9753_v58 = vld [vmem:[#allocation14 + $0xd0c] sm:$0xf]  ;;  %v8390_v42 = vor.u32 %v9681_v7, %v8387_v31  ;;  %5700 = vmatpush.bf16.msra.mxu0 %v8134_v4 }
 0x84f   :  { %v8675_v2 = vld [vmem:[#allocation14 + $0xd28] sm:$0xf0] }
 0x850   :  { %v9817_v43 = vld [vmem:[#allocation14 + $0xf0c] sm:$0xf]  ;;  %v8678_v61 = vor.u32 %v9753_v58, %v8675_v2  ;;  %5713 = vmatpush.bf16.msra.mxu1 %v8390_v42  ;;  %v7498_v2 = vor.u32 %v9462_v62, %v7497_v25  ;;  %v9454_v42 = vld [vmem:[#allocation14 + $0x3ac] sm:$0xf0] }
 0x851   :  { %v8931_v33 = vld [vmem:[#allocation14 + $0xf28] sm:$0xf0]  ;;  %v7466_v57 = vor.u32 %v9454_v42, %v7465_v50  ;;  %v9574_v25 = vld [vmem:[#allocation14 + $0x76c] sm:$0xf0] }
 0x852   :  { %v9609_v56 = vld [vmem:[#allocation14 + $0x88c] sm:$0xf]  ;;  %v8934_v26 = vor.u32 %v9817_v43, %v8931_v33  ;;  %5725 = vmatpush.bf16.msra.mxu2 %v8678_v61  ;;  %v7209_v43 = vld [vmem:[#allocation14 + $0x190] sm:$0xf] }
 0x853   :  { %v8099_v28 = vld [vmem:[#allocation14 + $0x8a8] sm:$0xf0]  ;;  %v9390_v33 = vld [vmem:[#allocation14 + $0x1ac] sm:$0xf0] }
 0x854   :  { %v9673_v60 = vld [vmem:[#allocation14 + $0xa8c] sm:$0xf]  ;;  %v8102_v30 = vor.u32 %v9609_v56, %v8099_v28  ;;  %5738 = vmatpush.bf16.msra.mxu3 %v8934_v26  ;;  %v7210_v22 = vor.u32 %v9390_v33, %v7209_v43  ;;  %v9430_v43 = vld [vmem:[#allocation14 + $0x2ec] sm:$0xf0] }
 0x855   :  { %v8355_v3 = vld [vmem:[#allocation14 + $0xaa8] sm:$0xf0]  ;;  %v7657_v33 = vld [vmem:[#allocation14 + $0x510] sm:$0xf] }
 0x856   :  { %v9745_v36 = vld [vmem:[#allocation14 + $0xccc] sm:$0xf]  ;;  %v8358_v45 = vor.u32 %v9673_v60, %v8355_v3  ;;  %5701 = vmatpush.bf16.msra.mxu0 %v8102_v30  ;;  %v7753_v60 = vld [vmem:[#allocation14 + $0x5d0] sm:$0xf]  ;;  %v5473_v3 = vpop.f32.mrf.mxu2 }
 0x857   :  { %v8643_v19 = vld [vmem:[#allocation14 + $0xce8] sm:$0xf0]  ;;  %v9502_v50 = vld [vmem:[#allocation14 + $0x52c] sm:$0xf0] }
 0x858   :  { %v9809_v55 = vld [vmem:[#allocation14 + $0xecc] sm:$0xf]  ;;  %v8646_v48 = vor.u32 %v9745_v36, %v8643_v19  ;;  %5714 = vmatpush.bf16.msra.mxu1 %v8358_v45  ;;  %v5486_v36 = vpop.f32.mrf.mxu3  ;;  %v9526_v19 = vld [vmem:[#allocation14 + $0x5ec] sm:$0xf0] }
 0x859   :  { %v8899_v41 = vld [vmem:[#allocation14 + $0xee8] sm:$0xf0]  ;;  %v9422_v3 = vld [vmem:[#allocation14 + $0x2ac] sm:$0xf0] }
 0x85a   :  { %v9601_v54 = vld [vmem:[#allocation14 + $0x84c] sm:$0xf]  ;;  %v8902_v5 = vor.u32 %v9809_v55, %v8899_v41  ;;  %5726 = vmatpush.bf16.msra.mxu2 %v8646_v48  ;;  %v8009_v55 = vld [vmem:[#allocation14 + $0x7d0] sm:$0xf]  ;;  %v7754_v48 = vor.u32 %v9526_v19, %v7753_v60 }
 0x85b   :  { %v8067_v20 = vld [vmem:[#allocation14 + $0x868] sm:$0xf0]  ;;  %v9590_v41 = vld [vmem:[#allocation14 + $0x7ec] sm:$0xf0] }
 0x85c   :  { %v9665_v29 = vld [vmem:[#allocation14 + $0xa4c] sm:$0xf]  ;;  %v8070_v6 = vor.u32 %v9601_v54, %v8067_v20  ;;  %5739 = vmatpush.bf16.msra.mxu3 %v8902_v5  ;;  %v7177_v54 = vld [vmem:[#allocation14 + $0x150] sm:$0xf]  ;;  %v8010_v5 = vor.u32 %v9590_v41, %v8009_v55 }
 0x85d   :  { %v8323_v39 = vld [vmem:[#allocation14 + $0xa68] sm:$0xf0]  ;;  %v9382_v20 = vld [vmem:[#allocation14 + $0x16c] sm:$0xf0] }
 0x85e   :  { %v9737_v38 = vld [vmem:[#allocation14 + $0xc8c] sm:$0xf]  ;;  %v8326_v37 = vor.u32 %v9665_v29, %v8323_v39  ;;  %5702 = vmatpush.bf16.msra.mxu0 %v8070_v6  ;;  %v7433_v29 = vld [vmem:[#allocation14 + $0x350] sm:$0xf]  ;;  %v7178_v59 = vor.u32 %v9382_v20, %v7177_v54 }
 0x85f   :  { %v8611_v12 = vld [vmem:[#allocation14 + $0xca8] sm:$0xf0]  ;;  %v9446_v39 = vld [vmem:[#allocation14 + $0x36c] sm:$0xf0] }
 0x860   :  { %v9801_v53 = vld [vmem:[#allocation14 + $0xe8c] sm:$0xf]  ;;  %v8614_v1 = vor.u32 %v9737_v38, %v8611_v12  ;;  %5715 = vmatpush.bf16.msra.mxu1 %v8326_v37  ;;  %v7721_v38 = vld [vmem:[#allocation14 + $0x590] sm:$0xf]  ;;  %v7434_v63 = vor.u32 %v9446_v39, %v7433_v29 }
 0x861   :  { %v8867_v11 = vld [vmem:[#allocation14 + $0xea8] sm:$0xf0]  ;;  %v9518_v12 = vld [vmem:[#allocation14 + $0x5ac] sm:$0xf0] }
 0x862   :  { %v9593_v27 = vld [vmem:[#allocation14 + $0x80c] sm:$0xf]  ;;  %v8870_v9 = vor.u32 %v9801_v53, %v8867_v11  ;;  %5727 = vmatpush.bf16.msra.mxu2 %v8614_v1  ;;  %v7977_v53 = vld [vmem:[#allocation14 + $0x790] sm:$0xf] }
 0x863   :  { %v8035_v8 = vld [vmem:[#allocation14 + $0x828] sm:$0xf0]  ;;  %v9582_v11 = vld [vmem:[#allocation14 + $0x7ac] sm:$0xf0] }
 0x864   :  { %v9657_v52 = vld [vmem:[#allocation14 + $0xa0c] sm:$0xf]  ;;  %v8038_v31 = vor.u32 %v9593_v27, %v8035_v8  ;;  %5740 = vmatpush.bf16.msra.mxu3 %v8870_v9  ;;  %v7145_v6 = vld [vmem:[#allocation14 + $0x110] sm:$0xf]  ;;  %v7722_v27 = vor.u32 %v9518_v12, %v7721_v38  ;;  %v7978_v8 = vor.u32 %v9582_v11, %v7977_v53  ;;  %v5497_v9 = vpop.f32.mrf.mxu0  ;;  %v5523_v12 = vpop.f32.mrf.mxu2 }
 0x865   :  { %v8291_v10 = vld [vmem:[#allocation14 + $0xa28] sm:$0xf0]  ;;  %v9374_v37 = vld [vmem:[#allocation14 + $0x12c] sm:$0xf0]  ;;  %v5498_v62 = vadd.f32 %v5497_v9, %v11586_v46  ;;  %v5536_v53 = vpop.f32.mrf.mxu3 }
 0x866   :  { %v9729_v17 = vld [vmem:[#allocation14 + $0xc4c] sm:$0xf]  ;;  %v8294_v58 = vor.u32 %v9657_v52, %v8291_v10  ;;  %5703 = vmatpush.bf16.msra.mxu0 %v8038_v31  ;;  %v7401_v52 = vld [vmem:[#allocation14 + $0x310] sm:$0xf]  ;;  %v5510_v10 = vpop.f32.mrf.mxu1 }
 0x867   :  { %v8579_v0 = vld [vmem:[#allocation14 + $0xc68] sm:$0xf0]  ;;  %v7689_v1 = vld [vmem:[#allocation14 + $0x550] sm:$0xf]  ;;  %v5511_v31 = vadd.f32 %v5510_v10, %v5498_v62 }
 0x868   :  { %v9793_v15 = vld [vmem:[#allocation14 + $0xe4c] sm:$0xf]  ;;  %v8582_v34 = vor.u32 %v9729_v17, %v8579_v0  ;;  %5716 = vmatpush.bf16.msra.mxu1 %v8294_v58  ;;  %v7146_v17 = vor.u32 %v9374_v37, %v7145_v6  ;;  %v7402_v0 = vor.u32 %v9438_v14, %v7401_v52  ;;  %v7690_v58 = vor.u32 %v9510_v40, %v7689_v1  ;;  %v7337_v60 = vld [vmem:[#allocation14 + $0x290] sm:$0xf] }
 0x869   :  { %v8835_v7 = vld [vmem:[#allocation14 + $0xe68] sm:$0xf0]  ;;  %5704 = vmatmul.bf16.vlgmr.msra.gmra.mxu0 %v11546_v44  ;;  %v7625_v36 = vld [vmem:[#allocation14 + $0x4d0] sm:$0xf]  ;;  %v5524_v6 = vadd.f32 %v5523_v12, %v5511_v31 }
 0x86a   :  { %v8838_v4 = vor.u32 %v9793_v15, %v8835_v7  ;;  %v9721_v56 = vld [vmem:[#allocation14 + $0xc0c] sm:$0xf]  ;;  %5748 = vmatpush.bf16.msrb.mxu0 %v7242_v18  ;;  %5728 = vmatpush.bf16.msra.mxu2 %v8582_v34  ;;  %v7113_v15 = vld [vmem:[#allocation14 + $0xd0] sm:$0xf]  ;;  %v7946_v18 = vor.u32 %v9574_v25, %v7945_v13 }
 0x86b   :  { %v8547_v28 = vld [vmem:[#allocation14 + $0xc28] sm:$0xf0]  ;;  %5717 = vmatmul.bf16.vlgmr.msra.gmra.mxu1 %v11548_v49  ;;  %v9366_v7 = vld [vmem:[#allocation14 + $0xec] sm:$0xf0]  ;;  %v11593_v1 = vadd.f32 %v5536_v53, %v5524_v6 }
 0x86c   :  { %v9785_v61 = vld [vmem:[#allocation14 + $0xe0c] sm:$0xf]  ;;  %5761 = vmatpush.bf16.msrb.mxu1 %v7498_v2  ;;  %5741 = vmatpush.bf16.msra.mxu3 %v8838_v4  ;;  %v8550_v30 = vor.u32 %v9721_v56, %v8547_v28  ;;  %v7369_v2 = vld [vmem:[#allocation14 + $0x2d0] sm:$0xf]  ;;  %v7114_v46 = vor.u32 %v9366_v7, %v7113_v15  ;;  %v5499_v19 = vpop.f32.mrf.mxu0 }
 0x86d   :  { %v8803_v26 = vld [vmem:[#allocation14 + $0xe28] sm:$0xf0]  ;;  %v7913_v34 = vld [vmem:[#allocation14 + $0x710] sm:$0xf]  ;;  %v7370_v42 = vor.u32 %v9430_v43, %v7369_v2 }
 0x86e   :  { %v8806_v45 = vor.u32 %v9785_v61, %v8803_v26  ;;  %5749 = vmatpush.bf16.msrb.mxu0 %v7210_v22  ;;  %5729 = vmatpush.bf16.msra.mxu2 %v8550_v30  ;;  %v9566_v4 = vld [vmem:[#allocation14 + $0x72c] sm:$0xf0]  ;;  %v7658_v61 = vor.u32 %v9502_v50, %v7657_v33  ;;  %v5512_v55 = vpop.f32.mrf.mxu1 }
 0x86f   :  { %v7081_v56 = vld [vmem:[#allocation14 + $0x90] sm:$0xf]  ;;  %v7914_v26 = vor.u32 %v9566_v4, %v7913_v34 }
 0x870   :  { %5762 = vmatpush.bf16.msrb.mxu1 %v7466_v57  ;;  %5742 = vmatpush.bf16.msra.mxu3 %v8806_v45  ;;  %v9358_v28 = vld [vmem:[#allocation14 + $0xac] sm:$0xf0]  ;;  %v7338_v45 = vor.u32 %v9422_v3, %v7337_v60 }
 0x871   :  { %5730 = vmatmul.bf16.vlgmr.msra.gmra.mxu2 %v11554_v16  ;;  %v9494_v41 = vld [vmem:[#allocation14 + $0x4ec] sm:$0xf0]  ;;  %v7082_v30 = vor.u32 %v9358_v28, %v7081_v56  ;;  %v5538_v56 = vpop.f32.mrf.mxu3 }
 0x872   :  { %5774 = vmatpush.bf16.msrb.mxu2 %v7754_v48  ;;  %5750 = vmatpush.bf16.msrb.mxu0 %v7178_v59  ;;  %v7881_v22 = vld [vmem:[#allocation14 + $0x6d0] sm:$0xf]  ;;  %v7626_v48 = vor.u32 %v9494_v41, %v7625_v36 }
 0x873   :  { %5743 = vmatmul.bf16.vlgmr.msra.gmra.mxu3 %v11556_v24  ;;  %v9558_v57 = vld [vmem:[#allocation14 + $0x6ec] sm:$0xf0] }
 0x874   :  { %5787 = vmatpush.bf16.msrb.mxu3 %v8010_v5  ;;  %5763 = vmatpush.bf16.msrb.mxu1 %v7434_v63  ;;  %v7049_v54 = vld [vmem:[#allocation14 + $0x50] sm:$0xf]  ;;  %v7882_v5 = vor.u32 %v9558_v57, %v7881_v22 }
 0x875   :  { %v9350_v20 = vld [vmem:[#allocation14 + $0x6c] sm:$0xf0] }
 0x876   :  { %5775 = vmatpush.bf16.msrb.mxu2 %v7722_v27  ;;  %5751 = vmatpush.bf16.msrb.mxu0 %v7146_v17  ;;  %v7305_v29 = vld [vmem:[#allocation14 + $0x250] sm:$0xf]  ;;  %v7050_v37 = vor.u32 %v9350_v20, %v7049_v54 }
 0x877   :  { %v9414_v39 = vld [vmem:[#allocation14 + $0x26c] sm:$0xf0] }
 0x878   :  { %5788 = vmatpush.bf16.msrb.mxu3 %v7978_v8  ;;  %5764 = vmatpush.bf16.msrb.mxu1 %v7402_v0  ;;  %v7593_v38 = vld [vmem:[#allocation14 + $0x490] sm:$0xf]  ;;  %v7306_v27 = vor.u32 %v9414_v39, %v7305_v29 }
 0x879   :  { %v9486_v11 = vld [vmem:[#allocation14 + $0x4ac] sm:$0xf0] }
 0x87a   :  { %5776 = vmatpush.bf16.msrb.mxu2 %v7690_v58  ;;  %5752 = vmatpush.bf16.msrb.mxu0 %v7114_v46  ;;  %v7849_v59 = vld [vmem:[#allocation14 + $0x690] sm:$0xf]  ;;  %v7594_v9 = vor.u32 %v9486_v11, %v7593_v38 }
 0x87b   :  { %v9550_v63 = vld [vmem:[#allocation14 + $0x6ac] sm:$0xf0] }
 0x87c   :  { %5789 = vmatpush.bf16.msrb.mxu3 %v7946_v18  ;;  %5765 = vmatpush.bf16.msrb.mxu1 %v7370_v42  ;;  %v7017_v8 = vld [vmem:[#allocation14 + $0x10] sm:$0xf]  ;;  %v7850_v10 = vor.u32 %v9550_v63, %v7849_v59  ;;  %v5525_v42 = vpop.f32.mrf.mxu2  ;;  %v2758_v59 = vperm.slane %v11572_v32, 2 }
 0x87d   :  { %v9342_v52 = vld [vmem:[#allocation14 + $0x2c] sm:$0xf0] }
 0x87e   :  { %5777 = vmatpush.bf16.msrb.mxu2 %v7658_v61  ;;  %5753 = vmatpush.bf16.msrb.mxu0 %v7082_v30  ;;  %v7273_v14 = vld [vmem:[#allocation14 + $0x210] sm:$0xf]  ;;  %v7018_v58 = vor.u32 %v9342_v52, %v7017_v8 }
 0x87f   :  { %v9406_v40 = vld [vmem:[#allocation14 + $0x22c] sm:$0xf0] }
 0x880   :  { %5790 = vmatpush.bf16.msrb.mxu3 %v7914_v26  ;;  %5766 = vmatpush.bf16.msrb.mxu1 %v7338_v45  ;;  %v8265_v13 = vld [vmem:[#allocation14 + $0x9d0] sm:$0xf]  ;;  %v7274_v18 = vor.u32 %v9406_v40, %v7273_v14  ;;  %v5549_v40 = vpop.f32.mrf.mxu0 }
 0x881   :  { %v9654_v25 = vld [vmem:[#allocation14 + $0x9ec] sm:$0xf0]  ;;  %v5550_v32 = vadd.f32 %v5549_v40, %v2758_v59 }
 0x882   :  { %5778 = vmatpush.bf16.msrb.mxu2 %v7626_v48  ;;  %v8521_v62 = vld [vmem:[#allocation14 + $0xbd0] sm:$0xf]  ;;  %5754 = vmatpush.bf16.msrb.mxu0 %v7050_v37  ;;  %v8266_v2 = vor.u32 %v9654_v25, %v8265_v13  ;;  %v5562_v13 = vpop.f32.mrf.mxu1 }
 0x883   :  { %v9718_v17 = vld [vmem:[#allocation14 + $0xbec] sm:$0xf0] }
 0x884   :  { %5791 = vmatpush.bf16.msrb.mxu3 %v7882_v5  ;;  %v7561_v0 = vld [vmem:[#allocation14 + $0x450] sm:$0xf]  ;;  %5767 = vmatpush.bf16.msrb.mxu1 %v7306_v27  ;;  %v8522_v43 = vor.u32 %v9718_v17, %v8521_v62 }
 0x885   :  { %v9478_v15 = vld [vmem:[#allocation14 + $0x46c] sm:$0xf0] }
 0x886   :  { %v7817_v7 = vld [vmem:[#allocation14 + $0x650] sm:$0xf]  ;;  %5779 = vmatpush.bf16.msrb.mxu2 %v7594_v9  ;;  %v7562_v4 = vor.u32 %v9478_v15, %v7561_v0  ;;  %5755 = vmatpush.bf16.msrb.mxu0 %v7018_v58  ;;  %v5563_v58 = vadd.f32 %v5562_v13, %v5550_v32  ;;  %v9458_v32 = vld [vmem:[#allocation14 + $0x3d4] sm:$0xf] }
 0x887   :  { %v9542_v31 = vld [vmem:[#allocation14 + $0x66c] sm:$0xf0] }
 0x888   :  { %5792 = vmatpush.bf16.msrb.mxu3 %v7850_v10  ;;  %v8233_v33 = vld [vmem:[#allocation14 + $0x990] sm:$0xf]  ;;  %v7818_v46 = vor.u32 %v9542_v31, %v7817_v7  ;;  %5768 = vmatpush.bf16.msrb.mxu1 %v7274_v18 }
 0x889   :  { %v9646_v50 = vld [vmem:[#allocation14 + $0x9ac] sm:$0xf0]  ;;  %5756 = vmatmul.bf16.vlgmr.msrb.gmra.mxu0 %v11526_v21 }
 0x88a   :  { %v8489_v34 = vld [vmem:[#allocation14 + $0xb90] sm:$0xf]  ;;  %5800 = vmatpush.bf16.msra.mxu0 %v8266_v2  ;;  %v8234_v22 = vor.u32 %v9646_v50, %v8233_v33  ;;  %5780 = vmatpush.bf16.msrb.mxu2 %v7562_v4 }
 0x88b   :  { %v9710_v28 = vld [vmem:[#allocation14 + $0xbac] sm:$0xf0]  ;;  %5769 = vmatmul.bf16.vlgmr.msrb.gmra.mxu1 %v11528_v47 }
 0x88c   :  { %v7529_v61 = vld [vmem:[#allocation14 + $0x410] sm:$0xf]  ;;  %5813 = vmatpush.bf16.msra.mxu1 %v8522_v43  ;;  %v8490_v57 = vor.u32 %v9710_v28, %v8489_v34  ;;  %5793 = vmatpush.bf16.msrb.mxu3 %v7818_v46 }
 0x88d   :  { %v9470_v26 = vld [vmem:[#allocation14 + $0x42c] sm:$0xf0] }
 0x88e   :  { %v7785_v60 = vld [vmem:[#allocation14 + $0x610] sm:$0xf]  ;;  %v7530_v30 = vor.u32 %v9470_v26, %v7529_v61  ;;  %5801 = vmatpush.bf16.msra.mxu0 %v8234_v22 }
 0x88f   :  { %v9534_v3 = vld [vmem:[#allocation14 + $0x62c] sm:$0xf0] }
 0x890   :  { %v8777_v36 = vld [vmem:[#allocation14 + $0xdd0] sm:$0xf]  ;;  %v7786_v45 = vor.u32 %v9534_v3, %v7785_v60  ;;  %5814 = vmatpush.bf16.msra.mxu1 %v8490_v57  ;;  %5781 = vmatpush.bf16.msrb.mxu2 %v7530_v30 }
 0x891   :  { %v9782_v19 = vld [vmem:[#allocation14 + $0xdec] sm:$0xf0] }
 0x892   :  { %v9033_v55 = vld [vmem:[#allocation14 + $0xfd0] sm:$0xf]  ;;  %v8778_v48 = vor.u32 %v9782_v19, %v8777_v36  ;;  %5794 = vmatpush.bf16.msrb.mxu3 %v7786_v45 }
 0x893   :  { %v9846_v41 = vld [vmem:[#allocation14 + $0xfec] sm:$0xf0]  ;;  %5782 = vmatmul.bf16.vlgmr.msrb.gmra.mxu2 %v11535_v35 }
 0x894   :  { %v8201_v54 = vld [vmem:[#allocation14 + $0x950] sm:$0xf]  ;;  %v9034_v5 = vor.u32 %v9846_v41, %v9033_v55  ;;  %5826 = vmatpush.bf16.msra.mxu2 %v8778_v48  ;;  %v5551_v55 = vpop.f32.mrf.mxu0  ;;  %v5564_v41 = vpop.f32.mrf.mxu1 }
 0x895   :  { %v9638_v20 = vld [vmem:[#allocation14 + $0x96c] sm:$0xf0]  ;;  %5795 = vmatmul.bf16.vlgmr.msrb.gmra.mxu3 %v11537_v51  ;;  %v7755_v55 = vld [vmem:[#allocation14 + $0x5f0] sm:$0xf0] }
 0x896   :  { %v8457_v29 = vld [vmem:[#allocation14 + $0xb50] sm:$0xf]  ;;  %v8202_v63 = vor.u32 %v9638_v20, %v8201_v54  ;;  %5839 = vmatpush.bf16.msra.mxu3 %v9034_v5  ;;  %v9586_v41 = vld [vmem:[#allocation14 + $0x7d4] sm:$0xf] }
 0x897   :  { %v9702_v39 = vld [vmem:[#allocation14 + $0xb6c] sm:$0xf0] }
 0x898   :  { %v8745_v38 = vld [vmem:[#allocation14 + $0xd90] sm:$0xf]  ;;  %v8458_v6 = vor.u32 %v9702_v39, %v8457_v29  ;;  %5802 = vmatpush.bf16.msra.mxu0 %v8202_v63 }
 0x899   :  { %v9774_v12 = vld [vmem:[#allocation14 + $0xdac] sm:$0xf0] }
 0x89a   :  { %v9001_v53 = vld [vmem:[#allocation14 + $0xf90] sm:$0xf]  ;;  %v8746_v8 = vor.u32 %v9774_v12, %v8745_v38  ;;  %5815 = vmatpush.bf16.msra.mxu1 %v8458_v6 }
 0x89b   :  { %v9838_v11 = vld [vmem:[#allocation14 + $0xfac] sm:$0xf0] }
 0x89c   :  { %v8169_v37 = vld [vmem:[#allocation14 + $0x910] sm:$0xf]  ;;  %v9002_v52 = vor.u32 %v9838_v11, %v9001_v53  ;;  %5827 = vmatpush.bf16.msra.mxu2 %v8746_v8  ;;  %v5575_v53 = vpop.f32.mrf.mxu2  ;;  %v5588_v11 = vpop.f32.mrf.mxu3 }
 0x89d   :  { %v9630_v27 = vld [vmem:[#allocation14 + $0x92c] sm:$0xf0] }
 0x89e   :  { %v8425_v14 = vld [vmem:[#allocation14 + $0xb10] sm:$0xf]  ;;  %v8170_v0 = vor.u32 %v9630_v27, %v8169_v37  ;;  %5840 = vmatpush.bf16.msra.mxu3 %v9002_v52  ;;  %v5576_v37 = vadd.f32 %v5575_v53, %v5563_v58  ;;  %v7723_v53 = vld [vmem:[#allocation14 + $0x5b0] sm:$0xf0] }
 0x89f   :  { %v9694_v9 = vld [vmem:[#allocation14 + $0xb2c] sm:$0xf0] }
 0x8a0   :  { %v8713_v10 = vld [vmem:[#allocation14 + $0xd50] sm:$0xf]  ;;  %v8426_v15 = vor.u32 %v9694_v9, %v8425_v14  ;;  %5803 = vmatpush.bf16.msra.mxu0 %v8170_v0  ;;  %v7499_v0 = vld [vmem:[#allocation14 + $0x3f0] sm:$0xf0] }
 0x8a1   :  { %v9766_v25 = vld [vmem:[#allocation14 + $0xd6c] sm:$0xf0] }
 0x8a2   :  { %v8969_v62 = vld [vmem:[#allocation14 + $0xf50] sm:$0xf]  ;;  %v8714_v18 = vor.u32 %v9766_v25, %v8713_v10  ;;  %5816 = vmatpush.bf16.msra.mxu1 %v8426_v15  ;;  %v11600_v10 = vadd.f32 %v5588_v11, %v5576_v37  ;;  %v9578_v11 = vld [vmem:[#allocation14 + $0x794] sm:$0xf] }
 0x8a3   :  { %v9830_v17 = vld [vmem:[#allocation14 + $0xf6c] sm:$0xf0]  ;;  %v9370_v37 = vld [vmem:[#allocation14 + $0x114] sm:$0xf] }
 0x8a4   :  { %v8137_v7 = vld [vmem:[#allocation14 + $0x8d0] sm:$0xf]  ;;  %v8970_v2 = vor.u32 %v9830_v17, %v8969_v62  ;;  %5828 = vmatpush.bf16.msra.mxu2 %v8714_v18  ;;  %v9394_v62 = vld [vmem:[#allocation14 + $0x1d4] sm:$0xf] }
 0x8a5   :  { %v9622_v31 = vld [vmem:[#allocation14 + $0x8ec] sm:$0xf0]  ;;  %v7243_v17 = vld [vmem:[#allocation14 + $0x1f0] sm:$0xf0] }
 0x8a6   :  { %v8393_v43 = vld [vmem:[#allocation14 + $0xad0] sm:$0xf]  ;;  %v8138_v42 = vor.u32 %v9622_v31, %v8137_v7  ;;  %5841 = vmatpush.bf16.msra.mxu3 %v8970_v2 }
 0x8a7   :  { %v9686_v33 = vld [vmem:[#allocation14 + $0xaec] sm:$0xf0] }
 0x8a8   :  { %v8681_v50 = vld [vmem:[#allocation14 + $0xd10] sm:$0xf]  ;;  %v8394_v56 = vor.u32 %v9686_v33, %v8393_v43  ;;  %5804 = vmatpush.bf16.msra.mxu0 %v8138_v42  ;;  %v7246_v43 = vor.u32 %v9394_v62, %v7243_v17  ;;  %v7502_v33 = vor.u32 %v9458_v32, %v7499_v0  ;;  %v7691_v62 = vld [vmem:[#allocation14 + $0x570] sm:$0xf0] }
 0x8a9   :  { %v9758_v34 = vld [vmem:[#allocation14 + $0xd2c] sm:$0xf0]  ;;  %v9570_v17 = vld [vmem:[#allocation14 + $0x754] sm:$0xf] }
 0x8aa   :  { %v8937_v4 = vld [vmem:[#allocation14 + $0xf10] sm:$0xf]  ;;  %v8682_v26 = vor.u32 %v9758_v34, %v8681_v50  ;;  %5817 = vmatpush.bf16.msra.mxu1 %v8394_v56  ;;  %v9386_v50 = vld [vmem:[#allocation14 + $0x194] sm:$0xf]  ;;  %v5577_v56 = vpop.f32.mrf.mxu2 }
 0x8ab   :  { %v9822_v46 = vld [vmem:[#allocation14 + $0xf2c] sm:$0xf0]  ;;  %v7211_v34 = vld [vmem:[#allocation14 + $0x1b0] sm:$0xf0] }
 0x8ac   :  { %v8105_v28 = vld [vmem:[#allocation14 + $0x890] sm:$0xf]  ;;  %v8938_v60 = vor.u32 %v9822_v46, %v8937_v4  ;;  %5829 = vmatpush.bf16.msra.mxu2 %v8682_v26  ;;  %v9450_v4 = vld [vmem:[#allocation14 + $0x394] sm:$0xf] }
 0x8ad   :  { %v9614_v61 = vld [vmem:[#allocation14 + $0x8ac] sm:$0xf0]  ;;  %v7947_v32 = vld [vmem:[#allocation14 + $0x770] sm:$0xf0] }
 0x8ae   :  { %v8361_v3 = vld [vmem:[#allocation14 + $0xa90] sm:$0xf]  ;;  %v8106_v45 = vor.u32 %v9614_v61, %v8105_v28  ;;  %5842 = vmatpush.bf16.msra.mxu3 %v8938_v60  ;;  %v5590_v28 = vpop.f32.mrf.mxu3  ;;  %v7467_v61 = vld [vmem:[#allocation14 + $0x3b0] sm:$0xf0] }
 0x8af   :  { %v9678_v36 = vld [vmem:[#allocation14 + $0xaac] sm:$0xf0]  ;;  %v9354_v28 = vld [vmem:[#allocation14 + $0x94] sm:$0xf] }
 0x8b0   :  { %v8649_v19 = vld [vmem:[#allocation14 + $0xcd0] sm:$0xf]  ;;  %v8362_v54 = vor.u32 %v9678_v36, %v8361_v3  ;;  %5805 = vmatpush.bf16.msra.mxu0 %v8106_v45 }
 0x8b1   :  { %v9750_v22 = vld [vmem:[#allocation14 + $0xcec] sm:$0xf0] }
 0x8b2   :  { %v8905_v57 = vld [vmem:[#allocation14 + $0xed0] sm:$0xf]  ;;  %v8650_v5 = vor.u32 %v9750_v22, %v8649_v19  ;;  %5818 = vmatpush.bf16.msra.mxu1 %v8362_v54  ;;  %v9522_v19 = vld [vmem:[#allocation14 + $0x5d4] sm:$0xf] }
 0x8b3   :  { %v9814_v30 = vld [vmem:[#allocation14 + $0xeec] sm:$0xf0]  ;;  %v8011_v22 = vld [vmem:[#allocation14 + $0x7f0] sm:$0xf0] }
 0x8b4   :  { %v8073_v20 = vld [vmem:[#allocation14 + $0x850] sm:$0xf]  ;;  %v8906_v29 = vor.u32 %v9814_v30, %v8905_v57  ;;  %5830 = vmatpush.bf16.msra.mxu2 %v8650_v5  ;;  %v7214_v57 = vor.u32 %v9386_v50, %v7211_v34  ;;  %v7470_v30 = vor.u32 %v9450_v4, %v7467_v61  ;;  %v7758_v5 = vor.u32 %v9522_v19, %v7755_v55  ;;  %v7371_v50 = vld [vmem:[#allocation14 + $0x2f0] sm:$0xf0] }
 0x8b5   :  { %v9606_v48 = vld [vmem:[#allocation14 + $0x86c] sm:$0xf0]  ;;  %v9498_v34 = vld [vmem:[#allocation14 + $0x514] sm:$0xf] }
 0x8b6   :  { %v8329_v39 = vld [vmem:[#allocation14 + $0xa50] sm:$0xf]  ;;  %v8074_v27 = vor.u32 %v9606_v48, %v8073_v20  ;;  %5843 = vmatpush.bf16.msra.mxu3 %v8906_v29  ;;  %v9378_v20 = vld [vmem:[#allocation14 + $0x154] sm:$0xf]  ;;  %v8014_v29 = vor.u32 %v9586_v41, %v8011_v22 }
 0x8b7   :  { %v9670_v38 = vld [vmem:[#allocation14 + $0xa6c] sm:$0xf0]  ;;  %v7179_v48 = vld [vmem:[#allocation14 + $0x170] sm:$0xf0] }
 0x8b8   :  { %v8617_v12 = vld [vmem:[#allocation14 + $0xc90] sm:$0xf]  ;;  %v8330_v8 = vor.u32 %v9670_v38, %v8329_v39  ;;  %5806 = vmatpush.bf16.msra.mxu0 %v8074_v27  ;;  %v9442_v39 = vld [vmem:[#allocation14 + $0x354] sm:$0xf] }
 0x8b9   :  { %v9742_v59 = vld [vmem:[#allocation14 + $0xcac] sm:$0xf0]  ;;  %v7435_v38 = vld [vmem:[#allocation14 + $0x370] sm:$0xf0] }
 0x8ba   :  { %v8873_v63 = vld [vmem:[#allocation14 + $0xe90] sm:$0xf]  ;;  %v8618_v40 = vor.u32 %v9742_v59, %v8617_v12  ;;  %5819 = vmatpush.bf16.msra.mxu1 %v8330_v8  ;;  %v9514_v12 = vld [vmem:[#allocation14 + $0x594] sm:$0xf] }
 0x8bb   :  { %v9806_v6 = vld [vmem:[#allocation14 + $0xeac] sm:$0xf0]  ;;  %v7979_v59 = vld [vmem:[#allocation14 + $0x7b0] sm:$0xf0]  ;;  %v7726_v8 = vor.u32 %v9514_v12, %v7723_v53  ;;  %v5627_v53 = vpop.f32.mrf.mxu2 }
 0x8bc   :  { %v8041_v52 = vld [vmem:[#allocation14 + $0x810] sm:$0xf]  ;;  %v8874_v13 = vor.u32 %v9806_v6, %v8873_v63  ;;  %5831 = vmatpush.bf16.msra.mxu2 %v8618_v40  ;;  %v7182_v63 = vor.u32 %v9378_v20, %v7179_v48  ;;  %v7438_v6 = vor.u32 %v9442_v39, %v7435_v38  ;;  %v7147_v27 = vld [vmem:[#allocation14 + $0x130] sm:$0xf0] }
 0x8bd   :  { %v9598_v14 = vld [vmem:[#allocation14 + $0x82c] sm:$0xf0]  ;;  %v9506_v40 = vld [vmem:[#allocation14 + $0x554] sm:$0xf] }
 0x8be   :  { %v8297_v9 = vld [vmem:[#allocation14 + $0xa10] sm:$0xf]  ;;  %v8042_v18 = vor.u32 %v9598_v14, %v8041_v52  ;;  %5844 = vmatpush.bf16.msra.mxu3 %v8874_v13  ;;  %v7982_v52 = vor.u32 %v9578_v11, %v7979_v59  ;;  %v9434_v14 = vld [vmem:[#allocation14 + $0x314] sm:$0xf]  ;;  %v5601_v13 = vpop.f32.mrf.mxu0  ;;  %v5640_v11 = vpop.f32.mrf.mxu3 }
 0x8bf   :  { %v9662_v25 = vld [vmem:[#allocation14 + $0xa2c] sm:$0xf0]  ;;  %v5602_v0 = vadd.f32 %v5601_v13, %v11600_v10  ;;  %v7659_v4 = vld [vmem:[#allocation14 + $0x530] sm:$0xf0] }
 0x8c0   :  { %v8585_v15 = vld [vmem:[#allocation14 + $0xc50] sm:$0xf]  ;;  %v8298_v2 = vor.u32 %v9662_v25, %v8297_v9  ;;  %5807 = vmatpush.bf16.msra.mxu0 %v8042_v18  ;;  %v7403_v9 = vld [vmem:[#allocation14 + $0x330] sm:$0xf0]  ;;  %v5614_v25 = vpop.f32.mrf.mxu1 }
 0x8c1   :  { %v9734_v7 = vld [vmem:[#allocation14 + $0xc6c] sm:$0xf0]  ;;  %v5615_v18 = vadd.f32 %v5614_v25, %v5602_v0  ;;  %v7083_v61 = vld [vmem:[#allocation14 + $0xb0] sm:$0xf0] }
 0x8c2   :  { %v8841_v31 = vld [vmem:[#allocation14 + $0xe50] sm:$0xf]  ;;  %v8586_v46 = vor.u32 %v9734_v7, %v8585_v15  ;;  %5820 = vmatpush.bf16.msra.mxu1 %v8298_v2  ;;  %v7150_v15 = vor.u32 %v9370_v37, %v7147_v27  ;;  %v7406_v7 = vor.u32 %v9434_v14, %v7403_v9  ;;  %v7694_v2 = vor.u32 %v9506_v40, %v7691_v62  ;;  %v9490_v19 = vld [vmem:[#allocation14 + $0x4d4] sm:$0xf] }
 0x8c3   :  { %v9798_v58 = vld [vmem:[#allocation14 + $0xe6c] sm:$0xf0]  ;;  %5808 = vmatmul.bf16.vlgmr.msra.gmra.mxu0 %v11546_v44  ;;  %v7627_v22 = vld [vmem:[#allocation14 + $0x4f0] sm:$0xf0]  ;;  %v5628_v37 = vadd.f32 %v5627_v53, %v5615_v18 }
 0x8c4   :  { %v8842_v42 = vor.u32 %v9798_v58, %v8841_v31  ;;  %v8553_v26 = vld [vmem:[#allocation14 + $0xc10] sm:$0xf]  ;;  %5852 = vmatpush.bf16.msrb.mxu0 %v7246_v43  ;;  %5832 = vmatpush.bf16.msra.mxu2 %v8586_v46  ;;  %v9362_v31 = vld [vmem:[#allocation14 + $0xd4] sm:$0xf]  ;;  %v7950_v43 = vor.u32 %v9570_v17, %v7947_v32 }
 0x8c5   :  { %v9726_v60 = vld [vmem:[#allocation14 + $0xc2c] sm:$0xf0]  ;;  %5821 = vmatmul.bf16.vlgmr.msra.gmra.mxu1 %v11548_v49  ;;  %v7115_v58 = vld [vmem:[#allocation14 + $0xf0] sm:$0xf0]  ;;  %v11607_v40 = vadd.f32 %v5640_v11, %v5628_v37 }
 0x8c6   :  { %v8809_v3 = vld [vmem:[#allocation14 + $0xe10] sm:$0xf]  ;;  %5865 = vmatpush.bf16.msrb.mxu1 %v7502_v33  ;;  %5845 = vmatpush.bf16.msra.mxu3 %v8842_v42  ;;  %v8554_v45 = vor.u32 %v9726_v60, %v8553_v26  ;;  %v9426_v33 = vld [vmem:[#allocation14 + $0x2d4] sm:$0xf]  ;;  %v7118_v10 = vor.u32 %v9362_v31, %v7115_v58  ;;  %v7662_v26 = vor.u32 %v9498_v34, %v7659_v4  ;;  %v5603_v55 = vpop.f32.mrf.mxu0 }
 0x8c7   :  { %v9790_v36 = vld [vmem:[#allocation14 + $0xe2c] sm:$0xf0]  ;;  %v9562_v46 = vld [vmem:[#allocation14 + $0x714] sm:$0xf]  ;;  %v7374_v56 = vor.u32 %v9426_v33, %v7371_v50 }
 0x8c8   :  { %v8810_v54 = vor.u32 %v9790_v36, %v8809_v3  ;;  %5853 = vmatpush.bf16.msrb.mxu0 %v7214_v57  ;;  %5833 = vmatpush.bf16.msra.mxu2 %v8554_v45  ;;  %v7915_v42 = vld [vmem:[#allocation14 + $0x730] sm:$0xf0]  ;;  %v5616_v41 = vpop.f32.mrf.mxu1  ;;  %v7086_v45 = vor.u32 %v9354_v28, %v7083_v61  ;;  %v5642_v28 = vpop.f32.mrf.mxu3 }
 0x8c9   :  { %v7918_v60 = vor.u32 %v9562_v46, %v7915_v42  ;;  %v9418_v3 = vld [vmem:[#allocation14 + $0x294] sm:$0xf] }
 0x8ca   :  { %5866 = vmatpush.bf16.msrb.mxu1 %v7470_v30  ;;  %5846 = vmatpush.bf16.msra.mxu3 %v8810_v54  ;;  %v7339_v36 = vld [vmem:[#allocation14 + $0x2b0] sm:$0xf0] }
 0x8cb   :  { %5834 = vmatmul.bf16.vlgmr.msra.gmra.mxu2 %v11554_v16  ;;  %v9554_v57 = vld [vmem:[#allocation14 + $0x6d4] sm:$0xf]  ;;  %v7342_v54 = vor.u32 %v9418_v3, %v7339_v36 }
 0x8cc   :  { %5878 = vmatpush.bf16.msrb.mxu2 %v7758_v5  ;;  %5854 = vmatpush.bf16.msrb.mxu0 %v7182_v63  ;;  %v7883_v30 = vld [vmem:[#allocation14 + $0x6f0] sm:$0xf0]  ;;  %v7630_v5 = vor.u32 %v9490_v19, %v7627_v22 }
 0x8cd   :  { %5847 = vmatmul.bf16.vlgmr.msra.gmra.mxu3 %v11556_v24  ;;  %v9346_v20 = vld [vmem:[#allocation14 + $0x54] sm:$0xf] }
 0x8ce   :  { %5891 = vmatpush.bf16.msrb.mxu3 %v8014_v29  ;;  %5867 = vmatpush.bf16.msrb.mxu1 %v7438_v6  ;;  %v7051_v48 = vld [vmem:[#allocation14 + $0x70] sm:$0xf0]  ;;  %v7886_v29 = vor.u32 %v9554_v57, %v7883_v30 }
 0x8cf   :  { %v9410_v39 = vld [vmem:[#allocation14 + $0x254] sm:$0xf]  ;;  %v7054_v27 = vor.u32 %v9346_v20, %v7051_v48 }
 0x8d0   :  { %5879 = vmatpush.bf16.msrb.mxu2 %v7726_v8  ;;  %5855 = vmatpush.bf16.msrb.mxu0 %v7150_v15  ;;  %v7307_v38 = vld [vmem:[#allocation14 + $0x270] sm:$0xf0] }
 0x8d1   :  { %v9482_v12 = vld [vmem:[#allocation14 + $0x494] sm:$0xf]  ;;  %v7310_v8 = vor.u32 %v9410_v39, %v7307_v38 }
 0x8d2   :  { %5892 = vmatpush.bf16.msrb.mxu3 %v7982_v52  ;;  %5868 = vmatpush.bf16.msrb.mxu1 %v7406_v7  ;;  %v7595_v59 = vld [vmem:[#allocation14 + $0x4b0] sm:$0xf0] }
 0x8d3   :  { %v9546_v63 = vld [vmem:[#allocation14 + $0x694] sm:$0xf]  ;;  %v7598_v13 = vor.u32 %v9482_v12, %v7595_v59 }
 0x8d4   :  { %5880 = vmatpush.bf16.msrb.mxu2 %v7694_v2  ;;  %5856 = vmatpush.bf16.msrb.mxu0 %v7118_v10  ;;  %v7851_v6 = vld [vmem:[#allocation14 + $0x6b0] sm:$0xf0] }
 0x8d5   :  { %v9338_v52 = vld [vmem:[#allocation14 + $0x14] sm:$0xf]  ;;  %v7854_v25 = vor.u32 %v9546_v63, %v7851_v6  ;;  %v11611_v63 = vld [vmem:[#allocation15] sm:$0xff] }
 0x8d6   :  { %5893 = vmatpush.bf16.msrb.mxu3 %v7950_v43  ;;  %5869 = vmatpush.bf16.msrb.mxu1 %v7374_v56  ;;  %v7019_v14 = vld [vmem:[#allocation14 + $0x30] sm:$0xf0]  ;;  %v5629_v56 = vpop.f32.mrf.mxu2  ;;  %v2759_v6 = vperm.slane %v11611_v63, 3 }
 0x8d7   :  { %v9402_v9 = vld [vmem:[#allocation14 + $0x214] sm:$0xf]  ;;  %v7022_v2 = vor.u32 %v9338_v52, %v7019_v14 }
 0x8d8   :  { %5881 = vmatpush.bf16.msrb.mxu2 %v7662_v26  ;;  %5857 = vmatpush.bf16.msrb.mxu0 %v7086_v45  ;;  %v7275_v62 = vld [vmem:[#allocation14 + $0x230] sm:$0xf0] }
 0x8d9   :  { %v9650_v17 = vld [vmem:[#allocation14 + $0x9d4] sm:$0xf]  ;;  %v7278_v43 = vor.u32 %v9402_v9, %v7275_v62 }
 0x8da   :  { %5894 = vmatpush.bf16.msrb.mxu3 %v7918_v60  ;;  %5870 = vmatpush.bf16.msrb.mxu1 %v7342_v54  ;;  %v8267_v32 = vld [vmem:[#allocation14 + $0x9f0] sm:$0xf0] }
 0x8db   :  { %v9714_v0 = vld [vmem:[#allocation14 + $0xbd4] sm:$0xf]  ;;  %v8270_v33 = vor.u32 %v9650_v17, %v8267_v32  ;;  %v5653_v17 = vpop.f32.mrf.mxu0  ;;  %v5666_v32 = vpop.f32.mrf.mxu1 }
 0x8dc   :  { %5882 = vmatpush.bf16.msrb.mxu2 %v7630_v5  ;;  %v8523_v15 = vld [vmem:[#allocation14 + $0xbf0] sm:$0xf0]  ;;  %5858 = vmatpush.bf16.msrb.mxu0 %v7054_v27 }
 0x8dd   :  { %v9474_v7 = vld [vmem:[#allocation14 + $0x454] sm:$0xf]  ;;  %v8526_v50 = vor.u32 %v9714_v0, %v8523_v15 }
 0x8de   :  { %5895 = vmatpush.bf16.msrb.mxu3 %v7886_v29  ;;  %v7563_v31 = vld [vmem:[#allocation14 + $0x470] sm:$0xf0]  ;;  %5871 = vmatpush.bf16.msrb.mxu1 %v7310_v8 }
 0x8df   :  { %v9538_v58 = vld [vmem:[#allocation14 + $0x654] sm:$0xf]  ;;  %v7566_v42 = vor.u32 %v9474_v7, %v7563_v31  ;;  %v5654_v31 = vadd.f32 %v5653_v17, %v2759_v6  ;;  %v5679_v6 = vpop.f32.mrf.mxu2 }
 0x8e0   :  { %v7819_v18 = vld [vmem:[#allocation14 + $0x670] sm:$0xf0]  ;;  %5883 = vmatpush.bf16.msrb.mxu2 %v7598_v13  ;;  %5859 = vmatpush.bf16.msrb.mxu0 %v7022_v2 }
 0x8e1   :  { %v9642_v34 = vld [vmem:[#allocation14 + $0x994] sm:$0xf]  ;;  %v7822_v10 = vor.u32 %v9538_v58, %v7819_v18 }
 0x8e2   :  { %5896 = vmatpush.bf16.msrb.mxu3 %v7854_v25  ;;  %v8235_v4 = vld [vmem:[#allocation14 + $0x9b0] sm:$0xf0]  ;;  %5872 = vmatpush.bf16.msrb.mxu1 %v7278_v43 }
 0x8e3   :  { %v9706_v46 = vld [vmem:[#allocation14 + $0xb94] sm:$0xf]  ;;  %v8238_v57 = vor.u32 %v9642_v34, %v8235_v4  ;;  %5860 = vmatmul.bf16.vlgmr.msrb.gmra.mxu0 %v11526_v21 }
 0x8e4   :  { %v8491_v61 = vld [vmem:[#allocation14 + $0xbb0] sm:$0xf0]  ;;  %5904 = vmatpush.bf16.msra.mxu0 %v8270_v33  ;;  %5884 = vmatpush.bf16.msrb.mxu2 %v7566_v42  ;;  %v5667_v33 = vadd.f32 %v5666_v32, %v5654_v31  ;;  %v7249_v31 = vld [vmem:[#allocation14 + $0x1d8] sm:$0xf] }
 0x8e5   :  { %v9466_v26 = vld [vmem:[#allocation14 + $0x414] sm:$0xf]  ;;  %v8494_v30 = vor.u32 %v9706_v46, %v8491_v61  ;;  %5873 = vmatmul.bf16.vlgmr.msrb.gmra.mxu1 %v11528_v47 }
 0x8e6   :  { %v7531_v60 = vld [vmem:[#allocation14 + $0x430] sm:$0xf0]  ;;  %5917 = vmatpush.bf16.msra.mxu1 %v8526_v50  ;;  %5897 = vmatpush.bf16.msrb.mxu3 %v7822_v10 }
 0x8e7   :  { %v9530_v3 = vld [vmem:[#allocation14 + $0x614] sm:$0xf]  ;;  %v7534_v45 = vor.u32 %v9466_v26, %v7531_v60 }
 0x8e8   :  { %v7787_v36 = vld [vmem:[#allocation14 + $0x630] sm:$0xf0]  ;;  %5905 = vmatpush.bf16.msra.mxu0 %v8238_v57  ;;  %v5655_v57 = vpop.f32.mrf.mxu0 }
 0x8e9   :  { %v9778_v19 = vld [vmem:[#allocation14 + $0xdd4] sm:$0xf]  ;;  %v7790_v54 = vor.u32 %v9530_v3, %v7787_v36  ;;  %5885 = vmatpush.bf16.msrb.mxu2 %v7534_v45 }
 0x8ea   :  { %v8779_v55 = vld [vmem:[#allocation14 + $0xdf0] sm:$0xf0]  ;;  %5918 = vmatpush.bf16.msra.mxu1 %v8494_v30  ;;  %v5668_v30 = vpop.f32.mrf.mxu1 }
 0x8eb   :  { %v9842_v41 = vld [vmem:[#allocation14 + $0xfd4] sm:$0xf]  ;;  %v8782_v5 = vor.u32 %v9778_v19, %v8779_v55  ;;  %5898 = vmatpush.bf16.msrb.mxu3 %v7790_v54  ;;  %v7761_v30 = vld [vmem:[#allocation14 + $0x5d8] sm:$0xf] }
 0x8ec   :  { %v9035_v22 = vld [vmem:[#allocation14 + $0xff0] sm:$0xf0]  ;;  %5886 = vmatmul.bf16.vlgmr.msrb.gmra.mxu2 %v11535_v35 }
 0x8ed   :  { %v9634_v20 = vld [vmem:[#allocation14 + $0x954] sm:$0xf]  ;;  %v9038_v29 = vor.u32 %v9842_v41, %v9035_v22  ;;  %5930 = vmatpush.bf16.msra.mxu2 %v8782_v5 }
 0x8ee   :  { %v8203_v48 = vld [vmem:[#allocation14 + $0x970] sm:$0xf0]  ;;  %5899 = vmatmul.bf16.vlgmr.msrb.gmra.mxu3 %v11537_v51 }
 0x8ef   :  { %v9698_v39 = vld [vmem:[#allocation14 + $0xb54] sm:$0xf]  ;;  %v8206_v37 = vor.u32 %v9634_v20, %v8203_v48  ;;  %5943 = vmatpush.bf16.msra.mxu3 %v9038_v29 }
 0x8f0   :  { %v8459_v38 = vld [vmem:[#allocation14 + $0xb70] sm:$0xf0] }
 0x8f1   :  { %v9770_v12 = vld [vmem:[#allocation14 + $0xd94] sm:$0xf]  ;;  %v8462_v27 = vor.u32 %v9698_v39, %v8459_v38  ;;  %5906 = vmatpush.bf16.msra.mxu0 %v8206_v37  ;;  %v5692_v37 = vpop.f32.mrf.mxu3 }
 0x8f2   :  { %v8747_v53 = vld [vmem:[#allocation14 + $0xdb0] sm:$0xf0] }
 0x8f3   :  { %v9834_v11 = vld [vmem:[#allocation14 + $0xf94] sm:$0xf]  ;;  %v8750_v14 = vor.u32 %v9770_v12, %v8747_v53  ;;  %5919 = vmatpush.bf16.msra.mxu1 %v8462_v27 }
 0x8f4   :  { %v9003_v59 = vld [vmem:[#allocation14 + $0xfb0] sm:$0xf0] }
 0x8f5   :  { %v9626_v8 = vld [vmem:[#allocation14 + $0x914] sm:$0xf]  ;;  %v9006_v9 = vor.u32 %v9834_v11, %v9003_v59  ;;  %5931 = vmatpush.bf16.msra.mxu2 %v8750_v14  ;;  %v5680_v14 = vadd.f32 %v5679_v6, %v5667_v33  ;;  %v9447_v6 = vld [vmem:[#allocation14 + $0x374] sm:$0xf0] }
 0x8f6   :  { %v8171_v52 = vld [vmem:[#allocation14 + $0x930] sm:$0xf0] }
 0x8f7   :  { %v9690_v13 = vld [vmem:[#allocation14 + $0xb14] sm:$0xf]  ;;  %v8174_v58 = vor.u32 %v9626_v8, %v8171_v52  ;;  %5944 = vmatpush.bf16.msra.mxu3 %v9006_v9  ;;  %v11616_v32 = vadd.f32 %v5692_v37, %v5680_v14  ;;  %v7729_v37 = vld [vmem:[#allocation14 + $0x598] sm:$0xf] }
 0x8f8   :  { %v8427_v25 = vld [vmem:[#allocation14 + $0xb30] sm:$0xf0] }
 0x8f9   :  { %v9762_v62 = vld [vmem:[#allocation14 + $0xd54] sm:$0xf]  ;;  %v8430_v18 = vor.u32 %v9690_v13, %v8427_v25  ;;  %5907 = vmatpush.bf16.msra.mxu0 %v8174_v58  ;;  %v9399_v58 = vld [vmem:[#allocation14 + $0x1f4] sm:$0xf0] }
 0x8fa   :  { %v8715_v0 = vld [vmem:[#allocation14 + $0xd70] sm:$0xf0] }
 0x8fb   :  { %v9826_v15 = vld [vmem:[#allocation14 + $0xf54] sm:$0xf]  ;;  %v8718_v50 = vor.u32 %v9762_v62, %v8715_v0  ;;  %5920 = vmatpush.bf16.msra.mxu1 %v8430_v18  ;;  %v7505_v18 = vld [vmem:[#allocation14 + $0x3d8] sm:$0xf] }
 0x8fc   :  { %v8971_v7 = vld [vmem:[#allocation14 + $0xf70] sm:$0xf0] }
 0x8fd   :  { %v9618_v2 = vld [vmem:[#allocation14 + $0x8d4] sm:$0xf]  ;;  %v8974_v34 = vor.u32 %v9826_v15, %v8971_v7  ;;  %5932 = vmatpush.bf16.msra.mxu2 %v8718_v50 }
 0x8fe   :  { %v8139_v43 = vld [vmem:[#allocation14 + $0x8f0] sm:$0xf0] }
 0x8ff   :  { %v9682_v4 = vld [vmem:[#allocation14 + $0xad4] sm:$0xf]  ;;  %v8142_v61 = vor.u32 %v9618_v2, %v8139_v43  ;;  %5945 = vmatpush.bf16.msra.mxu3 %v8974_v34  ;;  %v9463_v2 = vld [vmem:[#allocation14 + $0x3f4] sm:$0xf0] }
 0x900   :  { %v8395_v46 = vld [vmem:[#allocation14 + $0xaf0] sm:$0xf0] }
 0x901   :  { %v9754_v42 = vld [vmem:[#allocation14 + $0xd14] sm:$0xf]  ;;  %v8398_v26 = vor.u32 %v9682_v4, %v8395_v46  ;;  %5908 = vmatpush.bf16.msra.mxu0 %v8142_v61  ;;  %v7473_v61 = vld [vmem:[#allocation14 + $0x398] sm:$0xf] }
 0x902   :  { %v8683_v10 = vld [vmem:[#allocation14 + $0xd30] sm:$0xf0] }
 0x903   :  { %v9818_v56 = vld [vmem:[#allocation14 + $0xf14] sm:$0xf]  ;;  %v8686_v36 = vor.u32 %v9754_v42, %v8683_v10  ;;  %5921 = vmatpush.bf16.msra.mxu1 %v8398_v26  ;;  %v7250_v42 = vor.u32 %v9399_v58, %v7249_v31  ;;  %v7506_v10 = vor.u32 %v9463_v2, %v7505_v18  ;;  %v5705_v31 = vpop.f32.mrf.mxu0  ;;  %v5718_v58 = vpop.f32.mrf.mxu1  ;;  %v9511_v18 = vld [vmem:[#allocation14 + $0x574] sm:$0xf0] }
 0x904   :  { %v8939_v28 = vld [vmem:[#allocation14 + $0xf30] sm:$0xf0]  ;;  %v7953_v2 = vld [vmem:[#allocation14 + $0x758] sm:$0xf] }
 0x905   :  { %v9610_v60 = vld [vmem:[#allocation14 + $0x894] sm:$0xf]  ;;  %v8942_v19 = vor.u32 %v9818_v56, %v8939_v28  ;;  %5933 = vmatpush.bf16.msra.mxu2 %v8686_v36  ;;  %v7217_v56 = vld [vmem:[#allocation14 + $0x198] sm:$0xf]  ;;  %v5694_v36 = vpop.f32.mrf.mxu3 }
 0x906   :  { %v8107_v3 = vld [vmem:[#allocation14 + $0x8b0] sm:$0xf0]  ;;  %v9391_v28 = vld [vmem:[#allocation14 + $0x1b4] sm:$0xf0] }
 0x907   :  { %v9674_v55 = vld [vmem:[#allocation14 + $0xa94] sm:$0xf]  ;;  %v8110_v48 = vor.u32 %v9610_v60, %v8107_v3  ;;  %5946 = vmatpush.bf16.msra.mxu3 %v8942_v19  ;;  %v5681_v3 = vpop.f32.mrf.mxu2  ;;  %v9455_v19 = vld [vmem:[#allocation14 + $0x3b4] sm:$0xf0] }
 0x908   :  { %v8363_v41 = vld [vmem:[#allocation14 + $0xab0] sm:$0xf0]  ;;  %v7921_v3 = vld [vmem:[#allocation14 + $0x718] sm:$0xf] }
 0x909   :  { %v9746_v22 = vld [vmem:[#allocation14 + $0xcd4] sm:$0xf]  ;;  %v8366_v5 = vor.u32 %v9674_v55, %v8363_v41  ;;  %5909 = vmatpush.bf16.msra.mxu0 %v8110_v48  ;;  %v7218_v48 = vor.u32 %v9391_v28, %v7217_v56  ;;  %v7377_v28 = vld [vmem:[#allocation14 + $0x2d8] sm:$0xf] }
 0x90a   :  { %v8651_v45 = vld [vmem:[#allocation14 + $0xcf0] sm:$0xf0]  ;;  %v9567_v36 = vld [vmem:[#allocation14 + $0x734] sm:$0xf0] }
 0x90b   :  { %v9810_v54 = vld [vmem:[#allocation14 + $0xed4] sm:$0xf]  ;;  %v8654_v38 = vor.u32 %v9746_v22, %v8651_v45  ;;  %5922 = vmatpush.bf16.msra.mxu1 %v8366_v5  ;;  %v9527_v45 = vld [vmem:[#allocation14 + $0x5f4] sm:$0xf0]  ;;  %v7474_v5 = vor.u32 %v9455_v19, %v7473_v61 }
 0x90c   :  { %v8907_v20 = vld [vmem:[#allocation14 + $0xef0] sm:$0xf0]  ;;  %v9431_v61 = vld [vmem:[#allocation14 + $0x2f4] sm:$0xf0] }
 0x90d   :  { %v9602_v29 = vld [vmem:[#allocation14 + $0x854] sm:$0xf]  ;;  %v8910_v12 = vor.u32 %v9810_v54, %v8907_v20  ;;  %5934 = vmatpush.bf16.msra.mxu2 %v8654_v38  ;;  %v8017_v54 = vld [vmem:[#allocation14 + $0x7d8] sm:$0xf]  ;;  %v7378_v19 = vor.u32 %v9431_v61, %v7377_v28 }
 0x90e   :  { %v8075_v39 = vld [vmem:[#allocation14 + $0x870] sm:$0xf0]  ;;  %v9591_v20 = vld [vmem:[#allocation14 + $0x7f4] sm:$0xf0] }
 0x90f   :  { %v9666_v53 = vld [vmem:[#allocation14 + $0xa54] sm:$0xf]  ;;  %v8078_v9 = vor.u32 %v9602_v29, %v8075_v39  ;;  %5947 = vmatpush.bf16.msra.mxu3 %v8910_v12  ;;  %v7185_v38 = vld [vmem:[#allocation14 + $0x158] sm:$0xf] }
 0x910   :  { %v8331_v11 = vld [vmem:[#allocation14 + $0xa70] sm:$0xf0]  ;;  %v9383_v12 = vld [vmem:[#allocation14 + $0x174] sm:$0xf0] }
 0x911   :  { %v9738_v59 = vld [vmem:[#allocation14 + $0xc94] sm:$0xf]  ;;  %v8334_v13 = vor.u32 %v9666_v53, %v8331_v11  ;;  %5910 = vmatpush.bf16.msra.mxu0 %v8078_v9  ;;  %v7762_v53 = vor.u32 %v9527_v45, %v7761_v30  ;;  %v8018_v11 = vor.u32 %v9591_v20, %v8017_v54  ;;  %v7186_v14 = vor.u32 %v9383_v12, %v7185_v38  ;;  %v7345_v30 = vld [vmem:[#allocation14 + $0x298] sm:$0xf]  ;;  %v5707_v20 = vpop.f32.mrf.mxu0 }
 0x912   :  { %v8619_v27 = vld [vmem:[#allocation14 + $0xcb0] sm:$0xf0]  ;;  %v9423_v45 = vld [vmem:[#allocation14 + $0x2b4] sm:$0xf0] }
 0x913   :  { %v9802_v8 = vld [vmem:[#allocation14 + $0xe94] sm:$0xf]  ;;  %v8622_v0 = vor.u32 %v9738_v59, %v8619_v27  ;;  %5923 = vmatpush.bf16.msra.mxu1 %v8334_v13  ;;  %v7441_v59 = vld [vmem:[#allocation14 + $0x358] sm:$0xf]  ;;  %v7346_v12 = vor.u32 %v9423_v45, %v7345_v30 }
 0x914   :  { %v8875_v52 = vld [vmem:[#allocation14 + $0xeb0] sm:$0xf0]  ;;  %v9519_v27 = vld [vmem:[#allocation14 + $0x5b4] sm:$0xf0]  ;;  %v7442_v9 = vor.u32 %v9447_v6, %v7441_v59 }
 0x915   :  { %v9594_v25 = vld [vmem:[#allocation14 + $0x814] sm:$0xf]  ;;  %v8878_v15 = vor.u32 %v9802_v8, %v8875_v52  ;;  %5935 = vmatpush.bf16.msra.mxu2 %v8622_v0  ;;  %v7985_v8 = vld [vmem:[#allocation14 + $0x798] sm:$0xf] }
 0x916   :  { %v8043_v62 = vld [vmem:[#allocation14 + $0x830] sm:$0xf0]  ;;  %v9583_v52 = vld [vmem:[#allocation14 + $0x7b4] sm:$0xf0] }
 0x917   :  { %v9658_v17 = vld [vmem:[#allocation14 + $0xa14] sm:$0xf]  ;;  %v8046_v4 = vor.u32 %v9594_v25, %v8043_v62  ;;  %5948 = vmatpush.bf16.msra.mxu3 %v8878_v15  ;;  %v7153_v13 = vld [vmem:[#allocation14 + $0x118] sm:$0xf]  ;;  %v7730_v62 = vor.u32 %v9519_v27, %v7729_v37 }
 0x918   :  { %v8299_v7 = vld [vmem:[#allocation14 + $0xa30] sm:$0xf0]  ;;  %v9375_v25 = vld [vmem:[#allocation14 + $0x134] sm:$0xf0] }
 0x919   :  { %v9730_v43 = vld [vmem:[#allocation14 + $0xc54] sm:$0xf]  ;;  %v8302_v46 = vor.u32 %v9658_v17, %v8299_v7  ;;  %5911 = vmatpush.bf16.msra.mxu0 %v8046_v4  ;;  %v7986_v17 = vor.u32 %v9583_v52, %v7985_v8  ;;  %v7409_v0 = vld [vmem:[#allocation14 + $0x318] sm:$0xf]  ;;  %v5731_v52 = vpop.f32.mrf.mxu2 }
 0x91a   :  { %v8587_v33 = vld [vmem:[#allocation14 + $0xc70] sm:$0xf0]  ;;  %v9439_v15 = vld [vmem:[#allocation14 + $0x334] sm:$0xf0] }
 0x91b   :  { %v9794_v50 = vld [vmem:[#allocation14 + $0xe54] sm:$0xf]  ;;  %v8590_v26 = vor.u32 %v9730_v43, %v8587_v33  ;;  %5924 = vmatpush.bf16.msra.mxu1 %v8302_v46  ;;  %v7697_v7 = vld [vmem:[#allocation14 + $0x558] sm:$0xf]  ;;  %v5706_v33 = vadd.f32 %v5705_v31, %v11616_v32 }
 0x91c   :  { %v8843_v34 = vld [vmem:[#allocation14 + $0xe70] sm:$0xf0]  ;;  %5912 = vmatmul.bf16.vlgmr.msra.gmra.mxu0 %v11546_v44  ;;  %v9575_v43 = vld [vmem:[#allocation14 + $0x774] sm:$0xf0] }
 0x91d   :  { %v8846_v60 = vor.u32 %v9794_v50, %v8843_v34  ;;  %v9722_v55 = vld [vmem:[#allocation14 + $0xc14] sm:$0xf]  ;;  %5956 = vmatpush.bf16.msrb.mxu0 %v7250_v42  ;;  %5936 = vmatpush.bf16.msra.mxu2 %v8590_v26  ;;  %v7154_v50 = vor.u32 %v9375_v25, %v7153_v13  ;;  %v7410_v34 = vor.u32 %v9439_v15, %v7409_v0  ;;  %v7121_v4 = vld [vmem:[#allocation14 + $0xd8] sm:$0xf] }
 0x91e   :  { %v8555_v41 = vld [vmem:[#allocation14 + $0xc30] sm:$0xf0]  ;;  %5925 = vmatmul.bf16.vlgmr.msra.gmra.mxu1 %v11548_v49  ;;  %v9367_v46 = vld [vmem:[#allocation14 + $0xf4] sm:$0xf0]  ;;  %v5719_v42 = vadd.f32 %v5718_v58, %v5706_v33  ;;  %v7954_v56 = vor.u32 %v9575_v43, %v7953_v2 }
 0x91f   :  { %v9786_v22 = vld [vmem:[#allocation14 + $0xe14] sm:$0xf]  ;;  %5969 = vmatpush.bf16.msrb.mxu1 %v7506_v10  ;;  %5949 = vmatpush.bf16.msra.mxu3 %v8846_v60  ;;  %v8558_v29 = vor.u32 %v9722_v55, %v8555_v41  ;;  %v7698_v10 = vor.u32 %v9511_v18, %v7697_v7  ;;  %v7665_v26 = vld [vmem:[#allocation14 + $0x518] sm:$0xf]  ;;  %v7122_v32 = vor.u32 %v9367_v46, %v7121_v4 }
 0x920   :  { %v8811_v57 = vld [vmem:[#allocation14 + $0xe30] sm:$0xf0]  ;;  %v9503_v60 = vld [vmem:[#allocation14 + $0x534] sm:$0xf0] }
 0x921   :  { %v8814_v39 = vor.u32 %v9786_v22, %v8811_v57  ;;  %5957 = vmatpush.bf16.msrb.mxu0 %v7218_v48  ;;  %5937 = vmatpush.bf16.msra.mxu2 %v8558_v29  ;;  %v7089_v55 = vld [vmem:[#allocation14 + $0x98] sm:$0xf]  ;;  %v7666_v22 = vor.u32 %v9503_v60, %v7665_v26  ;;  %v7922_v57 = vor.u32 %v9567_v36, %v7921_v3  ;;  %v5720_v48 = vpop.f32.mrf.mxu1 }
 0x922   :  { %v9359_v41 = vld [vmem:[#allocation14 + $0xb4] sm:$0xf0] }
 0x923   :  { %5970 = vmatpush.bf16.msrb.mxu1 %v7474_v5  ;;  %5950 = vmatpush.bf16.msra.mxu3 %v8814_v39  ;;  %v7633_v54 = vld [vmem:[#allocation14 + $0x4d8] sm:$0xf]  ;;  %v7090_v38 = vor.u32 %v9359_v41, %v7089_v55  ;;  %v5733_v41 = vpop.f32.mrf.mxu2 }
 0x924   :  { %5938 = vmatmul.bf16.vlgmr.msra.gmra.mxu2 %v11554_v16  ;;  %v9495_v5 = vld [vmem:[#allocation14 + $0x4f4] sm:$0xf0] }
 0x925   :  { %5982 = vmatpush.bf16.msrb.mxu2 %v7762_v53  ;;  %5958 = vmatpush.bf16.msrb.mxu0 %v7186_v14  ;;  %v7889_v29 = vld [vmem:[#allocation14 + $0x6d8] sm:$0xf]  ;;  %v7634_v59 = vor.u32 %v9495_v5, %v7633_v54  ;;  %v5744_v14 = vpop.f32.mrf.mxu3 }
 0x926   :  { %5951 = vmatmul.bf16.vlgmr.msra.gmra.mxu3 %v11556_v24  ;;  %v9559_v39 = vld [vmem:[#allocation14 + $0x6f4] sm:$0xf0] }
 0x927   :  { %5995 = vmatpush.bf16.msrb.mxu3 %v8018_v11  ;;  %5971 = vmatpush.bf16.msrb.mxu1 %v7442_v9  ;;  %v7057_v53 = vld [vmem:[#allocation14 + $0x58] sm:$0xf]  ;;  %v7890_v6 = vor.u32 %v9559_v39, %v7889_v29 }
 0x928   :  { %v9351_v11 = vld [vmem:[#allocation14 + $0x74] sm:$0xf0] }
 0x929   :  { %5983 = vmatpush.bf16.msrb.mxu2 %v7730_v62  ;;  %5959 = vmatpush.bf16.msrb.mxu0 %v7154_v50  ;;  %v7313_v37 = vld [vmem:[#allocation14 + $0x258] sm:$0xf]  ;;  %v5732_v62 = vadd.f32 %v5731_v52, %v5719_v42 }
 0x92a   :  { %v9415_v27 = vld [vmem:[#allocation14 + $0x274] sm:$0xf0] }
 0x92b   :  { %5996 = vmatpush.bf16.msrb.mxu3 %v7986_v17  ;;  %5972 = vmatpush.bf16.msrb.mxu1 %v7410_v34  ;;  %v7601_v8 = vld [vmem:[#allocation14 + $0x498] sm:$0xf]  ;;  %v7058_v17 = vor.u32 %v9351_v11, %v7057_v53  ;;  %v7314_v0 = vor.u32 %v9415_v27, %v7313_v37  ;;  %v11623_v58 = vadd.f32 %v5744_v14, %v5732_v62  ;;  %v2760_v62 = vperm.slane %v11611_v63, 4 }
 0x92c   :  { %v9487_v9 = vld [vmem:[#allocation14 + $0x4b4] sm:$0xf0] }
 0x92d   :  { %5984 = vmatpush.bf16.msrb.mxu2 %v7698_v10  ;;  %5960 = vmatpush.bf16.msrb.mxu0 %v7122_v32  ;;  %v7857_v13 = vld [vmem:[#allocation14 + $0x698] sm:$0xf]  ;;  %v7602_v18 = vor.u32 %v9487_v9, %v7601_v8 }
 0x92e   :  { %v9551_v25 = vld [vmem:[#allocation14 + $0x6b4] sm:$0xf0] }
 0x92f   :  { %5997 = vmatpush.bf16.msrb.mxu3 %v7954_v56  ;;  %5973 = vmatpush.bf16.msrb.mxu1 %v7378_v19  ;;  %v7025_v15 = vld [vmem:[#allocation14 + $0x18] sm:$0xf]  ;;  %v7858_v2 = vor.u32 %v9551_v25, %v7857_v13 }
 0x930   :  { %v9343_v7 = vld [vmem:[#allocation14 + $0x34] sm:$0xf0] }
 0x931   :  { %5985 = vmatpush.bf16.msrb.mxu2 %v7666_v22  ;;  %5961 = vmatpush.bf16.msrb.mxu0 %v7090_v38  ;;  %v7281_v31 = vld [vmem:[#allocation14 + $0x218] sm:$0xf]  ;;  %v7026_v28 = vor.u32 %v9343_v7, %v7025_v15  ;;  %v5746_v22 = vpop.f32.mrf.mxu3 }
 0x932   :  { %v9407_v43 = vld [vmem:[#allocation14 + $0x234] sm:$0xf0] }
 0x933   :  { %5998 = vmatpush.bf16.msrb.mxu3 %v7922_v57  ;;  %5974 = vmatpush.bf16.msrb.mxu1 %v7346_v12  ;;  %v8273_v33 = vld [vmem:[#allocation14 + $0x9d8] sm:$0xf]  ;;  %v7282_v61 = vor.u32 %v9407_v43, %v7281_v31 }
 0x934   :  { %v9655_v50 = vld [vmem:[#allocation14 + $0x9f4] sm:$0xf0] }
 0x935   :  { %5986 = vmatpush.bf16.msrb.mxu2 %v7634_v59  ;;  %v8529_v34 = vld [vmem:[#allocation14 + $0xbd8] sm:$0xf]  ;;  %5962 = vmatpush.bf16.msrb.mxu0 %v7058_v17  ;;  %v8274_v26 = vor.u32 %v9655_v50, %v8273_v33  ;;  %v5757_v50 = vpop.f32.mrf.mxu0 }
 0x936   :  { %v9719_v4 = vld [vmem:[#allocation14 + $0xbf4] sm:$0xf0]  ;;  %v5758_v63 = vadd.f32 %v5757_v50, %v2760_v62  ;;  %v5783_v62 = vpop.f32.mrf.mxu2 }
 0x937   :  { %5999 = vmatpush.bf16.msrb.mxu3 %v7890_v6  ;;  %v7569_v46 = vld [vmem:[#allocation14 + $0x458] sm:$0xf]  ;;  %5975 = vmatpush.bf16.msrb.mxu1 %v7314_v0  ;;  %v8530_v60 = vor.u32 %v9719_v4, %v8529_v34  ;;  %v5770_v34 = vpop.f32.mrf.mxu1 }
 0x938   :  { %v9479_v42 = vld [vmem:[#allocation14 + $0x474] sm:$0xf0] }
 0x939   :  { %v7825_v10 = vld [vmem:[#allocation14 + $0x658] sm:$0xf]  ;;  %5987 = vmatpush.bf16.msrb.mxu2 %v7602_v18  ;;  %v7570_v19 = vor.u32 %v9479_v42, %v7569_v46  ;;  %5963 = vmatpush.bf16.msrb.mxu0 %v7026_v28 }
 0x93a   :  { %v9543_v56 = vld [vmem:[#allocation14 + $0x674] sm:$0xf0] }
 0x93b   :  { %6000 = vmatpush.bf16.msrb.mxu3 %v7858_v2  ;;  %v8241_v3 = vld [vmem:[#allocation14 + $0x998] sm:$0xf]  ;;  %v7826_v55 = vor.u32 %v9543_v56, %v7825_v10  ;;  %5976 = vmatpush.bf16.msrb.mxu1 %v7282_v61 }
 0x93c   :  { %v9647_v36 = vld [vmem:[#allocation14 + $0x9b4] sm:$0xf0]  ;;  %5964 = vmatmul.bf16.vlgmr.msrb.gmra.mxu0 %v11526_v21 }
 0x93d   :  { %v8497_v32 = vld [vmem:[#allocation14 + $0xb98] sm:$0xf]  ;;  %6008 = vmatpush.bf16.msra.mxu0 %v8274_v26  ;;  %v8242_v38 = vor.u32 %v9647_v36, %v8241_v3  ;;  %5988 = vmatpush.bf16.msrb.mxu2 %v7570_v19  ;;  %v5771_v26 = vadd.f32 %v5770_v34, %v5758_v63  ;;  %v9395_v63 = vld [vmem:[#allocation14 + $0x1dc] sm:$0xf] }
 0x93e   :  { %v9711_v57 = vld [vmem:[#allocation14 + $0xbb4] sm:$0xf0]  ;;  %5977 = vmatmul.bf16.vlgmr.msrb.gmra.mxu1 %v11528_v47 }
 0x93f   :  { %v7537_v30 = vld [vmem:[#allocation14 + $0x418] sm:$0xf]  ;;  %6021 = vmatpush.bf16.msra.mxu1 %v8530_v60  ;;  %v8498_v12 = vor.u32 %v9711_v57, %v8497_v32  ;;  %6001 = vmatpush.bf16.msrb.mxu3 %v7826_v55 }
 0x940   :  { %v9471_v45 = vld [vmem:[#allocation14 + $0x434] sm:$0xf0] }
 0x941   :  { %v7793_v54 = vld [vmem:[#allocation14 + $0x618] sm:$0xf]  ;;  %v7538_v53 = vor.u32 %v9471_v45, %v7537_v30  ;;  %6009 = vmatpush.bf16.msra.mxu0 %v8242_v38  ;;  %v5759_v38 = vpop.f32.mrf.mxu0 }
 0x942   :  { %v9535_v20 = vld [vmem:[#allocation14 + $0x634] sm:$0xf0] }
 0x943   :  { %v8785_v48 = vld [vmem:[#allocation14 + $0xdd8] sm:$0xf]  ;;  %v7794_v11 = vor.u32 %v9535_v20, %v7793_v54  ;;  %6022 = vmatpush.bf16.msra.mxu1 %v8498_v12  ;;  %5989 = vmatpush.bf16.msrb.mxu2 %v7538_v53  ;;  %v5772_v12 = vpop.f32.mrf.mxu1 }
 0x944   :  { %v9783_v5 = vld [vmem:[#allocation14 + $0xdf4] sm:$0xf0]  ;;  %v9523_v12 = vld [vmem:[#allocation14 + $0x5dc] sm:$0xf] }
 0x945   :  { %v9041_v29 = vld [vmem:[#allocation14 + $0xfd8] sm:$0xf]  ;;  %v8786_v37 = vor.u32 %v9783_v5, %v8785_v48  ;;  %6002 = vmatpush.bf16.msrb.mxu3 %v7794_v11 }
 0x946   :  { %v9847_v39 = vld [vmem:[#allocation14 + $0xff4] sm:$0xf0]  ;;  %5990 = vmatmul.bf16.vlgmr.msrb.gmra.mxu2 %v11535_v35 }
 0x947   :  { %v8209_v59 = vld [vmem:[#allocation14 + $0x958] sm:$0xf]  ;;  %v9042_v27 = vor.u32 %v9847_v39, %v9041_v29  ;;  %6034 = vmatpush.bf16.msra.mxu2 %v8786_v37 }
 0x948   :  { %v9639_v6 = vld [vmem:[#allocation14 + $0x974] sm:$0xf0]  ;;  %6003 = vmatmul.bf16.vlgmr.msrb.gmra.mxu3 %v11537_v51 }
 0x949   :  { %v8465_v8 = vld [vmem:[#allocation14 + $0xb58] sm:$0xf]  ;;  %v8210_v17 = vor.u32 %v9639_v6, %v8209_v59  ;;  %6047 = vmatpush.bf16.msra.mxu3 %v9042_v27 }
 0x94a   :  { %v9703_v52 = vld [vmem:[#allocation14 + $0xb74] sm:$0xf0] }
 0x94b   :  { %v8753_v14 = vld [vmem:[#allocation14 + $0xd98] sm:$0xf]  ;;  %v8466_v0 = vor.u32 %v9703_v52, %v8465_v8  ;;  %6010 = vmatpush.bf16.msra.mxu0 %v8210_v17  ;;  %v5796_v17 = vpop.f32.mrf.mxu3 }
 0x94c   :  { %v9775_v9 = vld [vmem:[#allocation14 + $0xdb4] sm:$0xf0] }
 0x94d   :  { %v9009_v13 = vld [vmem:[#allocation14 + $0xf98] sm:$0xf]  ;;  %v8754_v31 = vor.u32 %v9775_v9, %v8753_v14  ;;  %6023 = vmatpush.bf16.msra.mxu1 %v8466_v0 }
 0x94e   :  { %v9839_v25 = vld [vmem:[#allocation14 + $0xfb4] sm:$0xf0] }
 0x94f   :  { %v8177_v15 = vld [vmem:[#allocation14 + $0x918] sm:$0xf]  ;;  %v9010_v18 = vor.u32 %v9839_v25, %v9009_v13  ;;  %6035 = vmatpush.bf16.msra.mxu2 %v8754_v31  ;;  %v5784_v31 = vadd.f32 %v5783_v62, %v5771_v26  ;;  %v7443_v62 = vld [vmem:[#allocation14 + $0x378] sm:$0xf0] }
 0x950   :  { %v9631_v7 = vld [vmem:[#allocation14 + $0x934] sm:$0xf0] }
 0x951   :  { %v8433_v2 = vld [vmem:[#allocation14 + $0xb18] sm:$0xf]  ;;  %v8178_v10 = vor.u32 %v9631_v7, %v8177_v15  ;;  %6048 = vmatpush.bf16.msra.mxu3 %v9010_v18  ;;  %v11630_v34 = vadd.f32 %v5796_v17, %v5784_v31  ;;  %v9515_v17 = vld [vmem:[#allocation14 + $0x59c] sm:$0xf] }
 0x952   :  { %v9695_v43 = vld [vmem:[#allocation14 + $0xb34] sm:$0xf0] }
 0x953   :  { %v8721_v33 = vld [vmem:[#allocation14 + $0xd58] sm:$0xf]  ;;  %v8434_v56 = vor.u32 %v9695_v43, %v8433_v2  ;;  %6011 = vmatpush.bf16.msra.mxu0 %v8178_v10  ;;  %v7251_v10 = vld [vmem:[#allocation14 + $0x1f8] sm:$0xf0] }
 0x954   :  { %v9767_v4 = vld [vmem:[#allocation14 + $0xd74] sm:$0xf0] }
 0x955   :  { %v8977_v46 = vld [vmem:[#allocation14 + $0xf58] sm:$0xf]  ;;  %v8722_v60 = vor.u32 %v9767_v4, %v8721_v33  ;;  %6024 = vmatpush.bf16.msra.mxu1 %v8434_v56  ;;  %v9459_v56 = vld [vmem:[#allocation14 + $0x3dc] sm:$0xf] }
 0x956   :  { %v9831_v42 = vld [vmem:[#allocation14 + $0xf74] sm:$0xf0] }
 0x957   :  { %v8145_v28 = vld [vmem:[#allocation14 + $0x8d8] sm:$0xf]  ;;  %v8978_v3 = vor.u32 %v9831_v42, %v8977_v46  ;;  %6036 = vmatpush.bf16.msra.mxu2 %v8722_v60 }
 0x958   :  { %v9623_v61 = vld [vmem:[#allocation14 + $0x8f4] sm:$0xf0] }
 0x959   :  { %v8401_v36 = vld [vmem:[#allocation14 + $0xad8] sm:$0xf]  ;;  %v8146_v57 = vor.u32 %v9623_v61, %v8145_v28  ;;  %6049 = vmatpush.bf16.msra.mxu3 %v8978_v3  ;;  %v7507_v28 = vld [vmem:[#allocation14 + $0x3f8] sm:$0xf0] }
 0x95a   :  { %v9687_v32 = vld [vmem:[#allocation14 + $0xaf4] sm:$0xf0] }
 0x95b   :  { %v8689_v19 = vld [vmem:[#allocation14 + $0xd18] sm:$0xf]  ;;  %v8402_v30 = vor.u32 %v9687_v32, %v8401_v36  ;;  %6012 = vmatpush.bf16.msra.mxu0 %v8146_v57  ;;  %v9451_v57 = vld [vmem:[#allocation14 + $0x39c] sm:$0xf] }
 0x95c   :  { %v9759_v55 = vld [vmem:[#allocation14 + $0xd34] sm:$0xf0] }
 0x95d   :  { %v8945_v41 = vld [vmem:[#allocation14 + $0xf18] sm:$0xf]  ;;  %v8690_v20 = vor.u32 %v9759_v55, %v8689_v19  ;;  %6025 = vmatpush.bf16.msra.mxu1 %v8402_v30  ;;  %v7254_v19 = vor.u32 %v9395_v63, %v7251_v10  ;;  %v7510_v55 = vor.u32 %v9459_v56, %v7507_v28  ;;  %v5809_v63 = vpop.f32.mrf.mxu0  ;;  %v5822_v10 = vpop.f32.mrf.mxu1  ;;  %v7699_v56 = vld [vmem:[#allocation14 + $0x578] sm:$0xf0] }
 0x95e   :  { %v9823_v22 = vld [vmem:[#allocation14 + $0xf34] sm:$0xf0]  ;;  %v9571_v28 = vld [vmem:[#allocation14 + $0x75c] sm:$0xf] }
 0x95f   :  { %v8113_v45 = vld [vmem:[#allocation14 + $0x898] sm:$0xf]  ;;  %v8946_v48 = vor.u32 %v9823_v22, %v8945_v41  ;;  %6037 = vmatpush.bf16.msra.mxu2 %v8690_v20  ;;  %v9387_v41 = vld [vmem:[#allocation14 + $0x19c] sm:$0xf]  ;;  %v5798_v20 = vpop.f32.mrf.mxu3 }
 0x960   :  { %v9615_v54 = vld [vmem:[#allocation14 + $0x8b4] sm:$0xf0]  ;;  %v7219_v22 = vld [vmem:[#allocation14 + $0x1b8] sm:$0xf0] }
 0x961   :  { %v8369_v5 = vld [vmem:[#allocation14 + $0xa98] sm:$0xf]  ;;  %v8114_v6 = vor.u32 %v9615_v54, %v8113_v45  ;;  %6050 = vmatpush.bf16.msra.mxu3 %v8946_v48  ;;  %v5785_v54 = vpop.f32.mrf.mxu2  ;;  %v7475_v48 = vld [vmem:[#allocation14 + $0x3b8] sm:$0xf0] }
 0x962   :  { %v9679_v29 = vld [vmem:[#allocation14 + $0xab4] sm:$0xf0]  ;;  %v9563_v54 = vld [vmem:[#allocation14 + $0x71c] sm:$0xf] }
 0x963   :  { %v8657_v39 = vld [vmem:[#allocation14 + $0xcd8] sm:$0xf]  ;;  %v8370_v37 = vor.u32 %v9679_v29, %v8369_v5  ;;  %6013 = vmatpush.bf16.msra.mxu0 %v8114_v6  ;;  %v7222_v6 = vor.u32 %v9387_v41, %v7219_v22  ;;  %v9427_v22 = vld [vmem:[#allocation14 + $0x2dc] sm:$0xf] }
 0x964   :  { %v9751_v53 = vld [vmem:[#allocation14 + $0xcf4] sm:$0xf0]  ;;  %v7923_v20 = vld [vmem:[#allocation14 + $0x738] sm:$0xf0] }
 0x965   :  { %v8913_v11 = vld [vmem:[#allocation14 + $0xed8] sm:$0xf]  ;;  %v8658_v52 = vor.u32 %v9751_v53, %v8657_v39  ;;  %6026 = vmatpush.bf16.msra.mxu1 %v8370_v37  ;;  %v7763_v53 = vld [vmem:[#allocation14 + $0x5f8] sm:$0xf0]  ;;  %v7478_v37 = vor.u32 %v9451_v57, %v7475_v48 }
 0x966   :  { %v9815_v59 = vld [vmem:[#allocation14 + $0xef4] sm:$0xf0]  ;;  %v7379_v57 = vld [vmem:[#allocation14 + $0x2f8] sm:$0xf0] }
 0x967   :  { %v8081_v27 = vld [vmem:[#allocation14 + $0x858] sm:$0xf]  ;;  %v8914_v14 = vor.u32 %v9815_v59, %v8913_v11  ;;  %6038 = vmatpush.bf16.msra.mxu2 %v8658_v52  ;;  %v9587_v11 = vld [vmem:[#allocation14 + $0x7dc] sm:$0xf]  ;;  %v7382_v48 = vor.u32 %v9427_v22, %v7379_v57 }
 0x968   :  { %v9607_v8 = vld [vmem:[#allocation14 + $0x874] sm:$0xf0]  ;;  %v8019_v59 = vld [vmem:[#allocation14 + $0x7f8] sm:$0xf0] }
 0x969   :  { %v8337_v9 = vld [vmem:[#allocation14 + $0xa58] sm:$0xf]  ;;  %v8082_v18 = vor.u32 %v9607_v8, %v8081_v27  ;;  %6051 = vmatpush.bf16.msra.mxu3 %v8914_v14  ;;  %v9379_v52 = vld [vmem:[#allocation14 + $0x15c] sm:$0xf] }
 0x96a   :  { %v9671_v13 = vld [vmem:[#allocation14 + $0xa74] sm:$0xf0]  ;;  %v7187_v14 = vld [vmem:[#allocation14 + $0x178] sm:$0xf0] }
 0x96b   :  { %v8625_v25 = vld [vmem:[#allocation14 + $0xc98] sm:$0xf]  ;;  %v8338_v2 = vor.u32 %v9671_v13, %v8337_v9  ;;  %6014 = vmatpush.bf16.msra.mxu0 %v8082_v18  ;;  %v7766_v9 = vor.u32 %v9523_v12, %v7763_v53  ;;  %v8022_v13 = vor.u32 %v9587_v11, %v8019_v59  ;;  %v7190_v31 = vor.u32 %v9379_v52, %v7187_v14  ;;  %v9419_v12 = vld [vmem:[#allocation14 + $0x29c] sm:$0xf]  ;;  %v5811_v59 = vpop.f32.mrf.mxu0 }
 0x96c   :  { %v9743_v0 = vld [vmem:[#allocation14 + $0xcb4] sm:$0xf0]  ;;  %v7347_v53 = vld [vmem:[#allocation14 + $0x2b8] sm:$0xf0] }
 0x96d   :  { %v8881_v15 = vld [vmem:[#allocation14 + $0xe98] sm:$0xf]  ;;  %v8626_v4 = vor.u32 %v9743_v0, %v8625_v25  ;;  %6027 = vmatpush.bf16.msra.mxu1 %v8338_v2  ;;  %v9443_v25 = vld [vmem:[#allocation14 + $0x35c] sm:$0xf]  ;;  %v7350_v14 = vor.u32 %v9419_v12, %v7347_v53 }
 0x96e   :  { %v9807_v7 = vld [vmem:[#allocation14 + $0xeb4] sm:$0xf0]  ;;  %v7731_v0 = vld [vmem:[#allocation14 + $0x5b8] sm:$0xf0]  ;;  %v7446_v18 = vor.u32 %v9443_v25, %v7443_v62 }
 0x96f   :  { %v8049_v43 = vld [vmem:[#allocation14 + $0x818] sm:$0xf]  ;;  %v8882_v46 = vor.u32 %v9807_v7, %v8881_v15  ;;  %6039 = vmatpush.bf16.msra.mxu2 %v8626_v4  ;;  %v9579_v15 = vld [vmem:[#allocation14 + $0x79c] sm:$0xf] }
 0x970   :  { %v9599_v33 = vld [vmem:[#allocation14 + $0x834] sm:$0xf0]  ;;  %v7987_v7 = vld [vmem:[#allocation14 + $0x7b8] sm:$0xf0] }
 0x971   :  { %v8305_v50 = vld [vmem:[#allocation14 + $0xa18] sm:$0xf]  ;;  %v8050_v36 = vor.u32 %v9599_v33, %v8049_v43  ;;  %6052 = vmatpush.bf16.msra.mxu3 %v8882_v46  ;;  %v9371_v2 = vld [vmem:[#allocation14 + $0x11c] sm:$0xf]  ;;  %v7734_v33 = vor.u32 %v9515_v17, %v7731_v0 }
 0x972   :  { %v9663_v42 = vld [vmem:[#allocation14 + $0xa34] sm:$0xf0]  ;;  %v7155_v43 = vld [vmem:[#allocation14 + $0x138] sm:$0xf0] }
 0x973   :  { %v8593_v61 = vld [vmem:[#allocation14 + $0xc58] sm:$0xf]  ;;  %v8306_v32 = vor.u32 %v9663_v42, %v8305_v50  ;;  %6015 = vmatpush.bf16.msra.mxu0 %v8050_v36  ;;  %v7990_v50 = vor.u32 %v9579_v15, %v7987_v7  ;;  %v9435_v4 = vld [vmem:[#allocation14 + $0x31c] sm:$0xf]  ;;  %v5835_v7 = vpop.f32.mrf.mxu2 }
 0x974   :  { %v9735_v26 = vld [vmem:[#allocation14 + $0xc74] sm:$0xf0]  ;;  %v7411_v46 = vld [vmem:[#allocation14 + $0x338] sm:$0xf0] }
 0x975   :  { %v8849_v60 = vld [vmem:[#allocation14 + $0xe58] sm:$0xf]  ;;  %v8594_v30 = vor.u32 %v9735_v26, %v8593_v61  ;;  %6028 = vmatpush.bf16.msra.mxu1 %v8306_v32  ;;  %v9507_v42 = vld [vmem:[#allocation14 + $0x55c] sm:$0xf]  ;;  %v5810_v26 = vadd.f32 %v5809_v63, %v11630_v34 }
 0x976   :  { %v9799_v3 = vld [vmem:[#allocation14 + $0xe74] sm:$0xf0]  ;;  %6016 = vmatmul.bf16.vlgmr.msra.gmra.mxu0 %v11546_v44  ;;  %v7955_v61 = vld [vmem:[#allocation14 + $0x778] sm:$0xf0] }
 0x977   :  { %v8850_v45 = vor.u32 %v9799_v3, %v8849_v60  ;;  %v8561_v5 = vld [vmem:[#allocation14 + $0xc18] sm:$0xf]  ;;  %6060 = vmatpush.bf16.msrb.mxu0 %v7254_v19  ;;  %6040 = vmatpush.bf16.msra.mxu2 %v8594_v30  ;;  %v7158_v60 = vor.u32 %v9371_v2, %v7155_v43  ;;  %v7414_v3 = vor.u32 %v9435_v4, %v7411_v46  ;;  %v9363_v36 = vld [vmem:[#allocation14 + $0xdc] sm:$0xf] }
 0x978   :  { %v9727_v29 = vld [vmem:[#allocation14 + $0xc34] sm:$0xf0]  ;;  %6029 = vmatmul.bf16.vlgmr.msra.gmra.mxu1 %v11548_v49  ;;  %v7123_v32 = vld [vmem:[#allocation14 + $0xf8] sm:$0xf0]  ;;  %v5823_v19 = vadd.f32 %v5822_v10, %v5810_v26  ;;  %v7958_v41 = vor.u32 %v9571_v28, %v7955_v61 }
 0x979   :  { %v8817_v39 = vld [vmem:[#allocation14 + $0xe18] sm:$0xf]  ;;  %6073 = vmatpush.bf16.msrb.mxu1 %v7510_v55  ;;  %6053 = vmatpush.bf16.msra.mxu3 %v8850_v45  ;;  %v8562_v27 = vor.u32 %v9727_v29, %v8561_v5  ;;  %v7702_v55 = vor.u32 %v9507_v42, %v7699_v56  ;;  %v9499_v30 = vld [vmem:[#allocation14 + $0x51c] sm:$0xf]  ;;  %v7126_v34 = vor.u32 %v9363_v36, %v7123_v32 }
 0x97a   :  { %v9791_v38 = vld [vmem:[#allocation14 + $0xe34] sm:$0xf0]  ;;  %v7667_v45 = vld [vmem:[#allocation14 + $0x538] sm:$0xf0] }
 0x97b   :  { %v8818_v8 = vor.u32 %v9791_v38, %v8817_v39  ;;  %6061 = vmatpush.bf16.msrb.mxu0 %v7222_v6  ;;  %6041 = vmatpush.bf16.msra.mxu2 %v8562_v27  ;;  %v9355_v5 = vld [vmem:[#allocation14 + $0x9c] sm:$0xf]  ;;  %v7670_v39 = vor.u32 %v9499_v30, %v7667_v45  ;;  %v7926_v38 = vor.u32 %v9563_v54, %v7923_v20  ;;  %v5824_v6 = vpop.f32.mrf.mxu1 }
 0x97c   :  { %v7091_v29 = vld [vmem:[#allocation14 + $0xb8] sm:$0xf0] }
 0x97d   :  { %6074 = vmatpush.bf16.msrb.mxu1 %v7478_v37  ;;  %6054 = vmatpush.bf16.msra.mxu3 %v8818_v8  ;;  %v9491_v11 = vld [vmem:[#allocation14 + $0x4dc] sm:$0xf]  ;;  %v7094_v52 = vor.u32 %v9355_v5, %v7091_v29  ;;  %v5837_v29 = vpop.f32.mrf.mxu2 }
 0x97e   :  { %6042 = vmatmul.bf16.vlgmr.msra.gmra.mxu2 %v11554_v16  ;;  %v7635_v37 = vld [vmem:[#allocation14 + $0x4f8] sm:$0xf0] }
 0x97f   :  { %6086 = vmatpush.bf16.msrb.mxu2 %v7766_v9  ;;  %6062 = vmatpush.bf16.msrb.mxu0 %v7190_v31  ;;  %v9555_v27 = vld [vmem:[#allocation14 + $0x6dc] sm:$0xf]  ;;  %v7638_v25 = vor.u32 %v9491_v11, %v7635_v37  ;;  %v5848_v31 = vpop.f32.mrf.mxu3 }
 0x980   :  { %6055 = vmatmul.bf16.vlgmr.msra.gmra.mxu3 %v11556_v24  ;;  %v7891_v8 = vld [vmem:[#allocation14 + $0x6f8] sm:$0xf0] }
 0x981   :  { %6099 = vmatpush.bf16.msrb.mxu3 %v8022_v13  ;;  %6075 = vmatpush.bf16.msrb.mxu1 %v7446_v18  ;;  %v9347_v9 = vld [vmem:[#allocation14 + $0x5c] sm:$0xf]  ;;  %v7894_v62 = vor.u32 %v9555_v27, %v7891_v8 }
 0x982   :  { %v7059_v13 = vld [vmem:[#allocation14 + $0x78] sm:$0xf0] }
 0x983   :  { %6087 = vmatpush.bf16.msrb.mxu2 %v7734_v33  ;;  %6063 = vmatpush.bf16.msrb.mxu0 %v7158_v60  ;;  %v9411_v17 = vld [vmem:[#allocation14 + $0x25c] sm:$0xf]  ;;  %v5836_v33 = vadd.f32 %v5835_v7, %v5823_v19 }
 0x984   :  { %v7315_v0 = vld [vmem:[#allocation14 + $0x278] sm:$0xf0] }
 0x985   :  { %6100 = vmatpush.bf16.msrb.mxu3 %v7990_v50  ;;  %6076 = vmatpush.bf16.msrb.mxu1 %v7414_v3  ;;  %v9483_v15 = vld [vmem:[#allocation14 + $0x49c] sm:$0xf]  ;;  %v7062_v50 = vor.u32 %v9347_v9, %v7059_v13  ;;  %v7318_v4 = vor.u32 %v9411_v17, %v7315_v0  ;;  %v11637_v10 = vadd.f32 %v5848_v31, %v5836_v33  ;;  %v11641_v33 = vld [vmem:[#allocation15] sm:$0xff] }
 0x986   :  { %v7603_v18 = vld [vmem:[#allocation14 + $0x4b8] sm:$0xf0] }
 0x987   :  { %6088 = vmatpush.bf16.msrb.mxu2 %v7702_v55  ;;  %6064 = vmatpush.bf16.msrb.mxu0 %v7126_v34  ;;  %v9547_v2 = vld [vmem:[#allocation14 + $0x69c] sm:$0xf]  ;;  %v7606_v56 = vor.u32 %v9483_v15, %v7603_v18 }
 0x988   :  { %v7859_v43 = vld [vmem:[#allocation14 + $0x6b8] sm:$0xf0] }
 0x989   :  { %6101 = vmatpush.bf16.msrb.mxu3 %v7958_v41  ;;  %6077 = vmatpush.bf16.msrb.mxu1 %v7382_v48  ;;  %v9339_v46 = vld [vmem:[#allocation14 + $0x1c] sm:$0xf]  ;;  %v7862_v28 = vor.u32 %v9547_v2, %v7859_v43 }
 0x98a   :  { %v7027_v42 = vld [vmem:[#allocation14 + $0x38] sm:$0xf0] }
 0x98b   :  { %6089 = vmatpush.bf16.msrb.mxu2 %v7670_v39  ;;  %6065 = vmatpush.bf16.msrb.mxu0 %v7094_v52  ;;  %v9403_v63 = vld [vmem:[#allocation14 + $0x21c] sm:$0xf]  ;;  %v7030_v22 = vor.u32 %v9339_v46, %v7027_v42  ;;  %v5850_v39 = vpop.f32.mrf.mxu3 }
 0x98c   :  { %v7283_v61 = vld [vmem:[#allocation14 + $0x238] sm:$0xf0] }
 0x98d   :  { %6102 = vmatpush.bf16.msrb.mxu3 %v7926_v38  ;;  %6078 = vmatpush.bf16.msrb.mxu1 %v7350_v14  ;;  %v9651_v26 = vld [vmem:[#allocation14 + $0x9dc] sm:$0xf]  ;;  %v7286_v57 = vor.u32 %v9403_v63, %v7283_v61 }
 0x98e   :  { %v8275_v60 = vld [vmem:[#allocation14 + $0x9f8] sm:$0xf0] }
 0x98f   :  { %6090 = vmatpush.bf16.msrb.mxu2 %v7638_v25  ;;  %v9715_v3 = vld [vmem:[#allocation14 + $0xbdc] sm:$0xf]  ;;  %6066 = vmatpush.bf16.msrb.mxu0 %v7062_v50  ;;  %v8278_v30 = vor.u32 %v9651_v26, %v8275_v60  ;;  %v2761_v50 = vperm.slane %v11641_v33, 5  ;;  %v5861_v26 = vpop.f32.mrf.mxu0  ;;  %v5874_v60 = vpop.f32.mrf.mxu1 }
 0x990   :  { %v8531_v36 = vld [vmem:[#allocation14 + $0xbf8] sm:$0xf0] }
 0x991   :  { %6103 = vmatpush.bf16.msrb.mxu3 %v7894_v62  ;;  %v9475_v32 = vld [vmem:[#allocation14 + $0x45c] sm:$0xf]  ;;  %6079 = vmatpush.bf16.msrb.mxu1 %v7318_v4  ;;  %v8534_v45 = vor.u32 %v9715_v3, %v8531_v36 }
 0x992   :  { %v7571_v19 = vld [vmem:[#allocation14 + $0x478] sm:$0xf0] }
 0x993   :  { %v9539_v55 = vld [vmem:[#allocation14 + $0x65c] sm:$0xf]  ;;  %6091 = vmatpush.bf16.msrb.mxu2 %v7606_v56  ;;  %v7574_v48 = vor.u32 %v9475_v32, %v7571_v19  ;;  %6067 = vmatpush.bf16.msrb.mxu0 %v7030_v22  ;;  %v5862_v19 = vadd.f32 %v5861_v26, %v2761_v50 }
 0x994   :  { %v7827_v41 = vld [vmem:[#allocation14 + $0x678] sm:$0xf0] }
 0x995   :  { %6104 = vmatpush.bf16.msrb.mxu3 %v7862_v28  ;;  %v9643_v54 = vld [vmem:[#allocation14 + $0x99c] sm:$0xf]  ;;  %v7830_v5 = vor.u32 %v9539_v55, %v7827_v41  ;;  %6080 = vmatpush.bf16.msrb.mxu1 %v7286_v57 }
 0x996   :  { %v8243_v20 = vld [vmem:[#allocation14 + $0x9b8] sm:$0xf0]  ;;  %6068 = vmatmul.bf16.vlgmr.msrb.gmra.mxu0 %v11526_v21 }
 0x997   :  { %v9707_v34 = vld [vmem:[#allocation14 + $0xb9c] sm:$0xf]  ;;  %6112 = vmatpush.bf16.msra.mxu0 %v8278_v30  ;;  %v8246_v52 = vor.u32 %v9643_v54, %v8243_v20  ;;  %6092 = vmatpush.bf16.msrb.mxu2 %v7574_v48  ;;  %v11646_v30 = vadd.f32 %v5874_v60, %v5862_v19 }
 0x998   :  { %v8499_v38 = vld [vmem:[#allocation14 + $0xbb8] sm:$0xf0]  ;;  %6081 = vmatmul.bf16.vlgmr.msrb.gmra.mxu1 %v11528_v47 }
 0x999   :  { %v9467_v12 = vld [vmem:[#allocation14 + $0x41c] sm:$0xf]  ;;  %6125 = vmatpush.bf16.msra.mxu1 %v8534_v45  ;;  %v8502_v14 = vor.u32 %v9707_v34, %v8499_v38  ;;  %6105 = vmatpush.bf16.msrb.mxu3 %v7830_v5 }
 0x99a   :  { %v7539_v53 = vld [vmem:[#allocation14 + $0x438] sm:$0xf0] }
 0x99b   :  { %v9531_v11 = vld [vmem:[#allocation14 + $0x61c] sm:$0xf]  ;;  %v7542_v9 = vor.u32 %v9467_v12, %v7539_v53  ;;  %6113 = vmatpush.bf16.msra.mxu0 %v8246_v52 }
 0x99c   :  { %v7795_v59 = vld [vmem:[#allocation14 + $0x638] sm:$0xf0] }
 0x99d   :  { %v9779_v6 = vld [vmem:[#allocation14 + $0xddc] sm:$0xf]  ;;  %v7798_v13 = vor.u32 %v9531_v11, %v7795_v59  ;;  %6126 = vmatpush.bf16.msra.mxu1 %v8502_v14  ;;  %6093 = vmatpush.bf16.msrb.mxu2 %v7542_v9 }
 0x99e   :  { %v8787_v37 = vld [vmem:[#allocation14 + $0xdf8] sm:$0xf0] }
 0x99f   :  { %v9843_v27 = vld [vmem:[#allocation14 + $0xfdc] sm:$0xf]  ;;  %v8790_v17 = vor.u32 %v9779_v6, %v8787_v37  ;;  %6106 = vmatpush.bf16.msrb.mxu3 %v7798_v13 }
 0x9a0   :  { %v9043_v8 = vld [vmem:[#allocation14 + $0xff8] sm:$0xf0]  ;;  %6094 = vmatmul.bf16.vlgmr.msrb.gmra.mxu2 %v11535_v35 }
 0x9a1   :  { %v9635_v25 = vld [vmem:[#allocation14 + $0x95c] sm:$0xf]  ;;  %v9046_v0 = vor.u32 %v9843_v27, %v9043_v8  ;;  %6138 = vmatpush.bf16.msra.mxu2 %v8790_v17  ;;  %v5863_v27 = vpop.f32.mrf.mxu0  ;;  %v5876_v8 = vpop.f32.mrf.mxu1 }
 0x9a2   :  { %v8211_v62 = vld [vmem:[#allocation14 + $0x978] sm:$0xf0]  ;;  %6107 = vmatmul.bf16.vlgmr.msrb.gmra.mxu3 %v11537_v51  ;;  %v9852_v27 = vld [vmem:[%s11884_s11 + $0x20] sm:$0xff] }
 0x9a3   :  { %v9699_v15 = vld [vmem:[#allocation14 + $0xb5c] sm:$0xf]  ;;  %v8214_v4 = vor.u32 %v9635_v25, %v8211_v62  ;;  %6151 = vmatpush.bf16.msra.mxu3 %v9046_v0  ;;  %v9860_v8 = vld [vmem:[%s11884_s11 + $0x60] sm:$0xff] }
 0x9a4   :  { %v8467_v7 = vld [vmem:[#allocation14 + $0xb78] sm:$0xf0] }
 0x9a5   :  { %v9771_v31 = vld [vmem:[#allocation14 + $0xd9c] sm:$0xf]  ;;  %v8470_v21 = vor.u32 %v9699_v15, %v8467_v7  ;;  %6114 = vmatpush.bf16.msra.mxu0 %v8214_v4 }
 0x9a6   :  { %v8755_v18 = vld [vmem:[#allocation14 + $0xdb8] sm:$0xf0] }
 0x9a7   :  { %v9835_v2 = vld [vmem:[#allocation14 + $0xf9c] sm:$0xf]  ;;  %v8758_v42 = vor.u32 %v9771_v31, %v8755_v18  ;;  %6127 = vmatpush.bf16.msra.mxu1 %v8470_v21 }
 0x9a8   :  { %v9011_v43 = vld [vmem:[#allocation14 + $0xfb8] sm:$0xf0] }
 0x9a9   :  { %v9627_v46 = vld [vmem:[#allocation14 + $0x91c] sm:$0xf]  ;;  %v9014_v63 = vor.u32 %v9835_v2, %v9011_v43  ;;  %6139 = vmatpush.bf16.msra.mxu2 %v8758_v42  ;;  %v11648_v2 = vpop.f32.mrf.mxu2  ;;  %v11650_v43 = vpop.f32.mrf.mxu3 }
 0x9aa   :  { %v8179_v47 = vld [vmem:[#allocation14 + $0x938] sm:$0xf0] }
 0x9ab   :  { %v9691_v56 = vld [vmem:[#allocation14 + $0xb1c] sm:$0xf]  ;;  %v8182_v55 = vor.u32 %v9627_v46, %v8179_v47  ;;  %6152 = vmatpush.bf16.msra.mxu3 %v9014_v63 }
 0x9ac   :  { %v8435_v28 = vld [vmem:[#allocation14 + $0xb38] sm:$0xf0] }
 0x9ad   :  { %v9763_v61 = vld [vmem:[#allocation14 + $0xd5c] sm:$0xf]  ;;  %v8438_v41 = vor.u32 %v9691_v56, %v8435_v28  ;;  %6115 = vmatpush.bf16.msra.mxu0 %v8182_v55 }
 0x9ae   :  { %v8723_v3 = vld [vmem:[#allocation14 + $0xd78] sm:$0xf0] }
 0x9af   :  { %v9827_v36 = vld [vmem:[#allocation14 + $0xf5c] sm:$0xf]  ;;  %v8726_v45 = vor.u32 %v9763_v61, %v8723_v3  ;;  %6128 = vmatpush.bf16.msra.mxu1 %v8438_v41 }
 0x9b0   :  { %v8979_v32 = vld [vmem:[#allocation14 + $0xf78] sm:$0xf0] }
 0x9b1   :  { %v9619_v22 = vld [vmem:[#allocation14 + $0x8dc] sm:$0xf]  ;;  %v8982_v54 = vor.u32 %v9827_v36, %v8979_v32  ;;  %6140 = vmatpush.bf16.msra.mxu2 %v8726_v45 }
 0x9b2   :  { %v8147_v57 = vld [vmem:[#allocation14 + $0x8f8] sm:$0xf0] }
 0x9b3   :  { %v9683_v20 = vld [vmem:[#allocation14 + $0xadc] sm:$0xf]  ;;  %v8150_v51 = vor.u32 %v9619_v22, %v8147_v57  ;;  %6153 = vmatpush.bf16.msra.mxu3 %v8982_v54  ;;  %v5889_v54 = vpop.f32.mrf.mxu2 }
 0x9b4   :  { %v8403_v34 = vld [vmem:[#allocation14 + $0xaf8] sm:$0xf0]  ;;  %v9885_v54 = vld [vmem:[%s11884_s11 + $0x128] sm:$0xff] }
 0x9b5   :  { %v9755_v48 = vld [vmem:[#allocation14 + $0xd1c] sm:$0xf]  ;;  %v8406_v39 = vor.u32 %v9683_v20, %v8403_v34  ;;  %6116 = vmatpush.bf16.msra.mxu0 %v8150_v51  ;;  %v5902_v20 = vpop.f32.mrf.mxu3 }
 0x9b6   :  { %v8691_v5 = vld [vmem:[#allocation14 + $0xd38] sm:$0xf0] }
 0x9b7   :  { %v9819_v35 = vld [vmem:[#allocation14 + $0xf1c] sm:$0xf]  ;;  %v8694_v53 = vor.u32 %v9755_v48, %v8691_v5  ;;  %6129 = vmatpush.bf16.msra.mxu1 %v8406_v39 }
 0x9b8   :  { %v8947_v29 = vld [vmem:[#allocation14 + $0xf38] sm:$0xf0] }
 0x9b9   :  { %v9611_v38 = vld [vmem:[#allocation14 + $0x89c] sm:$0xf]  ;;  %v8950_v11 = vor.u32 %v9819_v35, %v8947_v29  ;;  %6141 = vmatpush.bf16.msra.mxu2 %v8694_v53 }
 0x9ba   :  { %v8115_v12 = vld [vmem:[#allocation14 + $0x8b8] sm:$0xf0] }
 0x9bb   :  { %v9675_v59 = vld [vmem:[#allocation14 + $0xa9c] sm:$0xf]  ;;  %v8118_v13 = vor.u32 %v9611_v38, %v8115_v12  ;;  %6154 = vmatpush.bf16.msra.mxu3 %v8950_v11  ;;  %v9853_v11 = vld [vmem:[%s11884_s11 + $0x28] sm:$0xff] }
 0x9bc   :  { %v8371_v6 = vld [vmem:[#allocation14 + $0xab8] sm:$0xf0] }
 0x9bd   :  { %v9747_v37 = vld [vmem:[#allocation14 + $0xcdc] sm:$0xf]  ;;  %v8374_v25 = vor.u32 %v9675_v59, %v8371_v6  ;;  %6117 = vmatpush.bf16.msra.mxu0 %v8118_v13  ;;  %v11684_v6 = vpop.f32.mrf.mxu0  ;;  %v9876_v13 = vld [vmem:[%s11884_s11 + $0xe0] sm:$0xff] }
 0x9be   :  { %v8659_v52 = vld [vmem:[#allocation14 + $0xcf8] sm:$0xf0] }
 0x9bf   :  { %v9811_v14 = vld [vmem:[#allocation14 + $0xedc] sm:$0xf]  ;;  %v8662_v0 = vor.u32 %v9747_v37, %v8659_v52  ;;  %6130 = vmatpush.bf16.msra.mxu1 %v8374_v25  ;;  %v11686_v37 = vpop.f32.mrf.mxu1  ;;  %v9869_v52 = vld [vmem:[%s11884_s11 + $0xa8] sm:$0xff] }
 0x9c0   :  { %v8915_v9 = vld [vmem:[#allocation14 + $0xef8] sm:$0xf0] }
 0x9c1   :  { %v9603_v62 = vld [vmem:[#allocation14 + $0x85c] sm:$0xf]  ;;  %v8918_v15 = vor.u32 %v9811_v14, %v8915_v9  ;;  %6142 = vmatpush.bf16.msra.mxu2 %v8662_v0  ;;  %v9868_v9 = vld [vmem:[%s11884_s11 + $0xa0] sm:$0xff] }
 0x9c2   :  { %v8083_v17 = vld [vmem:[#allocation14 + $0x878] sm:$0xf0] }
 0x9c3   :  { %v9667_v7 = vld [vmem:[#allocation14 + $0xa5c] sm:$0xf]  ;;  %v8086_v46 = vor.u32 %v9603_v62, %v8083_v17  ;;  %6155 = vmatpush.bf16.msra.mxu3 %v8918_v15 }
 0x9c4   :  { %v8339_v31 = vld [vmem:[#allocation14 + $0xa78] sm:$0xf0] }
 0x9c5   :  { %v9739_v18 = vld [vmem:[#allocation14 + $0xc9c] sm:$0xf]  ;;  %v8342_v47 = vor.u32 %v9667_v7, %v8339_v31  ;;  %6118 = vmatpush.bf16.msra.mxu0 %v8086_v46  ;;  %v5915_v25 = vpop.f32.mrf.mxu0  ;;  %v11726_v31 = vpop.f32.mrf.mxu2 }
 0x9c6   :  { %v8627_v50 = vld [vmem:[#allocation14 + $0xcb8] sm:$0xf0]  ;;  %v6168_v25 = vmax.f32 %v11637_v10, 0.0 }
 0x9c7   :  { %v9803_v4 = vld [vmem:[#allocation14 + $0xe9c] sm:$0xf]  ;;  %v8630_v63 = vor.u32 %v9739_v18, %v8627_v50  ;;  %6131 = vmatpush.bf16.msra.mxu1 %v8342_v47  ;;  %v5928_v62 = vpop.f32.mrf.mxu1  ;;  %v11728_v18 = vpop.f32.mrf.mxu3  ;;  %v9849_v50 = vld [vmem:[%s11884_s11 + $0x8] sm:$0xff]  ;;  %v9848_v47 = vld [vmem:[%s11884_s11] sm:$0xff] }
 0x9c8   :  { %v8883_v21 = vld [vmem:[#allocation14 + $0xeb8] sm:$0xf0] }
 0x9c9   :  { %v9595_v42 = vld [vmem:[#allocation14 + $0x81c] sm:$0xf]  ;;  %v8886_v56 = vor.u32 %v9803_v4, %v8883_v21  ;;  %6143 = vmatpush.bf16.msra.mxu2 %v8630_v63  ;;  %v9857_v4 = vld [vmem:[%s11884_s11 + $0x48] sm:$0xff]  ;;  %v6164_v63 = vmax.f32 %v11582_v23, 0.0 }
 0x9ca   :  { %v8051_v28 = vld [vmem:[#allocation14 + $0x838] sm:$0xf0]  ;;  %v9873_v23 = vld [vmem:[%s11884_s11 + $0xc8] sm:$0xff] }
 0x9cb   :  { %v9659_v61 = vld [vmem:[#allocation14 + $0xa1c] sm:$0xf]  ;;  %v8054_v19 = vor.u32 %v9595_v42, %v8051_v28  ;;  %6156 = vmatpush.bf16.msra.mxu3 %v8886_v56  ;;  %v9856_v42 = vld [vmem:[%s11884_s11 + $0x40] sm:$0xff]  ;;  %v6165_v56 = vmax.f32 %v11593_v1, 0.0 }
 0x9cc   :  { %v8307_v26 = vld [vmem:[#allocation14 + $0xa38] sm:$0xf0] }
 0x9cd   :  { %v9731_v60 = vld [vmem:[#allocation14 + $0xc5c] sm:$0xf]  ;;  %v8310_v55 = vor.u32 %v9659_v61, %v8307_v26  ;;  %6119 = vmatpush.bf16.msra.mxu0 %v8054_v19  ;;  %v9865_v26 = vld [vmem:[%s11884_s11 + $0x88] sm:$0xff] }
 0x9ce   :  { %v8595_v3 = vld [vmem:[#allocation14 + $0xc78] sm:$0xf0] }
 0x9cf   :  { %v9795_v36 = vld [vmem:[#allocation14 + $0xe5c] sm:$0xf]  ;;  %v8598_v57 = vor.u32 %v9731_v60, %v8595_v3  ;;  %6132 = vmatpush.bf16.msra.mxu1 %v8310_v55  ;;  %v5941_v60 = vpop.f32.mrf.mxu2  ;;  %v5954_v1 = vpop.f32.mrf.mxu3  ;;  %v6172_v3 = vpack.c.bf16 %v6164_v63, %v6164_v63  ;;  %v9864_v55 = vld [vmem:[%s11884_s11 + $0x80] sm:$0xff] }
 0x9d0   :  { %v8851_v32 = vld [vmem:[#allocation14 + $0xe78] sm:$0xf0]  ;;  %6120 = vmatmul.bf16.vlgmr.msra.gmra.mxu0 %v11546_v44  ;;  %v9861_v44 = vld [vmem:[%s11884_s11 + $0x68] sm:$0xff] }
 0x9d1   :  { %v9855_v41 = vld [vmem:[%s11884_s11 + $0x38] sm:$0xff]  ;;  %v8854_v45 = vor.u32 %v9795_v36, %v8851_v32  ;;  %v9854_v29 = vld [vmem:[%s11884_s11 + $0x30] sm:$0xff]  ;;  %6144 = vmatpush.bf16.msra.mxu2 %v8598_v57  ;;  %v6173_v36 = vpack.c.bf16 %v6165_v56, %v6165_v56  ;;  %v6167_v57 = vmax.f32 %v11623_v58, 0.0 }
 0x9d2   :  { %v9863_v22 = vld [vmem:[%s11884_s11 + $0x78] sm:$0xff]  ;;  %6696 = vmatpush.bf16.msrb.mxu0 %v9855_v41  ;;  %v9862_v51 = vld [vmem:[%s11884_s11 + $0x70] sm:$0xff]  ;;  %6133 = vmatmul.bf16.vlgmr.msra.gmra.mxu1 %v11548_v49  ;;  %v9872_v41 = vld [vmem:[%s11884_s11 + $0xc0] sm:$0xff] }
 0x9d3   :  { %v9723_v34 = vld [vmem:[#allocation14 + $0xc1c] sm:$0xf]  ;;  %6709 = vmatpush.bf16.msrb.mxu1 %v9863_v22  ;;  %6157 = vmatpush.bf16.msra.mxu3 %v8854_v45  ;;  %v6166_v22 = vmax.f32 %v11607_v40, 0.0  ;;  %v9893_v40 = vld [vmem:[%s11884_s11 + $0x168] sm:$0xff]  ;;  %v6175_v58 = vpack.c.bf16 %v6167_v57, %v6167_v57 }
 0x9d4   :  { %v8563_v48 = vld [vmem:[#allocation14 + $0xc38] sm:$0xf0] }
 0x9d5   :  { %v9787_v5 = vld [vmem:[#allocation14 + $0xe1c] sm:$0xf]  ;;  %v8566_v39 = vor.u32 %v9723_v34, %v8563_v48  ;;  %v6174_v20 = vpack.c.bf16 %v6166_v22, %v6166_v22  ;;  %v5888_v34 = vadd.f32 %v11648_v2, %v11646_v30  ;;  %v9901_v2 = vld [vmem:[%s11884_s11 + $0x1a8] sm:$0xff] }
 0x9d6   :  { %v8819_v35 = vld [vmem:[#allocation14 + $0xe38] sm:$0xf0]  ;;  %6697 = vmatpush.bf16.msrb.mxu0 %v9854_v29  ;;  %v9884_v29 = vld [vmem:[%s11884_s11 + $0x120] sm:$0xff]  ;;  %v9909_v22 = vld [vmem:[%s11884_s11 + $0x1e8] sm:$0xff] }
 0x9d7   :  { %v8822_v38 = vor.u32 %v9787_v5, %v8819_v35  ;;  %v9871_v12 = vld [vmem:[%s11884_s11 + $0xb8] sm:$0xff]  ;;  %6710 = vmatpush.bf16.msrb.mxu1 %v9862_v51  ;;  %6145 = vmatpush.bf16.msra.mxu2 %v8566_v39  ;;  %v9870_v49 = vld [vmem:[%s11884_s11 + $0xb0] sm:$0xff]  ;;  %v5965_v5 = vpop.f32.mrf.mxu0  ;;  %v5978_v35 = vpop.f32.mrf.mxu1  ;;  %v9892_v51 = vld [vmem:[%s11884_s11 + $0x160] sm:$0xff]  ;;  %v5901_v30 = vadd.f32 %v11650_v43, %v5888_v34 }
 0x9d8   :  { %v9879_v53 = vld [vmem:[%s11884_s11 + $0xf8] sm:$0xff]  ;;  %v9878_v59 = vld [vmem:[%s11884_s11 + $0xf0] sm:$0xff]  ;;  %v9900_v43 = vld [vmem:[%s11884_s11 + $0x1a0] sm:$0xff] }
 0x9d9   :  { %6158 = vmatpush.bf16.msra.mxu3 %v8822_v38  ;;  %v9859_v14 = vld [vmem:[%s11884_s11 + $0x58] sm:$0xff]  ;;  %v9850_v17 = vld [vmem:[%s11884_s11 + $0x10] sm:$0xff]  ;;  %v5914_v39 = vadd.f32 %v11684_v6, %v5901_v30 }
 0x9da   :  { %6146 = vmatmul.bf16.vlgmr.msra.gmra.mxu2 %v11554_v16  ;;  %6698 = vmatpush.bf16.msrb.mxu0 %v9853_v11  ;;  %v9877_v16 = vld [vmem:[%s11884_s11 + $0xe8] sm:$0xff]  ;;  %v9858_v0 = vld [vmem:[%s11884_s11 + $0x50] sm:$0xff]  ;;  %v9867_v15 = vld [vmem:[%s11884_s11 + $0x98] sm:$0xff] }
 0x9db   :  { %6722 = vmatpush.bf16.msrb.mxu2 %v9871_v12  ;;  %6711 = vmatpush.bf16.msrb.mxu1 %v9861_v44  ;;  %v9875_v7 = vld [vmem:[%s11884_s11 + $0xd8] sm:$0xff]  ;;  %v9866_v21 = vld [vmem:[%s11884_s11 + $0x90] sm:$0xff]  ;;  %v5927_v44 = vadd.f32 %v11686_v37, %v5914_v39  ;;  %v9881_v37 = vld [vmem:[%s11884_s11 + $0x108] sm:$0xff] }
 0x9dc   :  { %6159 = vmatmul.bf16.vlgmr.msra.gmra.mxu3 %v11556_v24  ;;  %v9851_v24 = vld [vmem:[%s11884_s11 + $0x18] sm:$0xff]  ;;  %v9874_v46 = vld [vmem:[%s11884_s11 + $0xd0] sm:$0xff] }
 0x9dd   :  { %6735 = vmatpush.bf16.msrb.mxu3 %v9879_v53  ;;  %v9887_v28 = vld [vmem:[%s11884_s11 + $0x138] sm:$0xff]  ;;  %v9886_v32 = vld [vmem:[%s11884_s11 + $0x130] sm:$0xff]  ;;  %v5940_v6 = vadd.f32 %v11726_v31, %v5927_v44  ;;  %v6176_v31 = vpack.c.bf16 %v6168_v25, %v6168_v25 }
 0x9de   :  { %6699 = vmatpush.bf16.msrb.mxu0 %v9852_v27  ;;  %v9895_v61 = vld [vmem:[%s11884_s11 + $0x178] sm:$0xff]  ;;  %v9894_v19 = vld [vmem:[%s11884_s11 + $0x170] sm:$0xff] }
 0x9df   :  { %6723 = vmatpush.bf16.msrb.mxu2 %v9870_v49  ;;  %6712 = vmatpush.bf16.msrb.mxu1 %v9860_v8  ;;  %v9903_v45 = vld [vmem:[%s11884_s11 + $0x1b8] sm:$0xff]  ;;  %v9902_v48 = vld [vmem:[%s11884_s11 + $0x1b0] sm:$0xff]  ;;  %v5967_v53 = vpop.f32.mrf.mxu0  ;;  %v5980_v11 = vpop.f32.mrf.mxu1 }
 0x9e0   :  { %v9883_v38 = vld [vmem:[%s11884_s11 + $0x118] sm:$0xff]  ;;  %v9882_v49 = vld [vmem:[%s11884_s11 + $0x110] sm:$0xff]  ;;  %v5991_v8 = vpop.f32.mrf.mxu2 }
 0x9e1   :  { %6736 = vmatpush.bf16.msrb.mxu3 %v9878_v59  ;;  %v9891_v12 = vld [vmem:[%s11884_s11 + $0x158] sm:$0xff]  ;;  %v9890_v59 = vld [vmem:[%s11884_s11 + $0x150] sm:$0xff] }
 0x9e2   :  { %6700 = vmatpush.bf16.msrb.mxu0 %v9851_v24  ;;  %v9899_v27 = vld [vmem:[%s11884_s11 + $0x198] sm:$0xff]  ;;  %v5953_v24 = vadd.f32 %v11728_v18, %v5940_v6 }
 0x9e3   :  { %6724 = vmatpush.bf16.msrb.mxu2 %v9869_v52  ;;  %6713 = vmatpush.bf16.msrb.mxu1 %v9859_v14  ;;  %v6004_v52 = vpop.f32.mrf.mxu3  ;;  %v9898_v14 = vld [vmem:[%s11884_s11 + $0x190] sm:$0xff]  ;;  %v9911_v1 = vld [vmem:[%s11884_s11 + $0x1f8] sm:$0xff] }
 0x9e4   :  { %v6169_v62 = vmax.f32 %v5953_v24, 0.0 }
 0x9e5   :  { %6737 = vmatpush.bf16.msrb.mxu3 %v9877_v16  ;;  %v9889_v16 = vld [vmem:[%s11884_s11 + $0x148] sm:$0xff] }
 0x9e6   :  { %6701 = vmatpush.bf16.msrb.mxu0 %v9850_v17  ;;  %v9897_v17 = vld [vmem:[%s11884_s11 + $0x188] sm:$0xff]  ;;  %v6177_v18 = vpack.c.bf16 %v6169_v62, %v6169_v62 }
 0x9e7   :  { %6725 = vmatpush.bf16.msrb.mxu2 %v9868_v9  ;;  %6714 = vmatpush.bf16.msrb.mxu1 %v9858_v0  ;;  %v9880_v9 = vld [vmem:[%s11884_s11 + $0x100] sm:$0xff] }
 0x9e8   :  { %v5993_v0 = vpop.f32.mrf.mxu2 }
 0x9e9   :  { %6738 = vmatpush.bf16.msrb.mxu3 %v9876_v13  ;;  %v9888_v13 = vld [vmem:[%s11884_s11 + $0x140] sm:$0xff] }
 0x9ea   :  { %6702 = vmatpush.bf16.msrb.mxu0 %v9849_v50  ;;  %v9896_v50 = vld [vmem:[%s11884_s11 + $0x180] sm:$0xff] }
 0x9eb   :  { %6726 = vmatpush.bf16.msrb.mxu2 %v9867_v15  ;;  %6715 = vmatpush.bf16.msrb.mxu1 %v9857_v4  ;;  %v6006_v15 = vpop.f32.mrf.mxu3 }
 0x9ed   :  { %6739 = vmatpush.bf16.msrb.mxu3 %v9875_v7  ;;  %v2762_v7 = vperm.slane %v11641_v33, 6 }
 0x9ee   :  { %6703 = vmatpush.bf16.msrb.mxu0 %v9848_v47 }
 0x9ef   :  { %6727 = vmatpush.bf16.msrb.mxu2 %v9866_v21  ;;  %6716 = vmatpush.bf16.msrb.mxu1 %v9856_v42  ;;  %v5966_v10 = vadd.f32 %v5965_v5, %v2762_v7 }
 0x9f1   :  { %6740 = vmatpush.bf16.msrb.mxu3 %v9874_v46  ;;  %6704 = vmatmul.bf16.vlgmr.msrb.gmra.mxu0 %v6172_v3  ;;  %v5979_v4 = vadd.f32 %v5978_v35, %v5966_v10  ;;  %v9905_v35 = vld [vmem:[%s11884_s11 + $0x1c8] sm:$0xff] }
 0x9f2   :  { %6748 = vmatpush.bf16.msra.mxu0 %v9887_v28  ;;  %6717 = vmatmul.bf16.vlgmr.msrb.gmra.mxu1 %v6173_v36 }
 0x9f3   :  { %6761 = vmatpush.bf16.msra.mxu1 %v9895_v61  ;;  %6728 = vmatpush.bf16.msrb.mxu2 %v9865_v26  ;;  %v6017_v21 = vpop.f32.mrf.mxu0  ;;  %v5992_v47 = vadd.f32 %v5991_v8, %v5979_v4 }
 0x9f5   :  { %6741 = vmatpush.bf16.msrb.mxu3 %v9873_v23  ;;  %v6030_v46 = vpop.f32.mrf.mxu1  ;;  %v6005_v42 = vadd.f32 %v6004_v52, %v5992_v47 }
 0x9f6   :  { %6749 = vmatpush.bf16.msra.mxu0 %v9886_v32  ;;  %v9910_v32 = vld [vmem:[%s11884_s11 + $0x1f0] sm:$0xff] }
 0x9f7   :  { %6762 = vmatpush.bf16.msra.mxu1 %v9894_v19  ;;  %6729 = vmatpush.bf16.msrb.mxu2 %v9864_v55  ;;  %v6018_v63 = vadd.f32 %v6017_v21, %v6005_v42 }
 0x9f9   :  { %6742 = vmatpush.bf16.msrb.mxu3 %v9872_v41  ;;  %v6031_v61 = vadd.f32 %v6030_v46, %v6018_v63 }
 0x9fa   :  { %6730 = vmatmul.bf16.vlgmr.msrb.gmra.mxu2 %v6174_v20  ;;  %6750 = vmatpush.bf16.msra.mxu0 %v9885_v54  ;;  %v9908_v54 = vld [vmem:[%s11884_s11 + $0x1e0] sm:$0xff]  ;;  %v9906_v20 = vld [vmem:[%s11884_s11 + $0x1d0] sm:$0xff] }
 0x9fb   :  { %6774 = vmatpush.bf16.msra.mxu2 %v9903_v45  ;;  %6763 = vmatpush.bf16.msra.mxu1 %v9893_v40  ;;  %v6019_v56 = vpop.f32.mrf.mxu0  ;;  %v9907_v40 = vld [vmem:[%s11884_s11 + $0x1d8] sm:$0xff] }
 0x9fc   :  { %6743 = vmatmul.bf16.vlgmr.msrb.gmra.mxu3 %v6175_v58 }
 0x9fd   :  { %v6032_v28 = vpop.f32.mrf.mxu1  ;;  %6787 = vmatpush.bf16.msra.mxu3 %v9911_v1 }
 0x9fe   :  { %6751 = vmatpush.bf16.msra.mxu0 %v9884_v29  ;;  %v9904_v29 = vld [vmem:[%s11884_s11 + $0x1c0] sm:$0xff]  ;;  %s10493_s11 = smov [#allocation18]  }
 0x9ff   :  { %6775 = vmatpush.bf16.msra.mxu2 %v9902_v48  ;;  %6764 = vmatpush.bf16.msra.mxu1 %v9892_v51  ;;  %s6807_s26 = sshll.u32 %s10493_s11, 4  ;;  %s6808_s26 = int_to_ptr.vmem [resolvable:$true] %s6807_s26 }
 0xa01   :  { %v6043_v26 = vpop.f32.mrf.mxu2  ;;  %6788 = vmatpush.bf16.msra.mxu3 %v9910_v32 }
 0xa02   :  { %6752 = vmatpush.bf16.msra.mxu0 %v9883_v38  ;;  %v6044_v60 = vadd.f32 %v6043_v26, %v6031_v61 }
 0xa03   :  { %6776 = vmatpush.bf16.msra.mxu2 %v9901_v2  ;;  %6765 = vmatpush.bf16.msra.mxu1 %v9891_v12  ;;  %v6056_v23 = vpop.f32.mrf.mxu3  ;;  %v2763_v2 = vperm.slane %v11641_v33, 7  ;;  %v10207_v33 = vld [vmem:[#allocation17] ss:$0 sm:$0xff] }
 0xa04   :  { %v6057_v3 = vadd.f32 %v6056_v23, %v6044_v60 }
 0xa05   :  { %6789 = vmatpush.bf16.msra.mxu3 %v9909_v22 }
 0xa06   :  { %6753 = vmatpush.bf16.msra.mxu0 %v9882_v49  ;;  %v6170_v36 = vmax.f32 %v6057_v3, 0.0 }
 0xa07   :  { %6777 = vmatpush.bf16.msra.mxu2 %v9900_v43  ;;  %6766 = vmatpush.bf16.msra.mxu1 %v9890_v59 }
 0xa08   :  { %v6178_v19 = vpack.c.bf16 %v6170_v36, %v6170_v36 }
 0xa09   :  { %v6045_v55 = vpop.f32.mrf.mxu2  ;;  %6790 = vmatpush.bf16.msra.mxu3 %v9908_v54 }
 0xa0a   :  { %6754 = vmatpush.bf16.msra.mxu0 %v9881_v37 }
 0xa0b   :  { %6778 = vmatpush.bf16.msra.mxu2 %v9899_v27  ;;  %6767 = vmatpush.bf16.msra.mxu1 %v9889_v16  ;;  %v6058_v41 = vpop.f32.mrf.mxu3 }
 0xa0d   :  { %6791 = vmatpush.bf16.msra.mxu3 %v9907_v40 }
 0xa0e   :  { %6755 = vmatpush.bf16.msra.mxu0 %v9880_v9 }
 0xa0f   :  { %6779 = vmatpush.bf16.msra.mxu2 %v9898_v14  ;;  %6768 = vmatpush.bf16.msra.mxu1 %v9888_v13 }
 0xa11   :  { %6756 = vmatmul.bf16.vlgmr.msra.gmra.mxu0 %v6176_v31  ;;  %6792 = vmatpush.bf16.msra.mxu3 %v9906_v20 }
 0xa12   :  { %6769 = vmatmul.bf16.vlgmr.msra.gmra.mxu1 %v6177_v18 }
 0xa13   :  { %6780 = vmatpush.bf16.msra.mxu2 %v9897_v17  ;;  %v6069_v57 = vpop.f32.mrf.mxu0 }
 0xa14   :  { %v6070_v39 = vadd.f32 %v6069_v57, %v2763_v2 }
 0xa15   :  { %v6082_v45 = vpop.f32.mrf.mxu1  ;;  %6793 = vmatpush.bf16.msra.mxu3 %v9905_v35 }
 0xa16   :  { %v6083_v38 = vadd.f32 %v6082_v45, %v6070_v39 }
 0xa17   :  { %6781 = vmatpush.bf16.msra.mxu2 %v9896_v50 }
 0xa19   :  { %6794 = vmatpush.bf16.msra.mxu3 %v9904_v29 }
 0xa1a   :  { %6782 = vmatmul.bf16.vlgmr.msra.gmra.mxu2 %v6178_v19 }
 0xa1b   :  { %v6071_v58 = vpop.f32.mrf.mxu0 }
 0xa1d   :  { %v6084_v34 = vpop.f32.mrf.mxu1 }
 0xa23   :  { %v6095_v48 = vpop.f32.mrf.mxu2 }
 0xa24   :  { %v6096_v53 = vadd.f32 %v6095_v48, %v6083_v38 }
 0xa25   :  { %v6108_v5 = vpop.f32.mrf.mxu3 }
 0xa26   :  { %v6109_v11 = vadd.f32 %v6108_v5, %v6096_v53 }
 0xa2b   :  { %v6097_v51 = vpop.f32.mrf.mxu2 }
 0xa2d   :  { %v6110_v30 = vpop.f32.mrf.mxu3 }
 0xa4d   :  { %v6121_v12 = vpop.f32.mrf.mxu0 }
 0xa4e   :  { %v6122_v44 = vadd.f32 %v6121_v12, %v6109_v11 }
 0xa4f   :  { %v6134_v43 = vpop.f32.mrf.mxu1 }
 0xa50   :  { %v6135_v6 = vadd.f32 %v6134_v43, %v6122_v44 }
 0xa55   :  { %v6123_v49 = vpop.f32.mrf.mxu0 }
 0xa57   :  { %v6136_v59 = vpop.f32.mrf.mxu1 }
 0xa5d   :  { %v6147_v27 = vpop.f32.mrf.mxu2 }
 0xa5e   :  { %v6148_v52 = vadd.f32 %v6147_v27, %v6135_v6 }
 0xa5f   :  { %v6160_v8 = vpop.f32.mrf.mxu3 }
 0xa60   :  { %v6161_v37 = vadd.f32 %v6160_v8, %v6148_v52 }
 0xa62   :  { %v6171_v16 = vmax.f32 %v6161_v37, 0.0 }
 0xa64   :  { %v6179_v24 = vpack.c.bf16 %v6171_v16, %v6171_v16 }
 0xa65   :  { %v6149_v14 = vpop.f32.mrf.mxu2 }
 0xa66   :  { %6795 = vmatmul.bf16.vlgmr.msra.gmra.mxu3 %v6179_v24 }
 0xa67   :  { %v6162_v9 = vpop.f32.mrf.mxu3 }
 0xa6e   :  { %v6705_v13 = vpop.f32.mrf.mxu0 }
 0xa6f   :  { %v6718_v25 = vpop.f32.mrf.mxu1  ;;  %v6706_v62 = vadd.f32 %v10207_v33, %v6705_v13 }
 0xa71   :  { %v6719_v17 = vadd.f32 %v6718_v25, %v6706_v62 }
 0xa76   :  { %v6707_v0 = vpop.f32.mrf.mxu0 }
 0xa77   :  { %v6720_v15 = vpop.f32.mrf.mxu1 }
 0xa7d   :  { %v6731_v7 = vpop.f32.mrf.mxu2 }
 0xa7e   :  { %v6732_v18 = vadd.f32 %v6731_v7, %v6719_v17 }
 0xa7f   :  { %v6744_v31 = vpop.f32.mrf.mxu3 }
 0xa80   :  { %v6745_v50 = vadd.f32 %v6744_v31, %v6732_v18 }
 0xa85   :  { %v6733_v10 = vpop.f32.mrf.mxu2 }
 0xa87   :  { %v6746_v4 = vpop.f32.mrf.mxu3 }
 0xa8e   :  { %v6757_v21 = vpop.f32.mrf.mxu0 }
 0xa8f   :  { %v6770_v46 = vpop.f32.mrf.mxu1  ;;  %v6758_v47 = vadd.f32 %v6757_v21, %v6745_v50 }
 0xa91   :  { %v6771_v42 = vadd.f32 %v6770_v46, %v6758_v47 }
 0xa96   :  { %v6759_v63 = vpop.f32.mrf.mxu0 }
 0xa97   :  { %v6772_v56 = vpop.f32.mrf.mxu1 }
 0xa9d   :  { %v6783_v28 = vpop.f32.mrf.mxu2 }
 0xa9e   :  { %v6784_v26 = vadd.f32 %v6783_v28, %v6771_v42 }
 0xaa5   :  { %v6785_v61 = vpop.f32.mrf.mxu2 }
 0xae9   :  { %v6796_v23 = vpop.f32.mrf.mxu3 }
 0xaea   :  { %v6797_v60 = vadd.f32 %v6796_v23, %v6784_v26 }
 0xaec   :  { %6801 = vst.msk [vmem:[#allocation18] sm:$0x3] %vm6800_vm3, %v6797_v60 }
 0xaed   :  { %6812 = dma.vmem_to_hbm [thread:$0]  %s6808_s26, 32, %s6810_s27, [#allocation5]  }
 0xaf1   :  { %v6798_v1 = vpop.f32.mrf.mxu3 }
 0xaf2   :  { %10460 = dma.done.wait [#allocation5], 32  }
 0xaf3   :  { %10461 = vsyncadd [#allocation5], 4294967264 }
 0xaf4   :  { %6817 = vsyncpa [#allocation4], 1 }
 0xaf5   :  { %6818 = vsyncpa [#allocation7], 1 }
 0xaf6   :  { %6819 = vsyncpa [#allocation10], 1 }
 0xaf7   :  { %6820 = vsyncpa [#allocation13], 1 }
 0xaf8   :  { %6821 = vsyncpa [#allocation16], 1 }
 0xaf9   :  { %6822 = vsyncpa [#allocation5], 1 }

</bundles_post_ra>
